<compile_context>
chip_gen: v7x
topology: tpu7x:2x2x1
jax: 0.10.0
libtpu: 0.0.40
codegen_flags: <defaults>
</compile_context>

<pallas_src>
import collections

import jax
import jax.numpy as jnp
from jax.experimental import pallas as pl
from jax.experimental.pallas import tpu as pltpu

SENSOR_SIZE = (64, 32)      # (W, H) — scaled-down analogue of (256, 160)
INPUT_CHANNELS = 6
FEATURE_DIM = 128           # scaled-down analogue of 512

# (out_channels, kernel, stride, padding) for the three conv layers.
CONV_DEFS = ((32, 8, 4, 2), (64, 4, 2, 1), (64, 3, 1, 1))

LayerGeom = collections.namedtuple(
    "LayerGeom", ["cin", "cout", "k", "st", "pad", "h", "w", "ho", "wo"])


def _round_up(x, m):
    return (x + m - 1) // m * m


def _conv_out(s, k, st, p):
    return (s + 2 * p - k) // st + 1


def _conv_geometry(h0, w0, c0):
    layers = []
    h, w, cin = h0, w0, c0
    for (cout, k, st, pad) in CONV_DEFS:
        ho, wo = _conv_out(h, k, st, pad), _conv_out(w, k, st, pad)
        layers.append(LayerGeom(cin, cout, k, st, pad, h, w, ho, wo))
        h, w, cin = ho, wo, cout
    return layers


# ---------------------------------------------------------------------------
# Fused conv stack: conv1+relu -> conv2+relu -> conv3+relu, one kernel.
# ---------------------------------------------------------------------------
def _make_conv_stack_kernel(layers):
    l1, l2, l3 = layers
    # In-kernel (ho, wo, c) <-> (ho*wo, c) reshapes stay tile-aligned (f32
    # sublane tile = 8) for the demo and the real sensor size.
    for L in layers:
        assert L.wo % 8 == 0, "output width per layer must be a multiple of 8"

    def conv_layer(y, w_ref, b_ref, xp_ref, L):
        hp, wp = L.h + 2 * L.pad, L.w + 2 * L.pad
        # In-kernel zero padding: the padded tensor never touches HBM.
        xp_ref[...] = jnp.zeros((hp, wp, L.cin), jnp.float32)
        xp_ref[pl.ds(L.pad, L.h), pl.ds(L.pad, L.w), :] = y
        # Direct convolution: one small MXU matmul per kernel tap, accumulated
        # in f32.  Patch rows are (strided) VMEM slices — no im2col patch
        # tensor is ever materialized in HBM.
        acc = jnp.zeros((L.ho * L.wo, L.cout), jnp.float32)
        for i in range(L.k):
            for j in range(L.k):
                if L.st == 1:
                    sl = xp_ref[pl.ds(i, L.ho), pl.ds(j, L.wo), :]
                else:
                    sl = xp_ref[pl.ds(i, L.ho, stride=L.st),
                                pl.ds(j, L.wo, stride=L.st), :]
                t = i * L.k + j
                acc += jnp.dot(sl.reshape(L.ho * L.wo, L.cin),
                               w_ref[pl.ds(t * L.cin, L.cin), :],
                               preferred_element_type=jnp.float32)
        return jnp.maximum(acc + b_ref[...], 0.0)          # (ho*wo, cout) f32

    def kernel(x_ref, w1_ref, b1_ref, w2_ref, b2_ref, w3_ref, b3_ref,
               o_ref, xp1_ref, xp2_ref, xp3_ref):
        y = x_ref[...]                                      # (H0, W0, C0) f32
        y = conv_layer(y, w1_ref, b1_ref, xp1_ref, l1)
        y = y.reshape(l1.ho, l1.wo, l1.cout)
        y = conv_layer(y, w2_ref, b2_ref, xp2_ref, l2)
        y = y.reshape(l2.ho, l2.wo, l2.cout)
        y = conv_layer(y, w3_ref, b3_ref, xp3_ref, l3)      # (H3*W3, 64)
        # Features stay flattened in (h, w, c) order; the FC weight rows are
        # permuted once at init to match, so no per-forward transpose.
        o_ref[...] = y.astype(o_ref.dtype)

    return kernel


def conv_stack(x_nhwc, w1, b1, w2, b2, w3, b3):
    """Fused conv stack; returns (N, H3*W3, C3) bf16 features (h, w, c order)."""
    n, h0, w0, c0 = x_nhwc.shape
    layers = _conv_geometry(h0, w0, c0)
    l3 = layers[-1]
    out_rows, out_c = l3.ho * l3.wo, l3.cout

    flops = 2 * n * sum(L.ho * L.wo * L.k * L.k * L.cin * L.cout for L in layers)
    bytes_accessed = int(
        4 * n * h0 * w0 * c0
        + sum(4 * (L.k * L.k * L.cin + 1) * L.cout for L in layers)
        + 2 * n * out_rows * out_c)

    scratch = [pltpu.VMEM((L.h + 2 * L.pad, L.w + 2 * L.pad, L.cin), jnp.float32)
               for L in layers]

    grid_spec = pltpu.PrefetchScalarGridSpec(
        num_scalar_prefetch=0,
        grid=(n,),
        in_specs=[
            pl.BlockSpec((None, h0, w0, c0), lambda b: (b, 0, 0, 0)),
            pl.BlockSpec(w1.shape, lambda b: (0, 0)),
            pl.BlockSpec(b1.shape, lambda b: (0, 0)),
            pl.BlockSpec(w2.shape, lambda b: (0, 0)),
            pl.BlockSpec(b2.shape, lambda b: (0, 0)),
            pl.BlockSpec(w3.shape, lambda b: (0, 0)),
            pl.BlockSpec(b3.shape, lambda b: (0, 0)),
        ],
        out_specs=pl.BlockSpec((None, out_rows, out_c), lambda b: (b, 0, 0)),
        scratch_shapes=scratch,
    )
    return pl.pallas_call(
        _make_conv_stack_kernel(layers),
        out_shape=jax.ShapeDtypeStruct((n, out_rows, out_c), jnp.bfloat16),
        grid_spec=grid_spec,
        compiler_params=pltpu.CompilerParams(
            dimension_semantics=("parallel",)),
        cost_estimate=pl.CostEstimate(flops=flops, transcendentals=0,
                                      bytes_accessed=bytes_accessed),
    )(x_nhwc, w1, b1, w2, b2, w3, b3)


# ---------------------------------------------------------------------------
# Fused matmul + bias + ReLU kernels (FC layer)
# ---------------------------------------------------------------------------
def _mm_bias_relu_1pass_kernel(x_ref, w_ref, b_ref, o_ref):
    # Full reduction in a single block: no k grid axis, no accumulator scratch.
    acc = jnp.dot(x_ref[...], w_ref[...], preferred_element_type=jnp.float32)
    o_ref[...] = jnp.maximum(acc + b_ref[...], 0.0).astype(o_ref.dtype)


def _mm_bias_relu_kloop_kernel(x_ref, w_ref, b_ref, o_ref, acc_ref):
    k = pl.program_id(2)

    @pl.when(k == 0)
    def _init():
        acc_ref[...] = jnp.zeros_like(acc_ref)

    acc_ref[...] += jnp.dot(x_ref[...], w_ref[...],
                            preferred_element_type=jnp.float32)

    @pl.when(k == pl.num_programs(2) - 1)
    def _finalize():
        o_ref[...] = jnp.maximum(acc_ref[...] + b_ref[...], 0.0).astype(o_ref.dtype)


def matmul_bias_relu(x, w, b, *, out_dtype=None,
                     tm_max=256, tn_max=256, tk_max=4096):
    """relu(x @ w + b) with x:(M,K), w:(K,N), b:(N,). f32 accumulation on MXU."""
    M, K = x.shape
    Kw, N = w.shape
    assert K == Kw
    out_dtype = out_dtype if out_dtype is not None else x.dtype

    tm = min(tm_max, _round_up(M, 16))
    Mp = _round_up(M, tm)
    Np = _round_up(N, 128)
    tn = tn_max if (tn_max <= Np and Np % tn_max == 0) else 128

    xp = x if Mp == M else jnp.pad(x, ((0, Mp - M), (0, 0)))
    wp = w if Np == N else jnp.pad(w, ((0, 0), (0, Np - N)))
    bp = jnp.pad(b.astype(jnp.float32).reshape(1, N), ((0, 0), (0, Np - N)))

    cost = pl.CostEstimate(
        flops=2 * M * K * N, transcendentals=0,
        bytes_accessed=int(M * K * x.dtype.itemsize + K * N * w.dtype.itemsize
                           + N * 4 + M * N * 4))

    if K <= tk_max:
        # Single pass: block spans the full K dim, no K padding / scratch.
        out = pl.pallas_call(
            _mm_bias_relu_1pass_kernel,
            out_shape=jax.ShapeDtypeStruct((Mp, Np), out_dtype),
            grid_spec=pltpu.PrefetchScalarGridSpec(
                num_scalar_prefetch=0,
                grid=(Mp // tm, Np // tn),
                in_specs=[
                    pl.BlockSpec((tm, K), lambda i, j: (i, 0)),
                    pl.BlockSpec((K, tn), lambda i, j: (0, j)),
                    pl.BlockSpec((1, tn), lambda i, j: (0, j)),
                ],
                out_specs=pl.BlockSpec((tm, tn), lambda i, j: (i, j)),
            ),
            compiler_params=pltpu.CompilerParams(
                dimension_semantics=("parallel", "parallel")),
            cost_estimate=cost,
        )(xp, wp, bp)
    else:
        # Large-K path (real-scale FC, K~40960): coarse k blocks + f32
        # accumulator.  NOTE: on v7x tk can be raised to 8192 (fits the 32 MiB
        # scoped VMEM default); keep 4096 on v5e (16 MiB default).
        tk = tk_max
        Kp = _round_up(K, tk)
        if Kp != K:
            xp = jnp.pad(xp, ((0, 0), (0, Kp - K)))
            wp = jnp.pad(wp, ((0, Kp - K), (0, 0)))
        out = pl.pallas_call(
            _mm_bias_relu_kloop_kernel,
            out_shape=jax.ShapeDtypeStruct((Mp, Np), out_dtype),
            grid_spec=pltpu.PrefetchScalarGridSpec(
                num_scalar_prefetch=0,
                grid=(Mp // tm, Np // tn, Kp // tk),
                in_specs=[
                    pl.BlockSpec((tm, tk), lambda i, j, k: (i, k)),
                    pl.BlockSpec((tk, tn), lambda i, j, k: (k, j)),
                    pl.BlockSpec((1, tn), lambda i, j, k: (0, j)),
                ],
                out_specs=pl.BlockSpec((tm, tn), lambda i, j, k: (i, j)),
                scratch_shapes=[pltpu.VMEM((tm, tn), jnp.float32)],
            ),
            compiler_params=pltpu.CompilerParams(
                dimension_semantics=("parallel", "parallel", "arbitrary")),
            cost_estimate=cost,
        )(xp, wp, bp)

    if Mp == M and Np == N:
        return out
    return out[:M, :N]


# ---------------------------------------------------------------------------
# Parameter init (deterministic, synthetic; weights pre-laid-out once)
# ---------------------------------------------------------------------------
def _torch_conv_w_to_matmul(w_oikk):
    # PyTorch (O, I, kh, kw) -> (kh*kw*I, O), matching the in-kernel tap order.
    o, i, kh, kw = w_oikk.shape
    return jnp.transpose(w_oikk, (2, 3, 1, 0)).reshape(kh * kw * i, o)


def init_params(key, input_channels=INPUT_CHANNELS, feature_dim=FEATURE_DIM):
    w0, h0 = SENSOR_SIZE
    layers = _conv_geometry(h0, w0, input_channels)
    l3 = layers[-1]
    conv_output_size = l3.cout * l3.ho * l3.wo

    ks = jax.random.split(key, 8)
    w1t = jax.random.normal(ks[0], (32, input_channels, 8, 8), jnp.float32) * 0.05
    w2t = jax.random.normal(ks[2], (64, 32, 4, 4), jnp.float32) * 0.05
    w3t = jax.random.normal(ks[4], (64, 64, 3, 3), jnp.float32) * 0.05
    # PyTorch Linear weight is (out, in) with `in` in NCHW-flatten (c, h, w)
    # order.  The fused conv kernel emits features flattened in (h, w, c)
    # order, so permute the `in` axis once at init and store the transpose
    # (in, out) -> no per-forward flatten transpose or HBM weight transpose.
    wfc = jax.random.normal(ks[6], (feature_dim, conv_output_size), jnp.float32) * 0.02
    wfc_hwc = jnp.transpose(
        wfc.reshape(feature_dim, l3.cout, l3.ho, l3.wo), (0, 2, 3, 1)
    ).reshape(feature_dim, conv_output_size)

    params = {
        "w1m": _torch_conv_w_to_matmul(w1t),                                 # (384, 32)
        "b1": (jax.random.normal(ks[1], (32,), jnp.float32) * 0.01).reshape(1, 32),
        "w2m": _torch_conv_w_to_matmul(w2t),                                 # (512, 64)
        "b2": (jax.random.normal(ks[3], (64,), jnp.float32) * 0.01).reshape(1, 64),
        "w3m": _torch_conv_w_to_matmul(w3t),                                 # (576, 64)
        "b3": (jax.random.normal(ks[5], (64,), jnp.float32) * 0.01).reshape(1, 64),
        "wfc_t": wfc_hwc.T.astype(jnp.bfloat16),                             # (in, out)
        "bfc": jax.random.normal(ks[7], (feature_dim,), jnp.float32) * 0.01,
    }
    return params, conv_output_size


# ---------------------------------------------------------------------------
# Forward pass
# ---------------------------------------------------------------------------
def cnn_feature_extractor(params, x_nchw):
    # TODO(synk): the NCHW->NHWC transpose of the (tiny) network input and the
    # (N, H*W, C)->(N, K) flatten stay as XLA glue; everything else runs in
    # two Pallas kernels.
    x = jnp.transpose(x_nchw, (0, 2, 3, 1))                      # NHWC f32
    feats = conv_stack(x, params["w1m"], params["b1"], params["w2m"],
                       params["b2"], params["w3m"], params["b3"])
    flat = feats.reshape(feats.shape[0], -1)                     # (N, H3*W3*C3)
    # FC + ReLU on bf16 activations/weights, f32 accumulation and f32 output.
    return matmul_bias_relu(flat, params["wfc_t"], params["bfc"],
                            out_dtype=jnp.float32, tn_max=256, tk_max=4096)


if __name__ == "__main__":
    key = jax.random.PRNGKey(0)
    kx, kp = jax.random.split(key)
    n, c = 2, INPUT_CHANNELS
    h, w = SENSOR_SIZE[1], SENSOR_SIZE[0]

    x = jax.random.normal(kx, (n, c, h, w), dtype=jnp.float32)
    params, conv_output_size = init_params(kp)
    assert conv_output_size == 64 * 4 * 8, conv_output_size

    fwd = jax.jit(cnn_feature_extractor)
    out = jax.block_until_ready(fwd(params, x))

    assert out.shape == (n, FEATURE_DIM), out.shape
    assert out.dtype == jnp.float32
    assert bool(jnp.all(jnp.isfinite(out)))
    assert bool(jnp.all(out >= 0.0))  # final ReLU
    print("KERNEL_OK")
</pallas_src>

<mosaic_0001>
module attributes {stable_mosaic.version = 11 : i64} {
  func.func @_mm_bias_relu_1pass_kernel(%arg0: i32, %arg1: i32, %arg2: memref<16x2048xbf16, #tpu.memory_space<vmem>>, %arg3: memref<2048x128xbf16, #tpu.memory_space<vmem>>, %arg4: memref<1x128xf32, #tpu.memory_space<vmem>>, %arg5: memref<16x128xf32, #tpu.memory_space<vmem>>) attributes {dimension_semantics = [#tpu.dimension_semantics<parallel>, #tpu.dimension_semantics<parallel>], iteration_bounds = array<i64: 1, 1>, scalar_prefetch = 0 : i64, scratch_operands = 0 : i64, tpu.core_type = #tpu.core_type<tc>, window_params = [{transform_indices = @transform_0, window_bounds = array<i64: 16, 2048>}, {transform_indices = @transform_1, window_bounds = array<i64: 2048, 128>}, {transform_indices = @transform_2, window_bounds = array<i64: 1, 128>}, {transform_indices = @transform_3, window_bounds = array<i64: 16, 128>}]} {
    %c0 = arith.constant 0 : index
    %c0_0 = arith.constant 0 : index
    %0 = vector.load %arg2[%c0, %c0_0] : memref<16x2048xbf16, #tpu.memory_space<vmem>>, vector<16x2048xbf16>
    %c0_1 = arith.constant 0 : index
    %c0_2 = arith.constant 0 : index
    %1 = vector.load %arg3[%c0_1, %c0_2] : memref<2048x128xbf16, #tpu.memory_space<vmem>>, vector<2048x128xbf16>
    %cst = arith.constant dense<0.000000e+00> : vector<16x128xf32>
    %2 = tpu.matmul %0, %1, %cst {dimension_numbers = #tpu.dot_dimension_numbers<[1], [0], [0], [1], [0, 0, 1, 1], [], []>} : vector<16x2048xbf16>, vector<2048x128xbf16>, vector<16x128xf32> -> vector<16x128xf32>
    %c0_3 = arith.constant 0 : index
    %c0_4 = arith.constant 0 : index
    %3 = vector.load %arg4[%c0_3, %c0_4] : memref<1x128xf32, #tpu.memory_space<vmem>>, vector<1x128xf32>
    %4 = vector.broadcast %3 : vector<1x128xf32> to vector<16x128xf32>
    %5 = arith.addf %2, %4 : vector<16x128xf32>
    %cst_5 = arith.constant 0.000000e+00 : f32
    %6 = vector.broadcast %cst_5 : f32 to vector<16x128xf32>
    %7 = arith.maximumf %5, %6 : vector<16x128xf32>
    %c0_6 = arith.constant 0 : index
    %c0_7 = arith.constant 0 : index
    %8 = vector.load %arg5[%c0_6, %c0_7] : memref<16x128xf32, #tpu.memory_space<vmem>>, vector<16x128xf32>
    tpu.vector_store %arg5[%c0_6, %c0_7], %7 {strides = array<i32>} : memref<16x128xf32, #tpu.memory_space<vmem>>, vector<16x128xf32>,
    return
  }
  func.func @transform_0(%arg0: i32, %arg1: i32) -> (i32, i32) {
    %c0_i32 = arith.constant 0 : i32
    %c0_i32_0 = arith.constant 0 : i32
    return %arg0, %c0_i32 : i32, i32
  }
  func.func @transform_1(%arg0: i32, %arg1: i32) -> (i32, i32) {
    %c0_i32 = arith.constant 0 : i32
    %c0_i32_0 = arith.constant 0 : i32
    return %c0_i32, %arg1 : i32, i32
  }
  func.func @transform_2(%arg0: i32, %arg1: i32) -> (i32, i32) {
    %c0_i32 = arith.constant 0 : i32
    %c0_i32_0 = arith.constant 0 : i32
    return %c0_i32, %arg1 : i32, i32
  }
  func.func @transform_3(%arg0: i32, %arg1: i32) -> (i32, i32) {
    %c0_i32 = arith.constant 0 : i32
    return %arg0, %arg1 : i32, i32
  }
}

module attributes {stable_mosaic.version = 11 : i64} {
  func.func @kernel(%arg0: i32, %arg1: memref<1x32x64x6xf32, #tpu.memory_space<vmem>>, %arg2: memref<384x32xf32, #tpu.memory_space<vmem>>, %arg3: memref<1x32xf32, #tpu.memory_space<vmem>>, %arg4: memref<512x64xf32, #tpu.memory_space<vmem>>, %arg5: memref<1x64xf32, #tpu.memory_space<vmem>>, %arg6: memref<576x64xf32, #tpu.memory_space<vmem>>, %arg7: memref<1x64xf32, #tpu.memory_space<vmem>>, %arg8: memref<1x32x64xbf16, #tpu.memory_space<vmem>>, %arg9: memref<36x68x6xf32, #tpu.memory_space<vmem>>, %arg10: memref<10x18x32xf32, #tpu.memory_space<vmem>>, %arg11: memref<6x10x64xf32, #tpu.memory_space<vmem>>) attributes {dimension_semantics = [#tpu.dimension_semantics<parallel>], iteration_bounds = array<i64: 2>, scalar_prefetch = 0 : i64, scratch_operands = 3 : i64, tpu.core_type = #tpu.core_type<tc>, window_params = [{transform_indices = @transform_0, window_bounds = array<i64: 1, 32, 64, 6>}, {pipeline_mode = #tpu.pipeline_mode<synchronous>, transform_indices = @transform_1, window_bounds = array<i64: 384, 32>}, {pipeline_mode = #tpu.pipeline_mode<synchronous>, transform_indices = @transform_2, window_bounds = array<i64: 1, 32>}, {pipeline_mode = #tpu.pipeline_mode<synchronous>, transform_indices = @transform_3, window_bounds = array<i64: 512, 64>}, {pipeline_mode = #tpu.pipeline_mode<synchronous>, transform_indices = @transform_4, window_bounds = array<i64: 1, 64>}, {pipeline_mode = #tpu.pipeline_mode<synchronous>, transform_indices = @transform_5, window_bounds = array<i64: 576, 64>}, {pipeline_mode = #tpu.pipeline_mode<synchronous>, transform_indices = @transform_6, window_bounds = array<i64: 1, 64>}, {transform_indices = @transform_7, window_bounds = array<i64: 1, 32, 64>}]} {
    %c0 = arith.constant 0 : index
    %c0_0 = arith.constant 0 : index
    %c0_1 = arith.constant 0 : index
    %c0_2 = arith.constant 0 : index
    %0 = vector.load %arg1[%c0, %c0_0, %c0_1, %c0_2] : memref<1x32x64x6xf32, #tpu.memory_space<vmem>>, vector<1x32x64x6xf32>
    %1 = vector.shape_cast %0 : vector<1x32x64x6xf32> to vector<32x64x6xf32>
    %cst = arith.constant 0.000000e+00 : f32
    %2 = vector.broadcast %cst : f32 to vector<36x68x6xf32>
    %c0_3 = arith.constant 0 : index
    %c0_4 = arith.constant 0 : index
    %c0_5 = arith.constant 0 : index
    %3 = vector.load %arg9[%c0_3, %c0_4, %c0_5] : memref<36x68x6xf32, #tpu.memory_space<vmem>>, vector<36x68x6xf32>
    tpu.vector_store %arg9[%c0_3, %c0_4, %c0_5], %2 {strides = array<i32>} : memref<36x68x6xf32, #tpu.memory_space<vmem>>, vector<36x68x6xf32>,
    %c2 = arith.constant 2 : index
    %c2_6 = arith.constant 2 : index
    %c0_7 = arith.constant 0 : index
    %4 = vector.load %arg9[%c2, %c2_6, %c0_7] : memref<36x68x6xf32, #tpu.memory_space<vmem>>, vector<32x64x6xf32>
    tpu.vector_store %arg9[%c2, %c2_6, %c0_7], %1 {strides = array<i32>} : memref<36x68x6xf32, #tpu.memory_space<vmem>>, vector<32x64x6xf32>,
    %cst_8 = arith.constant 0.000000e+00 : f32
    %5 = vector.broadcast %cst_8 : f32 to vector<128x32xf32>
    %c0_9 = arith.constant 0 : index
    %c0_10 = arith.constant 0 : index
    %c0_11 = arith.constant 0 : index
    %6 = tpu.strided_load %arg9[%c0_9, %c0_10, %c0_11] {strides = array<i32: 4, 4, 1>} : memref<36x68x6xf32, #tpu.memory_space<vmem>>, vector<8x16x6xf32>
    %7 = vector.shape_cast %6 : vector<8x16x6xf32> to vector<128x6xf32>
    %c0_12 = arith.constant 0 : index
    %c0_13 = arith.constant 0 : index
    %8 = vector.load %arg2[%c0_12, %c0_13] : memref<384x32xf32, #tpu.memory_space<vmem>>, vector<6x32xf32>
    %cst_14 = arith.constant dense<0.000000e+00> : vector<128x32xf32>
    %9 = tpu.matmul %7, %8, %cst_14 {dimension_numbers = #tpu.dot_dimension_numbers<[1], [0], [0], [1], [0, 0, 1, 1], [], []>} : vector<128x6xf32>, vector<6x32xf32>, vector<128x32xf32> -> vector<128x32xf32>
    %10 = arith.addf %5, %9 : vector<128x32xf32>
    %c0_15 = arith.constant 0 : index
    %c1 = arith.constant 1 : index
    %c0_16 = arith.constant 0 : index
    %11 = tpu.strided_load %arg9[%c0_15, %c1, %c0_16] {strides = array<i32: 4, 4, 1>} : memref<36x68x6xf32, #tpu.memory_space<vmem>>, vector<8x16x6xf32>
    %12 = vector.shape_cast %11 : vector<8x16x6xf32> to vector<128x6xf32>
    %c6 = arith.constant 6 : index
    %c0_17 = arith.constant 0 : index
    %13 = vector.load %arg2[%c6, %c0_17] : memref<384x32xf32, #tpu.memory_space<vmem>>, vector<6x32xf32>
    %cst_18 = arith.constant dense<0.000000e+00> : vector<128x32xf32>
    %14 = tpu.matmul %12, %13, %cst_18 {dimension_numbers = #tpu.dot_dimension_numbers<[1], [0], [0], [1], [0, 0, 1, 1], [], []>} : vector<128x6xf32>, vector<6x32xf32>, vector<128x32xf32> -> vector<128x32xf32>
    %15 = arith.addf %10, %14 : vector<128x32xf32>
    %c0_19 = arith.constant 0 : index
    %c2_20 = arith.constant 2 : index
    %c0_21 = arith.constant 0 : index
    %16 = tpu.strided_load %arg9[%c0_19, %c2_20, %c0_21] {strides = array<i32: 4, 4, 1>} : memref<36x68x6xf32, #tpu.memory_space<vmem>>, vector<8x16x6xf32>
    %17 = vector.shape_cast %16 : vector<8x16x6xf32> to vector<128x6xf32>
    %c12 = arith.constant 12 : index
    %c0_22 = arith.constant 0 : index
    %18 = vector.load %arg2[%c12, %c0_22] : memref<384x32xf32, #tpu.memory_space<vmem>>, vector<6x32xf32>
    %cst_23 = arith.constant dense<0.000000e+00> : vector<128x32xf32>
    %19 = tpu.matmul %17, %18, %cst_23 {dimension_numbers = #tpu.dot_dimension_numbers<[1], [0], [0], [1], [0, 0, 1, 1], [], []>} : vector<128x6xf32>, vector<6x32xf32>, vector<128x32xf32> -> vector<128x32xf32>
    %20 = arith.addf %15, %19 : vector<128x32xf32>
    %c0_24 = arith.constant 0 : index
    %c3 = arith.constant 3 : index
    %c0_25 = arith.constant 0 : index
    %21 = tpu.strided_load %arg9[%c0_24, %c3, %c0_25] {strides = array<i32: 4, 4, 1>} : memref<36x68x6xf32, #tpu.memory_space<vmem>>, vector<8x16x6xf32>
    %22 = vector.shape_cast %21 : vector<8x16x6xf32> to vector<128x6xf32>
    %c18 = arith.constant 18 : index
    %c0_26 = arith.constant 0 : index
    %23 = vector.load %arg2[%c18, %c0_26] : memref<384x32xf32, #tpu.memory_space<vmem>>, vector<6x32xf32>
    %cst_27 = arith.constant dense<0.000000e+00> : vector<128x32xf32>
    %24 = tpu.matmul %22, %23, %cst_27 {dimension_numbers = #tpu.dot_dimension_numbers<[1], [0], [0], [1], [0, 0, 1, 1], [], []>} : vector<128x6xf32>, vector<6x32xf32>, vector<128x32xf32> -> vector<128x32xf32>
    %25 = arith.addf %20, %24 : vector<128x32xf32>
    %c0_28 = arith.constant 0 : index
    %c4 = arith.constant 4 : index
    %c0_29 = arith.constant 0 : index
    %26 = tpu.strided_load %arg9[%c0_28, %c4, %c0_29] {strides = array<i32: 4, 4, 1>} : memref<36x68x6xf32, #tpu.memory_space<vmem>>, vector<8x16x6xf32>
    %27 = vector.shape_cast %26 : vector<8x16x6xf32> to vector<128x6xf32>
    %c24 = arith.constant 24 : index
    %c0_30 = arith.constant 0 : index
    %28 = vector.load %arg2[%c24, %c0_30] : memref<384x32xf32, #tpu.memory_space<vmem>>, vector<6x32xf32>
    %cst_31 = arith.constant dense<0.000000e+00> : vector<128x32xf32>
    %29 = tpu.matmul %27, %28, %cst_31 {dimension_numbers = #tpu.dot_dimension_numbers<[1], [0], [0], [1], [0, 0, 1, 1], [], []>} : vector<128x6xf32>, vector<6x32xf32>, vector<128x32xf32> -> vector<128x32xf32>
    %30 = arith.addf %25, %29 : vector<128x32xf32>
    %c0_32 = arith.constant 0 : index
    %c5 = arith.constant 5 : index
    %c0_33 = arith.constant 0 : index
    %31 = tpu.strided_load %arg9[%c0_32, %c5, %c0_33] {strides = array<i32: 4, 4, 1>} : memref<36x68x6xf32, #tpu.memory_space<vmem>>, vector<8x16x6xf32>
    %32 = vector.shape_cast %31 : vector<8x16x6xf32> to vector<128x6xf32>
    %c30 = arith.constant 30 : index
    %c0_34 = arith.constant 0 : index
    %33 = vector.load %arg2[%c30, %c0_34] : memref<384x32xf32, #tpu.memory_space<vmem>>, vector<6x32xf32>
    %cst_35 = arith.constant dense<0.000000e+00> : vector<128x32xf32>
    %34 = tpu.matmul %32, %33, %cst_35 {dimension_numbers = #tpu.dot_dimension_numbers<[1], [0], [0], [1], [0, 0, 1, 1], [], []>} : vector<128x6xf32>, vector<6x32xf32>, vector<128x32xf32> -> vector<128x32xf32>
    %35 = arith.addf %30, %34 : vector<128x32xf32>
    %c0_36 = arith.constant 0 : index
    %c6_37 = arith.constant 6 : index
    %c0_38 = arith.constant 0 : index
    %36 = tpu.strided_load %arg9[%c0_36, %c6_37, %c0_38] {strides = array<i32: 4, 4, 1>} : memref<36x68x6xf32, #tpu.memory_space<vmem>>, vector<8x16x6xf32>
    %37 = vector.shape_cast %36 : vector<8x16x6xf32> to vector<128x6xf32>
    %c36 = arith.constant 36 : index
    %c0_39 = arith.constant 0 : index
    %38 = vector.load %arg2[%c36, %c0_39] : memref<384x32xf32, #tpu.memory_space<vmem>>, vector<6x32xf32>
    %cst_40 = arith.constant dense<0.000000e+00> : vector<128x32xf32>
    %39 = tpu.matmul %37, %38, %cst_40 {dimension_numbers = #tpu.dot_dimension_numbers<[1], [0], [0], [1], [0, 0, 1, 1], [], []>} : vector<128x6xf32>, vector<6x32xf32>, vector<128x32xf32> -> vector<128x32xf32>
    %40 = arith.addf %35, %39 : vector<128x32xf32>
    %c0_41 = arith.constant 0 : index
    %c7 = arith.constant 7 : index
    %c0_42 = arith.constant 0 : index
    %41 = tpu.strided_load %arg9[%c0_41, %c7, %c0_42] {strides = array<i32: 4, 4, 1>} : memref<36x68x6xf32, #tpu.memory_space<vmem>>, vector<8x16x6xf32>
    %42 = vector.shape_cast %41 : vector<8x16x6xf32> to vector<128x6xf32>
    %c42 = arith.constant 42 : index
    %c0_43 = arith.constant 0 : index
    %43 = vector.load %arg2[%c42, %c0_43] : memref<384x32xf32, #tpu.memory_space<vmem>>, vector<6x32xf32>
    %cst_44 = arith.constant dense<0.000000e+00> : vector<128x32xf32>
    %44 = tpu.matmul %42, %43, %cst_44 {dimension_numbers = #tpu.dot_dimension_numbers<[1], [0], [0], [1], [0, 0, 1, 1], [], []>} : vector<128x6xf32>, vector<6x32xf32>, vector<128x32xf32> -> vector<128x32xf32>
    %45 = arith.addf %40, %44 : vector<128x32xf32>
    %c1_45 = arith.constant 1 : index
    %c0_46 = arith.constant 0 : index
    %c0_47 = arith.constant 0 : index
    %46 = tpu.strided_load %arg9[%c1_45, %c0_46, %c0_47] {strides = array<i32: 4, 4, 1>} : memref<36x68x6xf32, #tpu.memory_space<vmem>>, vector<8x16x6xf32>
    %47 = vector.shape_cast %46 : vector<8x16x6xf32> to vector<128x6xf32>
    %c48 = arith.constant 48 : index
    %c0_48 = arith.constant 0 : index
    %48 = vector.load %arg2[%c48, %c0_48] : memref<384x32xf32, #tpu.memory_space<vmem>>, vector<6x32xf32>
    %cst_49 = arith.constant dense<0.000000e+00> : vector<128x32xf32>
    %49 = tpu.matmul %47, %48, %cst_49 {dimension_numbers = #tpu.dot_dimension_numbers<[1], [0], [0], [1], [0, 0, 1, 1], [], []>} : vector<128x6xf32>, vector<6x32xf32>, vector<128x32xf32> -> vector<128x32xf32>
    %50 = arith.addf %45, %49 : vector<128x32xf32>
    %c1_50 = arith.constant 1 : index
    %c1_51 = arith.constant 1 : index
    %c0_52 = arith.constant 0 : index
    %51 = tpu.strided_load %arg9[%c1_50, %c1_51, %c0_52] {strides = array<i32: 4, 4, 1>} : memref<36x68x6xf32, #tpu.memory_space<vmem>>, vector<8x16x6xf32>
    %52 = vector.shape_cast %51 : vector<8x16x6xf32> to vector<128x6xf32>
    %c54 = arith.constant 54 : index
    %c0_53 = arith.constant 0 : index
    %53 = vector.load %arg2[%c54, %c0_53] : memref<384x32xf32, #tpu.memory_space<vmem>>, vector<6x32xf32>
    %cst_54 = arith.constant dense<0.000000e+00> : vector<128x32xf32>
    %54 = tpu.matmul %52, %53, %cst_54 {dimension_numbers = #tpu.dot_dimension_numbers<[1], [0], [0], [1], [0, 0, 1, 1], [], []>} : vector<128x6xf32>, vector<6x32xf32>, vector<128x32xf32> -> vector<128x32xf32>
    %55 = arith.addf %50, %54 : vector<128x32xf32>
    %c1_55 = arith.constant 1 : index
    %c2_56 = arith.constant 2 : index
    %c0_57 = arith.constant 0 : index
    %56 = tpu.strided_load %arg9[%c1_55, %c2_56, %c0_57] {strides = array<i32: 4, 4, 1>} : memref<36x68x6xf32, #tpu.memory_space<vmem>>, vector<8x16x6xf32>
    %57 = vector.shape_cast %56 : vector<8x16x6xf32> to vector<128x6xf32>
    %c60 = arith.constant 60 : index
    %c0_58 = arith.constant 0 : index
    %58 = vector.load %arg2[%c60, %c0_58] : memref<384x32xf32, #tpu.memory_space<vmem>>, vector<6x32xf32>
    %cst_59 = arith.constant dense<0.000000e+00> : vector<128x32xf32>
    %59 = tpu.matmul %57, %58, %cst_59 {dimension_numbers = #tpu.dot_dimension_numbers<[1], [0], [0], [1], [0, 0, 1, 1], [], []>} : vector<128x6xf32>, vector<6x32xf32>, vector<128x32xf32> -> vector<128x32xf32>
    %60 = arith.addf %55, %59 : vector<128x32xf32>
    %c1_60 = arith.constant 1 : index
    %c3_61 = arith.constant 3 : index
    %c0_62 = arith.constant 0 : index
    %61 = tpu.strided_load %arg9[%c1_60, %c3_61, %c0_62] {strides = array<i32: 4, 4, 1>} : memref<36x68x6xf32, #tpu.memory_space<vmem>>, vector<8x16x6xf32>
    %62 = vector.shape_cast %61 : vector<8x16x6xf32> to vector<128x6xf32>
    %c66 = arith.constant 66 : index
    %c0_63 = arith.constant 0 : index
    %63 = vector.load %arg2[%c66, %c0_63] : memref<384x32xf32, #tpu.memory_space<vmem>>, vector<6x32xf32>
    %cst_64 = arith.constant dense<0.000000e+00> : vector<128x32xf32>
    %64 = tpu.matmul %62, %63, %cst_64 {dimension_numbers = #tpu.dot_dimension_numbers<[1], [0], [0], [1], [0, 0, 1, 1], [], []>} : vector<128x6xf32>, vector<6x32xf32>, vector<128x32xf32> -> vector<128x32xf32>
    %65 = arith.addf %60, %64 : vector<128x32xf32>
    %c1_65 = arith.constant 1 : index
    %c4_66 = arith.constant 4 : index
    %c0_67 = arith.constant 0 : index
    %66 = tpu.strided_load %arg9[%c1_65, %c4_66, %c0_67] {strides = array<i32: 4, 4, 1>} : memref<36x68x6xf32, #tpu.memory_space<vmem>>, vector<8x16x6xf32>
    %67 = vector.shape_cast %66 : vector<8x16x6xf32> to vector<128x6xf32>
    %c72 = arith.constant 72 : index
    %c0_68 = arith.constant 0 : index
    %68 = vector.load %arg2[%c72, %c0_68] : memref<384x32xf32, #tpu.memory_space<vmem>>, vector<6x32xf32>
    %cst_69 = arith.constant dense<0.000000e+00> : vector<128x32xf32>
    %69 = tpu.matmul %67, %68, %cst_69 {dimension_numbers = #tpu.dot_dimension_numbers<[1], [0], [0], [1], [0, 0, 1, 1], [], []>} : vector<128x6xf32>, vector<6x32xf32>, vector<128x32xf32> -> vector<128x32xf32>
    %70 = arith.addf %65, %69 : vector<128x32xf32>
    %c1_70 = arith.constant 1 : index
    %c5_71 = arith.constant 5 : index
    %c0_72 = arith.constant 0 : index
    %71 = tpu.strided_load %arg9[%c1_70, %c5_71, %c0_72] {strides = array<i32: 4, 4, 1>} : memref<36x68x6xf32, #tpu.memory_space<vmem>>, vector<8x16x6xf32>
    %72 = vector.shape_cast %71 : vector<8x16x6xf32> to vector<128x6xf32>
    %c78 = arith.constant 78 : index
    %c0_73 = arith.constant 0 : index
    %73 = vector.load %arg2[%c78, %c0_73] : memref<384x32xf32, #tpu.memory_space<vmem>>, vector<6x32xf32>
    %cst_74 = arith.constant dense<0.000000e+00> : vector<128x32xf32>
    %74 = tpu.matmul %72, %73, %cst_74 {dimension_numbers = #tpu.dot_dimension_numbers<[1], [0], [0], [1], [0, 0, 1, 1], [], []>} : vector<128x6xf32>, vector<6x32xf32>, vector<128x32xf32> -> vector<128x32xf32>
    %75 = arith.addf %70, %74 : vector<128x32xf32>
    %c1_75 = arith.constant 1 : index
    %c6_76 = arith.constant 6 : index
    %c0_77 = arith.constant 0 : index
    %76 = tpu.strided_load %arg9[%c1_75, %c6_76, %c0_77] {strides = array<i32: 4, 4, 1>} : memref<36x68x6xf32, #tpu.memory_space<vmem>>, vector<8x16x6xf32>
    %77 = vector.shape_cast %76 : vector<8x16x6xf32> to vector<128x6xf32>
    %c84 = arith.constant 84 : index
    %c0_78 = arith.constant 0 : index
    %78 = vector.load %arg2[%c84, %c0_78] : memref<384x32xf32, #tpu.memory_space<vmem>>, vector<6x32xf32>
    %cst_79 = arith.constant dense<0.000000e+00> : vector<128x32xf32>
    %79 = tpu.matmul %77, %78, %cst_79 {dimension_numbers = #tpu.dot_dimension_numbers<[1], [0], [0], [1], [0, 0, 1, 1], [], []>} : vector<128x6xf32>, vector<6x32xf32>, vector<128x32xf32> -> vector<128x32xf32>
    %80 = arith.addf %75, %79 : vector<128x32xf32>
    %c1_80 = arith.constant 1 : index
    %c7_81 = arith.constant 7 : index
    %c0_82 = arith.constant 0 : index
    %81 = tpu.strided_load %arg9[%c1_80, %c7_81, %c0_82] {strides = array<i32: 4, 4, 1>} : memref<36x68x6xf32, #tpu.memory_space<vmem>>, vector<8x16x6xf32>
    %82 = vector.shape_cast %81 : vector<8x16x6xf32> to vector<128x6xf32>
    %c90 = arith.constant 90 : index
    %c0_83 = arith.constant 0 : index
    %83 = vector.load %arg2[%c90, %c0_83] : memref<384x32xf32, #tpu.memory_space<vmem>>, vector<6x32xf32>
    %cst_84 = arith.constant dense<0.000000e+00> : vector<128x32xf32>
    %84 = tpu.matmul %82, %83, %cst_84 {dimension_numbers = #tpu.dot_dimension_numbers<[1], [0], [0], [1], [0, 0, 1, 1], [], []>} : vector<128x6xf32>, vector<6x32xf32>, vector<128x32xf32> -> vector<128x32xf32>
    %85 = arith.addf %80, %84 : vector<128x32xf32>
    %c2_85 = arith.constant 2 : index
    %c0_86 = arith.constant 0 : index
    %c0_87 = arith.constant 0 : index
    %86 = tpu.strided_load %arg9[%c2_85, %c0_86, %c0_87] {strides = array<i32: 4, 4, 1>} : memref<36x68x6xf32, #tpu.memory_space<vmem>>, vector<8x16x6xf32>
    %87 = vector.shape_cast %86 : vector<8x16x6xf32> to vector<128x6xf32>
    %c96 = arith.constant 96 : index
    %c0_88 = arith.constant 0 : index
    %88 = vector.load %arg2[%c96, %c0_88] : memref<384x32xf32, #tpu.memory_space<vmem>>, vector<6x32xf32>
    %cst_89 = arith.constant dense<0.000000e+00> : vector<128x32xf32>
    %89 = tpu.matmul %87, %88, %cst_89 {dimension_numbers = #tpu.dot_dimension_numbers<[1], [0], [0], [1], [0, 0, 1, 1], [], []>} : vector<128x6xf32>, vector<6x32xf32>, vector<128x32xf32> -> vector<128x32xf32>
    %90 = arith.addf %85, %89 : vector<128x32xf32>
    %c2_90 = arith.constant 2 : index
    %c1_91 = arith.constant 1 : index
    %c0_92 = arith.constant 0 : index
    %91 = tpu.strided_load %arg9[%c2_90, %c1_91, %c0_92] {strides = array<i32: 4, 4, 1>} : memref<36x68x6xf32, #tpu.memory_space<vmem>>, vector<8x16x6xf32>
    %92 = vector.shape_cast %91 : vector<8x16x6xf32> to vector<128x6xf32>
    %c102 = arith.constant 102 : index
    %c0_93 = arith.constant 0 : index
    %93 = vector.load %arg2[%c102, %c0_93] : memref<384x32xf32, #tpu.memory_space<vmem>>, vector<6x32xf32>
    %cst_94 = arith.constant dense<0.000000e+00> : vector<128x32xf32>
    %94 = tpu.matmul %92, %93, %cst_94 {dimension_numbers = #tpu.dot_dimension_numbers<[1], [0], [0], [1], [0, 0, 1, 1], [], []>} : vector<128x6xf32>, vector<6x32xf32>, vector<128x32xf32> -> vector<128x32xf32>
    %95 = arith.addf %90, %94 : vector<128x32xf32>
    %c2_95 = arith.constant 2 : index
    %c2_96 = arith.constant 2 : index
    %c0_97 = arith.constant 0 : index
    %96 = tpu.strided_load %arg9[%c2_95, %c2_96, %c0_97] {strides = array<i32: 4, 4, 1>} : memref<36x68x6xf32, #tpu.memory_space<vmem>>, vector<8x16x6xf32>
    %97 = vector.shape_cast %96 : vector<8x16x6xf32> to vector<128x6xf32>
    %c108 = arith.constant 108 : index
    %c0_98 = arith.constant 0 : index
    %98 = vector.load %arg2[%c108, %c0_98] : memref<384x32xf32, #tpu.memory_space<vmem>>, vector<6x32xf32>
    %cst_99 = arith.constant dense<0.000000e+00> : vector<128x32xf32>
    %99 = tpu.matmul %97, %98, %cst_99 {dimension_numbers = #tpu.dot_dimension_numbers<[1], [0], [0], [1], [0, 0, 1, 1], [], []>} : vector<128x6xf32>, vector<6x32xf32>, vector<128x32xf32> -> vector<128x32xf32>
    %100 = arith.addf %95, %99 : vector<128x32xf32>
    %c2_100 = arith.constant 2 : index
    %c3_101 = arith.constant 3 : index
    %c0_102 = arith.constant 0 : index
    %101 = tpu.strided_load %arg9[%c2_100, %c3_101, %c0_102] {strides = array<i32: 4, 4, 1>} : memref<36x68x6xf32, #tpu.memory_space<vmem>>, vector<8x16x6xf32>
    %102 = vector.shape_cast %101 : vector<8x16x6xf32> to vector<128x6xf32>
    %c114 = arith.constant 114 : index
    %c0_103 = arith.constant 0 : index
    %103 = vector.load %arg2[%c114, %c0_103] : memref<384x32xf32, #tpu.memory_space<vmem>>, vector<6x32xf32>
    %cst_104 = arith.constant dense<0.000000e+00> : vector<128x32xf32>
    %104 = tpu.matmul %102, %103, %cst_104 {dimension_numbers = #tpu.dot_dimension_numbers<[1], [0], [0], [1], [0, 0, 1, 1], [], []>} : vector<128x6xf32>, vector<6x32xf32>, vector<128x32xf32> -> vector<128x32xf32>
    %105 = arith.addf %100, %104 : vector<128x32xf32>
    %c2_105 = arith.constant 2 : index
    %c4_106 = arith.constant 4 : index
    %c0_107 = arith.constant 0 : index
    %106 = tpu.strided_load %arg9[%c2_105, %c4_106, %c0_107] {strides = array<i32: 4, 4, 1>} : memref<36x68x6xf32, #tpu.memory_space<vmem>>, vector<8x16x6xf32>
    %107 = vector.shape_cast %106 : vector<8x16x6xf32> to vector<128x6xf32>
    %c120 = arith.constant 120 : index
    %c0_108 = arith.constant 0 : index
    %108 = vector.load %arg2[%c120, %c0_108] : memref<384x32xf32, #tpu.memory_space<vmem>>, vector<6x32xf32>
    %cst_109 = arith.constant dense<0.000000e+00> : vector<128x32xf32>
    %109 = tpu.matmul %107, %108, %cst_109 {dimension_numbers = #tpu.dot_dimension_numbers<[1], [0], [0], [1], [0, 0, 1, 1], [], []>} : vector<128x6xf32>, vector<6x32xf32>, vector<128x32xf32> -> vector<128x32xf32>
    %110 = arith.addf %105, %109 : vector<128x32xf32>
    %c2_110 = arith.constant 2 : index
    %c5_111 = arith.constant 5 : index
    %c0_112 = arith.constant 0 : index
    %111 = tpu.strided_load %arg9[%c2_110, %c5_111, %c0_112] {strides = array<i32: 4, 4, 1>} : memref<36x68x6xf32, #tpu.memory_space<vmem>>, vector<8x16x6xf32>
    %112 = vector.shape_cast %111 : vector<8x16x6xf32> to vector<128x6xf32>
    %c126 = arith.constant 126 : index
    %c0_113 = arith.constant 0 : index
    %113 = vector.load %arg2[%c126, %c0_113] : memref<384x32xf32, #tpu.memory_space<vmem>>, vector<6x32xf32>
    %cst_114 = arith.constant dense<0.000000e+00> : vector<128x32xf32>
    %114 = tpu.matmul %112, %113, %cst_114 {dimension_numbers = #tpu.dot_dimension_numbers<[1], [0], [0], [1], [0, 0, 1, 1], [], []>} : vector<128x6xf32>, vector<6x32xf32>, vector<128x32xf32> -> vector<128x32xf32>
    %115 = arith.addf %110, %114 : vector<128x32xf32>
    %c2_115 = arith.constant 2 : index
    %c6_116 = arith.constant 6 : index
    %c0_117 = arith.constant 0 : index
    %116 = tpu.strided_load %arg9[%c2_115, %c6_116, %c0_117] {strides = array<i32: 4, 4, 1>} : memref<36x68x6xf32, #tpu.memory_space<vmem>>, vector<8x16x6xf32>
    %117 = vector.shape_cast %116 : vector<8x16x6xf32> to vector<128x6xf32>
    %c132 = arith.constant 132 : index
    %c0_118 = arith.constant 0 : index
    %118 = vector.load %arg2[%c132, %c0_118] : memref<384x32xf32, #tpu.memory_space<vmem>>, vector<6x32xf32>
    %cst_119 = arith.constant dense<0.000000e+00> : vector<128x32xf32>
    %119 = tpu.matmul %117, %118, %cst_119 {dimension_numbers = #tpu.dot_dimension_numbers<[1], [0], [0], [1], [0, 0, 1, 1], [], []>} : vector<128x6xf32>, vector<6x32xf32>, vector<128x32xf32> -> vector<128x32xf32>
    %120 = arith.addf %115, %119 : vector<128x32xf32>
    %c2_120 = arith.constant 2 : index
    %c7_121 = arith.constant 7 : index
    %c0_122 = arith.constant 0 : index
    %121 = tpu.strided_load %arg9[%c2_120, %c7_121, %c0_122] {strides = array<i32: 4, 4, 1>} : memref<36x68x6xf32, #tpu.memory_space<vmem>>, vector<8x16x6xf32>
    %122 = vector.shape_cast %121 : vector<8x16x6xf32> to vector<128x6xf32>
    %c138 = arith.constant 138 : index
    %c0_123 = arith.constant 0 : index
    %123 = vector.load %arg2[%c138, %c0_123] : memref<384x32xf32, #tpu.memory_space<vmem>>, vector<6x32xf32>
    %cst_124 = arith.constant dense<0.000000e+00> : vector<128x32xf32>
    %124 = tpu.matmul %122, %123, %cst_124 {dimension_numbers = #tpu.dot_dimension_numbers<[1], [0], [0], [1], [0, 0, 1, 1], [], []>} : vector<128x6xf32>, vector<6x32xf32>, vector<128x32xf32> -> vector<128x32xf32>
    %125 = arith.addf %120, %124 : vector<128x32xf32>
    %c3_125 = arith.constant 3 : index
    %c0_126 = arith.constant 0 : index
    %c0_127 = arith.constant 0 : index
    %126 = tpu.strided_load %arg9[%c3_125, %c0_126, %c0_127] {strides = array<i32: 4, 4, 1>} : memref<36x68x6xf32, #tpu.memory_space<vmem>>, vector<8x16x6xf32>
    %127 = vector.shape_cast %126 : vector<8x16x6xf32> to vector<128x6xf32>
    %c144 = arith.constant 144 : index
    %c0_128 = arith.constant 0 : index
    %128 = vector.load %arg2[%c144, %c0_128] : memref<384x32xf32, #tpu.memory_space<vmem>>, vector<6x32xf32>
    %cst_129 = arith.constant dense<0.000000e+00> : vector<128x32xf32>
    %129 = tpu.matmul %127, %128, %cst_129 {dimension_numbers = #tpu.dot_dimension_numbers<[1], [0], [0], [1], [0, 0, 1, 1], [], []>} : vector<128x6xf32>, vector<6x32xf32>, vector<128x32xf32> -> vector<128x32xf32>
    %130 = arith.addf %125, %129 : vector<128x32xf32>
    %c3_130 = arith.constant 3 : index
    %c1_131 = arith.constant 1 : index
    %c0_132 = arith.constant 0 : index
    %131 = tpu.strided_load %arg9[%c3_130, %c1_131, %c0_132] {strides = array<i32: 4, 4, 1>} : memref<36x68x6xf32, #tpu.memory_space<vmem>>, vector<8x16x6xf32>
    %132 = vector.shape_cast %131 : vector<8x16x6xf32> to vector<128x6xf32>
    %c150 = arith.constant 150 : index
    %c0_133 = arith.constant 0 : index
    %133 = vector.load %arg2[%c150, %c0_133] : memref<384x32xf32, #tpu.memory_space<vmem>>, vector<6x32xf32>
    %cst_134 = arith.constant dense<0.000000e+00> : vector<128x32xf32>
    %134 = tpu.matmul %132, %133, %cst_134 {dimension_numbers = #tpu.dot_dimension_numbers<[1], [0], [0], [1], [0, 0, 1, 1], [], []>} : vector<128x6xf32>, vector<6x32xf32>, vector<128x32xf32> -> vector<128x32xf32>
    %135 = arith.addf %130, %134 : vector<128x32xf32>
    %c3_135 = arith.constant 3 : index
    %c2_136 = arith.constant 2 : index
    %c0_137 = arith.constant 0 : index
    %136 = tpu.strided_load %arg9[%c3_135, %c2_136, %c0_137] {strides = array<i32: 4, 4, 1>} : memref<36x68x6xf32, #tpu.memory_space<vmem>>, vector<8x16x6xf32>
    %137 = vector.shape_cast %136 : vector<8x16x6xf32> to vector<128x6xf32>
    %c156 = arith.constant 156 : index
    %c0_138 = arith.constant 0 : index
    %138 = vector.load %arg2[%c156, %c0_138] : memref<384x32xf32, #tpu.memory_space<vmem>>, vector<6x32xf32>
    %cst_139 = arith.constant dense<0.000000e+00> : vector<128x32xf32>
    %139 = tpu.matmul %137, %138, %cst_139 {dimension_numbers = #tpu.dot_dimension_numbers<[1], [0], [0], [1], [0, 0, 1, 1], [], []>} : vector<128x6xf32>, vector<6x32xf32>, vector<128x32xf32> -> vector<128x32xf32>
    %140 = arith.addf %135, %139 : vector<128x32xf32>
    %c3_140 = arith.constant 3 : index
    %c3_141 = arith.constant 3 : index
    %c0_142 = arith.constant 0 : index
    %141 = tpu.strided_load %arg9[%c3_140, %c3_141, %c0_142] {strides = array<i32: 4, 4, 1>} : memref<36x68x6xf32, #tpu.memory_space<vmem>>, vector<8x16x6xf32>
    %142 = vector.shape_cast %141 : vector<8x16x6xf32> to vector<128x6xf32>
    %c162 = arith.constant 162 : index
    %c0_143 = arith.constant 0 : index
    %143 = vector.load %arg2[%c162, %c0_143] : memref<384x32xf32, #tpu.memory_space<vmem>>, vector<6x32xf32>
    %cst_144 = arith.constant dense<0.000000e+00> : vector<128x32xf32>
    %144 = tpu.matmul %142, %143, %cst_144 {dimension_numbers = #tpu.dot_dimension_numbers<[1], [0], [0], [1], [0, 0, 1, 1], [], []>} : vector<128x6xf32>, vector<6x32xf32>, vector<128x32xf32> -> vector<128x32xf32>
    %145 = arith.addf %140, %144 : vector<128x32xf32>
    %c3_145 = arith.constant 3 : index
    %c4_146 = arith.constant 4 : index
    %c0_147 = arith.constant 0 : index
    %146 = tpu.strided_load %arg9[%c3_145, %c4_146, %c0_147] {strides = array<i32: 4, 4, 1>} : memref<36x68x6xf32, #tpu.memory_space<vmem>>, vector<8x16x6xf32>
    %147 = vector.shape_cast %146 : vector<8x16x6xf32> to vector<128x6xf32>
    %c168 = arith.constant 168 : index
    %c0_148 = arith.constant 0 : index
    %148 = vector.load %arg2[%c168, %c0_148] : memref<384x32xf32, #tpu.memory_space<vmem>>, vector<6x32xf32>
    %cst_149 = arith.constant dense<0.000000e+00> : vector<128x32xf32>
    %149 = tpu.matmul %147, %148, %cst_149 {dimension_numbers = #tpu.dot_dimension_numbers<[1], [0], [0], [1], [0, 0, 1, 1], [], []>} : vector<128x6xf32>, vector<6x32xf32>, vector<128x32xf32> -> vector<128x32xf32>
    %150 = arith.addf %145, %149 : vector<128x32xf32>
    %c3_150 = arith.constant 3 : index
    %c5_151 = arith.constant 5 : index
    %c0_152 = arith.constant 0 : index
    %151 = tpu.strided_load %arg9[%c3_150, %c5_151, %c0_152] {strides = array<i32: 4, 4, 1>} : memref<36x68x6xf32, #tpu.memory_space<vmem>>, vector<8x16x6xf32>
    %152 = vector.shape_cast %151 : vector<8x16x6xf32> to vector<128x6xf32>
    %c174 = arith.constant 174 : index
    %c0_153 = arith.constant 0 : index
    %153 = vector.load %arg2[%c174, %c0_153] : memref<384x32xf32, #tpu.memory_space<vmem>>, vector<6x32xf32>
    %cst_154 = arith.constant dense<0.000000e+00> : vector<128x32xf32>
    %154 = tpu.matmul %152, %153, %cst_154 {dimension_numbers = #tpu.dot_dimension_numbers<[1], [0], [0], [1], [0, 0, 1, 1], [], []>} : vector<128x6xf32>, vector<6x32xf32>, vector<128x32xf32> -> vector<128x32xf32>
    %155 = arith.addf %150, %154 : vector<128x32xf32>
    %c3_155 = arith.constant 3 : index
    %c6_156 = arith.constant 6 : index
    %c0_157 = arith.constant 0 : index
    %156 = tpu.strided_load %arg9[%c3_155, %c6_156, %c0_157] {strides = array<i32: 4, 4, 1>} : memref<36x68x6xf32, #tpu.memory_space<vmem>>, vector<8x16x6xf32>
    %157 = vector.shape_cast %156 : vector<8x16x6xf32> to vector<128x6xf32>
    %c180 = arith.constant 180 : index
    %c0_158 = arith.constant 0 : index
    %158 = vector.load %arg2[%c180, %c0_158] : memref<384x32xf32, #tpu.memory_space<vmem>>, vector<6x32xf32>
    %cst_159 = arith.constant dense<0.000000e+00> : vector<128x32xf32>
    %159 = tpu.matmul %157, %158, %cst_159 {dimension_numbers = #tpu.dot_dimension_numbers<[1], [0], [0], [1], [0, 0, 1, 1], [], []>} : vector<128x6xf32>, vector<6x32xf32>, vector<128x32xf32> -> vector<128x32xf32>
    %160 = arith.addf %155, %159 : vector<128x32xf32>
    %c3_160 = arith.constant 3 : index
    %c7_161 = arith.constant 7 : index
    %c0_162 = arith.constant 0 : index
    %161 = tpu.strided_load %arg9[%c3_160, %c7_161, %c0_162] {strides = array<i32: 4, 4, 1>} : memref<36x68x6xf32, #tpu.memory_space<vmem>>, vector<8x16x6xf32>
    %162 = vector.shape_cast %161 : vector<8x16x6xf32> to vector<128x6xf32>
    %c186 = arith.constant 186 : index
    %c0_163 = arith.constant 0 : index
    %163 = vector.load %arg2[%c186, %c0_163] : memref<384x32xf32, #tpu.memory_space<vmem>>, vector<6x32xf32>
    %cst_164 = arith.constant dense<0.000000e+00> : vector<128x32xf32>
    %164 = tpu.matmul %162, %163, %cst_164 {dimension_numbers = #tpu.dot_dimension_numbers<[1], [0], [0], [1], [0, 0, 1, 1], [], []>} : vector<128x6xf32>, vector<6x32xf32>, vector<128x32xf32> -> vector<128x32xf32>
    %165 = arith.addf %160, %164 : vector<128x32xf32>
    %c4_165 = arith.constant 4 : index
    %c0_166 = arith.constant 0 : index
    %c0_167 = arith.constant 0 : index
    %166 = tpu.strided_load %arg9[%c4_165, %c0_166, %c0_167] {strides = array<i32: 4, 4, 1>} : memref<36x68x6xf32, #tpu.memory_space<vmem>>, vector<8x16x6xf32>
    %167 = vector.shape_cast %166 : vector<8x16x6xf32> to vector<128x6xf32>
    %c192 = arith.constant 192 : index
    %c0_168 = arith.constant 0 : index
    %168 = vector.load %arg2[%c192, %c0_168] : memref<384x32xf32, #tpu.memory_space<vmem>>, vector<6x32xf32>
    %cst_169 = arith.constant dense<0.000000e+00> : vector<128x32xf32>
    %169 = tpu.matmul %167, %168, %cst_169 {dimension_numbers = #tpu.dot_dimension_numbers<[1], [0], [0], [1], [0, 0, 1, 1], [], []>} : vector<128x6xf32>, vector<6x32xf32>, vector<128x32xf32> -> vector<128x32xf32>
    %170 = arith.addf %165, %169 : vector<128x32xf32>
    %c4_170 = arith.constant 4 : index
    %c1_171 = arith.constant 1 : index
    %c0_172 = arith.constant 0 : index
    %171 = tpu.strided_load %arg9[%c4_170, %c1_171, %c0_172] {strides = array<i32: 4, 4, 1>} : memref<36x68x6xf32, #tpu.memory_space<vmem>>, vector<8x16x6xf32>
    %172 = vector.shape_cast %171 : vector<8x16x6xf32> to vector<128x6xf32>
    %c198 = arith.constant 198 : index
    %c0_173 = arith.constant 0 : index
    %173 = vector.load %arg2[%c198, %c0_173] : memref<384x32xf32, #tpu.memory_space<vmem>>, vector<6x32xf32>
    %cst_174 = arith.constant dense<0.000000e+00> : vector<128x32xf32>
    %174 = tpu.matmul %172, %173, %cst_174 {dimension_numbers = #tpu.dot_dimension_numbers<[1], [0], [0], [1], [0, 0, 1, 1], [], []>} : vector<128x6xf32>, vector<6x32xf32>, vector<128x32xf32> -> vector<128x32xf32>
    %175 = arith.addf %170, %174 : vector<128x32xf32>
    %c4_175 = arith.constant 4 : index
    %c2_176 = arith.constant 2 : index
    %c0_177 = arith.constant 0 : index
    %176 = tpu.strided_load %arg9[%c4_175, %c2_176, %c0_177] {strides = array<i32: 4, 4, 1>} : memref<36x68x6xf32, #tpu.memory_space<vmem>>, vector<8x16x6xf32>
    %177 = vector.shape_cast %176 : vector<8x16x6xf32> to vector<128x6xf32>
    %c204 = arith.constant 204 : index
    %c0_178 = arith.constant 0 : index
    %178 = vector.load %arg2[%c204, %c0_178] : memref<384x32xf32, #tpu.memory_space<vmem>>, vector<6x32xf32>
    %cst_179 = arith.constant dense<0.000000e+00> : vector<128x32xf32>
    %179 = tpu.matmul %177, %178, %cst_179 {dimension_numbers = #tpu.dot_dimension_numbers<[1], [0], [0], [1], [0, 0, 1, 1], [], []>} : vector<128x6xf32>, vector<6x32xf32>, vector<128x32xf32> -> vector<128x32xf32>
    %180 = arith.addf %175, %179 : vector<128x32xf32>
    %c4_180 = arith.constant 4 : index
    %c3_181 = arith.constant 3 : index
    %c0_182 = arith.constant 0 : index
    %181 = tpu.strided_load %arg9[%c4_180, %c3_181, %c0_182] {strides = array<i32: 4, 4, 1>} : memref<36x68x6xf32, #tpu.memory_space<vmem>>, vector<8x16x6xf32>
    %182 = vector.shape_cast %181 : vector<8x16x6xf32> to vector<128x6xf32>
    %c210 = arith.constant 210 : index
    %c0_183 = arith.constant 0 : index
    %183 = vector.load %arg2[%c210, %c0_183] : memref<384x32xf32, #tpu.memory_space<vmem>>, vector<6x32xf32>
    %cst_184 = arith.constant dense<0.000000e+00> : vector<128x32xf32>
    %184 = tpu.matmul %182, %183, %cst_184 {dimension_numbers = #tpu.dot_dimension_numbers<[1], [0], [0], [1], [0, 0, 1, 1], [], []>} : vector<128x6xf32>, vector<6x32xf32>, vector<128x32xf32> -> vector<128x32xf32>
    %185 = arith.addf %180, %184 : vector<128x32xf32>
    %c4_185 = arith.constant 4 : index
    %c4_186 = arith.constant 4 : index
    %c0_187 = arith.constant 0 : index
    %186 = tpu.strided_load %arg9[%c4_185, %c4_186, %c0_187] {strides = array<i32: 4, 4, 1>} : memref<36x68x6xf32, #tpu.memory_space<vmem>>, vector<8x16x6xf32>
    %187 = vector.shape_cast %186 : vector<8x16x6xf32> to vector<128x6xf32>
    %c216 = arith.constant 216 : index
    %c0_188 = arith.constant 0 : index
    %188 = vector.load %arg2[%c216, %c0_188] : memref<384x32xf32, #tpu.memory_space<vmem>>, vector<6x32xf32>
    %cst_189 = arith.constant dense<0.000000e+00> : vector<128x32xf32>
    %189 = tpu.matmul %187, %188, %cst_189 {dimension_numbers = #tpu.dot_dimension_numbers<[1], [0], [0], [1], [0, 0, 1, 1], [], []>} : vector<128x6xf32>, vector<6x32xf32>, vector<128x32xf32> -> vector<128x32xf32>
    %190 = arith.addf %185, %189 : vector<128x32xf32>
    %c4_190 = arith.constant 4 : index
    %c5_191 = arith.constant 5 : index
    %c0_192 = arith.constant 0 : index
    %191 = tpu.strided_load %arg9[%c4_190, %c5_191, %c0_192] {strides = array<i32: 4, 4, 1>} : memref<36x68x6xf32, #tpu.memory_space<vmem>>, vector<8x16x6xf32>
    %192 = vector.shape_cast %191 : vector<8x16x6xf32> to vector<128x6xf32>
    %c222 = arith.constant 222 : index
    %c0_193 = arith.constant 0 : index
    %193 = vector.load %arg2[%c222, %c0_193] : memref<384x32xf32, #tpu.memory_space<vmem>>, vector<6x32xf32>
    %cst_194 = arith.constant dense<0.000000e+00> : vector<128x32xf32>
    %194 = tpu.matmul %192, %193, %cst_194 {dimension_numbers = #tpu.dot_dimension_numbers<[1], [0], [0], [1], [0, 0, 1, 1], [], []>} : vector<128x6xf32>, vector<6x32xf32>, vector<128x32xf32> -> vector<128x32xf32>
    %195 = arith.addf %190, %194 : vector<128x32xf32>
    %c4_195 = arith.constant 4 : index
    %c6_196 = arith.constant 6 : index
    %c0_197 = arith.constant 0 : index
    %196 = tpu.strided_load %arg9[%c4_195, %c6_196, %c0_197] {strides = array<i32: 4, 4, 1>} : memref<36x68x6xf32, #tpu.memory_space<vmem>>, vector<8x16x6xf32>
    %197 = vector.shape_cast %196 : vector<8x16x6xf32> to vector<128x6xf32>
    %c228 = arith.constant 228 : index
    %c0_198 = arith.constant 0 : index
    %198 = vector.load %arg2[%c228, %c0_198] : memref<384x32xf32, #tpu.memory_space<vmem>>, vector<6x32xf32>
    %cst_199 = arith.constant dense<0.000000e+00> : vector<128x32xf32>
    %199 = tpu.matmul %197, %198, %cst_199 {dimension_numbers = #tpu.dot_dimension_numbers<[1], [0], [0], [1], [0, 0, 1, 1], [], []>} : vector<128x6xf32>, vector<6x32xf32>, vector<128x32xf32> -> vector<128x32xf32>
    %200 = arith.addf %195, %199 : vector<128x32xf32>
    %c4_200 = arith.constant 4 : index
    %c7_201 = arith.constant 7 : index
    %c0_202 = arith.constant 0 : index
    %201 = tpu.strided_load %arg9[%c4_200, %c7_201, %c0_202] {strides = array<i32: 4, 4, 1>} : memref<36x68x6xf32, #tpu.memory_space<vmem>>, vector<8x16x6xf32>
    %202 = vector.shape_cast %201 : vector<8x16x6xf32> to vector<128x6xf32>
    %c234 = arith.constant 234 : index
    %c0_203 = arith.constant 0 : index
    %203 = vector.load %arg2[%c234, %c0_203] : memref<384x32xf32, #tpu.memory_space<vmem>>, vector<6x32xf32>
    %cst_204 = arith.constant dense<0.000000e+00> : vector<128x32xf32>
    %204 = tpu.matmul %202, %203, %cst_204 {dimension_numbers = #tpu.dot_dimension_numbers<[1], [0], [0], [1], [0, 0, 1, 1], [], []>} : vector<128x6xf32>, vector<6x32xf32>, vector<128x32xf32> -> vector<128x32xf32>
    %205 = arith.addf %200, %204 : vector<128x32xf32>
    %c5_205 = arith.constant 5 : index
    %c0_206 = arith.constant 0 : index
    %c0_207 = arith.constant 0 : index
    %206 = tpu.strided_load %arg9[%c5_205, %c0_206, %c0_207] {strides = array<i32: 4, 4, 1>} : memref<36x68x6xf32, #tpu.memory_space<vmem>>, vector<8x16x6xf32>
    %207 = vector.shape_cast %206 : vector<8x16x6xf32> to vector<128x6xf32>
    %c240 = arith.constant 240 : index
    %c0_208 = arith.constant 0 : index
    %208 = vector.load %arg2[%c240, %c0_208] : memref<384x32xf32, #tpu.memory_space<vmem>>, vector<6x32xf32>
    %cst_209 = arith.constant dense<0.000000e+00> : vector<128x32xf32>
    %209 = tpu.matmul %207, %208, %cst_209 {dimension_numbers = #tpu.dot_dimension_numbers<[1], [0], [0], [1], [0, 0, 1, 1], [], []>} : vector<128x6xf32>, vector<6x32xf32>, vector<128x32xf32> -> vector<128x32xf32>
    %210 = arith.addf %205, %209 : vector<128x32xf32>
    %c5_210 = arith.constant 5 : index
    %c1_211 = arith.constant 1 : index
    %c0_212 = arith.constant 0 : index
    %211 = tpu.strided_load %arg9[%c5_210, %c1_211, %c0_212] {strides = array<i32: 4, 4, 1>} : memref<36x68x6xf32, #tpu.memory_space<vmem>>, vector<8x16x6xf32>
    %212 = vector.shape_cast %211 : vector<8x16x6xf32> to vector<128x6xf32>
    %c246 = arith.constant 246 : index
    %c0_213 = arith.constant 0 : index
    %213 = vector.load %arg2[%c246, %c0_213] : memref<384x32xf32, #tpu.memory_space<vmem>>, vector<6x32xf32>
    %cst_214 = arith.constant dense<0.000000e+00> : vector<128x32xf32>
    %214 = tpu.matmul %212, %213, %cst_214 {dimension_numbers = #tpu.dot_dimension_numbers<[1], [0], [0], [1], [0, 0, 1, 1], [], []>} : vector<128x6xf32>, vector<6x32xf32>, vector<128x32xf32> -> vector<128x32xf32>
    %215 = arith.addf %210, %214 : vector<128x32xf32>
    %c5_215 = arith.constant 5 : index
    %c2_216 = arith.constant 2 : index
    %c0_217 = arith.constant 0 : index
    %216 = tpu.strided_load %arg9[%c5_215, %c2_216, %c0_217] {strides = array<i32: 4, 4, 1>} : memref<36x68x6xf32, #tpu.memory_space<vmem>>, vector<8x16x6xf32>
    %217 = vector.shape_cast %216 : vector<8x16x6xf32> to vector<128x6xf32>
    %c252 = arith.constant 252 : index
    %c0_218 = arith.constant 0 : index
    %218 = vector.load %arg2[%c252, %c0_218] : memref<384x32xf32, #tpu.memory_space<vmem>>, vector<6x32xf32>
    %cst_219 = arith.constant dense<0.000000e+00> : vector<128x32xf32>
    %219 = tpu.matmul %217, %218, %cst_219 {dimension_numbers = #tpu.dot_dimension_numbers<[1], [0], [0], [1], [0, 0, 1, 1], [], []>} : vector<128x6xf32>, vector<6x32xf32>, vector<128x32xf32> -> vector<128x32xf32>
    %220 = arith.addf %215, %219 : vector<128x32xf32>
    %c5_220 = arith.constant 5 : index
    %c3_221 = arith.constant 3 : index
    %c0_222 = arith.constant 0 : index
    %221 = tpu.strided_load %arg9[%c5_220, %c3_221, %c0_222] {strides = array<i32: 4, 4, 1>} : memref<36x68x6xf32, #tpu.memory_space<vmem>>, vector<8x16x6xf32>
    %222 = vector.shape_cast %221 : vector<8x16x6xf32> to vector<128x6xf32>
    %c258 = arith.constant 258 : index
    %c0_223 = arith.constant 0 : index
    %223 = vector.load %arg2[%c258, %c0_223] : memref<384x32xf32, #tpu.memory_space<vmem>>, vector<6x32xf32>
    %cst_224 = arith.constant dense<0.000000e+00> : vector<128x32xf32>
    %224 = tpu.matmul %222, %223, %cst_224 {dimension_numbers = #tpu.dot_dimension_numbers<[1], [0], [0], [1], [0, 0, 1, 1], [], []>} : vector<128x6xf32>, vector<6x32xf32>, vector<128x32xf32> -> vector<128x32xf32>
    %225 = arith.addf %220, %224 : vector<128x32xf32>
    %c5_225 = arith.constant 5 : index
    %c4_226 = arith.constant 4 : index
    %c0_227 = arith.constant 0 : index
    %226 = tpu.strided_load %arg9[%c5_225, %c4_226, %c0_227] {strides = array<i32: 4, 4, 1>} : memref<36x68x6xf32, #tpu.memory_space<vmem>>, vector<8x16x6xf32>
    %227 = vector.shape_cast %226 : vector<8x16x6xf32> to vector<128x6xf32>
    %c264 = arith.constant 264 : index
    %c0_228 = arith.constant 0 : index
    %228 = vector.load %arg2[%c264, %c0_228] : memref<384x32xf32, #tpu.memory_space<vmem>>, vector<6x32xf32>
    %cst_229 = arith.constant dense<0.000000e+00> : vector<128x32xf32>
    %229 = tpu.matmul %227, %228, %cst_229 {dimension_numbers = #tpu.dot_dimension_numbers<[1], [0], [0], [1], [0, 0, 1, 1], [], []>} : vector<128x6xf32>, vector<6x32xf32>, vector<128x32xf32> -> vector<128x32xf32>
    %230 = arith.addf %225, %229 : vector<128x32xf32>
    %c5_230 = arith.constant 5 : index
    %c5_231 = arith.constant 5 : index
    %c0_232 = arith.constant 0 : index
    %231 = tpu.strided_load %arg9[%c5_230, %c5_231, %c0_232] {strides = array<i32: 4, 4, 1>} : memref<36x68x6xf32, #tpu.memory_space<vmem>>, vector<8x16x6xf32>
    %232 = vector.shape_cast %231 : vector<8x16x6xf32> to vector<128x6xf32>
    %c270 = arith.constant 270 : index
    %c0_233 = arith.constant 0 : index
    %233 = vector.load %arg2[%c270, %c0_233] : memref<384x32xf32, #tpu.memory_space<vmem>>, vector<6x32xf32>
    %cst_234 = arith.constant dense<0.000000e+00> : vector<128x32xf32>
    %234 = tpu.matmul %232, %233, %cst_234 {dimension_numbers = #tpu.dot_dimension_numbers<[1], [0], [0], [1], [0, 0, 1, 1], [], []>} : vector<128x6xf32>, vector<6x32xf32>, vector<128x32xf32> -> vector<128x32xf32>
    %235 = arith.addf %230, %234 : vector<128x32xf32>
    %c5_235 = arith.constant 5 : index
    %c6_236 = arith.constant 6 : index
    %c0_237 = arith.constant 0 : index
    %236 = tpu.strided_load %arg9[%c5_235, %c6_236, %c0_237] {strides = array<i32: 4, 4, 1>} : memref<36x68x6xf32, #tpu.memory_space<vmem>>, vector<8x16x6xf32>
    %237 = vector.shape_cast %236 : vector<8x16x6xf32> to vector<128x6xf32>
    %c276 = arith.constant 276 : index
    %c0_238 = arith.constant 0 : index
    %238 = vector.load %arg2[%c276, %c0_238] : memref<384x32xf32, #tpu.memory_space<vmem>>, vector<6x32xf32>
    %cst_239 = arith.constant dense<0.000000e+00> : vector<128x32xf32>
    %239 = tpu.matmul %237, %238, %cst_239 {dimension_numbers = #tpu.dot_dimension_numbers<[1], [0], [0], [1], [0, 0, 1, 1], [], []>} : vector<128x6xf32>, vector<6x32xf32>, vector<128x32xf32> -> vector<128x32xf32>
    %240 = arith.addf %235, %239 : vector<128x32xf32>
    %c5_240 = arith.constant 5 : index
    %c7_241 = arith.constant 7 : index
    %c0_242 = arith.constant 0 : index
    %241 = tpu.strided_load %arg9[%c5_240, %c7_241, %c0_242] {strides = array<i32: 4, 4, 1>} : memref<36x68x6xf32, #tpu.memory_space<vmem>>, vector<8x16x6xf32>
    %242 = vector.shape_cast %241 : vector<8x16x6xf32> to vector<128x6xf32>
    %c282 = arith.constant 282 : index
    %c0_243 = arith.constant 0 : index
    %243 = vector.load %arg2[%c282, %c0_243] : memref<384x32xf32, #tpu.memory_space<vmem>>, vector<6x32xf32>
    %cst_244 = arith.constant dense<0.000000e+00> : vector<128x32xf32>
    %244 = tpu.matmul %242, %243, %cst_244 {dimension_numbers = #tpu.dot_dimension_numbers<[1], [0], [0], [1], [0, 0, 1, 1], [], []>} : vector<128x6xf32>, vector<6x32xf32>, vector<128x32xf32> -> vector<128x32xf32>
    %245 = arith.addf %240, %244 : vector<128x32xf32>
    %c6_245 = arith.constant 6 : index
    %c0_246 = arith.constant 0 : index
    %c0_247 = arith.constant 0 : index
    %246 = tpu.strided_load %arg9[%c6_245, %c0_246, %c0_247] {strides = array<i32: 4, 4, 1>} : memref<36x68x6xf32, #tpu.memory_space<vmem>>, vector<8x16x6xf32>
    %247 = vector.shape_cast %246 : vector<8x16x6xf32> to vector<128x6xf32>
    %c288 = arith.constant 288 : index
    %c0_248 = arith.constant 0 : index
    %248 = vector.load %arg2[%c288, %c0_248] : memref<384x32xf32, #tpu.memory_space<vmem>>, vector<6x32xf32>
    %cst_249 = arith.constant dense<0.000000e+00> : vector<128x32xf32>
    %249 = tpu.matmul %247, %248, %cst_249 {dimension_numbers = #tpu.dot_dimension_numbers<[1], [0], [0], [1], [0, 0, 1, 1], [], []>} : vector<128x6xf32>, vector<6x32xf32>, vector<128x32xf32> -> vector<128x32xf32>
    %250 = arith.addf %245, %249 : vector<128x32xf32>
    %c6_250 = arith.constant 6 : index
    %c1_251 = arith.constant 1 : index
    %c0_252 = arith.constant 0 : index
    %251 = tpu.strided_load %arg9[%c6_250, %c1_251, %c0_252] {strides = array<i32: 4, 4, 1>} : memref<36x68x6xf32, #tpu.memory_space<vmem>>, vector<8x16x6xf32>
    %252 = vector.shape_cast %251 : vector<8x16x6xf32> to vector<128x6xf32>
    %c294 = arith.constant 294 : index
    %c0_253 = arith.constant 0 : index
    %253 = vector.load %arg2[%c294, %c0_253] : memref<384x32xf32, #tpu.memory_space<vmem>>, vector<6x32xf32>
    %cst_254 = arith.constant dense<0.000000e+00> : vector<128x32xf32>
    %254 = tpu.matmul %252, %253, %cst_254 {dimension_numbers = #tpu.dot_dimension_numbers<[1], [0], [0], [1], [0, 0, 1, 1], [], []>} : vector<128x6xf32>, vector<6x32xf32>, vector<128x32xf32> -> vector<128x32xf32>
    %255 = arith.addf %250, %254 : vector<128x32xf32>
    %c6_255 = arith.constant 6 : index
    %c2_256 = arith.constant 2 : index
    %c0_257 = arith.constant 0 : index
    %256 = tpu.strided_load %arg9[%c6_255, %c2_256, %c0_257] {strides = array<i32: 4, 4, 1>} : memref<36x68x6xf32, #tpu.memory_space<vmem>>, vector<8x16x6xf32>
    %257 = vector.shape_cast %256 : vector<8x16x6xf32> to vector<128x6xf32>
    %c300 = arith.constant 300 : index
    %c0_258 = arith.constant 0 : index
    %258 = vector.load %arg2[%c300, %c0_258] : memref<384x32xf32, #tpu.memory_space<vmem>>, vector<6x32xf32>
    %cst_259 = arith.constant dense<0.000000e+00> : vector<128x32xf32>
    %259 = tpu.matmul %257, %258, %cst_259 {dimension_numbers = #tpu.dot_dimension_numbers<[1], [0], [0], [1], [0, 0, 1, 1], [], []>} : vector<128x6xf32>, vector<6x32xf32>, vector<128x32xf32> -> vector<128x32xf32>
    %260 = arith.addf %255, %259 : vector<128x32xf32>
    %c6_260 = arith.constant 6 : index
    %c3_261 = arith.constant 3 : index
    %c0_262 = arith.constant 0 : index
    %261 = tpu.strided_load %arg9[%c6_260, %c3_261, %c0_262] {strides = array<i32: 4, 4, 1>} : memref<36x68x6xf32, #tpu.memory_space<vmem>>, vector<8x16x6xf32>
    %262 = vector.shape_cast %261 : vector<8x16x6xf32> to vector<128x6xf32>
    %c306 = arith.constant 306 : index
    %c0_263 = arith.constant 0 : index
    %263 = vector.load %arg2[%c306, %c0_263] : memref<384x32xf32, #tpu.memory_space<vmem>>, vector<6x32xf32>
    %cst_264 = arith.constant dense<0.000000e+00> : vector<128x32xf32>
    %264 = tpu.matmul %262, %263, %cst_264 {dimension_numbers = #tpu.dot_dimension_numbers<[1], [0], [0], [1], [0, 0, 1, 1], [], []>} : vector<128x6xf32>, vector<6x32xf32>, vector<128x32xf32> -> vector<128x32xf32>
    %265 = arith.addf %260, %264 : vector<128x32xf32>
    %c6_265 = arith.constant 6 : index
    %c4_266 = arith.constant 4 : index
    %c0_267 = arith.constant 0 : index
    %266 = tpu.strided_load %arg9[%c6_265, %c4_266, %c0_267] {strides = array<i32: 4, 4, 1>} : memref<36x68x6xf32, #tpu.memory_space<vmem>>, vector<8x16x6xf32>
    %267 = vector.shape_cast %266 : vector<8x16x6xf32> to vector<128x6xf32>
    %c312 = arith.constant 312 : index
    %c0_268 = arith.constant 0 : index
    %268 = vector.load %arg2[%c312, %c0_268] : memref<384x32xf32, #tpu.memory_space<vmem>>, vector<6x32xf32>
    %cst_269 = arith.constant dense<0.000000e+00> : vector<128x32xf32>
    %269 = tpu.matmul %267, %268, %cst_269 {dimension_numbers = #tpu.dot_dimension_numbers<[1], [0], [0], [1], [0, 0, 1, 1], [], []>} : vector<128x6xf32>, vector<6x32xf32>, vector<128x32xf32> -> vector<128x32xf32>
    %270 = arith.addf %265, %269 : vector<128x32xf32>
    %c6_270 = arith.constant 6 : index
    %c5_271 = arith.constant 5 : index
    %c0_272 = arith.constant 0 : index
    %271 = tpu.strided_load %arg9[%c6_270, %c5_271, %c0_272] {strides = array<i32: 4, 4, 1>} : memref<36x68x6xf32, #tpu.memory_space<vmem>>, vector<8x16x6xf32>
    %272 = vector.shape_cast %271 : vector<8x16x6xf32> to vector<128x6xf32>
    %c318 = arith.constant 318 : index
    %c0_273 = arith.constant 0 : index
    %273 = vector.load %arg2[%c318, %c0_273] : memref<384x32xf32, #tpu.memory_space<vmem>>, vector<6x32xf32>
    %cst_274 = arith.constant dense<0.000000e+00> : vector<128x32xf32>
    %274 = tpu.matmul %272, %273, %cst_274 {dimension_numbers = #tpu.dot_dimension_numbers<[1], [0], [0], [1], [0, 0, 1, 1], [], []>} : vector<128x6xf32>, vector<6x32xf32>, vector<128x32xf32> -> vector<128x32xf32>
    %275 = arith.addf %270, %274 : vector<128x32xf32>
    %c6_275 = arith.constant 6 : index
    %c6_276 = arith.constant 6 : index
    %c0_277 = arith.constant 0 : index
    %276 = tpu.strided_load %arg9[%c6_275, %c6_276, %c0_277] {strides = array<i32: 4, 4, 1>} : memref<36x68x6xf32, #tpu.memory_space<vmem>>, vector<8x16x6xf32>
    %277 = vector.shape_cast %276 : vector<8x16x6xf32> to vector<128x6xf32>
    %c324 = arith.constant 324 : index
    %c0_278 = arith.constant 0 : index
    %278 = vector.load %arg2[%c324, %c0_278] : memref<384x32xf32, #tpu.memory_space<vmem>>, vector<6x32xf32>
    %cst_279 = arith.constant dense<0.000000e+00> : vector<128x32xf32>
    %279 = tpu.matmul %277, %278, %cst_279 {dimension_numbers = #tpu.dot_dimension_numbers<[1], [0], [0], [1], [0, 0, 1, 1], [], []>} : vector<128x6xf32>, vector<6x32xf32>, vector<128x32xf32> -> vector<128x32xf32>
    %280 = arith.addf %275, %279 : vector<128x32xf32>
    %c6_280 = arith.constant 6 : index
    %c7_281 = arith.constant 7 : index
    %c0_282 = arith.constant 0 : index
    %281 = tpu.strided_load %arg9[%c6_280, %c7_281, %c0_282] {strides = array<i32: 4, 4, 1>} : memref<36x68x6xf32, #tpu.memory_space<vmem>>, vector<8x16x6xf32>
    %282 = vector.shape_cast %281 : vector<8x16x6xf32> to vector<128x6xf32>
    %c330 = arith.constant 330 : index
    %c0_283 = arith.constant 0 : index
    %283 = vector.load %arg2[%c330, %c0_283] : memref<384x32xf32, #tpu.memory_space<vmem>>, vector<6x32xf32>
    %cst_284 = arith.constant dense<0.000000e+00> : vector<128x32xf32>
    %284 = tpu.matmul %282, %283, %cst_284 {dimension_numbers = #tpu.dot_dimension_numbers<[1], [0], [0], [1], [0, 0, 1, 1], [], []>} : vector<128x6xf32>, vector<6x32xf32>, vector<128x32xf32> -> vector<128x32xf32>
    %285 = arith.addf %280, %284 : vector<128x32xf32>
    %c7_285 = arith.constant 7 : index
    %c0_286 = arith.constant 0 : index
    %c0_287 = arith.constant 0 : index
    %286 = tpu.strided_load %arg9[%c7_285, %c0_286, %c0_287] {strides = array<i32: 4, 4, 1>} : memref<36x68x6xf32, #tpu.memory_space<vmem>>, vector<8x16x6xf32>
    %287 = vector.shape_cast %286 : vector<8x16x6xf32> to vector<128x6xf32>
    %c336 = arith.constant 336 : index
    %c0_288 = arith.constant 0 : index
    %288 = vector.load %arg2[%c336, %c0_288] : memref<384x32xf32, #tpu.memory_space<vmem>>, vector<6x32xf32>
    %cst_289 = arith.constant dense<0.000000e+00> : vector<128x32xf32>
    %289 = tpu.matmul %287, %288, %cst_289 {dimension_numbers = #tpu.dot_dimension_numbers<[1], [0], [0], [1], [0, 0, 1, 1], [], []>} : vector<128x6xf32>, vector<6x32xf32>, vector<128x32xf32> -> vector<128x32xf32>
    %290 = arith.addf %285, %289 : vector<128x32xf32>
    %c7_290 = arith.constant 7 : index
    %c1_291 = arith.constant 1 : index
    %c0_292 = arith.constant 0 : index
    %291 = tpu.strided_load %arg9[%c7_290, %c1_291, %c0_292] {strides = array<i32: 4, 4, 1>} : memref<36x68x6xf32, #tpu.memory_space<vmem>>, vector<8x16x6xf32>
    %292 = vector.shape_cast %291 : vector<8x16x6xf32> to vector<128x6xf32>
    %c342 = arith.constant 342 : index
    %c0_293 = arith.constant 0 : index
    %293 = vector.load %arg2[%c342, %c0_293] : memref<384x32xf32, #tpu.memory_space<vmem>>, vector<6x32xf32>
    %cst_294 = arith.constant dense<0.000000e+00> : vector<128x32xf32>
    %294 = tpu.matmul %292, %293, %cst_294 {dimension_numbers = #tpu.dot_dimension_numbers<[1], [0], [0], [1], [0, 0, 1, 1], [], []>} : vector<128x6xf32>, vector<6x32xf32>, vector<128x32xf32> -> vector<128x32xf32>
    %295 = arith.addf %290, %294 : vector<128x32xf32>
    %c7_295 = arith.constant 7 : index
    %c2_296 = arith.constant 2 : index
    %c0_297 = arith.constant 0 : index
    %296 = tpu.strided_load %arg9[%c7_295, %c2_296, %c0_297] {strides = array<i32: 4, 4, 1>} : memref<36x68x6xf32, #tpu.memory_space<vmem>>, vector<8x16x6xf32>
    %297 = vector.shape_cast %296 : vector<8x16x6xf32> to vector<128x6xf32>
    %c348 = arith.constant 348 : index
    %c0_298 = arith.constant 0 : index
    %298 = vector.load %arg2[%c348, %c0_298] : memref<384x32xf32, #tpu.memory_space<vmem>>, vector<6x32xf32>
    %cst_299 = arith.constant dense<0.000000e+00> : vector<128x32xf32>
    %299 = tpu.matmul %297, %298, %cst_299 {dimension_numbers = #tpu.dot_dimension_numbers<[1], [0], [0], [1], [0, 0, 1, 1], [], []>} : vector<128x6xf32>, vector<6x32xf32>, vector<128x32xf32> -> vector<128x32xf32>
    %300 = arith.addf %295, %299 : vector<128x32xf32>
    %c7_300 = arith.constant 7 : index
    %c3_301 = arith.constant 3 : index
    %c0_302 = arith.constant 0 : index
    %301 = tpu.strided_load %arg9[%c7_300, %c3_301, %c0_302] {strides = array<i32: 4, 4, 1>} : memref<36x68x6xf32, #tpu.memory_space<vmem>>, vector<8x16x6xf32>
    %302 = vector.shape_cast %301 : vector<8x16x6xf32> to vector<128x6xf32>
    %c354 = arith.constant 354 : index
    %c0_303 = arith.constant 0 : index
    %303 = vector.load %arg2[%c354, %c0_303] : memref<384x32xf32, #tpu.memory_space<vmem>>, vector<6x32xf32>
    %cst_304 = arith.constant dense<0.000000e+00> : vector<128x32xf32>
    %304 = tpu.matmul %302, %303, %cst_304 {dimension_numbers = #tpu.dot_dimension_numbers<[1], [0], [0], [1], [0, 0, 1, 1], [], []>} : vector<128x6xf32>, vector<6x32xf32>, vector<128x32xf32> -> vector<128x32xf32>
    %305 = arith.addf %300, %304 : vector<128x32xf32>
    %c7_305 = arith.constant 7 : index
    %c4_306 = arith.constant 4 : index
    %c0_307 = arith.constant 0 : index
    %306 = tpu.strided_load %arg9[%c7_305, %c4_306, %c0_307] {strides = array<i32: 4, 4, 1>} : memref<36x68x6xf32, #tpu.memory_space<vmem>>, vector<8x16x6xf32>
    %307 = vector.shape_cast %306 : vector<8x16x6xf32> to vector<128x6xf32>
    %c360 = arith.constant 360 : index
    %c0_308 = arith.constant 0 : index
    %308 = vector.load %arg2[%c360, %c0_308] : memref<384x32xf32, #tpu.memory_space<vmem>>, vector<6x32xf32>
    %cst_309 = arith.constant dense<0.000000e+00> : vector<128x32xf32>
    %309 = tpu.matmul %307, %308, %cst_309 {dimension_numbers = #tpu.dot_dimension_numbers<[1], [0], [0], [1], [0, 0, 1, 1], [], []>} : vector<128x6xf32>, vector<6x32xf32>, vector<128x32xf32> -> vector<128x32xf32>
    %310 = arith.addf %305, %309 : vector<128x32xf32>
    %c7_310 = arith.constant 7 : index
    %c5_311 = arith.constant 5 : index
    %c0_312 = arith.constant 0 : index
    %311 = tpu.strided_load %arg9[%c7_310, %c5_311, %c0_312] {strides = array<i32: 4, 4, 1>} : memref<36x68x6xf32, #tpu.memory_space<vmem>>, vector<8x16x6xf32>
    %312 = vector.shape_cast %311 : vector<8x16x6xf32> to vector<128x6xf32>
    %c366 = arith.constant 366 : index
    %c0_313 = arith.constant 0 : index
    %313 = vector.load %arg2[%c366, %c0_313] : memref<384x32xf32, #tpu.memory_space<vmem>>, vector<6x32xf32>
    %cst_314 = arith.constant dense<0.000000e+00> : vector<128x32xf32>
    %314 = tpu.matmul %312, %313, %cst_314 {dimension_numbers = #tpu.dot_dimension_numbers<[1], [0], [0], [1], [0, 0, 1, 1], [], []>} : vector<128x6xf32>, vector<6x32xf32>, vector<128x32xf32> -> vector<128x32xf32>
    %315 = arith.addf %310, %314 : vector<128x32xf32>
    %c7_315 = arith.constant 7 : index
    %c6_316 = arith.constant 6 : index
    %c0_317 = arith.constant 0 : index
    %316 = tpu.strided_load %arg9[%c7_315, %c6_316, %c0_317] {strides = array<i32: 4, 4, 1>} : memref<36x68x6xf32, #tpu.memory_space<vmem>>, vector<8x16x6xf32>
    %317 = vector.shape_cast %316 : vector<8x16x6xf32> to vector<128x6xf32>
    %c372 = arith.constant 372 : index
    %c0_318 = arith.constant 0 : index
    %318 = vector.load %arg2[%c372, %c0_318] : memref<384x32xf32, #tpu.memory_space<vmem>>, vector<6x32xf32>
    %cst_319 = arith.constant dense<0.000000e+00> : vector<128x32xf32>
    %319 = tpu.matmul %317, %318, %cst_319 {dimension_numbers = #tpu.dot_dimension_numbers<[1], [0], [0], [1], [0, 0, 1, 1], [], []>} : vector<128x6xf32>, vector<6x32xf32>, vector<128x32xf32> -> vector<128x32xf32>
    %320 = arith.addf %315, %319 : vector<128x32xf32>
    %c7_320 = arith.constant 7 : index
    %c7_321 = arith.constant 7 : index
    %c0_322 = arith.constant 0 : index
    %321 = tpu.strided_load %arg9[%c7_320, %c7_321, %c0_322] {strides = array<i32: 4, 4, 1>} : memref<36x68x6xf32, #tpu.memory_space<vmem>>, vector<8x16x6xf32>
    %322 = vector.shape_cast %321 : vector<8x16x6xf32> to vector<128x6xf32>
    %c378 = arith.constant 378 : index
    %c0_323 = arith.constant 0 : index
    %323 = vector.load %arg2[%c378, %c0_323] : memref<384x32xf32, #tpu.memory_space<vmem>>, vector<6x32xf32>
    %cst_324 = arith.constant dense<0.000000e+00> : vector<128x32xf32>
    %324 = tpu.matmul %322, %323, %cst_324 {dimension_numbers = #tpu.dot_dimension_numbers<[1], [0], [0], [1], [0, 0, 1, 1], [], []>} : vector<128x6xf32>, vector<6x32xf32>, vector<128x32xf32> -> vector<128x32xf32>
    %325 = arith.addf %320, %324 : vector<128x32xf32>
    %c0_325 = arith.constant 0 : index
    %c0_326 = arith.constant 0 : index
    %326 = vector.load %arg3[%c0_325, %c0_326] : memref<1x32xf32, #tpu.memory_space<vmem>>, vector<1x32xf32>
    %327 = vector.broadcast %326 : vector<1x32xf32> to vector<128x32xf32>
    %328 = arith.addf %325, %327 : vector<128x32xf32>
    %cst_327 = arith.constant 0.000000e+00 : f32
    %329 = vector.broadcast %cst_327 : f32 to vector<128x32xf32>
    %330 = arith.maximumf %328, %329 : vector<128x32xf32>
    %331 = vector.shape_cast %330 : vector<128x32xf32> to vector<8x16x32xf32>
    %cst_328 = arith.constant 0.000000e+00 : f32
    %332 = vector.broadcast %cst_328 : f32 to vector<10x18x32xf32>
    %c0_329 = arith.constant 0 : index
    %c0_330 = arith.constant 0 : index
    %c0_331 = arith.constant 0 : index
    %333 = vector.load %arg10[%c0_329, %c0_330, %c0_331] : memref<10x18x32xf32, #tpu.memory_space<vmem>>, vector<10x18x32xf32>
    tpu.vector_store %arg10[%c0_329, %c0_330, %c0_331], %332 {strides = array<i32>} : memref<10x18x32xf32, #tpu.memory_space<vmem>>, vector<10x18x32xf32>,
    %c1_332 = arith.constant 1 : index
    %c1_333 = arith.constant 1 : index
    %c0_334 = arith.constant 0 : index
    %334 = vector.load %arg10[%c1_332, %c1_333, %c0_334] : memref<10x18x32xf32, #tpu.memory_space<vmem>>, vector<8x16x32xf32>
    tpu.vector_store %arg10[%c1_332, %c1_333, %c0_334], %331 {strides = array<i32>} : memref<10x18x32xf32, #tpu.memory_space<vmem>>, vector<8x16x32xf32>,
    %cst_335 = arith.constant 0.000000e+00 : f32
    %335 = vector.broadcast %cst_335 : f32 to vector<32x64xf32>
    %c0_336 = arith.constant 0 : index
    %c0_337 = arith.constant 0 : index
    %c0_338 = arith.constant 0 : index
    %336 = tpu.strided_load %arg10[%c0_336, %c0_337, %c0_338] {strides = array<i32: 2, 2, 1>} : memref<10x18x32xf32, #tpu.memory_space<vmem>>, vector<4x8x32xf32>
    %337 = vector.shape_cast %336 : vector<4x8x32xf32> to vector<32x32xf32>
    %c0_339 = arith.constant 0 : index
    %c0_340 = arith.constant 0 : index
    %338 = vector.load %arg4[%c0_339, %c0_340] : memref<512x64xf32, #tpu.memory_space<vmem>>, vector<32x64xf32>
    %cst_341 = arith.constant dense<0.000000e+00> : vector<32x64xf32>
    %339 = tpu.matmul %337, %338, %cst_341 {dimension_numbers = #tpu.dot_dimension_numbers<[1], [0], [0], [1], [0, 0, 1, 1], [], []>} : vector<32x32xf32>, vector<32x64xf32>, vector<32x64xf32> -> vector<32x64xf32>
    %340 = arith.addf %335, %339 : vector<32x64xf32>
    %c0_342 = arith.constant 0 : index
    %c1_343 = arith.constant 1 : index
    %c0_344 = arith.constant 0 : index
    %341 = tpu.strided_load %arg10[%c0_342, %c1_343, %c0_344] {strides = array<i32: 2, 2, 1>} : memref<10x18x32xf32, #tpu.memory_space<vmem>>, vector<4x8x32xf32>
    %342 = vector.shape_cast %341 : vector<4x8x32xf32> to vector<32x32xf32>
    %c32 = arith.constant 32 : index
    %c0_345 = arith.constant 0 : index
    %343 = vector.load %arg4[%c32, %c0_345] : memref<512x64xf32, #tpu.memory_space<vmem>>, vector<32x64xf32>
    %cst_346 = arith.constant dense<0.000000e+00> : vector<32x64xf32>
    %344 = tpu.matmul %342, %343, %cst_346 {dimension_numbers = #tpu.dot_dimension_numbers<[1], [0], [0], [1], [0, 0, 1, 1], [], []>} : vector<32x32xf32>, vector<32x64xf32>, vector<32x64xf32> -> vector<32x64xf32>
    %345 = arith.addf %340, %344 : vector<32x64xf32>
    %c0_347 = arith.constant 0 : index
    %c2_348 = arith.constant 2 : index
    %c0_349 = arith.constant 0 : index
    %346 = tpu.strided_load %arg10[%c0_347, %c2_348, %c0_349] {strides = array<i32: 2, 2, 1>} : memref<10x18x32xf32, #tpu.memory_space<vmem>>, vector<4x8x32xf32>
    %347 = vector.shape_cast %346 : vector<4x8x32xf32> to vector<32x32xf32>
    %c64 = arith.constant 64 : index
    %c0_350 = arith.constant 0 : index
    %348 = vector.load %arg4[%c64, %c0_350] : memref<512x64xf32, #tpu.memory_space<vmem>>, vector<32x64xf32>
    %cst_351 = arith.constant dense<0.000000e+00> : vector<32x64xf32>
    %349 = tpu.matmul %347, %348, %cst_351 {dimension_numbers = #tpu.dot_dimension_numbers<[1], [0], [0], [1], [0, 0, 1, 1], [], []>} : vector<32x32xf32>, vector<32x64xf32>, vector<32x64xf32> -> vector<32x64xf32>
    %350 = arith.addf %345, %349 : vector<32x64xf32>
    %c0_352 = arith.constant 0 : index
    %c3_353 = arith.constant 3 : index
    %c0_354 = arith.constant 0 : index
    %351 = tpu.strided_load %arg10[%c0_352, %c3_353, %c0_354] {strides = array<i32: 2, 2, 1>} : memref<10x18x32xf32, #tpu.memory_space<vmem>>, vector<4x8x32xf32>
    %352 = vector.shape_cast %351 : vector<4x8x32xf32> to vector<32x32xf32>
    %c96_355 = arith.constant 96 : index
    %c0_356 = arith.constant 0 : index
    %353 = vector.load %arg4[%c96_355, %c0_356] : memref<512x64xf32, #tpu.memory_space<vmem>>, vector<32x64xf32>
    %cst_357 = arith.constant dense<0.000000e+00> : vector<32x64xf32>
    %354 = tpu.matmul %352, %353, %cst_357 {dimension_numbers = #tpu.dot_dimension_numbers<[1], [0], [0], [1], [0, 0, 1, 1], [], []>} : vector<32x32xf32>, vector<32x64xf32>, vector<32x64xf32> -> vector<32x64xf32>
    %355 = arith.addf %350, %354 : vector<32x64xf32>
    %c1_358 = arith.constant 1 : index
    %c0_359 = arith.constant 0 : index
    %c0_360 = arith.constant 0 : index
    %356 = tpu.strided_load %arg10[%c1_358, %c0_359, %c0_360] {strides = array<i32: 2, 2, 1>} : memref<10x18x32xf32, #tpu.memory_space<vmem>>, vector<4x8x32xf32>
    %357 = vector.shape_cast %356 : vector<4x8x32xf32> to vector<32x32xf32>
    %c128 = arith.constant 128 : index
    %c0_361 = arith.constant 0 : index
    %358 = vector.load %arg4[%c128, %c0_361] : memref<512x64xf32, #tpu.memory_space<vmem>>, vector<32x64xf32>
    %cst_362 = arith.constant dense<0.000000e+00> : vector<32x64xf32>
    %359 = tpu.matmul %357, %358, %cst_362 {dimension_numbers = #tpu.dot_dimension_numbers<[1], [0], [0], [1], [0, 0, 1, 1], [], []>} : vector<32x32xf32>, vector<32x64xf32>, vector<32x64xf32> -> vector<32x64xf32>
    %360 = arith.addf %355, %359 : vector<32x64xf32>
    %c1_363 = arith.constant 1 : index
    %c1_364 = arith.constant 1 : index
    %c0_365 = arith.constant 0 : index
    %361 = tpu.strided_load %arg10[%c1_363, %c1_364, %c0_365] {strides = array<i32: 2, 2, 1>} : memref<10x18x32xf32, #tpu.memory_space<vmem>>, vector<4x8x32xf32>
    %362 = vector.shape_cast %361 : vector<4x8x32xf32> to vector<32x32xf32>
    %c160 = arith.constant 160 : index
    %c0_366 = arith.constant 0 : index
    %363 = vector.load %arg4[%c160, %c0_366] : memref<512x64xf32, #tpu.memory_space<vmem>>, vector<32x64xf32>
    %cst_367 = arith.constant dense<0.000000e+00> : vector<32x64xf32>
    %364 = tpu.matmul %362, %363, %cst_367 {dimension_numbers = #tpu.dot_dimension_numbers<[1], [0], [0], [1], [0, 0, 1, 1], [], []>} : vector<32x32xf32>, vector<32x64xf32>, vector<32x64xf32> -> vector<32x64xf32>
    %365 = arith.addf %360, %364 : vector<32x64xf32>
    %c1_368 = arith.constant 1 : index
    %c2_369 = arith.constant 2 : index
    %c0_370 = arith.constant 0 : index
    %366 = tpu.strided_load %arg10[%c1_368, %c2_369, %c0_370] {strides = array<i32: 2, 2, 1>} : memref<10x18x32xf32, #tpu.memory_space<vmem>>, vector<4x8x32xf32>
    %367 = vector.shape_cast %366 : vector<4x8x32xf32> to vector<32x32xf32>
    %c192_371 = arith.constant 192 : index
    %c0_372 = arith.constant 0 : index
    %368 = vector.load %arg4[%c192_371, %c0_372] : memref<512x64xf32, #tpu.memory_space<vmem>>, vector<32x64xf32>
    %cst_373 = arith.constant dense<0.000000e+00> : vector<32x64xf32>
    %369 = tpu.matmul %367, %368, %cst_373 {dimension_numbers = #tpu.dot_dimension_numbers<[1], [0], [0], [1], [0, 0, 1, 1], [], []>} : vector<32x32xf32>, vector<32x64xf32>, vector<32x64xf32> -> vector<32x64xf32>
    %370 = arith.addf %365, %369 : vector<32x64xf32>
    %c1_374 = arith.constant 1 : index
    %c3_375 = arith.constant 3 : index
    %c0_376 = arith.constant 0 : index
    %371 = tpu.strided_load %arg10[%c1_374, %c3_375, %c0_376] {strides = array<i32: 2, 2, 1>} : memref<10x18x32xf32, #tpu.memory_space<vmem>>, vector<4x8x32xf32>
    %372 = vector.shape_cast %371 : vector<4x8x32xf32> to vector<32x32xf32>
    %c224 = arith.constant 224 : index
    %c0_377 = arith.constant 0 : index
    %373 = vector.load %arg4[%c224, %c0_377] : memref<512x64xf32, #tpu.memory_space<vmem>>, vector<32x64xf32>
    %cst_378 = arith.constant dense<0.000000e+00> : vector<32x64xf32>
    %374 = tpu.matmul %372, %373, %cst_378 {dimension_numbers = #tpu.dot_dimension_numbers<[1], [0], [0], [1], [0, 0, 1, 1], [], []>} : vector<32x32xf32>, vector<32x64xf32>, vector<32x64xf32> -> vector<32x64xf32>
    %375 = arith.addf %370, %374 : vector<32x64xf32>
    %c2_379 = arith.constant 2 : index
    %c0_380 = arith.constant 0 : index
    %c0_381 = arith.constant 0 : index
    %376 = tpu.strided_load %arg10[%c2_379, %c0_380, %c0_381] {strides = array<i32: 2, 2, 1>} : memref<10x18x32xf32, #tpu.memory_space<vmem>>, vector<4x8x32xf32>
    %377 = vector.shape_cast %376 : vector<4x8x32xf32> to vector<32x32xf32>
    %c256 = arith.constant 256 : index
    %c0_382 = arith.constant 0 : index
    %378 = vector.load %arg4[%c256, %c0_382] : memref<512x64xf32, #tpu.memory_space<vmem>>, vector<32x64xf32>
    %cst_383 = arith.constant dense<0.000000e+00> : vector<32x64xf32>
    %379 = tpu.matmul %377, %378, %cst_383 {dimension_numbers = #tpu.dot_dimension_numbers<[1], [0], [0], [1], [0, 0, 1, 1], [], []>} : vector<32x32xf32>, vector<32x64xf32>, vector<32x64xf32> -> vector<32x64xf32>
    %380 = arith.addf %375, %379 : vector<32x64xf32>
    %c2_384 = arith.constant 2 : index
    %c1_385 = arith.constant 1 : index
    %c0_386 = arith.constant 0 : index
    %381 = tpu.strided_load %arg10[%c2_384, %c1_385, %c0_386] {strides = array<i32: 2, 2, 1>} : memref<10x18x32xf32, #tpu.memory_space<vmem>>, vector<4x8x32xf32>
    %382 = vector.shape_cast %381 : vector<4x8x32xf32> to vector<32x32xf32>
    %c288_387 = arith.constant 288 : index
    %c0_388 = arith.constant 0 : index
    %383 = vector.load %arg4[%c288_387, %c0_388] : memref<512x64xf32, #tpu.memory_space<vmem>>, vector<32x64xf32>
    %cst_389 = arith.constant dense<0.000000e+00> : vector<32x64xf32>
    %384 = tpu.matmul %382, %383, %cst_389 {dimension_numbers = #tpu.dot_dimension_numbers<[1], [0], [0], [1], [0, 0, 1, 1], [], []>} : vector<32x32xf32>, vector<32x64xf32>, vector<32x64xf32> -> vector<32x64xf32>
    %385 = arith.addf %380, %384 : vector<32x64xf32>
    %c2_390 = arith.constant 2 : index
    %c2_391 = arith.constant 2 : index
    %c0_392 = arith.constant 0 : index
    %386 = tpu.strided_load %arg10[%c2_390, %c2_391, %c0_392] {strides = array<i32: 2, 2, 1>} : memref<10x18x32xf32, #tpu.memory_space<vmem>>, vector<4x8x32xf32>
    %387 = vector.shape_cast %386 : vector<4x8x32xf32> to vector<32x32xf32>
    %c320 = arith.constant 320 : index
    %c0_393 = arith.constant 0 : index
    %388 = vector.load %arg4[%c320, %c0_393] : memref<512x64xf32, #tpu.memory_space<vmem>>, vector<32x64xf32>
    %cst_394 = arith.constant dense<0.000000e+00> : vector<32x64xf32>
    %389 = tpu.matmul %387, %388, %cst_394 {dimension_numbers = #tpu.dot_dimension_numbers<[1], [0], [0], [1], [0, 0, 1, 1], [], []>} : vector<32x32xf32>, vector<32x64xf32>, vector<32x64xf32> -> vector<32x64xf32>
    %390 = arith.addf %385, %389 : vector<32x64xf32>
    %c2_395 = arith.constant 2 : index
    %c3_396 = arith.constant 3 : index
    %c0_397 = arith.constant 0 : index
    %391 = tpu.strided_load %arg10[%c2_395, %c3_396, %c0_397] {strides = array<i32: 2, 2, 1>} : memref<10x18x32xf32, #tpu.memory_space<vmem>>, vector<4x8x32xf32>
    %392 = vector.shape_cast %391 : vector<4x8x32xf32> to vector<32x32xf32>
    %c352 = arith.constant 352 : index
    %c0_398 = arith.constant 0 : index
    %393 = vector.load %arg4[%c352, %c0_398] : memref<512x64xf32, #tpu.memory_space<vmem>>, vector<32x64xf32>
    %cst_399 = arith.constant dense<0.000000e+00> : vector<32x64xf32>
    %394 = tpu.matmul %392, %393, %cst_399 {dimension_numbers = #tpu.dot_dimension_numbers<[1], [0], [0], [1], [0, 0, 1, 1], [], []>} : vector<32x32xf32>, vector<32x64xf32>, vector<32x64xf32> -> vector<32x64xf32>
    %395 = arith.addf %390, %394 : vector<32x64xf32>
    %c3_400 = arith.constant 3 : index
    %c0_401 = arith.constant 0 : index
    %c0_402 = arith.constant 0 : index
    %396 = tpu.strided_load %arg10[%c3_400, %c0_401, %c0_402] {strides = array<i32: 2, 2, 1>} : memref<10x18x32xf32, #tpu.memory_space<vmem>>, vector<4x8x32xf32>
    %397 = vector.shape_cast %396 : vector<4x8x32xf32> to vector<32x32xf32>
    %c384 = arith.constant 384 : index
    %c0_403 = arith.constant 0 : index
    %398 = vector.load %arg4[%c384, %c0_403] : memref<512x64xf32, #tpu.memory_space<vmem>>, vector<32x64xf32>
    %cst_404 = arith.constant dense<0.000000e+00> : vector<32x64xf32>
    %399 = tpu.matmul %397, %398, %cst_404 {dimension_numbers = #tpu.dot_dimension_numbers<[1], [0], [0], [1], [0, 0, 1, 1], [], []>} : vector<32x32xf32>, vector<32x64xf32>, vector<32x64xf32> -> vector<32x64xf32>
    %400 = arith.addf %395, %399 : vector<32x64xf32>
    %c3_405 = arith.constant 3 : index
    %c1_406 = arith.constant 1 : index
    %c0_407 = arith.constant 0 : index
    %401 = tpu.strided_load %arg10[%c3_405, %c1_406, %c0_407] {strides = array<i32: 2, 2, 1>} : memref<10x18x32xf32, #tpu.memory_space<vmem>>, vector<4x8x32xf32>
    %402 = vector.shape_cast %401 : vector<4x8x32xf32> to vector<32x32xf32>
    %c416 = arith.constant 416 : index
    %c0_408 = arith.constant 0 : index
    %403 = vector.load %arg4[%c416, %c0_408] : memref<512x64xf32, #tpu.memory_space<vmem>>, vector<32x64xf32>
    %cst_409 = arith.constant dense<0.000000e+00> : vector<32x64xf32>
    %404 = tpu.matmul %402, %403, %cst_409 {dimension_numbers = #tpu.dot_dimension_numbers<[1], [0], [0], [1], [0, 0, 1, 1], [], []>} : vector<32x32xf32>, vector<32x64xf32>, vector<32x64xf32> -> vector<32x64xf32>
    %405 = arith.addf %400, %404 : vector<32x64xf32>
    %c3_410 = arith.constant 3 : index
    %c2_411 = arith.constant 2 : index
    %c0_412 = arith.constant 0 : index
    %406 = tpu.strided_load %arg10[%c3_410, %c2_411, %c0_412] {strides = array<i32: 2, 2, 1>} : memref<10x18x32xf32, #tpu.memory_space<vmem>>, vector<4x8x32xf32>
    %407 = vector.shape_cast %406 : vector<4x8x32xf32> to vector<32x32xf32>
    %c448 = arith.constant 448 : index
    %c0_413 = arith.constant 0 : index
    %408 = vector.load %arg4[%c448, %c0_413] : memref<512x64xf32, #tpu.memory_space<vmem>>, vector<32x64xf32>
    %cst_414 = arith.constant dense<0.000000e+00> : vector<32x64xf32>
    %409 = tpu.matmul %407, %408, %cst_414 {dimension_numbers = #tpu.dot_dimension_numbers<[1], [0], [0], [1], [0, 0, 1, 1], [], []>} : vector<32x32xf32>, vector<32x64xf32>, vector<32x64xf32> -> vector<32x64xf32>
    %410 = arith.addf %405, %409 : vector<32x64xf32>
    %c3_415 = arith.constant 3 : index
    %c3_416 = arith.constant 3 : index
    %c0_417 = arith.constant 0 : index
    %411 = tpu.strided_load %arg10[%c3_415, %c3_416, %c0_417] {strides = array<i32: 2, 2, 1>} : memref<10x18x32xf32, #tpu.memory_space<vmem>>, vector<4x8x32xf32>
    %412 = vector.shape_cast %411 : vector<4x8x32xf32> to vector<32x32xf32>
    %c480 = arith.constant 480 : index
    %c0_418 = arith.constant 0 : index
    %413 = vector.load %arg4[%c480, %c0_418] : memref<512x64xf32, #tpu.memory_space<vmem>>, vector<32x64xf32>
    %cst_419 = arith.constant dense<0.000000e+00> : vector<32x64xf32>
    %414 = tpu.matmul %412, %413, %cst_419 {dimension_numbers = #tpu.dot_dimension_numbers<[1], [0], [0], [1], [0, 0, 1, 1], [], []>} : vector<32x32xf32>, vector<32x64xf32>, vector<32x64xf32> -> vector<32x64xf32>
    %415 = arith.addf %410, %414 : vector<32x64xf32>
    %c0_420 = arith.constant 0 : index
    %c0_421 = arith.constant 0 : index
    %416 = vector.load %arg5[%c0_420, %c0_421] : memref<1x64xf32, #tpu.memory_space<vmem>>, vector<1x64xf32>
    %417 = vector.broadcast %416 : vector<1x64xf32> to vector<32x64xf32>
    %418 = arith.addf %415, %417 : vector<32x64xf32>
    %cst_422 = arith.constant 0.000000e+00 : f32
    %419 = vector.broadcast %cst_422 : f32 to vector<32x64xf32>
    %420 = arith.maximumf %418, %419 : vector<32x64xf32>
    %421 = vector.shape_cast %420 : vector<32x64xf32> to vector<4x8x64xf32>
    %cst_423 = arith.constant 0.000000e+00 : f32
    %422 = vector.broadcast %cst_423 : f32 to vector<6x10x64xf32>
    %c0_424 = arith.constant 0 : index
    %c0_425 = arith.constant 0 : index
    %c0_426 = arith.constant 0 : index
    %423 = vector.load %arg11[%c0_424, %c0_425, %c0_426] : memref<6x10x64xf32, #tpu.memory_space<vmem>>, vector<6x10x64xf32>
    tpu.vector_store %arg11[%c0_424, %c0_425, %c0_426], %422 {strides = array<i32>} : memref<6x10x64xf32, #tpu.memory_space<vmem>>, vector<6x10x64xf32>,
    %c1_427 = arith.constant 1 : index
    %c1_428 = arith.constant 1 : index
    %c0_429 = arith.constant 0 : index
    %424 = vector.load %arg11[%c1_427, %c1_428, %c0_429] : memref<6x10x64xf32, #tpu.memory_space<vmem>>, vector<4x8x64xf32>
    tpu.vector_store %arg11[%c1_427, %c1_428, %c0_429], %421 {strides = array<i32>} : memref<6x10x64xf32, #tpu.memory_space<vmem>>, vector<4x8x64xf32>,
    %cst_430 = arith.constant 0.000000e+00 : f32
    %425 = vector.broadcast %cst_430 : f32 to vector<32x64xf32>
    %c0_431 = arith.constant 0 : index
    %c0_432 = arith.constant 0 : index
    %c0_433 = arith.constant 0 : index
    %426 = vector.load %arg11[%c0_431, %c0_432, %c0_433] : memref<6x10x64xf32, #tpu.memory_space<vmem>>, vector<4x8x64xf32>
    %427 = vector.shape_cast %426 : vector<4x8x64xf32> to vector<32x64xf32>
    %c0_434 = arith.constant 0 : index
    %c0_435 = arith.constant 0 : index
    %428 = vector.load %arg6[%c0_434, %c0_435] : memref<576x64xf32, #tpu.memory_space<vmem>>, vector<64x64xf32>
    %cst_436 = arith.constant dense<0.000000e+00> : vector<32x64xf32>
    %429 = tpu.matmul %427, %428, %cst_436 {dimension_numbers = #tpu.dot_dimension_numbers<[1], [0], [0], [1], [0, 0, 1, 1], [], []>} : vector<32x64xf32>, vector<64x64xf32>, vector<32x64xf32> -> vector<32x64xf32>
    %430 = arith.addf %425, %429 : vector<32x64xf32>
    %c0_437 = arith.constant 0 : index
    %c1_438 = arith.constant 1 : index
    %c0_439 = arith.constant 0 : index
    %431 = vector.load %arg11[%c0_437, %c1_438, %c0_439] : memref<6x10x64xf32, #tpu.memory_space<vmem>>, vector<4x8x64xf32>
    %432 = vector.shape_cast %431 : vector<4x8x64xf32> to vector<32x64xf32>
    %c64_440 = arith.constant 64 : index
    %c0_441 = arith.constant 0 : index
    %433 = vector.load %arg6[%c64_440, %c0_441] : memref<576x64xf32, #tpu.memory_space<vmem>>, vector<64x64xf32>
    %cst_442 = arith.constant dense<0.000000e+00> : vector<32x64xf32>
    %434 = tpu.matmul %432, %433, %cst_442 {dimension_numbers = #tpu.dot_dimension_numbers<[1], [0], [0], [1], [0, 0, 1, 1], [], []>} : vector<32x64xf32>, vector<64x64xf32>, vector<32x64xf32> -> vector<32x64xf32>
    %435 = arith.addf %430, %434 : vector<32x64xf32>
    %c0_443 = arith.constant 0 : index
    %c2_444 = arith.constant 2 : index
    %c0_445 = arith.constant 0 : index
    %436 = vector.load %arg11[%c0_443, %c2_444, %c0_445] : memref<6x10x64xf32, #tpu.memory_space<vmem>>, vector<4x8x64xf32>
    %437 = vector.shape_cast %436 : vector<4x8x64xf32> to vector<32x64xf32>
    %c128_446 = arith.constant 128 : index
    %c0_447 = arith.constant 0 : index
    %438 = vector.load %arg6[%c128_446, %c0_447] : memref<576x64xf32, #tpu.memory_space<vmem>>, vector<64x64xf32>
    %cst_448 = arith.constant dense<0.000000e+00> : vector<32x64xf32>
    %439 = tpu.matmul %437, %438, %cst_448 {dimension_numbers = #tpu.dot_dimension_numbers<[1], [0], [0], [1], [0, 0, 1, 1], [], []>} : vector<32x64xf32>, vector<64x64xf32>, vector<32x64xf32> -> vector<32x64xf32>
    %440 = arith.addf %435, %439 : vector<32x64xf32>
    %c1_449 = arith.constant 1 : index
    %c0_450 = arith.constant 0 : index
    %c0_451 = arith.constant 0 : index
    %441 = vector.load %arg11[%c1_449, %c0_450, %c0_451] : memref<6x10x64xf32, #tpu.memory_space<vmem>>, vector<4x8x64xf32>
    %442 = vector.shape_cast %441 : vector<4x8x64xf32> to vector<32x64xf32>
    %c192_452 = arith.constant 192 : index
    %c0_453 = arith.constant 0 : index
    %443 = vector.load %arg6[%c192_452, %c0_453] : memref<576x64xf32, #tpu.memory_space<vmem>>, vector<64x64xf32>
    %cst_454 = arith.constant dense<0.000000e+00> : vector<32x64xf32>
    %444 = tpu.matmul %442, %443, %cst_454 {dimension_numbers = #tpu.dot_dimension_numbers<[1], [0], [0], [1], [0, 0, 1, 1], [], []>} : vector<32x64xf32>, vector<64x64xf32>, vector<32x64xf32> -> vector<32x64xf32>
    %445 = arith.addf %440, %444 : vector<32x64xf32>
    %c1_455 = arith.constant 1 : index
    %c1_456 = arith.constant 1 : index
    %c0_457 = arith.constant 0 : index
    %446 = vector.load %arg11[%c1_455, %c1_456, %c0_457] : memref<6x10x64xf32, #tpu.memory_space<vmem>>, vector<4x8x64xf32>
    %447 = vector.shape_cast %446 : vector<4x8x64xf32> to vector<32x64xf32>
    %c256_458 = arith.constant 256 : index
    %c0_459 = arith.constant 0 : index
    %448 = vector.load %arg6[%c256_458, %c0_459] : memref<576x64xf32, #tpu.memory_space<vmem>>, vector<64x64xf32>
    %cst_460 = arith.constant dense<0.000000e+00> : vector<32x64xf32>
    %449 = tpu.matmul %447, %448, %cst_460 {dimension_numbers = #tpu.dot_dimension_numbers<[1], [0], [0], [1], [0, 0, 1, 1], [], []>} : vector<32x64xf32>, vector<64x64xf32>, vector<32x64xf32> -> vector<32x64xf32>
    %450 = arith.addf %445, %449 : vector<32x64xf32>
    %c1_461 = arith.constant 1 : index
    %c2_462 = arith.constant 2 : index
    %c0_463 = arith.constant 0 : index
    %451 = vector.load %arg11[%c1_461, %c2_462, %c0_463] : memref<6x10x64xf32, #tpu.memory_space<vmem>>, vector<4x8x64xf32>
    %452 = vector.shape_cast %451 : vector<4x8x64xf32> to vector<32x64xf32>
    %c320_464 = arith.constant 320 : index
    %c0_465 = arith.constant 0 : index
    %453 = vector.load %arg6[%c320_464, %c0_465] : memref<576x64xf32, #tpu.memory_space<vmem>>, vector<64x64xf32>
    %cst_466 = arith.constant dense<0.000000e+00> : vector<32x64xf32>
    %454 = tpu.matmul %452, %453, %cst_466 {dimension_numbers = #tpu.dot_dimension_numbers<[1], [0], [0], [1], [0, 0, 1, 1], [], []>} : vector<32x64xf32>, vector<64x64xf32>, vector<32x64xf32> -> vector<32x64xf32>
    %455 = arith.addf %450, %454 : vector<32x64xf32>
    %c2_467 = arith.constant 2 : index
    %c0_468 = arith.constant 0 : index
    %c0_469 = arith.constant 0 : index
    %456 = vector.load %arg11[%c2_467, %c0_468, %c0_469] : memref<6x10x64xf32, #tpu.memory_space<vmem>>, vector<4x8x64xf32>
    %457 = vector.shape_cast %456 : vector<4x8x64xf32> to vector<32x64xf32>
    %c384_470 = arith.constant 384 : index
    %c0_471 = arith.constant 0 : index
    %458 = vector.load %arg6[%c384_470, %c0_471] : memref<576x64xf32, #tpu.memory_space<vmem>>, vector<64x64xf32>
    %cst_472 = arith.constant dense<0.000000e+00> : vector<32x64xf32>
    %459 = tpu.matmul %457, %458, %cst_472 {dimension_numbers = #tpu.dot_dimension_numbers<[1], [0], [0], [1], [0, 0, 1, 1], [], []>} : vector<32x64xf32>, vector<64x64xf32>, vector<32x64xf32> -> vector<32x64xf32>
    %460 = arith.addf %455, %459 : vector<32x64xf32>
    %c2_473 = arith.constant 2 : index
    %c1_474 = arith.constant 1 : index
    %c0_475 = arith.constant 0 : index
    %461 = vector.load %arg11[%c2_473, %c1_474, %c0_475] : memref<6x10x64xf32, #tpu.memory_space<vmem>>, vector<4x8x64xf32>
    %462 = vector.shape_cast %461 : vector<4x8x64xf32> to vector<32x64xf32>
    %c448_476 = arith.constant 448 : index
    %c0_477 = arith.constant 0 : index
    %463 = vector.load %arg6[%c448_476, %c0_477] : memref<576x64xf32, #tpu.memory_space<vmem>>, vector<64x64xf32>
    %cst_478 = arith.constant dense<0.000000e+00> : vector<32x64xf32>
    %464 = tpu.matmul %462, %463, %cst_478 {dimension_numbers = #tpu.dot_dimension_numbers<[1], [0], [0], [1], [0, 0, 1, 1], [], []>} : vector<32x64xf32>, vector<64x64xf32>, vector<32x64xf32> -> vector<32x64xf32>
    %465 = arith.addf %460, %464 : vector<32x64xf32>
    %c2_479 = arith.constant 2 : index
    %c2_480 = arith.constant 2 : index
    %c0_481 = arith.constant 0 : index
    %466 = vector.load %arg11[%c2_479, %c2_480, %c0_481] : memref<6x10x64xf32, #tpu.memory_space<vmem>>, vector<4x8x64xf32>
    %467 = vector.shape_cast %466 : vector<4x8x64xf32> to vector<32x64xf32>
    %c512 = arith.constant 512 : index
    %c0_482 = arith.constant 0 : index
    %468 = vector.load %arg6[%c512, %c0_482] : memref<576x64xf32, #tpu.memory_space<vmem>>, vector<64x64xf32>
    %cst_483 = arith.constant dense<0.000000e+00> : vector<32x64xf32>
    %469 = tpu.matmul %467, %468, %cst_483 {dimension_numbers = #tpu.dot_dimension_numbers<[1], [0], [0], [1], [0, 0, 1, 1], [], []>} : vector<32x64xf32>, vector<64x64xf32>, vector<32x64xf32> -> vector<32x64xf32>
    %470 = arith.addf %465, %469 : vector<32x64xf32>
    %c0_484 = arith.constant 0 : index
    %c0_485 = arith.constant 0 : index
    %471 = vector.load %arg7[%c0_484, %c0_485] : memref<1x64xf32, #tpu.memory_space<vmem>>, vector<1x64xf32>
    %472 = vector.broadcast %471 : vector<1x64xf32> to vector<32x64xf32>
    %473 = arith.addf %470, %472 : vector<32x64xf32>
    %cst_486 = arith.constant 0.000000e+00 : f32
    %474 = vector.broadcast %cst_486 : f32 to vector<32x64xf32>
    %475 = arith.maximumf %473, %474 : vector<32x64xf32>
    %476 = arith.truncf %475 : vector<32x64xf32> to vector<32x64xbf16>
    %c0_487 = arith.constant 0 : index
    %c0_488 = arith.constant 0 : index
    %c0_489 = arith.constant 0 : index
    %477 = vector.load %arg8[%c0_487, %c0_488, %c0_489] : memref<1x32x64xbf16, #tpu.memory_space<vmem>>, vector<1x32x64xbf16>
    %478 = vector.shape_cast %477 : vector<1x32x64xbf16> to vector<32x64xbf16>
    %479 = vector.shape_cast %476 : vector<32x64xbf16> to vector<1x32x64xbf16>
    tpu.vector_store %arg8[%c0_487, %c0_488, %c0_489], %479 {strides = array<i32>} : memref<1x32x64xbf16, #tpu.memory_space<vmem>>, vector<1x32x64xbf16>,
    return
  }
  func.func @transform_0(%arg0: i32) -> (i32, i32, i32, i32) {
    %c0_i32 = arith.constant 0 : i32
    %c0_i32_0 = arith.constant 0 : i32
    %c0_i32_1 = arith.constant 0 : i32
    %c0_i32_2 = arith.constant 0 : i32
    return %arg0, %c0_i32, %c0_i32_0, %c0_i32_1 : i32, i32, i32, i32
  }
  func.func @transform_1(%arg0: i32) -> (i32, i32) {
    %c0_i32 = arith.constant 0 : i32
    %c0_i32_0 = arith.constant 0 : i32
    %c0_i32_1 = arith.constant 0 : i32
    return %c0_i32, %c0_i32_0 : i32, i32
  }
  func.func @transform_2(%arg0: i32) -> (i32, i32) {
    %c0_i32 = arith.constant 0 : i32
    %c0_i32_0 = arith.constant 0 : i32
    %c0_i32_1 = arith.constant 0 : i32
    return %c0_i32, %c0_i32_0 : i32, i32
  }
  func.func @transform_3(%arg0: i32) -> (i32, i32) {
    %c0_i32 = arith.constant 0 : i32
    %c0_i32_0 = arith.constant 0 : i32
    %c0_i32_1 = arith.constant 0 : i32
    return %c0_i32, %c0_i32_0 : i32, i32
  }
  func.func @transform_4(%arg0: i32) -> (i32, i32) {
    %c0_i32 = arith.constant 0 : i32
    %c0_i32_0 = arith.constant 0 : i32
    %c0_i32_1 = arith.constant 0 : i32
    return %c0_i32, %c0_i32_0 : i32, i32
  }
  func.func @transform_5(%arg0: i32) -> (i32, i32) {
    %c0_i32 = arith.constant 0 : i32
    %c0_i32_0 = arith.constant 0 : i32
    %c0_i32_1 = arith.constant 0 : i32
    return %c0_i32, %c0_i32_0 : i32, i32
  }
  func.func @transform_6(%arg0: i32) -> (i32, i32) {
    %c0_i32 = arith.constant 0 : i32
    %c0_i32_0 = arith.constant 0 : i32
    %c0_i32_1 = arith.constant 0 : i32
    return %c0_i32, %c0_i32_0 : i32, i32
  }
  func.func @transform_7(%arg0: i32) -> (i32, i32, i32) {
    %c0_i32 = arith.constant 0 : i32
    %c0_i32_0 = arith.constant 0 : i32
    %c0_i32_1 = arith.constant 0 : i32
    return %arg0, %c0_i32, %c0_i32_0 : i32, i32, i32
  }
}

</mosaic_0001>

<bundles_post_ra>
// kernel: cnn_feature_extractor.3
= control target key start
LH: loop header
LB: loop body
LE: loop exit
PB: predicated region body
PF: predicated region fallthrough
CT: control target
= control target key end

     0   :  { %s2388_s1 = inlined_call_operand.vmem [shape: bf16[2048,128], index: 1, kind: input, shape index: {}]   ;;  %s2389_s0 = inlined_call_operand.vmem [shape: bf16[16,2048], index: 0, kind: input, shape index: {}]   ;;  %s2390_s2 = inlined_call_operand.vmem [shape: f32[1,128], index: 2, kind: input, shape index: {}]   ;;  %s2391_s3 = inlined_call_operand.vmem [shape: f32[16,128], index: 3, kind: output, shape index: {}]  }
   0x1   :  { %v1799_v0 = vld [vmem:[%s2388_s1 + $0x40] sm:$0xff]   ;;  %v1803_v4 = vld [vmem:[%s2388_s1 + $0x48] sm:$0xff]   ;;  %v1807_v8 = vld [vmem:[%s2388_s1 + $0x50] sm:$0xff]  }
   0x2   :  { %v1800_v1 = vld [vmem:[%s2388_s1 + $0xc0] sm:$0xff]   ;;  %1623 = vmatprep.subr.bf16.mxu0 %v1799_v0  ;;  %v1804_v5 = vld [vmem:[%s2388_s1 + $0xc8] sm:$0xff]   ;;  %v1808_v9 = vld [vmem:[%s2388_s1 + $0xd0] sm:$0xff]  }
   0x3   :  { %v1801_v2 = vld [vmem:[%s2388_s1] sm:$0xff]   ;;  %1645 = vmatprep.subr.bf16.mxu1 %v1800_v1  ;;  %v1805_v6 = vld [vmem:[%s2388_s1 + $0x8] sm:$0xff]   ;;  %v1809_v10 = vld [vmem:[%s2388_s1 + $0x10] sm:$0xff]  }
   0x4   :  { %v1802_v3 = vld [vmem:[%s2388_s1 + $0x80] sm:$0xff]   ;;  %1624 = vmatpush3.bf16.msra.mxu0 %v1801_v2  ;;  %v1806_v7 = vld [vmem:[%s2388_s1 + $0x88] sm:$0xff]   ;;  %v1810_v11 = vld [vmem:[%s2388_s1 + $0x90] sm:$0xff]  }
   0x5   :  { %1646 = vmatpush3.bf16.msra.mxu1 %v1802_v3  ;;  %1625 = vmatprep.subr.bf16.mxu0 %v1803_v4  ;;  %v1811_v12 = vld [vmem:[%s2388_s1 + $0x58] sm:$0xff]   ;;  %v1815_v16 = vld [vmem:[%s2388_s1 + $0x60] sm:$0xff]   ;;  %v1819_v20 = vld [vmem:[%s2388_s1 + $0x68] sm:$0xff]  }
   0x6   :  { %1647 = vmatprep.subr.bf16.mxu1 %v1804_v5  ;;  %v1812_v13 = vld [vmem:[%s2388_s1 + $0xd8] sm:$0xff]   ;;  %v1816_v17 = vld [vmem:[%s2388_s1 + $0xe0] sm:$0xff]   ;;  %v1820_v21 = vld [vmem:[%s2388_s1 + $0xe8] sm:$0xff]  }
   0x7   :  { %v1813_v14 = vld [vmem:[%s2388_s1 + $0x18] sm:$0xff]   ;;  %v1817_v18 = vld [vmem:[%s2388_s1 + $0x20] sm:$0xff]   ;;  %v1821_v22 = vld [vmem:[%s2388_s1 + $0x28] sm:$0xff]  }
   0x8   :  { %1626 = vmatpush3.bf16.msra.mxu0 %v1805_v6  ;;  %v1814_v15 = vld [vmem:[%s2388_s1 + $0x98] sm:$0xff]   ;;  %v1818_v19 = vld [vmem:[%s2388_s1 + $0xa0] sm:$0xff]   ;;  %v1822_v23 = vld [vmem:[%s2388_s1 + $0xa8] sm:$0xff]  }
   0x9   :  { %1648 = vmatpush3.bf16.msra.mxu1 %v1806_v7  ;;  %1627 = vmatprep.subr.bf16.mxu0 %v1807_v8  ;;  %v1823_v24 = vld [vmem:[%s2388_s1 + $0x70] sm:$0xff]   ;;  %v1827_v28 = vld [vmem:[%s2388_s1 + $0x78] sm:$0xff]   ;;  %v15_v32 = vld [vmem:[%s2389_s0] sm:$0xff] }
   0xa   :  { %1649 = vmatprep.subr.bf16.mxu1 %v1808_v9  ;;  %v1824_v25 = vld [vmem:[%s2388_s1 + $0xf0] sm:$0xff]   ;;  %v1828_v29 = vld [vmem:[%s2388_s1 + $0xf8] sm:$0xff]   ;;  %v23_v33 = vld [vmem:[%s2389_s0 + $0x40] sm:$0xff] }
   0xb   :  { %v1825_v26 = vld [vmem:[%s2388_s1 + $0x30] sm:$0xff]   ;;  %v1829_v30 = vld [vmem:[%s2388_s1 + $0x38] sm:$0xff]   ;;  %v16_v34 = vld [vmem:[%s2389_s0 + $0x8] sm:$0xff]  ;;  %v1479_v35 = vcombine.low %v15_v32, %v23_v33  ;;  %v1480_v36 = vcombine.high %v15_v32, %v23_v33 }
   0xc   :  { %1628 = vmatpush3.bf16.msra.mxu0 %v1809_v10  ;;  %v1826_v27 = vld [vmem:[%s2388_s1 + $0xb0] sm:$0xff]   ;;  %v1830_v31 = vld [vmem:[%s2388_s1 + $0xb8] sm:$0xff]   ;;  %v24_v37 = vld [vmem:[%s2389_s0 + $0x48] sm:$0xff] }
   0xd   :  { %1650 = vmatpush3.bf16.msra.mxu1 %v1810_v11  ;;  %1629 = vmatprep.subr.bf16.mxu0 %v1811_v12  ;;  %v1481_v38 = vcombine.low %v16_v34, %v24_v37  ;;  %v1482_v39 = vcombine.high %v16_v34, %v24_v37  ;;  %v1831_v40 = vld [vmem:[%s2388_s1 + $0x140] sm:$0xff]   ;;  %v1835_v44 = vld [vmem:[%s2388_s1 + $0x148] sm:$0xff]   ;;  %v1839_v48 = vld [vmem:[%s2388_s1 + $0x150] sm:$0xff]  }
   0xe   :  { %1651 = vmatprep.subr.bf16.mxu1 %v1812_v13  ;;  %1174 = vmatprep.mubr.bf16.mxu0 %v1480_v36  ;;  %v1832_v41 = vld [vmem:[%s2388_s1 + $0x1c0] sm:$0xff]   ;;  %v1836_v45 = vld [vmem:[%s2388_s1 + $0x1c8] sm:$0xff]   ;;  %v1840_v49 = vld [vmem:[%s2388_s1 + $0x1d0] sm:$0xff]  }
   0xf   :  { %1215 = vmatprep.mubr.bf16.mxu1 %v1482_v39  ;;  %v1833_v42 = vld [vmem:[%s2388_s1 + $0x100] sm:$0xff]   ;;  %v1837_v46 = vld [vmem:[%s2388_s1 + $0x108] sm:$0xff]   ;;  %v1841_v50 = vld [vmem:[%s2388_s1 + $0x110] sm:$0xff]  }
  0x10   :  { %1630 = vmatpush3.bf16.msra.mxu0 %v1813_v14  ;;  %v1834_v43 = vld [vmem:[%s2388_s1 + $0x180] sm:$0xff]   ;;  %v1838_v47 = vld [vmem:[%s2388_s1 + $0x188] sm:$0xff]   ;;  %v1842_v51 = vld [vmem:[%s2388_s1 + $0x190] sm:$0xff]  }
  0x11   :  { %1652 = vmatpush3.bf16.msra.mxu1 %v1814_v15  ;;  %1631 = vmatprep.subr.bf16.mxu0 %v1815_v16  ;;  %v1843_v52 = vld [vmem:[%s2388_s1 + $0x158] sm:$0xff]   ;;  %v1847_v56 = vld [vmem:[%s2388_s1 + $0x160] sm:$0xff]   ;;  %v1851_v60 = vld [vmem:[%s2388_s1 + $0x168] sm:$0xff]  }
  0x12   :  { %1653 = vmatprep.subr.bf16.mxu1 %v1816_v17  ;;  %v1844_v53 = vld [vmem:[%s2388_s1 + $0x1d8] sm:$0xff]   ;;  %v1848_v57 = vld [vmem:[%s2388_s1 + $0x1e0] sm:$0xff]   ;;  %v1852_v61 = vld [vmem:[%s2388_s1 + $0x1e8] sm:$0xff]  }
  0x13   :  { %v1845_v54 = vld [vmem:[%s2388_s1 + $0x118] sm:$0xff]   ;;  %v1849_v58 = vld [vmem:[%s2388_s1 + $0x120] sm:$0xff]   ;;  %v1853_v62 = vld [vmem:[%s2388_s1 + $0x128] sm:$0xff]  }
  0x14   :  { %1632 = vmatpush3.bf16.msra.mxu0 %v1817_v18  ;;  %v1846_v55 = vld [vmem:[%s2388_s1 + $0x198] sm:$0xff]   ;;  %v1850_v59 = vld [vmem:[%s2388_s1 + $0x1a0] sm:$0xff]   ;;  %v1854_v63 = vld [vmem:[%s2388_s1 + $0x1a8] sm:$0xff]  }
  0x15   :  { %1654 = vmatpush3.bf16.msra.mxu1 %v1818_v19  ;;  %1633 = vmatprep.subr.bf16.mxu0 %v1819_v20  ;;  %v1855_v0 = vld [vmem:[%s2388_s1 + $0x170] sm:$0xff]   ;;  %v1859_v4 = vld [vmem:[%s2388_s1 + $0x178] sm:$0xff]   ;;  %v1863_v16 = vld [vmem:[%s2388_s1 + $0x240] sm:$0xff]  }
  0x16   :  { %1655 = vmatprep.subr.bf16.mxu1 %v1820_v21  ;;  %v1856_v1 = vld [vmem:[%s2388_s1 + $0x1f0] sm:$0xff]   ;;  %v1860_v5 = vld [vmem:[%s2388_s1 + $0x1f8] sm:$0xff]   ;;  %v1864_v17 = vld [vmem:[%s2388_s1 + $0x2c0] sm:$0xff]  }
  0x17   :  { %v1857_v2 = vld [vmem:[%s2388_s1 + $0x130] sm:$0xff]   ;;  %v1861_v6 = vld [vmem:[%s2388_s1 + $0x138] sm:$0xff]   ;;  %v1865_v18 = vld [vmem:[%s2388_s1 + $0x200] sm:$0xff]  }
  0x18   :  { %1634 = vmatpush3.bf16.msra.mxu0 %v1821_v22  ;;  %v1858_v3 = vld [vmem:[%s2388_s1 + $0x1b0] sm:$0xff]   ;;  %v1862_v7 = vld [vmem:[%s2388_s1 + $0x1b8] sm:$0xff]   ;;  %v1866_v19 = vld [vmem:[%s2388_s1 + $0x280] sm:$0xff]  }
  0x19   :  { %1656 = vmatpush3.bf16.msra.mxu1 %v1822_v23  ;;  %1635 = vmatprep.subr.bf16.mxu0 %v1823_v24  ;;  %v17_v8 = vld [vmem:[%s2389_s0 + $0x10] sm:$0xff]  ;;  %v18_v12 = vld [vmem:[%s2389_s0 + $0x18] sm:$0xff]  ;;  %v1867_v20 = vld [vmem:[%s2388_s1 + $0x248] sm:$0xff]  }
  0x1a   :  { %1657 = vmatprep.subr.bf16.mxu1 %v1824_v25  ;;  %v25_v9 = vld [vmem:[%s2389_s0 + $0x50] sm:$0xff]  ;;  %v26_v13 = vld [vmem:[%s2389_s0 + $0x58] sm:$0xff]  ;;  %v1868_v21 = vld [vmem:[%s2388_s1 + $0x2c8] sm:$0xff]  }
  0x1b   :  { %v1483_v10 = vcombine.low %v17_v8, %v25_v9  ;;  %v1484_v11 = vcombine.high %v17_v8, %v25_v9  ;;  %v1485_v14 = vcombine.low %v18_v12, %v26_v13  ;;  %v1486_v15 = vcombine.high %v18_v12, %v26_v13  ;;  %v1869_v22 = vld [vmem:[%s2388_s1 + $0x208] sm:$0xff]   ;;  %v1871_v24 = vld [vmem:[%s2388_s1 + $0x250] sm:$0xff]   ;;  %v1879_v32 = vld [vmem:[%s2388_s1 + $0x260] sm:$0xff]  }
  0x1c   :  { %1636 = vmatpush3.bf16.msra.mxu0 %v1825_v26  ;;  %v1870_v23 = vld [vmem:[%s2388_s1 + $0x288] sm:$0xff]   ;;  %v1872_v25 = vld [vmem:[%s2388_s1 + $0x2d0] sm:$0xff]   ;;  %v1880_v33 = vld [vmem:[%s2388_s1 + $0x2e0] sm:$0xff]  }
  0x1d   :  { %1658 = vmatpush3.bf16.msra.mxu1 %v1826_v27  ;;  %1637 = vmatprep.subr.bf16.mxu0 %v1827_v28  ;;  %v1873_v26 = vld [vmem:[%s2388_s1 + $0x210] sm:$0xff]   ;;  %v1875_v28 = vld [vmem:[%s2388_s1 + $0x258] sm:$0xff]   ;;  %v1881_v34 = vld [vmem:[%s2388_s1 + $0x220] sm:$0xff]  }
  0x1e   :  { %1659 = vmatprep.subr.bf16.mxu1 %v1828_v29  ;;  %v1874_v27 = vld [vmem:[%s2388_s1 + $0x290] sm:$0xff]   ;;  %v1876_v29 = vld [vmem:[%s2388_s1 + $0x2d8] sm:$0xff]   ;;  %v1883_v36 = vld [vmem:[%s2388_s1 + $0x268] sm:$0xff]  }
  0x1f   :  { %v1884_v37 = vld [vmem:[%s2388_s1 + $0x2e8] sm:$0xff]   ;;  %v1911_v8 = vld [vmem:[%s2388_s1 + $0x360] sm:$0xff]  }
  0x20   :  { %1638 = vmatpush3.bf16.msra.mxu0 %v1829_v30  ;;  %v1877_v30 = vld [vmem:[%s2388_s1 + $0x218] sm:$0xff]   ;;  %v1886_v39 = vld [vmem:[%s2388_s1 + $0x2a8] sm:$0xff]   ;;  %v1912_v9 = vld [vmem:[%s2388_s1 + $0x3e0] sm:$0xff]  }
  0x21   :  { %1660 = vmatpush3.bf16.msra.mxu1 %v1830_v31  ;;  %1667 = vmatprep.subr.bf16.mxu0 %v1831_v40  ;;  %v1878_v31 = vld [vmem:[%s2388_s1 + $0x298] sm:$0xff]   ;;  %v1887_v40 = vld [vmem:[%s2388_s1 + $0x270] sm:$0xff]   ;;  %v1915_v12 = vld [vmem:[%s2388_s1 + $0x368] sm:$0xff]  }
  0x22   :  { %1689 = vmatprep.subr.bf16.mxu1 %v1832_v41  ;;  %v1888_v41 = vld [vmem:[%s2388_s1 + $0x2f0] sm:$0xff]   ;;  %v1916_v13 = vld [vmem:[%s2388_s1 + $0x3e8] sm:$0xff]  }
  0x23   :  { %1175 = vmatmul.mubr.bf16.vlgmr.msra.gmra.mrb[0].mxu0 %v1479_v35  ;;  %v1882_v35 = vld [vmem:[%s2388_s1 + $0x2a0] sm:$0xff]  }
  0x24   :  { %1216 = vmatmul.mubr.bf16.vlgmr.msra.gmra.mrb[0].mxu1 %v1481_v38  ;;  %1668 = vmatpush3.bf16.msra.mxu0 %v1833_v42  ;;  %v1885_v38 = vld [vmem:[%s2388_s1 + $0x228] sm:$0xff]   ;;  %v1889_v42 = vld [vmem:[%s2388_s1 + $0x230] sm:$0xff]  }
  0x25   :  { %1690 = vmatpush3.bf16.msra.mxu1 %v1834_v43  ;;  %1669 = vmatprep.subr.bf16.mxu0 %v1835_v44  ;;  %v1890_v43 = vld [vmem:[%s2388_s1 + $0x2b0] sm:$0xff]   ;;  %v1891_v44 = vld [vmem:[%s2388_s1 + $0x278] sm:$0xff]  }
  0x26   :  { %1691 = vmatprep.subr.bf16.mxu1 %v1836_v45  ;;  %1256 = vmatprep.mubr.bf16.mxu0 %v1484_v11  ;;  %v1892_v45 = vld [vmem:[%s2388_s1 + $0x2f8] sm:$0xff]   ;;  %v1914_v11 = vld [vmem:[%s2388_s1 + $0x3a0] sm:$0xff]  }
  0x27   :  { %1297 = vmatprep.mubr.bf16.mxu1 %v1486_v15  ;;  %v1918_v15 = vld [vmem:[%s2388_s1 + $0x3a8] sm:$0xff]  }
  0x28   :  { %1670 = vmatpush3.bf16.msra.mxu0 %v1837_v46  ;;  %v1893_v46 = vld [vmem:[%s2388_s1 + $0x238] sm:$0xff]  }
  0x29   :  { %1692 = vmatpush3.bf16.msra.mxu1 %v1838_v47  ;;  %1671 = vmatprep.subr.bf16.mxu0 %v1839_v48  ;;  %v1894_v47 = vld [vmem:[%s2388_s1 + $0x2b8] sm:$0xff]   ;;  %v19_v48 = vld [vmem:[%s2389_s0 + $0x20] sm:$0xff] }
  0x2a   :  { %1693 = vmatprep.subr.bf16.mxu1 %v1840_v49  ;;  %v27_v49 = vld [vmem:[%s2389_s0 + $0x60] sm:$0xff] }
  0x2c   :  { %1672 = vmatpush3.bf16.msra.mxu0 %v1841_v50  ;;  %v20_v50 = vld [vmem:[%s2389_s0 + $0x28] sm:$0xff] }
  0x2d   :  { %1694 = vmatpush3.bf16.msra.mxu1 %v1842_v51  ;;  %1673 = vmatprep.subr.bf16.mxu0 %v1843_v52  ;;  %v28_v51 = vld [vmem:[%s2389_s0 + $0x68] sm:$0xff]  ;;  %v1487_v52 = vcombine.low %v19_v48, %v27_v49 }
  0x2e   :  { %1695 = vmatprep.subr.bf16.mxu1 %v1844_v53  ;;  %v1488_v53 = vcombine.high %v19_v48, %v27_v49 }
  0x30   :  { %1674 = vmatpush3.bf16.msra.mxu0 %v1845_v54  ;;  %v1489_v54 = vcombine.low %v20_v50, %v28_v51 }
  0x31   :  { %1696 = vmatpush3.bf16.msra.mxu1 %v1846_v55  ;;  %1675 = vmatprep.subr.bf16.mxu0 %v1847_v56  ;;  %v1490_v55 = vcombine.high %v20_v50, %v28_v51  ;;  %v1895_v56 = vld [vmem:[%s2388_s1 + $0x340] sm:$0xff]  }
  0x32   :  { %1697 = vmatprep.subr.bf16.mxu1 %v1848_v57  ;;  %v1896_v57 = vld [vmem:[%s2388_s1 + $0x3c0] sm:$0xff]  }
  0x34   :  { %1676 = vmatpush3.bf16.msra.mxu0 %v1849_v58  ;;  %v1897_v58 = vld [vmem:[%s2388_s1 + $0x300] sm:$0xff]  }
  0x35   :  { %1698 = vmatpush3.bf16.msra.mxu1 %v1850_v59  ;;  %1677 = vmatprep.subr.bf16.mxu0 %v1851_v60  ;;  %v1898_v59 = vld [vmem:[%s2388_s1 + $0x380] sm:$0xff]   ;;  %v1899_v60 = vld [vmem:[%s2388_s1 + $0x348] sm:$0xff]  }
  0x36   :  { %1699 = vmatprep.subr.bf16.mxu1 %v1852_v61  ;;  %v1900_v61 = vld [vmem:[%s2388_s1 + $0x3c8] sm:$0xff]  }
  0x38   :  { %1678 = vmatpush3.bf16.msra.mxu0 %v1853_v62  ;;  %v1901_v62 = vld [vmem:[%s2388_s1 + $0x308] sm:$0xff]  }
  0x39   :  { %1700 = vmatpush3.bf16.msra.mxu1 %v1854_v63  ;;  %1679 = vmatprep.subr.bf16.mxu0 %v1855_v0  ;;  %v1902_v63 = vld [vmem:[%s2388_s1 + $0x388] sm:$0xff]   ;;  %v1903_v0 = vld [vmem:[%s2388_s1 + $0x350] sm:$0xff]  }
  0x3a   :  { %1701 = vmatprep.subr.bf16.mxu1 %v1856_v1  ;;  %v1904_v1 = vld [vmem:[%s2388_s1 + $0x3d0] sm:$0xff]  }
  0x3c   :  { %1680 = vmatpush3.bf16.msra.mxu0 %v1857_v2  ;;  %v1905_v2 = vld [vmem:[%s2388_s1 + $0x310] sm:$0xff]  }
  0x3d   :  { %1702 = vmatpush3.bf16.msra.mxu1 %v1858_v3  ;;  %1681 = vmatprep.subr.bf16.mxu0 %v1859_v4  ;;  %v1906_v3 = vld [vmem:[%s2388_s1 + $0x390] sm:$0xff]   ;;  %v1907_v4 = vld [vmem:[%s2388_s1 + $0x358] sm:$0xff]  }
  0x3e   :  { %1703 = vmatprep.subr.bf16.mxu1 %v1860_v5  ;;  %v1908_v5 = vld [vmem:[%s2388_s1 + $0x3d8] sm:$0xff]  }
  0x40   :  { %1682 = vmatpush3.bf16.msra.mxu0 %v1861_v6  ;;  %v1909_v6 = vld [vmem:[%s2388_s1 + $0x318] sm:$0xff]  }
  0x41   :  { %1704 = vmatpush3.bf16.msra.mxu1 %v1862_v7  ;;  %1711 = vmatprep.subr.bf16.mxu0 %v1863_v16  ;;  %v1910_v7 = vld [vmem:[%s2388_s1 + $0x398] sm:$0xff]   ;;  %v1919_v16 = vld [vmem:[%s2388_s1 + $0x370] sm:$0xff]  }
  0x42   :  { %1733 = vmatprep.subr.bf16.mxu1 %v1864_v17  ;;  %v1920_v17 = vld [vmem:[%s2388_s1 + $0x3f0] sm:$0xff]  }
  0x43   :  { %1257 = vmatmul.mubr.bf16.vlgmr.msra.gmra.mrb[4].mxu0 %v1483_v10  ;;  %v1913_v10 = vld [vmem:[%s2388_s1 + $0x320] sm:$0xff]  }
  0x44   :  { %1298 = vmatmul.mubr.bf16.vlgmr.msra.gmra.mrb[4].mxu1 %v1485_v14  ;;  %1712 = vmatpush3.bf16.msra.mxu0 %v1865_v18  ;;  %v1917_v14 = vld [vmem:[%s2388_s1 + $0x328] sm:$0xff]   ;;  %v1921_v18 = vld [vmem:[%s2388_s1 + $0x330] sm:$0xff]  }
  0x45   :  { %1734 = vmatpush3.bf16.msra.mxu1 %v1866_v19  ;;  %1713 = vmatprep.subr.bf16.mxu0 %v1867_v20  ;;  %v1922_v19 = vld [vmem:[%s2388_s1 + $0x3b0] sm:$0xff]   ;;  %v1923_v20 = vld [vmem:[%s2388_s1 + $0x378] sm:$0xff]  }
  0x46   :  { %1735 = vmatprep.subr.bf16.mxu1 %v1868_v21  ;;  %1338 = vmatprep.mubr.bf16.mxu0 %v1488_v53  ;;  %v1924_v21 = vld [vmem:[%s2388_s1 + $0x3f8] sm:$0xff]  }
  0x47   :  { %1379 = vmatprep.mubr.bf16.mxu1 %v1490_v55 }
  0x48   :  { %1714 = vmatpush3.bf16.msra.mxu0 %v1869_v22  ;;  %v1925_v22 = vld [vmem:[%s2388_s1 + $0x338] sm:$0xff]  }
  0x49   :  { %1736 = vmatpush3.bf16.msra.mxu1 %v1870_v23  ;;  %1715 = vmatprep.subr.bf16.mxu0 %v1871_v24  ;;  %v1926_v23 = vld [vmem:[%s2388_s1 + $0x3b8] sm:$0xff]   ;;  %v21_v24 = vld [vmem:[%s2389_s0 + $0x30] sm:$0xff] }
  0x4a   :  { %1737 = vmatprep.subr.bf16.mxu1 %v1872_v25  ;;  %v29_v25 = vld [vmem:[%s2389_s0 + $0x70] sm:$0xff] }
  0x4c   :  { %1716 = vmatpush3.bf16.msra.mxu0 %v1873_v26  ;;  %v22_v26 = vld [vmem:[%s2389_s0 + $0x38] sm:$0xff] }
  0x4d   :  { %1738 = vmatpush3.bf16.msra.mxu1 %v1874_v27  ;;  %1717 = vmatprep.subr.bf16.mxu0 %v1875_v28  ;;  %v1491_v27 = vcombine.low %v21_v24, %v29_v25  ;;  %v1492_v28 = vcombine.high %v21_v24, %v29_v25 }
  0x4e   :  { %1739 = vmatprep.subr.bf16.mxu1 %v1876_v29  ;;  %v30_v29 = vld [vmem:[%s2389_s0 + $0x78] sm:$0xff] }
  0x50   :  { %1718 = vmatpush3.bf16.msra.mxu0 %v1877_v30  ;;  %v1493_v30 = vcombine.low %v22_v26, %v30_v29 }
  0x51   :  { %1740 = vmatpush3.bf16.msra.mxu1 %v1878_v31  ;;  %1719 = vmatprep.subr.bf16.mxu0 %v1879_v32  ;;  %v1494_v31 = vcombine.high %v22_v26, %v30_v29 }
  0x52   :  { %1741 = vmatprep.subr.bf16.mxu1 %v1880_v33 }
  0x54   :  { %1720 = vmatpush3.bf16.msra.mxu0 %v1881_v34  ;;  %v1478_v34 = vld [vmem:[%s2390_s2] ss:$0 sm:$0xff] }
  0x55   :  { %1742 = vmatpush3.bf16.msra.mxu1 %v1882_v35  ;;  %1721 = vmatprep.subr.bf16.mxu0 %v1883_v36 }
  0x56   :  { %1743 = vmatprep.subr.bf16.mxu1 %v1884_v37 }
  0x58   :  { %1722 = vmatpush3.bf16.msra.mxu0 %v1885_v38 }
  0x59   :  { %1744 = vmatpush3.bf16.msra.mxu1 %v1886_v39  ;;  %1723 = vmatprep.subr.bf16.mxu0 %v1887_v40 }
  0x5a   :  { %1745 = vmatprep.subr.bf16.mxu1 %v1888_v41 }
  0x5c   :  { %1724 = vmatpush3.bf16.msra.mxu0 %v1889_v42 }
  0x5d   :  { %1746 = vmatpush3.bf16.msra.mxu1 %v1890_v43  ;;  %1725 = vmatprep.subr.bf16.mxu0 %v1891_v44 }
  0x5e   :  { %1747 = vmatprep.subr.bf16.mxu1 %v1892_v45 }
  0x60   :  { %1726 = vmatpush3.bf16.msra.mxu0 %v1893_v46 }
  0x61   :  { %1748 = vmatpush3.bf16.msra.mxu1 %v1894_v47  ;;  %1755 = vmatprep.subr.bf16.mxu0 %v1895_v56 }
  0x62   :  { %1777 = vmatprep.subr.bf16.mxu1 %v1896_v57 }
  0x63   :  { %1339 = vmatmul.mubr.bf16.vlgmr.msra.gmra.mrb[8].mxu0 %v1487_v52 }
  0x64   :  { %1380 = vmatmul.mubr.bf16.vlgmr.msra.gmra.mrb[8].mxu1 %v1489_v54  ;;  %1756 = vmatpush3.bf16.msra.mxu0 %v1897_v58 }
  0x65   :  { %1778 = vmatpush3.bf16.msra.mxu1 %v1898_v59  ;;  %1757 = vmatprep.subr.bf16.mxu0 %v1899_v60 }
  0x66   :  { %1779 = vmatprep.subr.bf16.mxu1 %v1900_v61  ;;  %1420 = vmatprep.mubr.bf16.mxu0 %v1492_v28 }
  0x67   :  { %1461 = vmatprep.mubr.bf16.mxu1 %v1494_v31 }
  0x68   :  { %1758 = vmatpush3.bf16.msra.mxu0 %v1901_v62 }
  0x69   :  { %1780 = vmatpush3.bf16.msra.mxu1 %v1902_v63  ;;  %1759 = vmatprep.subr.bf16.mxu0 %v1903_v0 }
  0x6a   :  { %1781 = vmatprep.subr.bf16.mxu1 %v1904_v1 }
  0x6c   :  { %1760 = vmatpush3.bf16.msra.mxu0 %v1905_v2 }
  0x6d   :  { %1782 = vmatpush3.bf16.msra.mxu1 %v1906_v3  ;;  %1761 = vmatprep.subr.bf16.mxu0 %v1907_v4 }
  0x6e   :  { %1783 = vmatprep.subr.bf16.mxu1 %v1908_v5 }
  0x70   :  { %1762 = vmatpush3.bf16.msra.mxu0 %v1909_v6 }
  0x71   :  { %1784 = vmatpush3.bf16.msra.mxu1 %v1910_v7  ;;  %1763 = vmatprep.subr.bf16.mxu0 %v1911_v8 }
  0x72   :  { %1785 = vmatprep.subr.bf16.mxu1 %v1912_v9 }
  0x74   :  { %1764 = vmatpush3.bf16.msra.mxu0 %v1913_v10 }
  0x75   :  { %1786 = vmatpush3.bf16.msra.mxu1 %v1914_v11  ;;  %1765 = vmatprep.subr.bf16.mxu0 %v1915_v12 }
  0x76   :  { %1787 = vmatprep.subr.bf16.mxu1 %v1916_v13 }
  0x78   :  { %1766 = vmatpush3.bf16.msra.mxu0 %v1917_v14 }
  0x79   :  { %1788 = vmatpush3.bf16.msra.mxu1 %v1918_v15  ;;  %1767 = vmatprep.subr.bf16.mxu0 %v1919_v16 }
  0x7a   :  { %1789 = vmatprep.subr.bf16.mxu1 %v1920_v17 }
  0x7c   :  { %1768 = vmatpush3.bf16.msra.mxu0 %v1921_v18 }
  0x7d   :  { %1790 = vmatpush3.bf16.msra.mxu1 %v1922_v19  ;;  %1769 = vmatprep.subr.bf16.mxu0 %v1923_v20 }
  0x7e   :  { %1791 = vmatprep.subr.bf16.mxu1 %v1924_v21 }
  0x80   :  { %1770 = vmatpush3.bf16.msra.mxu0 %v1925_v22 }
  0x81   :  { %1792 = vmatpush3.bf16.msra.mxu1 %v1926_v23 }
  0x83   :  { %1421 = vmatmul.mubr.bf16.vlgmr.msra.gmra.mrb[12].mxu0 %v1491_v27 }
  0x84   :  { %1462 = vmatmul.mubr.bf16.vlgmr.msra.gmra.mrb[12].mxu1 %v1493_v30 }
  0xf6   :  { %v1639_v32 = vpop.f32.mrb[0].mxu0 }
  0xf7   :  { %v1661_v33 = vpop.f32.mrb[0].mxu1  ;;  %v1640_v35 = vpop.f32.mrb[1].mxu0 }
  0xf8   :  { %v1641_v36 = vadd.f32 %v1640_v35, %v1639_v32  ;;  %v1662_v37 = vpop.f32.mrb[1].mxu1  ;;  %v1642_v38 = vpop.f32.mrb[2].mxu0 }
  0xf9   :  { %v1663_v39 = vadd.f32 %v1662_v37, %v1661_v33  ;;  %v1664_v40 = vpop.f32.mrb[2].mxu1  ;;  %v1643_v41 = vpop.f32.mrb[3].mxu0 }
  0xfa   :  { %v1177_v42 = vadd.f32 %v1641_v36, %v1478_v34  ;;  %v1644_v43 = vadd.f32 %v1643_v41, %v1642_v38  ;;  %v1665_v44 = vpop.f32.mrb[3].mxu1 }
  0xfb   :  { %v1666_v45 = vadd.f32 %v1665_v44, %v1664_v40 }
  0xfc   :  { %v1218_v46 = vadd.f32 %v1663_v39, %v1177_v42  ;;  %v1180_v47 = vadd.f32 %v1644_v43, %v1478_v34 }
  0xfe   :  { %v1221_v48 = vadd.f32 %v1666_v45, %v1180_v47 }
 0x116   :  { %v1683_v49 = vpop.f32.mrb[4].mxu0 }
 0x117   :  { %v1705_v50 = vpop.f32.mrb[4].mxu1  ;;  %v1684_v51 = vpop.f32.mrb[5].mxu0 }
 0x118   :  { %v1685_v52 = vadd.f32 %v1684_v51, %v1683_v49  ;;  %v1706_v53 = vpop.f32.mrb[5].mxu1  ;;  %v1686_v54 = vpop.f32.mrb[6].mxu0 }
 0x119   :  { %v1707_v55 = vadd.f32 %v1706_v53, %v1705_v50  ;;  %v1708_v56 = vpop.f32.mrb[6].mxu1  ;;  %v1687_v57 = vpop.f32.mrb[7].mxu0 }
 0x11a   :  { %v1259_v58 = vadd.f32 %v1685_v52, %v1218_v46  ;;  %v1688_v59 = vadd.f32 %v1687_v57, %v1686_v54  ;;  %v1709_v60 = vpop.f32.mrb[7].mxu1 }
 0x11b   :  { %v1710_v61 = vadd.f32 %v1709_v60, %v1708_v56 }
 0x11c   :  { %v1300_v62 = vadd.f32 %v1707_v55, %v1259_v58  ;;  %v1262_v63 = vadd.f32 %v1688_v59, %v1221_v48 }
 0x11e   :  { %v1303_v0 = vadd.f32 %v1710_v61, %v1262_v63 }
 0x136   :  { %v1727_v1 = vpop.f32.mrb[8].mxu0 }
 0x137   :  { %v1749_v2 = vpop.f32.mrb[8].mxu1  ;;  %v1728_v3 = vpop.f32.mrb[9].mxu0 }
 0x138   :  { %v1750_v4 = vpop.f32.mrb[9].mxu1  ;;  %v1729_v5 = vadd.f32 %v1728_v3, %v1727_v1  ;;  %v1730_v7 = vpop.f32.mrb[10].mxu0 }
 0x139   :  { %v1751_v6 = vadd.f32 %v1750_v4, %v1749_v2  ;;  %v1752_v8 = vpop.f32.mrb[10].mxu1  ;;  %v1731_v9 = vpop.f32.mrb[11].mxu0 }
 0x13a   :  { %v1753_v10 = vpop.f32.mrb[11].mxu1  ;;  %v1341_v11 = vadd.f32 %v1729_v5, %v1300_v62  ;;  %v1732_v12 = vadd.f32 %v1731_v9, %v1730_v7 }
 0x13b   :  { %v1754_v13 = vadd.f32 %v1753_v10, %v1752_v8 }
 0x13c   :  { %v1382_v14 = vadd.f32 %v1751_v6, %v1341_v11  ;;  %v1344_v15 = vadd.f32 %v1732_v12, %v1303_v0 }
 0x13e   :  { %v1385_v16 = vadd.f32 %v1754_v13, %v1344_v15 }
 0x156   :  { %v1771_v17 = vpop.f32.mrb[12].mxu0 }
 0x157   :  { %v1793_v18 = vpop.f32.mrb[12].mxu1  ;;  %v1772_v19 = vpop.f32.mrb[13].mxu0 }
 0x158   :  { %v1773_v20 = vadd.f32 %v1772_v19, %v1771_v17  ;;  %v1794_v21 = vpop.f32.mrb[13].mxu1  ;;  %v1774_v22 = vpop.f32.mrb[14].mxu0 }
 0x159   :  { %v1795_v23 = vadd.f32 %v1794_v21, %v1793_v18  ;;  %v1796_v24 = vpop.f32.mrb[14].mxu1  ;;  %v1775_v25 = vpop.f32.mrb[15].mxu0 }
 0x15a   :  { %v1423_v26 = vadd.f32 %v1773_v20, %v1382_v14  ;;  %v1776_v27 = vadd.f32 %v1775_v25, %v1774_v22  ;;  %v1797_v28 = vpop.f32.mrb[15].mxu1 }
 0x15b   :  { %v1798_v29 = vadd.f32 %v1797_v28, %v1796_v24 }
 0x15c   :  { %v1464_v30 = vadd.f32 %v1795_v23, %v1423_v26  ;;  %v1426_v31 = vadd.f32 %v1776_v27, %v1385_v16 }
 0x15e   :  { %v1470_v32 = vmax.f32 %v1464_v30, 0.0  ;;  %v1467_v33 = vadd.f32 %v1798_v29, %v1426_v31 }
 0x160   :  { %1472 = vst [vmem:[%s2391_s3] sm:$0xff] %v1470_v32  ;;  %v1471_v34 = vmax.f32 %v1467_v33, 0.0 }
 0x162   :  { %1473 = vst [vmem:[%s2391_s3 + $0x8] sm:$0xff] %v1471_v34 }

// kernel: cnn_feature_extractor.2
= control target key start
LH: loop header
LB: loop body
LE: loop exit
PB: predicated region body
PF: predicated region fallthrough
CT: control target
= control target key end

     0   :  { %s26775_s24 = smov 0   ;;  %s30268_s0 = inlined_call_operand.vmem [shape: f32[2,32,64,6], index: 0, kind: input, shape index: {}]   ;;  %s30269_s1 = inlined_call_operand.vmem [shape: f32[384,32], index: 1, kind: input, shape index: {}]   ;;  %s30270_s2 = inlined_call_operand.vmem [shape: f32[1,32], index: 2, kind: input, shape index: {}]   ;;  %s30271_s3 = inlined_call_operand.vmem [shape: f32[512,64], index: 3, kind: input, shape index: {}]   ;;  %s30272_s4 = inlined_call_operand.vmem [shape: f32[1,64], index: 4, kind: input, shape index: {}]   ;;  %s30273_s5 = inlined_call_operand.vmem [shape: f32[576,64], index: 5, kind: input, shape index: {}]   ;;  %s30274_s6 = inlined_call_operand.vmem [shape: f32[1,64], index: 6, kind: input, shape index: {}]   ;;  %s30275_s7 = inlined_call_operand.vmem [shape: bf16[2,32,64], index: 7, kind: output, shape index: {}]  }
   0x1 LB: > { %s20720_s25 = sadd.s32 4294967295, %s26732_s24   ;;  %p20724_p0 = scmp.ge.s32.totalorder %s26732_s24, 1  ;;  %s26732_s24 = sphi %s26775_s24, %s17_s24  }
   0x2   : > { %p237_p1 = scmp.lt.s32.totalorder %s26732_s24, 3 }
   0x4   : > { %p238_p2 = pnand %p20724_p0, %p237_p1 }
   0x5   : > { %v26786_v0 = vld [vmem:[%s30269_s1 + $0x6] sm:$0x3f] (!%p238_p2)  ;;  %vm1231_vm0 = vcmask (!%p238_p2), 1045504   ;;  %vm535_vm1 = vcmask (!%p238_p2), 48128   ;;  %p26790_p3 = scmp.lt.s32.totalorder (!%p238_p2), %s20720_s25, 1  ;;  %v26734_v1 = vmov (!%p238_p2), 0.0  }
   0x6   : > { %241 = sbr.rel (%p238_p2) target bundleno = 2270 (0x8de), region = 48  ;;  %23256 = vmatprep.subr.msk.mxu1 (!%p238_p2), %vm1231_vm0, %v26786_v0  ;;  %536 = vst.msk [vmem:[#allocation2] sm:$0xff] (!%p238_p2), %vm535_vm1, %v26734_v1  ;;  %537 = vst.msk [vmem:[#allocation2 + $0x8] sm:$0xff] (!%p238_p2), %vm535_vm1, %v26734_v1  ;;  %v7732_v2 = vld [vmem:[%s30269_s1 + $0xa2] sm:$0x3f] (!%p238_p2)  ;;  %vm544_vm2 = vcmask (!%p238_p2), 44032  }
   0x7   : > { %538 = vst.msk [vmem:[#allocation2 + $0x10] sm:$0xff] (!%p238_p2), %vm535_vm1, %v26734_v1  ;;  %539 = vst.msk [vmem:[#allocation2 + $0x18] sm:$0xff] (!%p238_p2), %vm535_vm1, %v26734_v1  ;;  %v27378_v3 = vld [vmem:[%s30269_s1 + $0xa8] sm:$0x3f] (!%p238_p2)  ;;  %23257 = vmatpush3.msk.msra.mxu1 (!%p238_p2), %vm1231_vm0, %v26786_v0  ;;  %23958 = vmatprep.subr.msk.mxu0 (!%p238_p2), %vm1231_vm0, %v7732_v2  ;;  %v1149_v4 = vld [vmem:[%s30269_s1] sm:$0x3f] (!%p238_p2) }
   0x8   : > { %540 = vst.msk [vmem:[#allocation2 + $0x20] sm:$0xff] (!%p238_p2), %vm535_vm1, %v26734_v1  ;;  %541 = vst.msk [vmem:[#allocation2 + $0x28] sm:$0xff] (!%p238_p2), %vm535_vm1, %v26734_v1  ;;  %23959 = vmatpush3.msk.msra.mxu0 (!%p238_p2), %vm1231_vm0, %v7732_v2  ;;  %23282 = vmatprep.subr.msk.mxu1 (!%p238_p2), %vm1231_vm0, %v1149_v4  ;;  %v27486_v11 = vld [vmem:[%s30269_s1 + $0xc] sm:$0x3f] (!%p238_p2)  ;;  %vm16804_vm3 = vcmask (!%p238_p2), 261120   ;;  %vm16807_vm4 = vcmask (!%p238_p2), 254976  }
   0x9   : > { %542 = vst.msk [vmem:[#allocation2 + $0x30] sm:$0xff] (!%p238_p2), %vm535_vm1, %v26734_v1  ;;  %543 = vst.msk [vmem:[#allocation2 + $0x38] sm:$0xff] (!%p238_p2), %vm535_vm1, %v26734_v1  ;;  %23984 = vmatprep.subr.msk.mxu0 (!%p238_p2), %vm1231_vm0, %v27378_v3  ;;  %v27550_v42 = vld [vmem:[%s30269_s1 + $0xae] sm:$0x3f] (!%p238_p2)  ;;  %vm18666_vm5 = vcmask (!%p238_p2), 523264   ;;  %vm18668_vm6 = vcmask (!%p238_p2), 517120  }
   0xa   : > { %546 = vst.msk [vmem:[#allocation2 + $0x48] sm:$0xff] (!%p238_p2), %vm535_vm1, %v26734_v1  ;;  %547 = vst.msk [vmem:[#allocation2 + $0x50] sm:$0xff] (!%p238_p2), %vm535_vm1, %v26734_v1  ;;  %vm19726_vm7 = vcmask (!%p238_p2), 519168  }
   0xb   : > { %548 = vst.msk [vmem:[#allocation2 + $0x58] sm:$0xff] (!%p238_p2), %vm535_vm1, %v26734_v1  ;;  %549 = vst.msk [vmem:[#allocation2 + $0x60] sm:$0xff] (!%p238_p2), %vm535_vm1, %v26734_v1 }
   0xc   : > { %550 = vst.msk [vmem:[#allocation2 + $0x68] sm:$0xff] (!%p238_p2), %vm535_vm1, %v26734_v1  ;;  %551 = vst.msk [vmem:[#allocation2 + $0x70] sm:$0xff] (!%p238_p2), %vm535_vm1, %v26734_v1 }
   0xd   : > { %552 = vst.msk [vmem:[#allocation2 + $0x78] sm:$0xff] %vm535_vm1, %v26734_v1  ;;  %553 = vst.msk [vmem:[#allocation2 + $0x80] sm:$0xff] %vm535_vm1, %v26734_v1  ;;  %s30278_s25 = smov (!%p26790_p3, %s20720_s25), 1 }
   0xe   : > { %555 = vst.msk [vmem:[#allocation2 + $0x90] sm:$0xff] %vm535_vm1, %v26734_v1  ;;  %556 = vst.msk [vmem:[#allocation2 + $0x98] sm:$0xff] %vm535_vm1, %v26734_v1  ;;  %s21926_s12 = sshll.u32 %s30278_s25, 11  ;;  %v1151_v12 = vld [vmem:[#allocation2 + $0x1] ss:$4 sm:$0xff]  ;;  %s21927_s19 = sshll.u32 %s30278_s25, 4 }
   0xf   : > { %557 = vst.msk [vmem:[#allocation2 + $0xa0] sm:$0xff] %vm535_vm1, %v26734_v1  ;;  %558 = vst.msk [vmem:[#allocation2 + $0xa8] sm:$0xff] %vm535_vm1, %v26734_v1  ;;  %s27472_s15 = scalar_lea.vmem %s30268_s0, %s21926_s12  ;;  %23258 = vmatprep.mubr.msk.f32.mxu1 %vm535_vm1, %v1151_v12  ;;  %s278_s22 = scalar_lea.vmem %s30275_s7, %s21927_s19 }
  0x10   : > { %559 = vst.msk [vmem:[#allocation2 + $0xb0] sm:$0xff] %vm535_vm1, %v26734_v1  ;;  %560 = vst.msk [vmem:[#allocation2 + $0xb8] sm:$0xff] %vm535_vm1, %v26734_v1  ;;  %v295_v5 = vld [vmem:[%s27472_s15 + $0x80] sm:$0xff]  ;;  %v296_v6 = vld [vmem:[%s27472_s15 + $0x88] sm:$0xff] }
  0x11   : > { %561 = vst.msk [vmem:[#allocation2 + $0xc0] sm:$0xff] %vm535_vm1, %v26734_v1  ;;  %562 = vst.msk [vmem:[#allocation2 + $0xc8] sm:$0xff] %vm535_vm1, %v26734_v1  ;;  %v297_v7 = vld [vmem:[%s27472_s15 + $0x90] sm:$0xff]  ;;  %v298_v8 = vld [vmem:[%s27472_s15 + $0x98] sm:$0xff] }
  0x12   : > { %564 = vst.msk [vmem:[#allocation2 + $0xd8] sm:$0xff] %vm535_vm1, %v26734_v1  ;;  %565 = vst.msk [vmem:[#allocation2 + $0xe0] sm:$0xff] %vm535_vm1, %v26734_v1  ;;  %v287_v9 = vld [vmem:[%s27472_s15 + $0x40] sm:$0xff]  ;;  %v288_v10 = vld [vmem:[%s27472_s15 + $0x48] sm:$0xff] }
  0x13   : > { %566 = vst.msk [vmem:[#allocation2 + $0xe8] sm:$0xff] %vm535_vm1, %v26734_v1  ;;  %567 = vst.msk [vmem:[#allocation2 + $0xf0] sm:$0xff] %vm535_vm1, %v26734_v1  ;;  %v1153_v13 = vld [vmem:[#allocation2 + $0x21] ss:$4 sm:$0xff] }
  0x14   : > { %568 = vst.msk [vmem:[#allocation2 + $0xf8] sm:$0xff] %vm535_vm1, %v26734_v1  ;;  %569 = vst.msk [vmem:[#allocation2 + $0x100] sm:$0xff] %vm535_vm1, %v26734_v1  ;;  %v289_v14 = vld [vmem:[%s27472_s15 + $0x50] sm:$0xff]  ;;  %v290_v15 = vld [vmem:[%s27472_s15 + $0x58] sm:$0xff]  ;;  %23259 = vmatmul.mubr.msk.f32.vlgmr.msra.gmra.mrb[0].mxu1 %vm535_vm1, %v1153_v13 }
  0x15   : > { %570 = vst.msk [vmem:[#allocation2 + $0x108] sm:$0xff] %vm535_vm1, %v26734_v1  ;;  %571 = vst.msk [vmem:[#allocation2 + $0x110] sm:$0xff] %vm535_vm1, %v26734_v1  ;;  %v299_v16 = vld [vmem:[%s27472_s15 + $0xa0] sm:$0xff]  ;;  %v300_v17 = vld [vmem:[%s27472_s15 + $0xa8] sm:$0xff]  ;;  %23283 = vmatpush3.msk.msra.mxu1 %vm1231_vm0, %v1149_v4 }
  0x16   : > { %573 = vst.msk [vmem:[#allocation2 + $0x120] sm:$0xff] %vm535_vm1, %v26734_v1  ;;  %574 = vst.msk [vmem:[#allocation2 + $0x128] sm:$0xff] %vm535_vm1, %v26734_v1  ;;  %v301_v18 = vld [vmem:[%s27472_s15 + $0xb0] sm:$0xff]  ;;  %v302_v19 = vld [vmem:[%s27472_s15 + $0xb8] sm:$0xff]  ;;  %23308 = vmatprep.subr.msk.mxu1 %vm1231_vm0, %v27486_v11 }
  0x17   : > { %575 = vst.msk [vmem:[#allocation2 + $0x130] sm:$0xff] %vm535_vm1, %v26734_v1  ;;  %576 = vst.msk [vmem:[#allocation2 + $0x138] sm:$0xff] %vm535_vm1, %v26734_v1  ;;  %v291_v20 = vld [vmem:[%s27472_s15 + $0x60] sm:$0xff]  ;;  %v292_v21 = vld [vmem:[%s27472_s15 + $0x68] sm:$0xff] }
  0x18   : > { %577 = vst.msk [vmem:[#allocation2 + $0x140] sm:$0xff] %vm535_vm1, %v26734_v1  ;;  %578 = vst.msk [vmem:[#allocation2 + $0x148] sm:$0xff] %vm535_vm1, %v26734_v1  ;;  %v293_v22 = vld [vmem:[%s27472_s15 + $0x70] sm:$0xff]  ;;  %v294_v23 = vld [vmem:[%s27472_s15 + $0x78] sm:$0xff] }
  0x19   : > { %579 = vst.msk [vmem:[#allocation2 + $0x150] sm:$0xff] %vm535_vm1, %v26734_v1  ;;  %580 = vst.msk [vmem:[#allocation2 + $0x158] sm:$0xff] %vm535_vm1, %v26734_v1  ;;  %v327_v24 = vld [vmem:[%s27472_s15 + $0x180] sm:$0xff]  ;;  %v328_v25 = vld [vmem:[%s27472_s15 + $0x188] sm:$0xff] }
  0x1a   : > { %582 = vst.msk [vmem:[#allocation2 + $0x168] sm:$0xff] %vm535_vm1, %v26734_v1  ;;  %583 = vst.msk [vmem:[#allocation2 + $0x170] sm:$0xff] %vm535_vm1, %v26734_v1  ;;  %v329_v26 = vld [vmem:[%s27472_s15 + $0x190] sm:$0xff]  ;;  %v330_v27 = vld [vmem:[%s27472_s15 + $0x198] sm:$0xff] }
  0x1b   : > { %584 = vst.msk [vmem:[#allocation2 + $0x178] sm:$0xff] %vm535_vm1, %v26734_v1  ;;  %585 = vst.msk [vmem:[#allocation2 + $0x180] sm:$0xff] %vm535_vm1, %v26734_v1  ;;  %v319_v28 = vld [vmem:[%s27472_s15 + $0x140] sm:$0xff]  ;;  %v320_v29 = vld [vmem:[%s27472_s15 + $0x148] sm:$0xff] }
  0x1c   : > { %586 = vst.msk [vmem:[#allocation2 + $0x188] sm:$0xff] %vm535_vm1, %v26734_v1  ;;  %587 = vst.msk [vmem:[#allocation2 + $0x190] sm:$0xff] %vm535_vm1, %v26734_v1  ;;  %v321_v30 = vld [vmem:[%s27472_s15 + $0x150] sm:$0xff]  ;;  %v322_v31 = vld [vmem:[%s27472_s15 + $0x158] sm:$0xff] }
  0x1d   : > { %588 = vst.msk [vmem:[#allocation2 + $0x198] sm:$0xff] %vm535_vm1, %v26734_v1  ;;  %589 = vst.msk [vmem:[#allocation2 + $0x1a0] sm:$0xff] %vm535_vm1, %v26734_v1  ;;  %v331_v32 = vld [vmem:[%s27472_s15 + $0x1a0] sm:$0xff]  ;;  %v332_v34 = vld [vmem:[%s27472_s15 + $0x1a8] sm:$0xff] }
  0x1e   : > { %591 = vst.msk [vmem:[#allocation2 + $0x1b0] sm:$0xff] %vm535_vm1, %v26734_v1  ;;  %592 = vst.msk [vmem:[#allocation2 + $0x1b8] sm:$0xff] %vm535_vm1, %v26734_v1  ;;  %v333_v35 = vld [vmem:[%s27472_s15 + $0x1b0] sm:$0xff]  ;;  %v334_v36 = vld [vmem:[%s27472_s15 + $0x1b8] sm:$0xff] }
  0x1f   : > { %593 = vst.msk [vmem:[#allocation2 + $0x1c0] sm:$0xff] %vm535_vm1, %v26734_v1  ;;  %594 = vst.msk [vmem:[#allocation2 + $0x1c8] sm:$0xff] %vm535_vm1, %v26734_v1  ;;  %v323_v37 = vld [vmem:[%s27472_s15 + $0x160] sm:$0xff]  ;;  %v324_v38 = vld [vmem:[%s27472_s15 + $0x168] sm:$0xff] }
  0x20   : > { %595 = vst.msk [vmem:[#allocation2 + $0x1d0] sm:$0xff] %vm535_vm1, %v26734_v1  ;;  %596 = vst.msk [vmem:[#allocation2 + $0x1d8] sm:$0xff] %vm535_vm1, %v26734_v1  ;;  %v325_v40 = vld [vmem:[%s27472_s15 + $0x170] sm:$0xff]  ;;  %v326_v41 = vld [vmem:[%s27472_s15 + $0x178] sm:$0xff] }
  0x21   : > { %597 = vst.msk [vmem:[#allocation2 + $0x1e0] sm:$0xff] %vm535_vm1, %v26734_v1  ;;  %598 = vst.msk [vmem:[#allocation2 + $0x1e8] sm:$0xff] %vm535_vm1, %v26734_v1  ;;  %v359_v44 = vld [vmem:[%s27472_s15 + $0x280] sm:$0xff]  ;;  %v360_v45 = vld [vmem:[%s27472_s15 + $0x288] sm:$0xff] }
  0x22   : > { %600 = vst.msk [vmem:[#allocation2 + $0x1f8] sm:$0xff] %vm535_vm1, %v26734_v1  ;;  %601 = vst.msk [vmem:[#allocation2 + $0x200] sm:$0xff] %vm535_vm1, %v26734_v1  ;;  %v361_v47 = vld [vmem:[%s27472_s15 + $0x290] sm:$0xff]  ;;  %v362_v48 = vld [vmem:[%s27472_s15 + $0x298] sm:$0xff] }
  0x23   : > { %602 = vst.msk [vmem:[#allocation2 + $0x208] sm:$0xff] %vm535_vm1, %v26734_v1  ;;  %603 = vst.msk [vmem:[#allocation2 + $0x210] sm:$0xff] %vm535_vm1, %v26734_v1  ;;  %v363_v49 = vld [vmem:[%s27472_s15 + $0x2a0] sm:$0xff]  ;;  %v364_v50 = vld [vmem:[%s27472_s15 + $0x2a8] sm:$0xff] }
  0x24   : > { %604 = vst.msk [vmem:[#allocation2 + $0x218] sm:$0xff] %vm535_vm1, %v26734_v1  ;;  %605 = vst.msk [vmem:[#allocation2 + $0x220] sm:$0xff] %vm535_vm1, %v26734_v1  ;;  %v365_v52 = vld [vmem:[%s27472_s15 + $0x2b0] sm:$0xff]  ;;  %v366_v53 = vld [vmem:[%s27472_s15 + $0x2b8] sm:$0xff] }
  0x25   : > { %606 = vst.msk [vmem:[#allocation2 + $0x228] sm:$0xff] %vm535_vm1, %v26734_v1  ;;  %607 = vst.msk [vmem:[#allocation2 + $0x230] sm:$0xff] %vm535_vm1, %v26734_v1  ;;  %v391_v55 = vld [vmem:[%s27472_s15 + $0x380] sm:$0xff]  ;;  %v392_v56 = vld [vmem:[%s27472_s15 + $0x388] sm:$0xff] }
  0x26   : > { %609 = vst.msk [vmem:[#allocation2 + $0x240] sm:$0xff] %vm535_vm1, %v26734_v1  ;;  %610 = vst.msk [vmem:[#allocation2 + $0x248] sm:$0xff] %vm535_vm1, %v26734_v1  ;;  %v393_v57 = vld [vmem:[%s27472_s15 + $0x390] sm:$0xff]  ;;  %v394_v58 = vld [vmem:[%s27472_s15 + $0x398] sm:$0xff] }
  0x27   : > { %611 = vst.msk [vmem:[#allocation2 + $0x250] sm:$0xff] %vm535_vm1, %v26734_v1  ;;  %612 = vst.msk [vmem:[#allocation2 + $0x258] sm:$0xff] %vm535_vm1, %v26734_v1  ;;  %v395_v61 = vld [vmem:[%s27472_s15 + $0x3a0] sm:$0xff]  ;;  %v396_v0 = vld [vmem:[%s27472_s15 + $0x3a8] sm:$0xff] }
  0x28   : > { %613 = vst.msk [vmem:[#allocation2 + $0x260] sm:$0xff] %vm535_vm1, %v26734_v1  ;;  %614 = vst.msk [vmem:[#allocation2 + $0x268] sm:$0xff] %vm535_vm1, %v26734_v1  ;;  %v397_v2 = vld [vmem:[%s27472_s15 + $0x3b0] sm:$0xff]  ;;  %v398_v4 = vld [vmem:[%s27472_s15 + $0x3b8] sm:$0xff] }
  0x29   : > { %615 = vst.msk [vmem:[#allocation2 + $0x270] sm:$0xff] %vm535_vm1, %v26734_v1  ;;  %616 = vst.msk [vmem:[#allocation2 + $0x278] sm:$0xff] %vm535_vm1, %v26734_v1  ;;  %v351_v12 = vld [vmem:[%s27472_s15 + $0x240] sm:$0xff]  ;;  %v352_v13 = vld [vmem:[%s27472_s15 + $0x248] sm:$0xff] }
  0x2a   : > { %618 = vst.msk [vmem:[#allocation2 + $0x288] sm:$0xff] %vm535_vm1, %v26734_v1  ;;  %619 = vst.msk [vmem:[#allocation2 + $0x290] sm:$0xff] %vm535_vm1, %v26734_v1 }
  0x2b   : > { %620 = vst.msk [vmem:[#allocation2 + $0x298] sm:$0xff] %vm535_vm1, %v26734_v1  ;;  %621 = vst.msk [vmem:[#allocation2 + $0x2a0] sm:$0xff] %vm535_vm1, %v26734_v1 }
  0x2c   : > { %622 = vst.msk [vmem:[#allocation2 + $0x2a8] sm:$0xff] %vm535_vm1, %v26734_v1  ;;  %623 = vst.msk [vmem:[#allocation2 + $0x2b0] sm:$0xff] %vm535_vm1, %v26734_v1 }
  0x2d   : > { %624 = vst.msk [vmem:[#allocation2 + $0x2b8] sm:$0xff] %vm535_vm1, %v26734_v1  ;;  %625 = vst.msk [vmem:[#allocation2 + $0x2c0] sm:$0xff] %vm535_vm1, %v26734_v1 }
  0x2e   : > { %627 = vst.msk [vmem:[#allocation2 + $0x2d0] sm:$0xff] %vm535_vm1, %v26734_v1  ;;  %628 = vst.msk [vmem:[#allocation2 + $0x2d8] sm:$0xff] %vm535_vm1, %v26734_v1 }
  0x2f   : > { %629 = vst.msk [vmem:[#allocation2 + $0x2e0] sm:$0xff] %vm535_vm1, %v26734_v1  ;;  %630 = vst.msk [vmem:[#allocation2 + $0x2e8] sm:$0xff] %vm535_vm1, %v26734_v1 }
  0x30   : > { %631 = vst.msk [vmem:[#allocation2 + $0x2f0] sm:$0xff] %vm535_vm1, %v26734_v1  ;;  %632 = vst.msk [vmem:[#allocation2 + $0x2f8] sm:$0xff] %vm535_vm1, %v26734_v1 }
  0x31   : > { %633 = vst.msk [vmem:[#allocation2 + $0x300] sm:$0xff] %vm535_vm1, %v26734_v1  ;;  %634 = vst.msk [vmem:[#allocation2 + $0x308] sm:$0xff] %vm535_vm1, %v26734_v1 }
  0x32   : > { %636 = vst.msk [vmem:[#allocation2 + $0x318] sm:$0xff] %vm535_vm1, %v26734_v1  ;;  %637 = vst.msk [vmem:[#allocation2 + $0x320] sm:$0xff] %vm535_vm1, %v26734_v1 }
  0x33   : > { %638 = vst.msk [vmem:[#allocation2 + $0x328] sm:$0xff] %vm535_vm1, %v26734_v1  ;;  %639 = vst.msk [vmem:[#allocation2 + $0x330] sm:$0xff] %vm535_vm1, %v26734_v1 }
  0x34   : > { %640 = vst.msk [vmem:[#allocation2 + $0x338] sm:$0xff] %vm535_vm1, %v26734_v1  ;;  %641 = vst.msk [vmem:[#allocation2 + $0x340] sm:$0xff] %vm535_vm1, %v26734_v1 }
  0x35   : > { %642 = vst.msk [vmem:[#allocation2 + $0x348] sm:$0xff] %vm535_vm1, %v26734_v1  ;;  %643 = vst.msk [vmem:[#allocation2 + $0x350] sm:$0xff] %vm535_vm1, %v26734_v1 }
  0x36   : > { %645 = vst.msk [vmem:[#allocation2 + $0x360] sm:$0xff] %vm535_vm1, %v26734_v1  ;;  %646 = vst.msk [vmem:[#allocation2 + $0x368] sm:$0xff] %vm535_vm1, %v26734_v1 }
  0x37   : > { %647 = vst.msk [vmem:[#allocation2 + $0x370] sm:$0xff] %vm535_vm1, %v26734_v1  ;;  %648 = vst.msk [vmem:[#allocation2 + $0x378] sm:$0xff] %vm535_vm1, %v26734_v1 }
  0x38   : > { %649 = vst.msk [vmem:[#allocation2 + $0x380] sm:$0xff] %vm535_vm1, %v26734_v1  ;;  %650 = vst.msk [vmem:[#allocation2 + $0x388] sm:$0xff] %vm535_vm1, %v26734_v1 }
  0x39   : > { %651 = vst.msk [vmem:[#allocation2 + $0x390] sm:$0xff] %vm535_vm1, %v26734_v1  ;;  %652 = vst.msk [vmem:[#allocation2 + $0x398] sm:$0xff] %vm535_vm1, %v26734_v1 }
  0x3a   : > { %654 = vst.msk [vmem:[#allocation2 + $0x3a8] sm:$0xff] %vm535_vm1, %v26734_v1  ;;  %655 = vst.msk [vmem:[#allocation2 + $0x3b0] sm:$0xff] %vm535_vm1, %v26734_v1 }
  0x3b   : > { %656 = vst.msk [vmem:[#allocation2 + $0x3b8] sm:$0xff] %vm535_vm1, %v26734_v1  ;;  %657 = vst.msk [vmem:[#allocation2 + $0x3c0] sm:$0xff] %vm535_vm1, %v26734_v1 }
  0x3c   : > { %658 = vst.msk [vmem:[#allocation2 + $0x3c8] sm:$0xff] %vm535_vm1, %v26734_v1  ;;  %659 = vst.msk [vmem:[#allocation2 + $0x3d0] sm:$0xff] %vm535_vm1, %v26734_v1 }
  0x3d   : > { %660 = vst.msk [vmem:[#allocation2 + $0x3d8] sm:$0xff] %vm535_vm1, %v26734_v1  ;;  %661 = vst.msk [vmem:[#allocation2 + $0x3e0] sm:$0xff] %vm535_vm1, %v26734_v1 }
  0x3e   : > { %663 = vst.msk [vmem:[#allocation2 + $0x3f0] sm:$0xff] %vm535_vm1, %v26734_v1  ;;  %664 = vst.msk [vmem:[#allocation2 + $0x3f8] sm:$0xff] %vm535_vm1, %v26734_v1 }
  0x3f   : > { %665 = vst.msk [vmem:[#allocation2 + $0x400] sm:$0xff] %vm535_vm1, %v26734_v1  ;;  %666 = vst.msk [vmem:[#allocation2 + $0x408] sm:$0xff] %vm535_vm1, %v26734_v1 }
  0x40   : > { %667 = vst.msk [vmem:[#allocation2 + $0x410] sm:$0xff] %vm535_vm1, %v26734_v1  ;;  %668 = vst.msk [vmem:[#allocation2 + $0x418] sm:$0xff] %vm535_vm1, %v26734_v1 }
  0x41   : > { %669 = vst.msk [vmem:[#allocation2 + $0x420] sm:$0xff] %vm535_vm1, %v26734_v1  ;;  %670 = vst.msk [vmem:[#allocation2 + $0x428] sm:$0xff] %vm535_vm1, %v26734_v1 }
  0x42   : > { %672 = vst.msk [vmem:[#allocation2 + $0x438] sm:$0xff] %vm535_vm1, %v26734_v1  ;;  %673 = vst.msk [vmem:[#allocation2 + $0x440] sm:$0xff] %vm535_vm1, %v26734_v1 }
  0x43   : > { %674 = vst.msk [vmem:[#allocation2 + $0x448] sm:$0xff] %vm535_vm1, %v26734_v1  ;;  %675 = vst.msk [vmem:[#allocation2 + $0x450] sm:$0xff] %vm535_vm1, %v26734_v1 }
  0x44   : > { %676 = vst.msk [vmem:[#allocation2 + $0x458] sm:$0xff] %vm535_vm1, %v26734_v1  ;;  %677 = vst.msk [vmem:[#allocation2 + $0x460] sm:$0xff] %vm535_vm1, %v26734_v1 }
  0x45   : > { %678 = vst.msk [vmem:[#allocation2 + $0x468] sm:$0xff] %vm535_vm1, %v26734_v1  ;;  %679 = vst.msk [vmem:[#allocation2 + $0x470] sm:$0xff] %vm535_vm1, %v26734_v1 }
  0x46   : > { %681 = vst.msk [vmem:[#allocation2 + $0x480] sm:$0xff] %vm535_vm1, %v26734_v1  ;;  %682 = vst.msk [vmem:[#allocation2 + $0x488] sm:$0xff] %vm535_vm1, %v26734_v1 }
  0x47   : > { %683 = vst.msk [vmem:[#allocation2 + $0x490] sm:$0xff] %vm535_vm1, %v26734_v1  ;;  %684 = vst.msk [vmem:[#allocation2 + $0x498] sm:$0xff] %vm535_vm1, %v26734_v1 }
  0x48   : > { %685 = vst.msk [vmem:[#allocation2 + $0x4a0] sm:$0xff] %vm535_vm1, %v26734_v1  ;;  %686 = vst.msk [vmem:[#allocation2 + $0x4a8] sm:$0xff] %vm535_vm1, %v26734_v1 }
  0x49   : > { %687 = vst.msk [vmem:[#allocation2 + $0x4b0] sm:$0xff] %vm535_vm1, %v26734_v1  ;;  %688 = vst.msk [vmem:[#allocation2 + $0x4b8] sm:$0xff] %vm535_vm1, %v26734_v1 }
  0x4a   : > { %690 = vst.msk [vmem:[#allocation2 + $0x4c8] sm:$0xff] %vm535_vm1, %v26734_v1  ;;  %691 = vst.msk [vmem:[#allocation2 + $0x4d0] sm:$0xff] %vm535_vm1, %v26734_v1 }
  0x4b   : > { %692 = vst.msk [vmem:[#allocation2 + $0x4d8] sm:$0xff] %vm535_vm1, %v26734_v1  ;;  %693 = vst.msk [vmem:[#allocation2 + $0x4e0] sm:$0xff] %vm535_vm1, %v26734_v1 }
  0x4c   : > { %694 = vst.msk [vmem:[#allocation2 + $0x4e8] sm:$0xff] %vm535_vm1, %v26734_v1  ;;  %695 = vst.msk [vmem:[#allocation2 + $0x4f0] sm:$0xff] %vm535_vm1, %v26734_v1 }
  0x4d   : > { %696 = vst.msk [vmem:[#allocation2 + $0x4f8] sm:$0xff] %vm535_vm1, %v26734_v1  ;;  %697 = vst.msk [vmem:[#allocation2 + $0x500] sm:$0xff] %vm535_vm1, %v26734_v1 }
  0x4e   : > { %699 = vst.msk [vmem:[#allocation2 + $0x510] sm:$0xff] %vm535_vm1, %v26734_v1  ;;  %700 = vst.msk [vmem:[#allocation2 + $0x518] sm:$0xff] %vm535_vm1, %v26734_v1 }
  0x4f   : > { %701 = vst.msk [vmem:[#allocation2 + $0x520] sm:$0xff] %vm535_vm1, %v26734_v1  ;;  %702 = vst.msk [vmem:[#allocation2 + $0x528] sm:$0xff] %vm535_vm1, %v26734_v1 }
  0x50   : > { %703 = vst.msk [vmem:[#allocation2 + $0x530] sm:$0xff] %vm535_vm1, %v26734_v1  ;;  %704 = vst.msk [vmem:[#allocation2 + $0x538] sm:$0xff] %vm535_vm1, %v26734_v1 }
  0x51   : > { %705 = vst.msk [vmem:[#allocation2 + $0x540] sm:$0xff] %vm535_vm1, %v26734_v1  ;;  %706 = vst.msk [vmem:[#allocation2 + $0x548] sm:$0xff] %vm535_vm1, %v26734_v1 }
  0x52   : > { %708 = vst.msk [vmem:[#allocation2 + $0x558] sm:$0xff] %vm535_vm1, %v26734_v1  ;;  %709 = vst.msk [vmem:[#allocation2 + $0x560] sm:$0xff] %vm535_vm1, %v26734_v1 }
  0x53   : > { %710 = vst.msk [vmem:[#allocation2 + $0x568] sm:$0xff] %vm535_vm1, %v26734_v1  ;;  %711 = vst.msk [vmem:[#allocation2 + $0x570] sm:$0xff] %vm535_vm1, %v26734_v1 }
  0x54   : > { %712 = vst.msk [vmem:[#allocation2 + $0x578] sm:$0xff] %vm535_vm1, %v26734_v1  ;;  %713 = vst.msk [vmem:[#allocation2 + $0x580] sm:$0xff] %vm535_vm1, %v26734_v1 }
  0x55   : > { %714 = vst.msk [vmem:[#allocation2 + $0x588] sm:$0xff] %vm535_vm1, %v26734_v1  ;;  %715 = vst.msk [vmem:[#allocation2 + $0x590] sm:$0xff] %vm535_vm1, %v26734_v1 }
  0x56   : > { %717 = vst.msk [vmem:[#allocation2 + $0x5a0] sm:$0xff] %vm535_vm1, %v26734_v1  ;;  %718 = vst.msk [vmem:[#allocation2 + $0x5a8] sm:$0xff] %vm535_vm1, %v26734_v1 }
  0x57   : > { %719 = vst.msk [vmem:[#allocation2 + $0x5b0] sm:$0xff] %vm535_vm1, %v26734_v1  ;;  %720 = vst.msk [vmem:[#allocation2 + $0x5b8] sm:$0xff] %vm535_vm1, %v26734_v1 }
  0x58   : > { %721 = vst.msk [vmem:[#allocation2 + $0x5c0] sm:$0xff] %vm535_vm1, %v26734_v1  ;;  %722 = vst.msk [vmem:[#allocation2 + $0x5c8] sm:$0xff] %vm535_vm1, %v26734_v1 }
  0x59   : > { %723 = vst.msk [vmem:[#allocation2 + $0x5d0] sm:$0xff] %vm535_vm1, %v26734_v1  ;;  %724 = vst.msk [vmem:[#allocation2 + $0x5d8] sm:$0xff] %vm535_vm1, %v26734_v1 }
  0x5a   : > { %726 = vst.msk [vmem:[#allocation2 + $0x5e8] sm:$0xff] %vm535_vm1, %v26734_v1  ;;  %727 = vst.msk [vmem:[#allocation2 + $0x5f0] sm:$0xff] %vm535_vm1, %v26734_v1 }
  0x5b   : > { %728 = vst.msk [vmem:[#allocation2 + $0x5f8] sm:$0xff] %vm535_vm1, %v26734_v1  ;;  %729 = vst.msk [vmem:[#allocation2 + $0x600] sm:$0xff] %vm535_vm1, %v26734_v1 }
  0x5c   : > { %730 = vst.msk [vmem:[#allocation2 + $0x608] sm:$0xff] %vm535_vm1, %v26734_v1  ;;  %731 = vst.msk [vmem:[#allocation2 + $0x610] sm:$0xff] %vm535_vm1, %v26734_v1 }
  0x5d   : > { %732 = vst.msk [vmem:[#allocation2 + $0x618] sm:$0xff] %vm535_vm1, %v26734_v1  ;;  %733 = vst.msk [vmem:[#allocation2 + $0x620] sm:$0xff] %vm535_vm1, %v26734_v1 }
  0x5e   : > { %735 = vst.msk [vmem:[#allocation2 + $0x630] sm:$0xff] %vm535_vm1, %v26734_v1  ;;  %736 = vst.msk [vmem:[#allocation2 + $0x638] sm:$0xff] %vm535_vm1, %v26734_v1 }
  0x5f   : > { %737 = vst.msk [vmem:[#allocation2 + $0x640] sm:$0xff] %vm535_vm1, %v26734_v1  ;;  %738 = vst.msk [vmem:[#allocation2 + $0x648] sm:$0xff] %vm535_vm1, %v26734_v1 }
  0x60   : > { %739 = vst.msk [vmem:[#allocation2 + $0x650] sm:$0xff] %vm535_vm1, %v26734_v1  ;;  %740 = vst.msk [vmem:[#allocation2 + $0x658] sm:$0xff] %vm535_vm1, %v26734_v1 }
  0x61   : > { %741 = vst.msk [vmem:[#allocation2 + $0x660] sm:$0xff] %vm535_vm1, %v26734_v1  ;;  %742 = vst.msk [vmem:[#allocation2 + $0x668] sm:$0xff] %vm535_vm1, %v26734_v1 }
  0x62   : > { %744 = vst.msk [vmem:[#allocation2 + $0x678] sm:$0xff] %vm535_vm1, %v26734_v1  ;;  %745 = vst.msk [vmem:[#allocation2 + $0x680] sm:$0xff] %vm535_vm1, %v26734_v1 }
  0x63   : > { %746 = vst.msk [vmem:[#allocation2 + $0x688] sm:$0xff] %vm535_vm1, %v26734_v1  ;;  %747 = vst.msk [vmem:[#allocation2 + $0x690] sm:$0xff] %vm535_vm1, %v26734_v1 }
  0x64   : > { %748 = vst.msk [vmem:[#allocation2 + $0x698] sm:$0xff] %vm535_vm1, %v26734_v1  ;;  %749 = vst.msk [vmem:[#allocation2 + $0x6a0] sm:$0xff] %vm535_vm1, %v26734_v1 }
  0x65   : > { %750 = vst.msk [vmem:[#allocation2 + $0x6a8] sm:$0xff] %vm535_vm1, %v26734_v1  ;;  %751 = vst.msk [vmem:[#allocation2 + $0x6b0] sm:$0xff] %vm535_vm1, %v26734_v1 }
  0x66   : > { %753 = vst.msk [vmem:[#allocation2 + $0x6c0] sm:$0xff] %vm535_vm1, %v26734_v1  ;;  %754 = vst.msk [vmem:[#allocation2 + $0x6c8] sm:$0xff] %vm535_vm1, %v26734_v1 }
  0x67   : > { %755 = vst.msk [vmem:[#allocation2 + $0x6d0] sm:$0xff] %vm535_vm1, %v26734_v1  ;;  %756 = vst.msk [vmem:[#allocation2 + $0x6d8] sm:$0xff] %vm535_vm1, %v26734_v1 }
  0x68   : > { %757 = vst.msk [vmem:[#allocation2 + $0x6e0] sm:$0xff] %vm535_vm1, %v26734_v1  ;;  %758 = vst.msk [vmem:[#allocation2 + $0x6e8] sm:$0xff] %vm535_vm1, %v26734_v1 }
  0x69   : > { %759 = vst.msk [vmem:[#allocation2 + $0x6f0] sm:$0xff] %vm535_vm1, %v26734_v1  ;;  %760 = vst.msk [vmem:[#allocation2 + $0x6f8] sm:$0xff] %vm535_vm1, %v26734_v1 }
  0x6a   : > { %762 = vst.msk [vmem:[#allocation2 + $0x708] sm:$0xff] %vm535_vm1, %v26734_v1  ;;  %763 = vst.msk [vmem:[#allocation2 + $0x710] sm:$0xff] %vm535_vm1, %v26734_v1 }
  0x6b   : > { %764 = vst.msk [vmem:[#allocation2 + $0x718] sm:$0xff] %vm535_vm1, %v26734_v1  ;;  %765 = vst.msk [vmem:[#allocation2 + $0x720] sm:$0xff] %vm535_vm1, %v26734_v1 }
  0x6c   : > { %766 = vst.msk [vmem:[#allocation2 + $0x728] sm:$0xff] %vm535_vm1, %v26734_v1  ;;  %767 = vst.msk [vmem:[#allocation2 + $0x730] sm:$0xff] %vm535_vm1, %v26734_v1 }
  0x6d   : > { %768 = vst.msk [vmem:[#allocation2 + $0x738] sm:$0xff] %vm535_vm1, %v26734_v1  ;;  %769 = vst.msk [vmem:[#allocation2 + $0x740] sm:$0xff] %vm535_vm1, %v26734_v1 }
  0x6e   : > { %771 = vst.msk [vmem:[#allocation2 + $0x750] sm:$0xff] %vm535_vm1, %v26734_v1  ;;  %772 = vst.msk [vmem:[#allocation2 + $0x758] sm:$0xff] %vm535_vm1, %v26734_v1 }
  0x6f   : > { %773 = vst.msk [vmem:[#allocation2 + $0x760] sm:$0xff] %vm535_vm1, %v26734_v1  ;;  %774 = vst.msk [vmem:[#allocation2 + $0x768] sm:$0xff] %vm535_vm1, %v26734_v1 }
  0x70   : > { %775 = vst.msk [vmem:[#allocation2 + $0x770] sm:$0xff] %vm535_vm1, %v26734_v1  ;;  %776 = vst.msk [vmem:[#allocation2 + $0x778] sm:$0xff] %vm535_vm1, %v26734_v1 }
  0x71   : > { %777 = vst.msk [vmem:[#allocation2 + $0x780] sm:$0xff] %vm535_vm1, %v26734_v1  ;;  %778 = vst.msk [vmem:[#allocation2 + $0x788] sm:$0xff] %vm535_vm1, %v26734_v1 }
  0x72   : > { %780 = vst.msk [vmem:[#allocation2 + $0x798] sm:$0xff] %vm535_vm1, %v26734_v1  ;;  %781 = vst.msk [vmem:[#allocation2 + $0x7a0] sm:$0xff] %vm535_vm1, %v26734_v1 }
  0x73   : > { %782 = vst.msk [vmem:[#allocation2 + $0x7a8] sm:$0xff] %vm535_vm1, %v26734_v1  ;;  %783 = vst.msk [vmem:[#allocation2 + $0x7b0] sm:$0xff] %vm535_vm1, %v26734_v1 }
  0x74   : > { %784 = vst.msk [vmem:[#allocation2 + $0x7b8] sm:$0xff] %vm535_vm1, %v26734_v1  ;;  %785 = vst.msk [vmem:[#allocation2 + $0x7c0] sm:$0xff] %vm535_vm1, %v26734_v1 }
  0x75   : > { %786 = vst.msk [vmem:[#allocation2 + $0x7c8] sm:$0xff] %vm535_vm1, %v26734_v1  ;;  %787 = vst.msk [vmem:[#allocation2 + $0x7d0] sm:$0xff] %vm535_vm1, %v26734_v1 }
  0x76   : > { %789 = vst.msk [vmem:[#allocation2 + $0x7e0] sm:$0xff] %vm535_vm1, %v26734_v1  ;;  %790 = vst.msk [vmem:[#allocation2 + $0x7e8] sm:$0xff] %vm535_vm1, %v26734_v1 }
  0x77   : > { %791 = vst.msk [vmem:[#allocation2 + $0x7f0] sm:$0xff] %vm535_vm1, %v26734_v1  ;;  %792 = vst.msk [vmem:[#allocation2 + $0x7f8] sm:$0xff] %vm535_vm1, %v26734_v1 }
  0x78   : > { %793 = vst.msk [vmem:[#allocation2 + $0x800] sm:$0xff] %vm535_vm1, %v26734_v1  ;;  %794 = vst.msk [vmem:[#allocation2 + $0x808] sm:$0xff] %vm535_vm1, %v26734_v1 }
  0x79   : > { %795 = vst.msk [vmem:[#allocation2 + $0x810] sm:$0xff] %vm535_vm1, %v26734_v1  ;;  %796 = vst.msk [vmem:[#allocation2 + $0x818] sm:$0xff] %vm535_vm1, %v26734_v1 }
  0x7a   : > { %798 = vst.msk [vmem:[#allocation2 + $0x828] sm:$0xff] %vm535_vm1, %v26734_v1  ;;  %799 = vst.msk [vmem:[#allocation2 + $0x830] sm:$0xff] %vm535_vm1, %v26734_v1 }
  0x7b   : > { %800 = vst.msk [vmem:[#allocation2 + $0x838] sm:$0xff] %vm535_vm1, %v26734_v1  ;;  %801 = vst.msk [vmem:[#allocation2 + $0x840] sm:$0xff] %vm535_vm1, %v26734_v1 }
  0x7c   : > { %802 = vst.msk [vmem:[#allocation2 + $0x848] sm:$0xff] %vm535_vm1, %v26734_v1  ;;  %803 = vst.msk [vmem:[#allocation2 + $0x850] sm:$0xff] %vm535_vm1, %v26734_v1 }
  0x7d   : > { %804 = vst.msk [vmem:[#allocation2 + $0x858] sm:$0xff] %vm535_vm1, %v26734_v1  ;;  %805 = vst.msk [vmem:[#allocation2 + $0x860] sm:$0xff] %vm535_vm1, %v26734_v1 }
  0x7e   : > { %807 = vst.msk [vmem:[#allocation2 + $0x870] sm:$0xff] %vm535_vm1, %v26734_v1  ;;  %808 = vst.msk [vmem:[#allocation2 + $0x878] sm:$0xff] %vm535_vm1, %v26734_v1 }
  0x7f   : > { %809 = vst.msk [vmem:[#allocation2 + $0x880] sm:$0xff] %vm535_vm1, %v26734_v1  ;;  %810 = vst.msk [vmem:[#allocation2 + $0x888] sm:$0xff] %vm535_vm1, %v26734_v1 }
  0x80   : > { %811 = vst.msk [vmem:[#allocation2 + $0x890] sm:$0xff] %vm535_vm1, %v26734_v1  ;;  %812 = vst.msk [vmem:[#allocation2 + $0x898] sm:$0xff] %vm535_vm1, %v26734_v1 }
  0x81   : > { %813 = vst.msk [vmem:[#allocation2 + $0x8a0] sm:$0xff] %vm535_vm1, %v26734_v1  ;;  %814 = vst.msk [vmem:[#allocation2 + $0x8a8] sm:$0xff] %vm535_vm1, %v26734_v1 }
  0x82   : > { %816 = vst.msk [vmem:[#allocation2 + $0x8b8] sm:$0xff] %vm535_vm1, %v26734_v1  ;;  %817 = vst.msk [vmem:[#allocation2 + $0x8c0] sm:$0xff] %vm535_vm1, %v26734_v1 }
  0x83   : > { %818 = vst.msk [vmem:[#allocation2 + $0x8c8] sm:$0xff] %vm535_vm1, %v26734_v1  ;;  %819 = vst.msk [vmem:[#allocation2 + $0x8d0] sm:$0xff] %vm535_vm1, %v26734_v1 }
  0x84   : > { %820 = vst.msk [vmem:[#allocation2 + $0x8d8] sm:$0xff] %vm535_vm1, %v26734_v1  ;;  %821 = vst.msk [vmem:[#allocation2 + $0x8e0] sm:$0xff] %vm535_vm1, %v26734_v1 }
  0x85   : > { %822 = vst.msk [vmem:[#allocation2 + $0x8e8] sm:$0xff] %vm535_vm1, %v26734_v1  ;;  %823 = vst.msk [vmem:[#allocation2 + $0x8f0] sm:$0xff] %vm535_vm1, %v26734_v1 }
  0x86   : > { %825 = vst.msk [vmem:[#allocation2 + $0x900] sm:$0xff] %vm535_vm1, %v26734_v1  ;;  %826 = vst.msk [vmem:[#allocation2 + $0x908] sm:$0xff] %vm535_vm1, %v26734_v1 }
  0x87   : > { %827 = vst.msk [vmem:[#allocation2 + $0x910] sm:$0xff] %vm535_vm1, %v26734_v1  ;;  %828 = vst.msk [vmem:[#allocation2 + $0x918] sm:$0xff] %vm535_vm1, %v26734_v1 }
  0x88   : > { %829 = vst.msk [vmem:[#allocation2 + $0x920] sm:$0xff] %vm535_vm1, %v26734_v1  ;;  %830 = vst.msk [vmem:[#allocation2 + $0x928] sm:$0xff] %vm535_vm1, %v26734_v1 }
  0x89   : > { %831 = vst.msk [vmem:[#allocation2 + $0x930] sm:$0xff] %vm535_vm1, %v26734_v1  ;;  %832 = vst.msk [vmem:[#allocation2 + $0x938] sm:$0xff] %vm535_vm1, %v26734_v1 }
  0x8a   : > { %834 = vst.msk [vmem:[#allocation2 + $0x948] sm:$0xff] %vm535_vm1, %v26734_v1  ;;  %835 = vst.msk [vmem:[#allocation2 + $0x950] sm:$0xff] %vm535_vm1, %v26734_v1 }
  0x8b   : > { %836 = vst.msk [vmem:[#allocation2 + $0x958] sm:$0xff] %vm535_vm1, %v26734_v1  ;;  %837 = vst.msk [vmem:[#allocation2 + $0x960] sm:$0xff] %vm535_vm1, %v26734_v1 }
  0x8c   : > { %838 = vst.msk [vmem:[#allocation2 + $0x968] sm:$0xff] %vm535_vm1, %v26734_v1  ;;  %839 = vst.msk [vmem:[#allocation2 + $0x970] sm:$0xff] %vm535_vm1, %v26734_v1 }
  0x8d   : > { %840 = vst.msk [vmem:[#allocation2 + $0x978] sm:$0xff] %vm535_vm1, %v26734_v1  ;;  %841 = vst.msk [vmem:[#allocation2 + $0x980] sm:$0xff] %vm535_vm1, %v26734_v1 }
  0x8e   : > { %843 = vst.msk [vmem:[#allocation2 + $0x990] sm:$0xff] %vm535_vm1, %v26734_v1  ;;  %844 = vst.msk [vmem:[#allocation2 + $0x998] sm:$0xff] %vm535_vm1, %v26734_v1 }
  0x8f   : > { %845 = vst.msk [vmem:[#allocation2 + $0x9a0] sm:$0xff] %vm535_vm1, %v26734_v1  ;;  %846 = vst.msk [vmem:[#allocation2 + $0x9a8] sm:$0xff] %vm535_vm1, %v26734_v1 }
  0x90   : > { %847 = vst.msk [vmem:[#allocation2 + $0x9b0] sm:$0xff] %vm535_vm1, %v26734_v1  ;;  %848 = vst.msk [vmem:[#allocation2 + $0x9b8] sm:$0xff] %vm535_vm1, %v26734_v1 }
  0x91   : > { %849 = vst.msk [vmem:[#allocation2 + $0x9c0] sm:$0xff] %vm535_vm1, %v26734_v1  ;;  %850 = vst.msk [vmem:[#allocation2 + $0x9c8] sm:$0xff] %vm535_vm1, %v26734_v1 }
  0x92   : > { %852 = vst.msk [vmem:[#allocation2 + $0x9d8] sm:$0xff] %vm535_vm1, %v26734_v1  ;;  %853 = vst.msk [vmem:[#allocation2 + $0x9e0] sm:$0xff] %vm535_vm1, %v26734_v1 }
  0x93   : > { %854 = vst.msk [vmem:[#allocation2 + $0x9e8] sm:$0xff] %vm535_vm1, %v26734_v1  ;;  %855 = vst.msk [vmem:[#allocation2 + $0x9f0] sm:$0xff] %vm535_vm1, %v26734_v1 }
  0x94   : > { %856 = vst.msk [vmem:[#allocation2 + $0x9f8] sm:$0xff] %vm535_vm1, %v26734_v1  ;;  %857 = vst.msk [vmem:[#allocation2 + $0xa00] sm:$0xff] %vm535_vm1, %v26734_v1 }
  0x95   : > { %858 = vst.msk [vmem:[#allocation2 + $0xa08] sm:$0xff] %vm535_vm1, %v26734_v1  ;;  %859 = vst.msk [vmem:[#allocation2 + $0xa10] sm:$0xff] %vm535_vm1, %v26734_v1 }
  0x96   : > { %581 = vst.msk [vmem:[#allocation2 + $0x160] sm:$0xf] %vm544_vm2, %v26734_v1  ;;  %545 = vst.msk [vmem:[#allocation2 + $0x40] sm:$0xf] %vm544_vm2, %v26734_v1 }
  0x97   : > { %554 = vst.msk [vmem:[#allocation2 + $0x88] sm:$0xf] %vm544_vm2, %v26734_v1  ;;  %563 = vst.msk [vmem:[#allocation2 + $0xd0] sm:$0xf] %vm544_vm2, %v26734_v1 }
  0x98   : > { %572 = vst.msk [vmem:[#allocation2 + $0x118] sm:$0xf] %vm544_vm2, %v26734_v1  ;;  %590 = vst.msk [vmem:[#allocation2 + $0x1a8] sm:$0xf] %vm544_vm2, %v26734_v1 }
  0x99   : > { %599 = vst.msk [vmem:[#allocation2 + $0x1f0] sm:$0xf] %vm544_vm2, %v26734_v1  ;;  %608 = vst.msk [vmem:[#allocation2 + $0x238] sm:$0xf] %vm544_vm2, %v26734_v1 }
  0x9a   : > { %617 = vst.msk [vmem:[#allocation2 + $0x280] sm:$0xf] %vm544_vm2, %v26734_v1  ;;  %626 = vst.msk [vmem:[#allocation2 + $0x2c8] sm:$0xf] %vm544_vm2, %v26734_v1 }
  0x9b   : > { %635 = vst.msk [vmem:[#allocation2 + $0x310] sm:$0xf] %vm544_vm2, %v26734_v1  ;;  %644 = vst.msk [vmem:[#allocation2 + $0x358] sm:$0xf] %vm544_vm2, %v26734_v1 }
  0x9c   : > { %653 = vst.msk [vmem:[#allocation2 + $0x3a0] sm:$0xf] %vm544_vm2, %v26734_v1  ;;  %662 = vst.msk [vmem:[#allocation2 + $0x3e8] sm:$0xf] %vm544_vm2, %v26734_v1 }
  0x9d   : > { %671 = vst.msk [vmem:[#allocation2 + $0x430] sm:$0xf] %vm544_vm2, %v26734_v1  ;;  %680 = vst.msk [vmem:[#allocation2 + $0x478] sm:$0xf] %vm544_vm2, %v26734_v1 }
  0x9e   : > { %689 = vst.msk [vmem:[#allocation2 + $0x4c0] sm:$0xf] %vm544_vm2, %v26734_v1  ;;  %698 = vst.msk [vmem:[#allocation2 + $0x508] sm:$0xf] %vm544_vm2, %v26734_v1 }
  0x9f   : > { %707 = vst.msk [vmem:[#allocation2 + $0x550] sm:$0xf] %vm544_vm2, %v26734_v1  ;;  %716 = vst.msk [vmem:[#allocation2 + $0x598] sm:$0xf] %vm544_vm2, %v26734_v1 }
  0xa0   : > { %725 = vst.msk [vmem:[#allocation2 + $0x5e0] sm:$0xf] %vm544_vm2, %v26734_v1  ;;  %734 = vst.msk [vmem:[#allocation2 + $0x628] sm:$0xf] %vm544_vm2, %v26734_v1 }
  0xa1   : > { %743 = vst.msk [vmem:[#allocation2 + $0x670] sm:$0xf] %vm544_vm2, %v26734_v1  ;;  %752 = vst.msk [vmem:[#allocation2 + $0x6b8] sm:$0xf] %vm544_vm2, %v26734_v1 }
  0xa2   : > { %761 = vst.msk [vmem:[#allocation2 + $0x700] sm:$0xf] %vm544_vm2, %v26734_v1  ;;  %770 = vst.msk [vmem:[#allocation2 + $0x748] sm:$0xf] %vm544_vm2, %v26734_v1 }
  0xa3   : > { %779 = vst.msk [vmem:[#allocation2 + $0x790] sm:$0xf] %vm544_vm2, %v26734_v1  ;;  %788 = vst.msk [vmem:[#allocation2 + $0x7d8] sm:$0xf] %vm544_vm2, %v26734_v1 }
  0xa4   : > { %797 = vst.msk [vmem:[#allocation2 + $0x820] sm:$0xf] %vm544_vm2, %v26734_v1  ;;  %806 = vst.msk [vmem:[#allocation2 + $0x868] sm:$0xf] %vm544_vm2, %v26734_v1 }
  0xa5   : > { %815 = vst.msk [vmem:[#allocation2 + $0x8b0] sm:$0xf] %vm544_vm2, %v26734_v1  ;;  %824 = vst.msk [vmem:[#allocation2 + $0x8f8] sm:$0xf] %vm544_vm2, %v26734_v1 }
  0xa6   : > { %833 = vst.msk [vmem:[#allocation2 + $0x940] sm:$0xf] %vm544_vm2, %v26734_v1  ;;  %842 = vst.msk [vmem:[#allocation2 + $0x988] sm:$0xf] %vm544_vm2, %v26734_v1 }
  0xa7   : > { %851 = vst.msk [vmem:[#allocation2 + $0x9d0] sm:$0xf] %vm544_vm2, %v26734_v1  ;;  %860 = vst.msk [vmem:[#allocation2 + $0xa18] sm:$0xf] %vm544_vm2, %v26734_v1 }
  0xa8   : > { %878 = vst.msk [vmem:[#allocation2 + $0x122] sm:$0xff] %vm535_vm1, %v295_v5  ;;  %879 = vst.msk [vmem:[#allocation2 + $0x12a] sm:$0xff] %vm535_vm1, %v296_v6  ;;  %v423_v5 = vld [vmem:[%s27472_s15 + $0x480] sm:$0xff] }
  0xa9   : > { %880 = vst.msk [vmem:[#allocation2 + $0x132] sm:$0xff] %vm535_vm1, %v297_v7  ;;  %881 = vst.msk [vmem:[#allocation2 + $0x13a] sm:$0xff] %vm535_vm1, %v298_v8  ;;  %v424_v7 = vld [vmem:[%s27472_s15 + $0x488] sm:$0xff]  ;;  %v425_v8 = vld [vmem:[%s27472_s15 + $0x490] sm:$0xff] }
  0xaa   : > { %870 = vst.msk [vmem:[#allocation2 + $0xda] sm:$0xff] %vm535_vm1, %v287_v9  ;;  %871 = vst.msk [vmem:[#allocation2 + $0xe2] sm:$0xff] %vm535_vm1, %v288_v10  ;;  %v27605_v9 = vld [vmem:[%s30269_s1 + $0xb4] sm:$0x3f] }
  0xab   : > { %872 = vst.msk [vmem:[#allocation2 + $0xea] sm:$0xff] %vm535_vm1, %v289_v14  ;;  %873 = vst.msk [vmem:[#allocation2 + $0xf2] sm:$0xff] %vm535_vm1, %v290_v15  ;;  %v426_v10 = vld [vmem:[%s27472_s15 + $0x498] sm:$0xff] }
  0xac   : > { %882 = vst.msk [vmem:[#allocation2 + $0x142] sm:$0xff] %vm535_vm1, %v299_v16  ;;  %883 = vst.msk [vmem:[#allocation2 + $0x14a] sm:$0xff] %vm535_vm1, %v300_v17  ;;  %v353_v16 = vld [vmem:[%s27472_s15 + $0x250] sm:$0xff]  ;;  %v354_v17 = vld [vmem:[%s27472_s15 + $0x258] sm:$0xff] }
  0xad   : > { %884 = vst.msk [vmem:[#allocation2 + $0x152] sm:$0xff] %vm535_vm1, %v301_v18  ;;  %885 = vst.msk [vmem:[#allocation2 + $0x15a] sm:$0xff] %vm535_vm1, %v302_v19  ;;  %v427_v18 = vld [vmem:[%s27472_s15 + $0x4a0] sm:$0xff]  ;;  %v428_v19 = vld [vmem:[%s27472_s15 + $0x4a8] sm:$0xff] }
  0xae   : > { %874 = vst.msk [vmem:[#allocation2 + $0xfa] sm:$0xff] %vm535_vm1, %v291_v20  ;;  %875 = vst.msk [vmem:[#allocation2 + $0x102] sm:$0xff] %vm535_vm1, %v292_v21  ;;  %v429_v20 = vld [vmem:[%s27472_s15 + $0x4b0] sm:$0xff] }
  0xaf   : > { %876 = vst.msk [vmem:[#allocation2 + $0x10a] sm:$0xff] %vm535_vm1, %v293_v22  ;;  %877 = vst.msk [vmem:[#allocation2 + $0x112] sm:$0xff] %vm535_vm1, %v294_v23  ;;  %v430_v22 = vld [vmem:[%s27472_s15 + $0x4b8] sm:$0xff]  ;;  %v355_v23 = vld [vmem:[%s27472_s15 + $0x260] sm:$0xff] }
  0xb0   : > { %910 = vst.msk [vmem:[#allocation2 + $0x242] sm:$0xff] %vm535_vm1, %v327_v24  ;;  %911 = vst.msk [vmem:[#allocation2 + $0x24a] sm:$0xff] %vm535_vm1, %v328_v25  ;;  %v1155_v33 = vld [vmem:[#allocation2 + $0x121] ss:$4 sm:$0xff] }
  0xb1   : > { %912 = vst.msk [vmem:[#allocation2 + $0x252] sm:$0xff] %vm535_vm1, %v329_v26  ;;  %913 = vst.msk [vmem:[#allocation2 + $0x25a] sm:$0xff] %vm535_vm1, %v330_v27  ;;  %23261 = vmatprep.mubr.msk.f32.mxu1 %vm535_vm1, %v1155_v33  ;;  %v356_v24 = vld [vmem:[%s27472_s15 + $0x268] sm:$0xff]  ;;  %v357_v25 = vld [vmem:[%s27472_s15 + $0x270] sm:$0xff] }
  0xb2   : > { %902 = vst.msk [vmem:[#allocation2 + $0x1fa] sm:$0xff] %vm535_vm1, %v319_v28  ;;  %903 = vst.msk [vmem:[#allocation2 + $0x202] sm:$0xff] %vm535_vm1, %v320_v29  ;;  %v7701_v39 = vld [vmem:[#allocation2 + $0xdb] ss:$4 sm:$0xff]  ;;  %v7946_v60 = vld [vmem:[#allocation2 + $0xdc] ss:$4 sm:$0xff] }
  0xb3   : > { %904 = vst.msk [vmem:[#allocation2 + $0x20a] sm:$0xff] %vm535_vm1, %v321_v30  ;;  %905 = vst.msk [vmem:[#allocation2 + $0x212] sm:$0xff] %vm535_vm1, %v322_v31  ;;  %23960 = vmatprep.mubr.msk.f32.mxu0 %vm535_vm1, %v7701_v39  ;;  %v358_v26 = vld [vmem:[%s27472_s15 + $0x278] sm:$0xff]  ;;  %v455_v27 = vld [vmem:[%s27472_s15 + $0x580] sm:$0xff] }
  0xb4   : > { %914 = vst.msk [vmem:[#allocation2 + $0x262] sm:$0xff] %vm535_vm1, %v331_v32  ;;  %915 = vst.msk [vmem:[#allocation2 + $0x26a] sm:$0xff] %vm535_vm1, %v332_v34  ;;  %v1157_v43 = vld [vmem:[#allocation2 + $0x141] ss:$4 sm:$0xff] }
  0xb5   : > { %916 = vst.msk [vmem:[#allocation2 + $0x272] sm:$0xff] %vm535_vm1, %v333_v35  ;;  %917 = vst.msk [vmem:[#allocation2 + $0x27a] sm:$0xff] %vm535_vm1, %v334_v36  ;;  %23262 = vmatmul.mubr.msk.f32.gmra.mrb[2].mxu1 %vm535_vm1, %v1157_v43  ;;  %v456_v28 = vld [vmem:[%s27472_s15 + $0x588] sm:$0xff]  ;;  %v457_v29 = vld [vmem:[%s27472_s15 + $0x590] sm:$0xff] }
  0xb6   : > { %906 = vst.msk [vmem:[#allocation2 + $0x21a] sm:$0xff] %vm535_vm1, %v323_v37  ;;  %907 = vst.msk [vmem:[#allocation2 + $0x222] sm:$0xff] %vm535_vm1, %v324_v38  ;;  %v7703_v46 = vld [vmem:[#allocation2 + $0xfb] ss:$4 sm:$0xff]  ;;  %v7948_v63 = vld [vmem:[#allocation2 + $0xfc] ss:$4 sm:$0xff] }
  0xb7   : > { %908 = vst.msk [vmem:[#allocation2 + $0x22a] sm:$0xff] %vm535_vm1, %v325_v40  ;;  %909 = vst.msk [vmem:[#allocation2 + $0x232] sm:$0xff] %vm535_vm1, %v326_v41  ;;  %23961 = vmatmul.mubr.msk.f32.vlgmr.msra.gmra.mrb[0].mxu0 %vm535_vm1, %v7703_v46  ;;  %v458_v31 = vld [vmem:[%s27472_s15 + $0x598] sm:$0xff]  ;;  %v383_v32 = vld [vmem:[%s27472_s15 + $0x340] sm:$0xff] }
  0xb8   : > { %942 = vst.msk [vmem:[#allocation2 + $0x362] sm:$0xff] %vm535_vm1, %v359_v44  ;;  %943 = vst.msk [vmem:[#allocation2 + $0x36a] sm:$0xff] %vm535_vm1, %v360_v45  ;;  %23985 = vmatpush3.msk.msra.mxu0 %vm1231_vm0, %v27378_v3  ;;  %v1159_v51 = vld [vmem:[#allocation2 + $0x241] ss:$4 sm:$0xff] }
  0xb9   : > { %944 = vst.msk [vmem:[#allocation2 + $0x372] sm:$0xff] %vm535_vm1, %v361_v47  ;;  %945 = vst.msk [vmem:[#allocation2 + $0x37a] sm:$0xff] %vm535_vm1, %v362_v48  ;;  %23264 = vmatprep.mubr.msk.f32.mxu1 %vm535_vm1, %v1159_v51  ;;  %24010 = vmatprep.subr.msk.mxu0 %vm1231_vm0, %v27550_v42  ;;  %v384_v33 = vld [vmem:[%s27472_s15 + $0x348] sm:$0xff]  ;;  %v385_v34 = vld [vmem:[%s27472_s15 + $0x350] sm:$0xff] }
  0xba   : > { %946 = vst.msk [vmem:[#allocation2 + $0x382] sm:$0xff] %vm535_vm1, %v363_v49  ;;  %947 = vst.msk [vmem:[#allocation2 + $0x38a] sm:$0xff] %vm535_vm1, %v364_v50  ;;  %v7705_v54 = vld [vmem:[#allocation2 + $0x1fb] ss:$4 sm:$0xff]  ;;  %v7950_v3 = vld [vmem:[#allocation2 + $0x1fc] ss:$4 sm:$0xff] }
  0xbb   : > { %948 = vst.msk [vmem:[#allocation2 + $0x392] sm:$0xff] %vm535_vm1, %v365_v52  ;;  %949 = vst.msk [vmem:[#allocation2 + $0x39a] sm:$0xff] %vm535_vm1, %v366_v53  ;;  %23963 = vmatprep.mubr.msk.f32.mxu0 %vm535_vm1, %v7705_v54  ;;  %v386_v35 = vld [vmem:[%s27472_s15 + $0x358] sm:$0xff]  ;;  %v459_v37 = vld [vmem:[%s27472_s15 + $0x5a0] sm:$0xff] }
  0xbc   : > { %974 = vst.msk [vmem:[#allocation2 + $0x482] sm:$0xff] %vm535_vm1, %v391_v55  ;;  %v1161_v59 = vld [vmem:[#allocation2 + $0x261] ss:$4 sm:$0xff]  ;;  %975 = vst.msk [vmem:[#allocation2 + $0x48a] sm:$0xff] %vm535_vm1, %v392_v56 }
  0xbd   : > { %976 = vst.msk [vmem:[#allocation2 + $0x492] sm:$0xff] %vm535_vm1, %v393_v57  ;;  %977 = vst.msk [vmem:[#allocation2 + $0x49a] sm:$0xff] %vm535_vm1, %v394_v58  ;;  %23265 = vmatmul.mubr.msk.f32.gmra.mrb[4].mxu1 %vm535_vm1, %v1161_v59  ;;  %v460_v38 = vld [vmem:[%s27472_s15 + $0x5a8] sm:$0xff]  ;;  %v461_v40 = vld [vmem:[%s27472_s15 + $0x5b0] sm:$0xff] }
  0xbe   : > { %v7707_v62 = vld [vmem:[#allocation2 + $0x21b] ss:$4 sm:$0xff]  ;;  %978 = vst.msk [vmem:[#allocation2 + $0x4a2] sm:$0xff] %vm535_vm1, %v395_v61  ;;  %979 = vst.msk [vmem:[#allocation2 + $0x4aa] sm:$0xff] %vm535_vm1, %v396_v0  ;;  %v7952_v15 = vld [vmem:[#allocation2 + $0x21c] ss:$4 sm:$0xff] }
  0xbf   : > { %23964 = vmatmul.mubr.msk.f32.gmra.mrb[2].mxu0 %vm535_vm1, %v7707_v62  ;;  %980 = vst.msk [vmem:[#allocation2 + $0x4b2] sm:$0xff] %vm535_vm1, %v397_v2  ;;  %981 = vst.msk [vmem:[#allocation2 + $0x4ba] sm:$0xff] %vm535_vm1, %v398_v4  ;;  %v462_v41 = vld [vmem:[%s27472_s15 + $0x5b8] sm:$0xff]  ;;  %v388_v43 = vld [vmem:[%s27472_s15 + $0x368] sm:$0xff] }
  0xc0   : > { %v1163_v6 = vld [vmem:[#allocation2 + $0x361] ss:$4 sm:$0xff]  ;;  %23986 = vmatprep.mubr.msk.f32.mxu0 %vm535_vm1, %v7946_v60  ;;  %1006 = vst.msk [vmem:[#allocation2 + $0x5a2] sm:$0xff] %vm535_vm1, %v423_v5  ;;  %1007 = vst.msk [vmem:[#allocation2 + $0x5aa] sm:$0xff] %vm535_vm1, %v424_v7 }
  0xc1   : > { %23267 = vmatprep.mubr.msk.f32.mxu1 %vm535_vm1, %v1163_v6  ;;  %1008 = vst.msk [vmem:[#allocation2 + $0x5b2] sm:$0xff] %vm535_vm1, %v425_v8  ;;  %1009 = vst.msk [vmem:[#allocation2 + $0x5ba] sm:$0xff] %vm535_vm1, %v426_v10  ;;  %v389_v44 = vld [vmem:[%s27472_s15 + $0x370] sm:$0xff]  ;;  %v390_v46 = vld [vmem:[%s27472_s15 + $0x378] sm:$0xff] }
  0xc2   : > { %v1165_v14 = vld [vmem:[#allocation2 + $0x381] ss:$4 sm:$0xff]  ;;  %934 = vst.msk [vmem:[#allocation2 + $0x31a] sm:$0xff] %vm535_vm1, %v351_v12  ;;  %935 = vst.msk [vmem:[#allocation2 + $0x322] sm:$0xff] %vm535_vm1, %v352_v13 }
  0xc3   : > { %23268 = vmatmul.mubr.msk.f32.gmra.mrb[6].mxu1 %vm535_vm1, %v1165_v14  ;;  %23987 = vmatmul.mubr.msk.f32.vlgmr.msra.gmra.mrb[0].mxu0 %vm535_vm1, %v7948_v63  ;;  %936 = vst.msk [vmem:[#allocation2 + $0x32a] sm:$0xff] %vm535_vm1, %v353_v16  ;;  %937 = vst.msk [vmem:[#allocation2 + $0x332] sm:$0xff] %vm535_vm1, %v354_v17  ;;  %v487_v47 = vld [vmem:[%s27472_s15 + $0x680] sm:$0xff]  ;;  %v488_v49 = vld [vmem:[%s27472_s15 + $0x688] sm:$0xff] }
  0xc4   : > { %24011 = vmatpush3.msk.msra.mxu0 %vm1231_vm0, %v27550_v42  ;;  %v1167_v21 = vld [vmem:[#allocation2 + $0x481] ss:$4 sm:$0xff]  ;;  %23989 = vmatprep.mubr.msk.f32.mxu0 %vm535_vm1, %v7950_v3  ;;  %1010 = vst.msk [vmem:[#allocation2 + $0x5c2] sm:$0xff] %vm535_vm1, %v427_v18  ;;  %1011 = vst.msk [vmem:[#allocation2 + $0x5ca] sm:$0xff] %vm535_vm1, %v428_v19  ;;  %v1118_v16 = vld [vmem:[#allocation2] ss:$4 sm:$0xff] }
  0xc5   : > { %1012 = vst.msk [vmem:[#allocation2 + $0x5d2] sm:$0xff] %vm535_vm1, %v429_v20  ;;  %23270 = vmatprep.mubr.msk.f32.mxu1 %vm535_vm1, %v1167_v21  ;;  %1013 = vst.msk [vmem:[#allocation2 + $0x5da] sm:$0xff] %vm535_vm1, %v430_v22  ;;  %24036 = vmatprep.subr.msk.mxu0 %vm1231_vm0, %v27605_v9  ;;  %v387_v42 = vld [vmem:[%s27472_s15 + $0x360] sm:$0xff]  ;;  %v489_v50 = vld [vmem:[%s27472_s15 + $0x690] sm:$0xff] }
  0xc6   : > { %938 = vst.msk [vmem:[#allocation2 + $0x33a] sm:$0xff] %vm535_vm1, %v355_v23  ;;  %939 = vst.msk [vmem:[#allocation2 + $0x342] sm:$0xff] %vm535_vm1, %v356_v24  ;;  %v1169_v30 = vld [vmem:[#allocation2 + $0x4a1] ss:$4 sm:$0xff]  ;;  %v1120_v22 = vld [vmem:[#allocation2 + $0x20] ss:$4 sm:$0xff] }
  0xc7   : > { %940 = vst.msk [vmem:[#allocation2 + $0x34a] sm:$0xff] %vm535_vm1, %v357_v25  ;;  %941 = vst.msk [vmem:[#allocation2 + $0x352] sm:$0xff] %vm535_vm1, %v358_v26  ;;  %23990 = vmatmul.mubr.msk.f32.gmra.mrb[2].mxu0 %vm535_vm1, %v7952_v15  ;;  %23271 = vmatmul.mubr.msk.f32.gmra.mrb[8].mxu1 %vm535_vm1, %v1169_v30  ;;  %v490_v51 = vld [vmem:[%s27472_s15 + $0x698] sm:$0xff]  ;;  %v415_v52 = vld [vmem:[%s27472_s15 + $0x440] sm:$0xff] }
  0xc8   : > { %1038 = vst.msk [vmem:[#allocation2 + $0x6c2] sm:$0xff] %vm535_vm1, %v455_v27  ;;  %1039 = vst.msk [vmem:[#allocation2 + $0x6ca] sm:$0xff] %vm535_vm1, %v456_v28  ;;  %v1171_v36 = vld [vmem:[#allocation2 + $0x5a1] ss:$4 sm:$0xff]  ;;  %v1122_v28 = vld [vmem:[#allocation2 + $0x120] ss:$4 sm:$0xff] }
  0xc9   : > { %1040 = vst.msk [vmem:[#allocation2 + $0x6d2] sm:$0xff] %vm535_vm1, %v457_v29  ;;  %1041 = vst.msk [vmem:[#allocation2 + $0x6da] sm:$0xff] %vm535_vm1, %v458_v31  ;;  %23273 = vmatprep.mubr.msk.f32.mxu1 %vm535_vm1, %v1171_v36  ;;  %v416_v53 = vld [vmem:[%s27472_s15 + $0x448] sm:$0xff]  ;;  %v417_v55 = vld [vmem:[%s27472_s15 + $0x450] sm:$0xff] }
  0xca   : > { %966 = vst.msk [vmem:[#allocation2 + $0x43a] sm:$0xff] %vm535_vm1, %v383_v32  ;;  %967 = vst.msk [vmem:[#allocation2 + $0x442] sm:$0xff] %vm535_vm1, %v384_v33  ;;  %v7954_v39 = vld [vmem:[#allocation2 + $0x31c] ss:$4 sm:$0xff] }
  0xcb   : > { %968 = vst.msk [vmem:[#allocation2 + $0x44a] sm:$0xff] %vm535_vm1, %v385_v34  ;;  %969 = vst.msk [vmem:[#allocation2 + $0x452] sm:$0xff] %vm535_vm1, %v386_v35  ;;  %23992 = vmatprep.mubr.msk.f32.mxu0 %vm535_vm1, %v7954_v39  ;;  %v418_v56 = vld [vmem:[%s27472_s15 + $0x458] sm:$0xff]  ;;  %v491_v58 = vld [vmem:[%s27472_s15 + $0x6a0] sm:$0xff] }
  0xcc   : > { %1042 = vst.msk [vmem:[#allocation2 + $0x6e2] sm:$0xff] %vm535_vm1, %v459_v37  ;;  %1043 = vst.msk [vmem:[#allocation2 + $0x6ea] sm:$0xff] %vm535_vm1, %v460_v38  ;;  %v1173_v45 = vld [vmem:[#allocation2 + $0x5c1] ss:$4 sm:$0xff] }
  0xcd   : > { %1044 = vst.msk [vmem:[#allocation2 + $0x6f2] sm:$0xff] %vm535_vm1, %v461_v40  ;;  %1045 = vst.msk [vmem:[#allocation2 + $0x6fa] sm:$0xff] %vm535_vm1, %v462_v41  ;;  %23274 = vmatmul.mubr.msk.f32.gmra.mrb[10].mxu1 %vm535_vm1, %v1173_v45  ;;  %v492_v59 = vld [vmem:[%s27472_s15 + $0x6a8] sm:$0xff]  ;;  %v493_v60 = vld [vmem:[%s27472_s15 + $0x6b0] sm:$0xff] }
  0xce   : > { %970 = vst.msk [vmem:[#allocation2 + $0x45a] sm:$0xff] %vm535_vm1, %v387_v42  ;;  %971 = vst.msk [vmem:[#allocation2 + $0x462] sm:$0xff] %vm535_vm1, %v388_v43  ;;  %v7956_v48 = vld [vmem:[#allocation2 + $0x33c] ss:$4 sm:$0xff] }
  0xcf   : > { %972 = vst.msk [vmem:[#allocation2 + $0x46a] sm:$0xff] %vm535_vm1, %v389_v44  ;;  %973 = vst.msk [vmem:[#allocation2 + $0x472] sm:$0xff] %vm535_vm1, %v390_v46  ;;  %23993 = vmatmul.mubr.msk.f32.gmra.mrb[4].mxu0 %vm535_vm1, %v7956_v48  ;;  %v494_v61 = vld [vmem:[%s27472_s15 + $0x6b8] sm:$0xff]  ;;  %v419_v62 = vld [vmem:[%s27472_s15 + $0x460] sm:$0xff] }
  0xd0   : > { %1070 = vst.msk [vmem:[#allocation2 + $0x7e2] sm:$0xff] %vm535_vm1, %v487_v47  ;;  %1071 = vst.msk [vmem:[#allocation2 + $0x7ea] sm:$0xff] %vm535_vm1, %v488_v49  ;;  %v1175_v54 = vld [vmem:[#allocation2 + $0x6c1] ss:$4 sm:$0xff]  ;;  %v1124_v40 = vld [vmem:[#allocation2 + $0x140] ss:$4 sm:$0xff] }
  0xd1   : > { %1072 = vst.msk [vmem:[#allocation2 + $0x7f2] sm:$0xff] %vm535_vm1, %v489_v50  ;;  %1073 = vst.msk [vmem:[#allocation2 + $0x7fa] sm:$0xff] %vm535_vm1, %v490_v51  ;;  %23276 = vmatprep.mubr.msk.f32.mxu1 %vm535_vm1, %v1175_v54  ;;  %v420_v0 = vld [vmem:[%s27472_s15 + $0x468] sm:$0xff]  ;;  %v421_v2 = vld [vmem:[%s27472_s15 + $0x470] sm:$0xff] }
  0xd2   : > { %998 = vst.msk [vmem:[#allocation2 + $0x55a] sm:$0xff] %vm535_vm1, %v415_v52  ;;  %999 = vst.msk [vmem:[#allocation2 + $0x562] sm:$0xff] %vm535_vm1, %v416_v53  ;;  %v7958_v57 = vld [vmem:[#allocation2 + $0x43c] ss:$4 sm:$0xff]  ;;  %v8191_v47 = vld [vmem:[#allocation2 + $0xdd] ss:$4 sm:$0xff] }
  0xd3   : > { %1000 = vst.msk [vmem:[#allocation2 + $0x56a] sm:$0xff] %vm535_vm1, %v417_v55  ;;  %1001 = vst.msk [vmem:[#allocation2 + $0x572] sm:$0xff] %vm535_vm1, %v418_v56  ;;  %23995 = vmatprep.mubr.msk.f32.mxu0 %vm535_vm1, %v7958_v57  ;;  %v422_v3 = vld [vmem:[%s27472_s15 + $0x478] sm:$0xff]  ;;  %v447_v4 = vld [vmem:[%s27472_s15 + $0x540] sm:$0xff] }
  0xd4   : > { %1074 = vst.msk [vmem:[#allocation2 + $0x802] sm:$0xff] %vm535_vm1, %v491_v58  ;;  %1075 = vst.msk [vmem:[#allocation2 + $0x80a] sm:$0xff] %vm535_vm1, %v492_v59  ;;  %v1177_v63 = vld [vmem:[#allocation2 + $0x6e1] ss:$4 sm:$0xff]  ;;  %v1126_v42 = vld [vmem:[#allocation2 + $0x240] ss:$4 sm:$0xff] }
  0xd5   : > { %1076 = vst.msk [vmem:[#allocation2 + $0x812] sm:$0xff] %vm535_vm1, %v493_v60  ;;  %1077 = vst.msk [vmem:[#allocation2 + $0x81a] sm:$0xff] %vm535_vm1, %v494_v61  ;;  %23277 = vmatmul.mubr.msk.f32.gmra.mrb[12].mxu1 %vm535_vm1, %v1177_v63  ;;  %v448_v6 = vld [vmem:[%s27472_s15 + $0x548] sm:$0xff]  ;;  %v449_v7 = vld [vmem:[%s27472_s15 + $0x550] sm:$0xff] }
  0xd6   : > { %1002 = vst.msk [vmem:[#allocation2 + $0x57a] sm:$0xff] %vm535_vm1, %v419_v62  ;;  %1003 = vst.msk [vmem:[#allocation2 + $0x582] sm:$0xff] %vm535_vm1, %v420_v0  ;;  %v7960_v5 = vld [vmem:[#allocation2 + $0x45c] ss:$4 sm:$0xff]  ;;  %v8193_v51 = vld [vmem:[#allocation2 + $0xfd] ss:$4 sm:$0xff] }
  0xd7   : > { %1004 = vst.msk [vmem:[#allocation2 + $0x58a] sm:$0xff] %vm535_vm1, %v421_v2  ;;  %1005 = vst.msk [vmem:[#allocation2 + $0x592] sm:$0xff] %vm535_vm1, %v422_v3  ;;  %23996 = vmatmul.mubr.msk.f32.gmra.mrb[6].mxu0 %vm535_vm1, %v7960_v5  ;;  %v450_v8 = vld [vmem:[%s27472_s15 + $0x558] sm:$0xff]  ;;  %v451_v10 = vld [vmem:[%s27472_s15 + $0x560] sm:$0xff] }
  0xd8   : > { %1030 = vst.msk [vmem:[#allocation2 + $0x67a] sm:$0xff] %vm535_vm1, %v447_v4  ;;  %1031 = vst.msk [vmem:[#allocation2 + $0x682] sm:$0xff] %vm535_vm1, %v448_v6  ;;  %v1179_v12 = vld [vmem:[#allocation2 + $0x7e1] ss:$4 sm:$0xff]  ;;  %v1128_v45 = vld [vmem:[#allocation2 + $0x260] ss:$4 sm:$0xff] }
  0xd9   : > { %1032 = vst.msk [vmem:[#allocation2 + $0x68a] sm:$0xff] %vm535_vm1, %v449_v7  ;;  %1033 = vst.msk [vmem:[#allocation2 + $0x692] sm:$0xff] %vm535_vm1, %v450_v8  ;;  %v452_v13 = vld [vmem:[%s27472_s15 + $0x568] sm:$0xff]  ;;  %v453_v14 = vld [vmem:[%s27472_s15 + $0x570] sm:$0xff]  ;;  %23279 = vmatprep.mubr.msk.f32.mxu1 %vm535_vm1, %v1179_v12 }
  0xda   : > { %1034 = vst.msk [vmem:[#allocation2 + $0x69a] sm:$0xff] %vm535_vm1, %v451_v10  ;;  %v7962_v15 = vld [vmem:[#allocation2 + $0x55c] ss:$4 sm:$0xff]  ;;  %1035 = vst.msk [vmem:[#allocation2 + $0x6a2] sm:$0xff] %vm535_vm1, %v452_v13  ;;  %v8195_v52 = vld [vmem:[#allocation2 + $0x1fd] ss:$4 sm:$0xff] }
  0xdb   : > { %v454_v17 = vld [vmem:[%s27472_s15 + $0x578] sm:$0xff]  ;;  %1036 = vst.msk [vmem:[#allocation2 + $0x6aa] sm:$0xff] %vm535_vm1, %v453_v14  ;;  %23998 = vmatprep.mubr.msk.f32.mxu0 %vm535_vm1, %v7962_v15  ;;  %v479_v18 = vld [vmem:[%s27472_s15 + $0x640] sm:$0xff]  ;;  %v480_v19 = vld [vmem:[%s27472_s15 + $0x648] sm:$0xff] }
  0xdc   : > { %1037 = vst.msk [vmem:[#allocation2 + $0x6b2] sm:$0xff] %vm535_vm1, %v454_v17  ;;  %v481_v20 = vld [vmem:[%s27472_s15 + $0x650] sm:$0xff]  ;;  %v482_v23 = vld [vmem:[%s27472_s15 + $0x658] sm:$0xff]  ;;  %1062 = vst.msk [vmem:[#allocation2 + $0x79a] sm:$0xff] %vm535_vm1, %v479_v18 }
  0xdd   : > { %v1181_v21 = vld [vmem:[#allocation2 + $0x801] ss:$4 sm:$0xff]  ;;  %1063 = vst.msk [vmem:[#allocation2 + $0x7a2] sm:$0xff] %vm535_vm1, %v480_v19  ;;  %1064 = vst.msk [vmem:[#allocation2 + $0x7aa] sm:$0xff] %vm535_vm1, %v481_v20  ;;  %v1132_v49 = vld [vmem:[#allocation2 + $0x380] ss:$4 sm:$0xff] }
  0xde   : > { %23280 = vmatmul.mubr.msk.f32.gmra.mrb[14].mxu1 %vm535_vm1, %v1181_v21  ;;  %1065 = vst.msk [vmem:[#allocation2 + $0x7b2] sm:$0xff] %vm535_vm1, %v482_v23  ;;  %v483_v24 = vld [vmem:[%s27472_s15 + $0x660] sm:$0xff]  ;;  %v484_v25 = vld [vmem:[%s27472_s15 + $0x668] sm:$0xff]  ;;  %v485_v26 = vld [vmem:[%s27472_s15 + $0x670] sm:$0xff] }
  0xdf   : > { %v7964_v27 = vld [vmem:[#allocation2 + $0x57c] ss:$4 sm:$0xff]  ;;  %23284 = vmatprep.mubr.msk.f32.mxu1 %vm535_vm1, %v1118_v16  ;;  %1066 = vst.msk [vmem:[#allocation2 + $0x7ba] sm:$0xff] %vm535_vm1, %v483_v24  ;;  %1067 = vst.msk [vmem:[#allocation2 + $0x7c2] sm:$0xff] %vm535_vm1, %v484_v25  ;;  %v8197_v56 = vld [vmem:[#allocation2 + $0x21d] ss:$4 sm:$0xff] }
  0xe0   : > { %v486_v29 = vld [vmem:[%s27472_s15 + $0x678] sm:$0xff]  ;;  %1068 = vst.msk [vmem:[#allocation2 + $0x7ca] sm:$0xff] %vm535_vm1, %v485_v26  ;;  %23999 = vmatmul.mubr.msk.f32.gmra.mrb[8].mxu0 %vm535_vm1, %v7964_v27  ;;  %v511_v30 = vld [vmem:[%s27472_s15 + $0x740] sm:$0xff]  ;;  %v512_v31 = vld [vmem:[%s27472_s15 + $0x748] sm:$0xff] }
  0xe1   : > { %1069 = vst.msk [vmem:[#allocation2 + $0x7d2] sm:$0xff] %vm535_vm1, %v486_v29  ;;  %v513_v32 = vld [vmem:[%s27472_s15 + $0x750] sm:$0xff]  ;;  %v514_v34 = vld [vmem:[%s27472_s15 + $0x758] sm:$0xff]  ;;  %1094 = vst.msk [vmem:[#allocation2 + $0x8ba] sm:$0xff] %vm535_vm1, %v511_v30 }
  0xe2   : > { %v7966_v33 = vld [vmem:[#allocation2 + $0x67c] ss:$4 sm:$0xff]  ;;  %1095 = vst.msk [vmem:[#allocation2 + $0x8c2] sm:$0xff] %vm535_vm1, %v512_v31  ;;  %1096 = vst.msk [vmem:[#allocation2 + $0x8ca] sm:$0xff] %vm535_vm1, %v513_v32  ;;  %23285 = vmatmul.mubr.msk.f32.vlgmr.msra.gmra.mrb[0].mxu1 %vm535_vm1, %v1120_v22  ;;  %v8199_v57 = vld [vmem:[#allocation2 + $0x31d] ss:$4 sm:$0xff] }
  0xe3   : > { %v27765_v35 = vld [vmem:[%s30269_s1 + $0x12] sm:$0x3f]  ;;  %24001 = vmatprep.mubr.msk.f32.mxu0 %vm535_vm1, %v7966_v33  ;;  %1097 = vst.msk [vmem:[#allocation2 + $0x8d2] sm:$0xff] %vm535_vm1, %v514_v34  ;;  %v515_v36 = vld [vmem:[%s27472_s15 + $0x760] sm:$0xff]  ;;  %v516_v37 = vld [vmem:[%s27472_s15 + $0x768] sm:$0xff]  ;;  %23287 = vmatprep.mubr.msk.f32.mxu1 %vm535_vm1, %v1122_v28 }
  0xe4   : > { %v517_v38 = vld [vmem:[%s27472_s15 + $0x770] sm:$0xff]  ;;  %v518_v41 = vld [vmem:[%s27472_s15 + $0x778] sm:$0xff]  ;;  %1098 = vst.msk [vmem:[#allocation2 + $0x8da] sm:$0xff] %vm535_vm1, %v515_v36  ;;  %1099 = vst.msk [vmem:[#allocation2 + $0x8e2] sm:$0xff] %vm535_vm1, %v516_v37  ;;  %23309 = vmatpush3.msk.msra.mxu1 %vm1231_vm0, %v27486_v11 }
  0xe5   : > { %v7968_v39 = vld [vmem:[#allocation2 + $0x69c] ss:$4 sm:$0xff]  ;;  %1100 = vst.msk [vmem:[#allocation2 + $0x8ea] sm:$0xff] %vm535_vm1, %v517_v38  ;;  %1101 = vst.msk [vmem:[#allocation2 + $0x8f2] sm:$0xff] %vm535_vm1, %v518_v41  ;;  %23334 = vmatprep.subr.msk.mxu1 %vm1231_vm0, %v27765_v35  ;;  %v8201_v60 = vld [vmem:[#allocation2 + $0x33d] ss:$4 sm:$0xff] }
  0xe6   : > { %24002 = vmatmul.mubr.msk.f32.gmra.mrb[10].mxu0 %vm535_vm1, %v7968_v39  ;;  %v7970_v43 = vld [vmem:[#allocation2 + $0x79c] ss:$4 sm:$0xff]  ;;  %23288 = vmatmul.mubr.msk.f32.gmra.mrb[2].mxu1 %vm535_vm1, %v1124_v40  ;;  %v8205_v63 = vld [vmem:[#allocation2 + $0x45d] ss:$4 sm:$0xff]  ;;  %v1577_v3 = vld [vmem:[#allocation2 + $0x2] ss:$4 sm:$0xff] }
  0xe7   : > { %24004 = vmatprep.mubr.msk.f32.mxu0 %vm535_vm1, %v7970_v43  ;;  %23290 = vmatprep.mubr.msk.f32.mxu1 %vm535_vm1, %v1126_v42  ;;  %v1130_v11 = vld [vmem:[#allocation2 + $0x360] ss:$4 sm:$0xff]  ;;  %v8207_v0 = vld [vmem:[#allocation2 + $0x55d] ss:$4 sm:$0xff]  ;;  %v1579_v6 = vld [vmem:[#allocation2 + $0x22] ss:$4 sm:$0xff] }
  0xe8   : > { %v7972_v44 = vld [vmem:[#allocation2 + $0x7bc] ss:$4 sm:$0xff]  ;;  %v8209_v4 = vld [vmem:[#allocation2 + $0x57d] ss:$4 sm:$0xff]  ;;  %v1581_v7 = vld [vmem:[#allocation2 + $0x122] ss:$4 sm:$0xff] }
  0xe9   : > { %v1134_v50 = vld [vmem:[#allocation2 + $0x480] ss:$4 sm:$0xff]  ;;  %v8211_v5 = vld [vmem:[#allocation2 + $0x67d] ss:$4 sm:$0xff]  ;;  %v1583_v13 = vld [vmem:[#allocation2 + $0x142] ss:$4 sm:$0xff] }
  0xea   : > { %24005 = vmatmul.mubr.msk.f32.gmra.mrb[12].mxu0 %vm535_vm1, %v7972_v44  ;;  %v7974_v46 = vld [vmem:[#allocation2 + $0x8bc] ss:$4 sm:$0xff]  ;;  %23291 = vmatmul.mubr.msk.f32.gmra.mrb[4].mxu1 %vm535_vm1, %v1128_v45  ;;  %v8213_v8 = vld [vmem:[#allocation2 + $0x69d] ss:$4 sm:$0xff]  ;;  %v1585_v14 = vld [vmem:[#allocation2 + $0x242] ss:$4 sm:$0xff] }
  0xeb   : > { %24007 = vmatprep.mubr.msk.f32.mxu0 %vm535_vm1, %v7974_v46  ;;  %23293 = vmatprep.mubr.msk.f32.mxu1 %vm535_vm1, %v1130_v11  ;;  %v1136_v53 = vld [vmem:[#allocation2 + $0x4a0] ss:$4 sm:$0xff]  ;;  %v8215_v12 = vld [vmem:[#allocation2 + $0x79d] ss:$4 sm:$0xff]  ;;  %v1587_v17 = vld [vmem:[#allocation2 + $0x262] ss:$4 sm:$0xff] }
  0xec   : > { %v7976_v48 = vld [vmem:[#allocation2 + $0x8dc] ss:$4 sm:$0xff]  ;;  %v8217_v15 = vld [vmem:[#allocation2 + $0x7bd] ss:$4 sm:$0xff]  ;;  %v1589_v18 = vld [vmem:[#allocation2 + $0x362] ss:$4 sm:$0xff] }
  0xed   : > { %v27798_v54 = vld [vmem:[%s30269_s1 + $0xba] sm:$0x3f]  ;;  %v27847_v25 = vld [vmem:[%s30269_s1 + $0xc0] sm:$0x3f]  ;;  %v520_v29 = vld [vmem:[%s27472_s15 + $0x788] sm:$0xff]  ;;  %16810 = vst.msk [vmem:[#allocation3 + $0x20] sm:$0xff] %vm16804_vm3, %v26734_v1 }
  0xee   : > { %24008 = vmatmul.mubr.msk.f32.gmra.mrb[14].mxu0 %vm535_vm1, %v7976_v48  ;;  %23294 = vmatmul.mubr.msk.f32.gmra.mrb[6].mxu1 %vm535_vm1, %v1132_v49  ;;  %v1138_v55 = vld [vmem:[#allocation2 + $0x5a0] ss:$4 sm:$0xff]  ;;  %v8219_v16 = vld [vmem:[#allocation2 + $0x8bd] ss:$4 sm:$0xff]  ;;  %v8436_v20 = vld [vmem:[#allocation2 + $0xde] ss:$4 sm:$0xff] }
  0xef   : > { %24012 = vmatprep.mubr.msk.f32.mxu0 %vm535_vm1, %v8191_v47  ;;  %23296 = vmatprep.mubr.msk.f32.mxu1 %vm535_vm1, %v1134_v50  ;;  %v1140_v58 = vld [vmem:[#allocation2 + $0x5c0] ss:$4 sm:$0xff]  ;;  %v8221_v19 = vld [vmem:[#allocation2 + $0x8dd] ss:$4 sm:$0xff]  ;;  %v1591_v21 = vld [vmem:[#allocation2 + $0x382] ss:$4 sm:$0xff] }
  0xf0   : > { %v1142_v59 = vld [vmem:[#allocation2 + $0x6c0] ss:$4 sm:$0xff]  ;;  %v1593_v22 = vld [vmem:[#allocation2 + $0x482] ss:$4 sm:$0xff]  ;;  %1103 = vst.msk [vmem:[#allocation2 + $0x90a] sm:$0xff] %vm535_vm1, %v520_v29 }
  0xf1   : > { %v1144_v61 = vld [vmem:[#allocation2 + $0x6e0] ss:$4 sm:$0xff]  ;;  %v8438_v23 = vld [vmem:[#allocation2 + $0xfe] ss:$4 sm:$0xff]  ;;  %v1822_v46 = vld [vmem:[#allocation2 + $0x3] ss:$4 sm:$0xff] }
  0xf2   : > { %24013 = vmatmul.mubr.msk.f32.vlgmr.msra.gmra.mrb[0].mxu0 %vm535_vm1, %v8193_v51  ;;  %23297 = vmatmul.mubr.msk.f32.gmra.mrb[8].mxu1 %vm535_vm1, %v1136_v53  ;;  %v1146_v62 = vld [vmem:[#allocation2 + $0x7e0] ss:$4 sm:$0xff]  ;;  %v8440_v24 = vld [vmem:[#allocation2 + $0x1fe] ss:$4 sm:$0xff]  ;;  %v1824_v49 = vld [vmem:[#allocation2 + $0x23] ss:$4 sm:$0xff] }
  0xf3   : > { %24037 = vmatpush3.msk.msra.mxu0 %vm1231_vm0, %v27605_v9  ;;  %24015 = vmatprep.mubr.msk.f32.mxu0 %vm535_vm1, %v8195_v52  ;;  %v8203_v9 = vld [vmem:[#allocation2 + $0x43d] ss:$4 sm:$0xff]  ;;  %v1148_v2 = vld [vmem:[#allocation2 + $0x800] ss:$4 sm:$0xff]  ;;  %v1595_v26 = vld [vmem:[#allocation2 + $0x4a2] ss:$4 sm:$0xff] }
  0xf4   : > { %24062 = vmatprep.subr.msk.mxu0 %vm1231_vm0, %v27798_v54  ;;  %23299 = vmatprep.mubr.msk.f32.mxu1 %vm535_vm1, %v1138_v55  ;;  %v27825_v10 = vld [vmem:[%s30269_s1 + $0x18] sm:$0x3f]  ;;  %v519_v28 = vld [vmem:[%s27472_s15 + $0x780] sm:$0xff]  ;;  %v521_v30 = vld [vmem:[%s27472_s15 + $0x790] sm:$0xff]  ;;  %16811 = vst.msk [vmem:[#allocation3 + $0x28] sm:$0x3] %vm16807_vm4, %v26734_v1 }
  0xf5   : > { %v1597_v27 = vld [vmem:[#allocation2 + $0x5a2] ss:$4 sm:$0xff]  ;;  %1102 = vst.msk [vmem:[#allocation2 + $0x902] sm:$0xff] %vm535_vm1, %v519_v28  ;;  %1104 = vst.msk [vmem:[#allocation2 + $0x912] sm:$0xff] %vm535_vm1, %v521_v30  ;;  %v1826_v50 = vld [vmem:[#allocation2 + $0x123] ss:$4 sm:$0xff] }
  0xf6   : > { %24016 = vmatmul.mubr.msk.f32.gmra.mrb[2].mxu0 %vm535_vm1, %v8197_v56  ;;  %23300 = vmatmul.mubr.msk.f32.gmra.mrb[10].mxu1 %vm535_vm1, %v1140_v58  ;;  %v522_v31 = vld [vmem:[%s27472_s15 + $0x798] sm:$0xff]  ;;  %v523_v33 = vld [vmem:[%s27472_s15 + $0x7a0] sm:$0xff]  ;;  %v524_v34 = vld [vmem:[%s27472_s15 + $0x7a8] sm:$0xff]  ;;  %16805 = vst.msk [vmem:[#allocation3] sm:$0xff] %vm16804_vm3, %v26734_v1 }
  0xf7   : > { %24018 = vmatprep.mubr.msk.f32.mxu0 %vm535_vm1, %v8199_v57  ;;  %23302 = vmatprep.mubr.msk.f32.mxu1 %vm535_vm1, %v1142_v59  ;;  %v8442_v32 = vld [vmem:[#allocation2 + $0x21e] ss:$4 sm:$0xff]  ;;  %1105 = vst.msk [vmem:[#allocation2 + $0x91a] sm:$0xff] %vm535_vm1, %v522_v31  ;;  %1106 = vst.msk [vmem:[#allocation2 + $0x922] sm:$0xff] %vm535_vm1, %v523_v33  ;;  %v1830_v55 = vld [vmem:[#allocation2 + $0x243] ss:$4 sm:$0xff] }
  0xf8   : > { %v525_v36 = vld [vmem:[%s27472_s15 + $0x7b0] sm:$0xff]  ;;  %v526_v37 = vld [vmem:[%s27472_s15 + $0x7b8] sm:$0xff]  ;;  %1107 = vst.msk [vmem:[#allocation2 + $0x92a] sm:$0xff] %vm535_vm1, %v524_v34  ;;  %v27951_v30 = vld [vmem:[%s30269_s1 + $0x24] sm:$0x3f] }
  0xf9   : > { %v1599_v38 = vld [vmem:[#allocation2 + $0x5c2] ss:$4 sm:$0xff]  ;;  %1108 = vst.msk [vmem:[#allocation2 + $0x932] sm:$0xff] %vm535_vm1, %v525_v36  ;;  %1109 = vst.msk [vmem:[#allocation2 + $0x93a] sm:$0xff] %vm535_vm1, %v526_v37  ;;  %v1832_v58 = vld [vmem:[#allocation2 + $0x263] ss:$4 sm:$0xff] }
  0xfa   : > { %24019 = vmatmul.mubr.msk.f32.gmra.mrb[4].mxu0 %vm535_vm1, %v8201_v60  ;;  %23303 = vmatmul.mubr.msk.f32.gmra.mrb[12].mxu1 %vm535_vm1, %v1144_v61  ;;  %v1601_v39 = vld [vmem:[#allocation2 + $0x6c2] ss:$4 sm:$0xff]  ;;  %v1834_v59 = vld [vmem:[#allocation2 + $0x363] ss:$4 sm:$0xff]  ;;  %v2071_v28 = vld [vmem:[#allocation2 + $0x124] ss:$4 sm:$0xff] }
  0xfb   : > { %24021 = vmatprep.mubr.msk.f32.mxu0 %vm535_vm1, %v8203_v9  ;;  %23305 = vmatprep.mubr.msk.f32.mxu1 %vm535_vm1, %v1146_v62  ;;  %v8446_v40 = vld [vmem:[#allocation2 + $0x33e] ss:$4 sm:$0xff]  ;;  %v8681_v9 = vld [vmem:[#allocation2 + $0xdf] ss:$4 sm:$0xff]  ;;  %v2073_v33 = vld [vmem:[#allocation2 + $0x144] ss:$4 sm:$0xff] }
  0xfc   : > { %v8448_v41 = vld [vmem:[#allocation2 + $0x43e] ss:$4 sm:$0xff]  ;;  %v1836_v61 = vld [vmem:[#allocation2 + $0x383] ss:$4 sm:$0xff]  ;;  %16806 = vst.msk [vmem:[#allocation3 + $0x8] sm:$0xff] %vm16804_vm3, %v26734_v1  ;;  %16809 = vst.msk [vmem:[#allocation3 + $0x18] sm:$0xff] %vm16804_vm3, %v26734_v1 }
  0xfd   : > { %v1603_v42 = vld [vmem:[#allocation2 + $0x6e2] ss:$4 sm:$0xff]  ;;  %v1838_v62 = vld [vmem:[#allocation2 + $0x483] ss:$4 sm:$0xff]  ;;  %16808 = vst.msk [vmem:[#allocation3 + $0x10] sm:$0x3] %vm16807_vm4, %v26734_v1 }
  0xfe   : > { %24022 = vmatmul.mubr.msk.f32.gmra.mrb[6].mxu0 %vm535_vm1, %v8205_v63  ;;  %23306 = vmatmul.mubr.msk.f32.gmra.mrb[14].mxu1 %vm535_vm1, %v1148_v2  ;;  %v1605_v43 = vld [vmem:[#allocation2 + $0x7e2] ss:$4 sm:$0xff]  ;;  %v8683_v63 = vld [vmem:[#allocation2 + $0xff] ss:$4 sm:$0xff]  ;;  %16812 = vst.msk [vmem:[#allocation3 + $0x30] sm:$0xff] %vm16804_vm3, %v26734_v1  ;;  %16813 = vst.msk [vmem:[#allocation3 + $0x38] sm:$0xff] %vm16804_vm3, %v26734_v1 }
  0xff   : > { %24024 = vmatprep.mubr.msk.f32.mxu0 %vm535_vm1, %v8207_v0  ;;  %23310 = vmatprep.mubr.msk.f32.mxu1 %vm535_vm1, %v1577_v3  ;;  %v8450_v44 = vld [vmem:[#allocation2 + $0x45e] ss:$4 sm:$0xff]  ;;  %v8685_v0 = vld [vmem:[#allocation2 + $0x1ff] ss:$4 sm:$0xff]  ;;  %16814 = vst.msk [vmem:[#allocation3 + $0x40] sm:$0x3] %vm16807_vm4, %v26734_v1 }
 0x100   : > { %v8452_v45 = vld [vmem:[#allocation2 + $0x55e] ss:$4 sm:$0xff]  ;;  %v1840_v2 = vld [vmem:[#allocation2 + $0x4a3] ss:$4 sm:$0xff]  ;;  %16815 = vst.msk [vmem:[#allocation3 + $0x48] sm:$0xff] %vm16804_vm3, %v26734_v1  ;;  %16816 = vst.msk [vmem:[#allocation3 + $0x50] sm:$0xff] %vm16804_vm3, %v26734_v1 }
 0x101   : > { %v1607_v11 = vld [vmem:[#allocation2 + $0x802] ss:$4 sm:$0xff]  ;;  %v8705_v29 = vld [vmem:[#allocation2 + $0x79f] ss:$4 sm:$0xff]  ;;  %16817 = vst.msk [vmem:[#allocation3 + $0x58] sm:$0x3] %vm16807_vm4, %v26734_v1 }
 0x102   : > { %24025 = vmatmul.mubr.msk.f32.gmra.mrb[8].mxu0 %vm535_vm1, %v8209_v4  ;;  %23311 = vmatmul.mubr.msk.f32.vlgmr.msra.gmra.mrb[0].mxu1 %vm535_vm1, %v1579_v6  ;;  %v8454_v47 = vld [vmem:[#allocation2 + $0x57e] ss:$4 sm:$0xff]  ;;  %v1842_v4 = vld [vmem:[#allocation2 + $0x5a3] ss:$4 sm:$0xff]  ;;  %16818 = vst.msk [vmem:[#allocation3 + $0x60] sm:$0xff] %vm16804_vm3, %v26734_v1  ;;  %16819 = vst.msk [vmem:[#allocation3 + $0x68] sm:$0xff] %vm16804_vm3, %v26734_v1 }
 0x103   : > { %24027 = vmatprep.mubr.msk.f32.mxu0 %vm535_vm1, %v8211_v5  ;;  %23313 = vmatprep.mubr.msk.f32.mxu1 %vm535_vm1, %v1581_v7  ;;  %v8456_v48 = vld [vmem:[#allocation2 + $0x67e] ss:$4 sm:$0xff]  ;;  %v8687_v5 = vld [vmem:[#allocation2 + $0x21f] ss:$4 sm:$0xff]  ;;  %16820 = vst.msk [vmem:[#allocation3 + $0x70] sm:$0x3] %vm16807_vm4, %v26734_v1 }
 0x104   : > { %23335 = vmatpush3.msk.msra.mxu1 %vm1231_vm0, %v27765_v35  ;;  %v8444_v35 = vld [vmem:[#allocation2 + $0x31e] ss:$4 sm:$0xff]  ;;  %v8689_v6 = vld [vmem:[#allocation2 + $0x31f] ss:$4 sm:$0xff]  ;;  %16821 = vst.msk [vmem:[#allocation3 + $0x78] sm:$0xff] %vm16804_vm3, %v26734_v1  ;;  %16822 = vst.msk [vmem:[#allocation3 + $0x80] sm:$0xff] %vm16804_vm3, %v26734_v1 }
 0x105   : > { %23360 = vmatprep.subr.msk.mxu1 %vm1231_vm0, %v27825_v10  ;;  %v8458_v51 = vld [vmem:[#allocation2 + $0x69e] ss:$4 sm:$0xff]  ;;  %v1844_v7 = vld [vmem:[#allocation2 + $0x5c3] ss:$4 sm:$0xff]  ;;  %16823 = vst.msk [vmem:[#allocation3 + $0x88] sm:$0x3] %vm16807_vm4, %v26734_v1 }
 0x106   : > { %24028 = vmatmul.mubr.msk.f32.gmra.mrb[10].mxu0 %vm535_vm1, %v8213_v8  ;;  %23314 = vmatmul.mubr.msk.f32.gmra.mrb[2].mxu1 %vm535_vm1, %v1583_v13  ;;  %v27891_v52 = vld [vmem:[%s30269_s1 + $0x1e] sm:$0x3f]  ;;  %v27914_v3 = vld [vmem:[%s30269_s1 + $0xc6] sm:$0x3f]  ;;  %v337_v37 = vld [vmem:[%s27472_s15 + $0x1d0] sm:$0xff]  ;;  %16824 = vst.msk [vmem:[#allocation3 + $0x90] sm:$0xff] %vm16804_vm3, %v26734_v1 }
 0x107   : > { %24030 = vmatprep.mubr.msk.f32.mxu0 %vm535_vm1, %v8215_v12  ;;  %23316 = vmatprep.mubr.msk.f32.mxu1 %vm535_vm1, %v1585_v14  ;;  %v8460_v53 = vld [vmem:[#allocation2 + $0x79e] ss:$4 sm:$0xff]  ;;  %v1846_v8 = vld [vmem:[#allocation2 + $0x6c3] ss:$4 sm:$0xff]  ;;  %920 = vst.msk [vmem:[#allocation2 + $0x29a] sm:$0xff] %vm535_vm1, %v337_v37 }
 0x108   : > { %v8462_v56 = vld [vmem:[#allocation2 + $0x7be] ss:$4 sm:$0xff]  ;;  %v8693_v12 = vld [vmem:[#allocation2 + $0x43f] ss:$4 sm:$0xff]  ;;  %v8940_v37 = vld [vmem:[#allocation2 + $0x4a0] ss:$4 sm:$0xff] }
 0x109   : > { %v8464_v57 = vld [vmem:[#allocation2 + $0x8be] ss:$4 sm:$0xff]  ;;  %v1848_v13 = vld [vmem:[#allocation2 + $0x6e3] ss:$4 sm:$0xff]  ;;  %16825 = vst.msk [vmem:[#allocation3 + $0x98] sm:$0xff] %vm16804_vm3, %v26734_v1  ;;  %16827 = vst.msk [vmem:[#allocation3 + $0xa8] sm:$0xff] %vm16804_vm3, %v26734_v1 }
 0x10a   : > { %24031 = vmatmul.mubr.msk.f32.gmra.mrb[12].mxu0 %vm535_vm1, %v8217_v15  ;;  %23317 = vmatmul.mubr.msk.f32.gmra.mrb[4].mxu1 %vm535_vm1, %v1587_v17  ;;  %v8466_v60 = vld [vmem:[#allocation2 + $0x8de] ss:$4 sm:$0xff]  ;;  %v1850_v14 = vld [vmem:[#allocation2 + $0x7e3] ss:$4 sm:$0xff]  ;;  %16826 = vst.msk [vmem:[#allocation3 + $0xa0] sm:$0x3] %vm16807_vm4, %v26734_v1 }
 0x10b   : > { %24033 = vmatprep.mubr.msk.f32.mxu0 %vm535_vm1, %v8219_v16  ;;  %23319 = vmatprep.mubr.msk.f32.mxu1 %vm535_vm1, %v1589_v18  ;;  %v8695_v15 = vld [vmem:[#allocation2 + $0x45f] ss:$4 sm:$0xff]  ;;  %v2067_v18 = vld [vmem:[#allocation2 + $0x4] ss:$4 sm:$0xff]  ;;  %16828 = vst.msk [vmem:[#allocation3 + $0xb0] sm:$0xff] %vm16804_vm3, %v26734_v1  ;;  %16830 = vst.msk [vmem:[#allocation3 + $0xc0] sm:$0xff] %vm16804_vm3, %v26734_v1 }
 0x10c   : > { %v8697_v16 = vld [vmem:[#allocation2 + $0x55f] ss:$4 sm:$0xff]  ;;  %16829 = vst.msk [vmem:[#allocation3 + $0xb8] sm:$0x3] %vm16807_vm4, %v26734_v1  ;;  %16832 = vst.msk [vmem:[#allocation3 + $0xd0] sm:$0x3] %vm16807_vm4, %v26734_v1 }
 0x10d   : > { %v1852_v17 = vld [vmem:[#allocation2 + $0x803] ss:$4 sm:$0xff]  ;;  %16831 = vst.msk [vmem:[#allocation3 + $0xc8] sm:$0xff] %vm16804_vm3, %v26734_v1  ;;  %16833 = vst.msk [vmem:[#allocation3 + $0xd8] sm:$0xff] %vm16804_vm3, %v26734_v1 }
 0x10e   : > { %24034 = vmatmul.mubr.msk.f32.gmra.mrb[14].mxu0 %vm535_vm1, %v8221_v19  ;;  %23320 = vmatmul.mubr.msk.f32.gmra.mrb[6].mxu1 %vm535_vm1, %v1591_v21  ;;  %v8699_v19 = vld [vmem:[#allocation2 + $0x57f] ss:$4 sm:$0xff]  ;;  %v2069_v21 = vld [vmem:[#allocation2 + $0x24] ss:$4 sm:$0xff]  ;;  %16834 = vst.msk [vmem:[#allocation3 + $0xe0] sm:$0xff] %vm16804_vm3, %v26734_v1 }
 0x10f   : > { %24038 = vmatprep.mubr.msk.f32.mxu0 %vm535_vm1, %v8436_v20  ;;  %23322 = vmatprep.mubr.msk.f32.mxu1 %vm535_vm1, %v1593_v22  ;;  %v8701_v20 = vld [vmem:[#allocation2 + $0x67f] ss:$4 sm:$0xff]  ;;  %16835 = vst.msk [vmem:[#allocation3 + $0xe8] sm:$0x3] %vm16807_vm4, %v26734_v1 }
 0x110   : > { %v303_v22 = vld [vmem:[%s27472_s15 + $0xc0] sm:$0xff]  ;;  %v308_v31 = vld [vmem:[%s27472_s15 + $0xe8] sm:$0xff]  ;;  %v310_v34 = vld [vmem:[%s27472_s15 + $0xf8] sm:$0xff]  ;;  %18669 = vst.msk [vmem:[#allocation4 + $0x8] sm:$0x3] %vm18668_vm6, %v26734_v1 }
 0x111   : > { %886 = vst.msk [vmem:[#allocation2 + $0x16a] sm:$0xff] %vm535_vm1, %v303_v22  ;;  %891 = vst.msk [vmem:[#allocation2 + $0x192] sm:$0xff] %vm535_vm1, %v308_v31  ;;  %v336_v36 = vld [vmem:[%s27472_s15 + $0x1c8] sm:$0xff] }
 0x112   : > { %24039 = vmatmul.mubr.msk.f32.vlgmr.msra.gmra.mrb[0].mxu0 %vm535_vm1, %v8438_v23  ;;  %23323 = vmatmul.mubr.msk.f32.gmra.mrb[8].mxu1 %vm535_vm1, %v1595_v26  ;;  %v304_v23 = vld [vmem:[%s27472_s15 + $0xc8] sm:$0xff]  ;;  %v307_v26 = vld [vmem:[%s27472_s15 + $0xe0] sm:$0xff]  ;;  %893 = vst.msk [vmem:[#allocation2 + $0x1a2] sm:$0xff] %vm535_vm1, %v310_v34  ;;  %919 = vst.msk [vmem:[#allocation2 + $0x292] sm:$0xff] %vm535_vm1, %v336_v36 }
 0x113   : > { %24063 = vmatpush3.msk.msra.mxu0 %vm1231_vm0, %v27798_v54  ;;  %24041 = vmatprep.mubr.msk.f32.mxu0 %vm535_vm1, %v8440_v24  ;;  %v1828_v54 = vld [vmem:[#allocation2 + $0x143] ss:$4 sm:$0xff]  ;;  %887 = vst.msk [vmem:[#allocation2 + $0x172] sm:$0xff] %vm535_vm1, %v304_v23  ;;  %890 = vst.msk [vmem:[#allocation2 + $0x18a] sm:$0xff] %vm535_vm1, %v307_v26  ;;  %v8938_v31 = vld [vmem:[#allocation2 + $0x480] ss:$4 sm:$0xff] }
 0x114   : > { %24088 = vmatprep.subr.msk.mxu0 %vm1231_vm0, %v27847_v25  ;;  %23325 = vmatprep.mubr.msk.f32.mxu1 %vm535_vm1, %v1597_v27  ;;  %v305_v24 = vld [vmem:[%s27472_s15 + $0xd0] sm:$0xff]  ;;  %v464_v22 = vld [vmem:[%s27472_s15 + $0x5c8] sm:$0xff]  ;;  %v466_v26 = vld [vmem:[%s27472_s15 + $0x5d8] sm:$0xff]  ;;  %18672 = vst.msk [vmem:[#allocation4 + $0x20] sm:$0xff] %vm18666_vm5, %v26734_v1 }
 0x115   : > { %v8703_v27 = vld [vmem:[#allocation2 + $0x69f] ss:$4 sm:$0xff]  ;;  %888 = vst.msk [vmem:[#allocation2 + $0x17a] sm:$0xff] %vm535_vm1, %v305_v24  ;;  %v8936_v24 = vld [vmem:[#allocation2 + $0x380] ss:$4 sm:$0xff]  ;;  %1047 = vst.msk [vmem:[#allocation2 + $0x712] sm:$0xff] %vm535_vm1, %v464_v22 }
 0x116   : > { %24042 = vmatmul.mubr.msk.f32.gmra.mrb[2].mxu0 %vm535_vm1, %v8442_v32  ;;  %23326 = vmatmul.mubr.msk.f32.gmra.mrb[10].mxu1 %vm535_vm1, %v1599_v38  ;;  %v309_v32 = vld [vmem:[%s27472_s15 + $0xf0] sm:$0xff]  ;;  %v338_v38 = vld [vmem:[%s27472_s15 + $0x1d8] sm:$0xff]  ;;  %1049 = vst.msk [vmem:[#allocation2 + $0x722] sm:$0xff] %vm535_vm1, %v466_v26  ;;  %v495_v34 = vld [vmem:[%s27472_s15 + $0x6c0] sm:$0xff] }
 0x117   : > { %24044 = vmatprep.mubr.msk.f32.mxu0 %vm535_vm1, %v8444_v35  ;;  %23328 = vmatprep.mubr.msk.f32.mxu1 %vm535_vm1, %v1601_v39  ;;  %892 = vst.msk [vmem:[#allocation2 + $0x19a] sm:$0xff] %vm535_vm1, %v309_v32  ;;  %v335_v35 = vld [vmem:[%s27472_s15 + $0x1c0] sm:$0xff]  ;;  %921 = vst.msk [vmem:[#allocation2 + $0x2a2] sm:$0xff] %vm535_vm1, %v338_v38  ;;  %v465_v23 = vld [vmem:[%s27472_s15 + $0x5d0] sm:$0xff] }
 0x118   : > { %918 = vst.msk [vmem:[#allocation2 + $0x28a] sm:$0xff] %vm535_vm1, %v335_v35  ;;  %v2075_v39 = vld [vmem:[#allocation2 + $0x244] ss:$4 sm:$0xff]  ;;  %1048 = vst.msk [vmem:[#allocation2 + $0x71a] sm:$0xff] %vm535_vm1, %v465_v23  ;;  %v9195_v23 = vld [vmem:[#allocation2 + $0x7e1] ss:$4 sm:$0xff] }
 0x119   : > { %v2093_v32 = vld [vmem:[#allocation2 + $0x6e4] ss:$4 sm:$0xff]  ;;  %1078 = vst.msk [vmem:[#allocation2 + $0x82a] sm:$0xff] %vm535_vm1, %v495_v34  ;;  %v9197_v26 = vld [vmem:[#allocation2 + $0x801] ss:$4 sm:$0xff] }
 0x11a   : > { %24045 = vmatmul.mubr.msk.f32.gmra.mrb[4].mxu0 %vm535_vm1, %v8446_v40  ;;  %23329 = vmatmul.mubr.msk.f32.gmra.mrb[12].mxu1 %vm535_vm1, %v1603_v42  ;;  %v339_v40 = vld [vmem:[%s27472_s15 + $0x1e0] sm:$0xff]  ;;  %v496_v35 = vld [vmem:[%s27472_s15 + $0x6c8] sm:$0xff]  ;;  %v497_v36 = vld [vmem:[%s27472_s15 + $0x6d0] sm:$0xff]  ;;  %18673 = vst.msk [vmem:[#allocation4 + $0x28] sm:$0x3] %vm18668_vm6, %v26734_v1 }
 0x11b   : > { %24047 = vmatprep.mubr.msk.f32.mxu0 %vm535_vm1, %v8448_v41  ;;  %23331 = vmatprep.mubr.msk.f32.mxu1 %vm535_vm1, %v1605_v43  ;;  %v340_v41 = vld [vmem:[%s27472_s15 + $0x1e8] sm:$0xff]  ;;  %v341_v43 = vld [vmem:[%s27472_s15 + $0x1f0] sm:$0xff]  ;;  %922 = vst.msk [vmem:[#allocation2 + $0x2aa] sm:$0xff] %vm535_vm1, %v339_v40  ;;  %1079 = vst.msk [vmem:[#allocation2 + $0x832] sm:$0xff] %vm535_vm1, %v496_v35 }
 0x11c   : > { %v8707_v42 = vld [vmem:[#allocation2 + $0x7bf] ss:$4 sm:$0xff]  ;;  %923 = vst.msk [vmem:[#allocation2 + $0x2b2] sm:$0xff] %vm535_vm1, %v340_v41  ;;  %924 = vst.msk [vmem:[#allocation2 + $0x2ba] sm:$0xff] %vm535_vm1, %v341_v43  ;;  %v2095_v38 = vld [vmem:[#allocation2 + $0x7e4] ss:$4 sm:$0xff] }
 0x11d   : > { %1080 = vst.msk [vmem:[#allocation2 + $0x83a] sm:$0xff] %vm535_vm1, %v497_v36  ;;  %v499_v40 = vld [vmem:[%s27472_s15 + $0x6e0] sm:$0xff]  ;;  %v500_v41 = vld [vmem:[%s27472_s15 + $0x6e8] sm:$0xff]  ;;  %v28153_v22 = vld [vmem:[%s30269_s1 + $0x30] sm:$0x3f] }
 0x11e   : > { %24048 = vmatmul.mubr.msk.f32.gmra.mrb[6].mxu0 %vm535_vm1, %v8450_v44  ;;  %23332 = vmatmul.mubr.msk.f32.gmra.mrb[14].mxu1 %vm535_vm1, %v1607_v11  ;;  %v342_v44 = vld [vmem:[%s27472_s15 + $0x1f8] sm:$0xff]  ;;  %v367_v11 = vld [vmem:[%s27472_s15 + $0x2c0] sm:$0xff]  ;;  %1082 = vst.msk [vmem:[#allocation2 + $0x84a] sm:$0xff] %vm535_vm1, %v499_v40  ;;  %1083 = vst.msk [vmem:[#allocation2 + $0x852] sm:$0xff] %vm535_vm1, %v500_v41 }
 0x11f   : > { %24050 = vmatprep.mubr.msk.f32.mxu0 %vm535_vm1, %v8452_v45  ;;  %23336 = vmatprep.mubr.msk.f32.mxu1 %vm535_vm1, %v1822_v46  ;;  %v8709_v45 = vld [vmem:[#allocation2 + $0x8bf] ss:$4 sm:$0xff]  ;;  %925 = vst.msk [vmem:[#allocation2 + $0x2c2] sm:$0xff] %vm535_vm1, %v342_v44  ;;  %950 = vst.msk [vmem:[#allocation2 + $0x3aa] sm:$0xff] %vm535_vm1, %v367_v11  ;;  %v8942_v43 = vld [vmem:[#allocation2 + $0x5a0] ss:$4 sm:$0xff] }
 0x120   : > { %v368_v46 = vld [vmem:[%s27472_s15 + $0x2c8] sm:$0xff]  ;;  %v502_v44 = vld [vmem:[%s27472_s15 + $0x6f8] sm:$0xff]  ;;  %18679 = vst.msk [vmem:[#allocation4 + $0x58] sm:$0x3] %vm18668_vm6, %v26734_v1  ;;  %18671 = vst.msk [vmem:[#allocation4 + $0x18] sm:$0x3] %vm18668_vm6, %v26734_v1 }
 0x121   : > { %951 = vst.msk [vmem:[#allocation2 + $0x3b2] sm:$0xff] %vm535_vm1, %v368_v46  ;;  %1085 = vst.msk [vmem:[#allocation2 + $0x862] sm:$0xff] %vm535_vm1, %v502_v44  ;;  %v2312_v11 = vld [vmem:[#allocation2 + $0x5] ss:$4 sm:$0xff]  ;;  %v8944_v46 = vld [vmem:[#allocation2 + $0x5c0] ss:$4 sm:$0xff] }
 0x122   : > { %24051 = vmatmul.mubr.msk.f32.gmra.mrb[8].mxu0 %vm535_vm1, %v8454_v47  ;;  %23337 = vmatmul.mubr.msk.f32.vlgmr.msra.gmra.mrb[0].mxu1 %vm535_vm1, %v1824_v49  ;;  %v2077_v47 = vld [vmem:[#allocation2 + $0x264] ss:$4 sm:$0xff]  ;;  %v2573_v34 = vld [vmem:[#allocation2 + $0x486] ss:$4 sm:$0xff]  ;;  %18667 = vst.msk [vmem:[#allocation4] sm:$0xff] %vm18666_vm5, %v26734_v1  ;;  %18670 = vst.msk [vmem:[#allocation4 + $0x10] sm:$0xff] %vm18666_vm5, %v26734_v1 }
 0x123   : > { %24053 = vmatprep.mubr.msk.f32.mxu0 %vm535_vm1, %v8456_v48  ;;  %23339 = vmatprep.mubr.msk.f32.mxu1 %vm535_vm1, %v1826_v50  ;;  %v369_v48 = vld [vmem:[%s27472_s15 + $0x2d0] sm:$0xff]  ;;  %v370_v49 = vld [vmem:[%s27472_s15 + $0x2d8] sm:$0xff]  ;;  %18674 = vst.msk [vmem:[#allocation4 + $0x30] sm:$0xff] %vm18666_vm5, %v26734_v1  ;;  %18676 = vst.msk [vmem:[#allocation4 + $0x40] sm:$0xff] %vm18666_vm5, %v26734_v1 }
 0x124   : > { %23361 = vmatpush3.msk.msra.mxu1 %vm1231_vm0, %v27825_v10  ;;  %v8691_v10 = vld [vmem:[#allocation2 + $0x33f] ss:$4 sm:$0xff]  ;;  %v2079_v50 = vld [vmem:[#allocation2 + $0x364] ss:$4 sm:$0xff]  ;;  %952 = vst.msk [vmem:[#allocation2 + $0x3ba] sm:$0xff] %vm535_vm1, %v369_v48  ;;  %953 = vst.msk [vmem:[#allocation2 + $0x3c2] sm:$0xff] %vm535_vm1, %v370_v49 }
 0x125   : > { %23386 = vmatprep.subr.msk.mxu1 %vm1231_vm0, %v27891_v52  ;;  %v2314_v48 = vld [vmem:[#allocation2 + $0x25] ss:$4 sm:$0xff]  ;;  %v9418_v35 = vld [vmem:[#allocation2 + $0x142] ss:$4 sm:$0xff]  ;;  %18675 = vst.msk [vmem:[#allocation4 + $0x38] sm:$0x3] %vm18668_vm6, %v26734_v1 }
 0x126   : > { %24054 = vmatmul.mubr.msk.f32.gmra.mrb[10].mxu0 %vm535_vm1, %v8458_v51  ;;  %23340 = vmatmul.mubr.msk.f32.gmra.mrb[2].mxu1 %vm535_vm1, %v1828_v54  ;;  %v371_v51 = vld [vmem:[%s27472_s15 + $0x2e0] sm:$0xff]  ;;  %v373_v54 = vld [vmem:[%s27472_s15 + $0x2f0] sm:$0xff]  ;;  %18677 = vst.msk [vmem:[#allocation4 + $0x48] sm:$0x3] %vm18668_vm6, %v26734_v1 }
 0x127   : > { %24056 = vmatprep.mubr.msk.f32.mxu0 %vm535_vm1, %v8460_v53  ;;  %23342 = vmatprep.mubr.msk.f32.mxu1 %vm535_vm1, %v1830_v55  ;;  %v8711_v53 = vld [vmem:[#allocation2 + $0x8df] ss:$4 sm:$0xff]  ;;  %954 = vst.msk [vmem:[#allocation2 + $0x3ca] sm:$0xff] %vm535_vm1, %v371_v51  ;;  %956 = vst.msk [vmem:[#allocation2 + $0x3da] sm:$0xff] %vm535_vm1, %v373_v54  ;;  %v2316_v49 = vld [vmem:[#allocation2 + $0x125] ss:$4 sm:$0xff] }
 0x128   : > { %v374_v55 = vld [vmem:[%s27472_s15 + $0x2f8] sm:$0xff]  ;;  %v28103_v51 = vld [vmem:[%s30269_s1 + $0x2a] sm:$0x3f]  ;;  %18678 = vst.msk [vmem:[#allocation4 + $0x50] sm:$0xff] %vm18666_vm5, %v26734_v1 }
 0x129   : > { %957 = vst.msk [vmem:[#allocation2 + $0x3e2] sm:$0xff] %vm535_vm1, %v374_v55  ;;  %v2320_v54 = vld [vmem:[#allocation2 + $0x245] ss:$4 sm:$0xff]  ;;  %v8952_v55 = vld [vmem:[#allocation2 + $0x800] ss:$4 sm:$0xff] }
 0x12a   : > { %24057 = vmatmul.mubr.msk.f32.gmra.mrb[12].mxu0 %vm535_vm1, %v8462_v56  ;;  %23343 = vmatmul.mubr.msk.f32.gmra.mrb[4].mxu1 %vm535_vm1, %v1832_v58  ;;  %v8926_v56 = vld [vmem:[#allocation2 + $0x120] ss:$4 sm:$0xff]  ;;  %v9420_v36 = vld [vmem:[#allocation2 + $0x242] ss:$4 sm:$0xff] }
 0x12b   : > { %24059 = vmatprep.mubr.msk.f32.mxu0 %vm535_vm1, %v8464_v57  ;;  %23345 = vmatprep.mubr.msk.f32.mxu1 %vm535_vm1, %v1834_v59  ;;  %v2081_v57 = vld [vmem:[#allocation2 + $0x384] ss:$4 sm:$0xff]  ;;  %v9422_v40 = vld [vmem:[#allocation2 + $0x262] ss:$4 sm:$0xff] }
 0x12c   : > { %v399_v58 = vld [vmem:[%s27472_s15 + $0x3c0] sm:$0xff]  ;;  %v18708_v1 = vld [vmem:[%s30273_s5 + $0x78] sm:$0xff] }
 0x12d   : > { %v8928_v59 = vld [vmem:[#allocation2 + $0x140] ss:$4 sm:$0xff]  ;;  %982 = vst.msk [vmem:[#allocation2 + $0x4ca] sm:$0xff] %vm535_vm1, %v399_v58  ;;  %v2324_v58 = vld [vmem:[#allocation2 + $0x365] ss:$4 sm:$0xff] }
 0x12e   : > { %24060 = vmatmul.mubr.msk.f32.gmra.mrb[14].mxu0 %vm535_vm1, %v8466_v60  ;;  %23346 = vmatmul.mubr.msk.f32.gmra.mrb[6].mxu1 %vm535_vm1, %v1836_v61  ;;  %v400_v60 = vld [vmem:[%s27472_s15 + $0x3c8] sm:$0xff] }
 0x12f   : > { %24064 = vmatprep.mubr.msk.f32.mxu0 %vm535_vm1, %v8681_v9  ;;  %23348 = vmatprep.mubr.msk.f32.mxu1 %vm535_vm1, %v1838_v62  ;;  %v401_v9 = vld [vmem:[%s27472_s15 + $0x3d0] sm:$0xff]  ;;  %v402_v62 = vld [vmem:[%s27472_s15 + $0x3d8] sm:$0xff]  ;;  %983 = vst.msk [vmem:[#allocation2 + $0x4d2] sm:$0xff] %vm535_vm1, %v400_v60 }
 0x130   : > { %v2083_v61 = vld [vmem:[#allocation2 + $0x484] ss:$4 sm:$0xff]  ;;  %984 = vst.msk [vmem:[#allocation2 + $0x4da] sm:$0xff] %vm535_vm1, %v401_v9  ;;  %985 = vst.msk [vmem:[#allocation2 + $0x4e2] sm:$0xff] %vm535_vm1, %v402_v62  ;;  %v2326_v60 = vld [vmem:[#allocation2 + $0x385] ss:$4 sm:$0xff] }
 0x131   : > { %v2328_v9 = vld [vmem:[#allocation2 + $0x485] ss:$4 sm:$0xff]  ;;  %v9424_v41 = vld [vmem:[#allocation2 + $0x362] ss:$4 sm:$0xff] }
 0x132   : > { %24065 = vmatmul.mubr.msk.f32.vlgmr.msra.gmra.mrb[0].mxu0 %vm535_vm1, %v8683_v63  ;;  %23349 = vmatmul.mubr.msk.f32.gmra.mrb[8].mxu1 %vm535_vm1, %v1840_v2  ;;  %v403_v63 = vld [vmem:[%s27472_s15 + $0x3e0] sm:$0xff] }
 0x133   : > { %24089 = vmatpush3.msk.msra.mxu0 %vm1231_vm0, %v27847_v25  ;;  %24067 = vmatprep.mubr.msk.f32.mxu0 %vm535_vm1, %v8685_v0  ;;  %v306_v25 = vld [vmem:[%s27472_s15 + $0xd8] sm:$0xff]  ;;  %986 = vst.msk [vmem:[#allocation2 + $0x4ea] sm:$0xff] %vm535_vm1, %v403_v63 }
 0x134   : > { %24114 = vmatprep.subr.msk.mxu0 %vm1231_vm0, %v27914_v3  ;;  %23351 = vmatprep.mubr.msk.f32.mxu1 %vm535_vm1, %v1842_v4  ;;  %889 = vst.msk [vmem:[#allocation2 + $0x182] sm:$0xff] %vm535_vm1, %v306_v25  ;;  %v8930_v0 = vld [vmem:[#allocation2 + $0x240] ss:$4 sm:$0xff]  ;;  %v9175_v62 = vld [vmem:[#allocation2 + $0x241] ss:$4 sm:$0xff] }
 0x135   : > { %v2085_v2 = vld [vmem:[#allocation2 + $0x4a4] ss:$4 sm:$0xff]  ;;  %v2330_v63 = vld [vmem:[#allocation2 + $0x4a5] ss:$4 sm:$0xff]  ;;  %v9426_v44 = vld [vmem:[#allocation2 + $0x382] ss:$4 sm:$0xff] }
 0x136   : > { %24068 = vmatmul.mubr.msk.f32.gmra.mrb[2].mxu0 %vm535_vm1, %v8687_v5  ;;  %23352 = vmatmul.mubr.msk.f32.gmra.mrb[10].mxu1 %vm535_vm1, %v1844_v7  ;;  %v404_v4 = vld [vmem:[%s27472_s15 + $0x3e8] sm:$0xff]  ;;  %v406_v7 = vld [vmem:[%s27472_s15 + $0x3f8] sm:$0xff] }
 0x137   : > { %24070 = vmatprep.mubr.msk.f32.mxu0 %vm535_vm1, %v8689_v6  ;;  %23354 = vmatprep.mubr.msk.f32.mxu1 %vm535_vm1, %v1846_v8  ;;  %v2087_v5 = vld [vmem:[#allocation2 + $0x5a4] ss:$4 sm:$0xff]  ;;  %987 = vst.msk [vmem:[#allocation2 + $0x4f2] sm:$0xff] %vm535_vm1, %v404_v4  ;;  %989 = vst.msk [vmem:[#allocation2 + $0x502] sm:$0xff] %vm535_vm1, %v406_v7  ;;  %v9177_v4 = vld [vmem:[#allocation2 + $0x261] ss:$4 sm:$0xff] }
 0x138   : > { %v405_v6 = vld [vmem:[%s27472_s15 + $0x3f0] sm:$0xff] }
 0x139   : > { %v28026_v8 = vld [vmem:[%s30269_s1 + $0xcc] sm:$0x3f]  ;;  %988 = vst.msk [vmem:[#allocation2 + $0x4fa] sm:$0xff] %vm535_vm1, %v405_v6 }
 0x13a   : > { %24071 = vmatmul.mubr.msk.f32.gmra.mrb[4].mxu0 %vm535_vm1, %v8691_v10  ;;  %23355 = vmatmul.mubr.msk.f32.gmra.mrb[12].mxu1 %vm535_vm1, %v1848_v13  ;;  %v431_v10 = vld [vmem:[%s27472_s15 + $0x4c0] sm:$0xff]  ;;  %v433_v13 = vld [vmem:[%s27472_s15 + $0x4d0] sm:$0xff] }
 0x13b   : > { %24073 = vmatprep.mubr.msk.f32.mxu0 %vm535_vm1, %v8693_v12  ;;  %23357 = vmatprep.mubr.msk.f32.mxu1 %vm535_vm1, %v1850_v14  ;;  %v432_v12 = vld [vmem:[%s27472_s15 + $0x4c8] sm:$0xff]  ;;  %v434_v14 = vld [vmem:[%s27472_s15 + $0x4d8] sm:$0xff]  ;;  %1014 = vst.msk [vmem:[#allocation2 + $0x5ea] sm:$0xff] %vm535_vm1, %v431_v10  ;;  %1016 = vst.msk [vmem:[#allocation2 + $0x5fa] sm:$0xff] %vm535_vm1, %v433_v13 }
 0x13c   : > { %1015 = vst.msk [vmem:[#allocation2 + $0x5f2] sm:$0xff] %vm535_vm1, %v432_v12  ;;  %1017 = vst.msk [vmem:[#allocation2 + $0x602] sm:$0xff] %vm535_vm1, %v434_v14  ;;  %v2091_v25 = vld [vmem:[#allocation2 + $0x6c4] ss:$4 sm:$0xff]  ;;  %v2334_v6 = vld [vmem:[#allocation2 + $0x5c5] ss:$4 sm:$0xff] }
 0x13d   : > { %v2336_v7 = vld [vmem:[#allocation2 + $0x6c5] ss:$4 sm:$0xff] }
 0x13e   : > { %24074 = vmatmul.mubr.msk.f32.gmra.mrb[6].mxu0 %vm535_vm1, %v8695_v15  ;;  %23358 = vmatmul.mubr.msk.f32.gmra.mrb[14].mxu1 %vm535_vm1, %v1852_v17  ;;  %v435_v15 = vld [vmem:[%s27472_s15 + $0x4e0] sm:$0xff] }
 0x13f   : > { %24076 = vmatprep.mubr.msk.f32.mxu0 %vm535_vm1, %v8697_v16  ;;  %23362 = vmatprep.mubr.msk.f32.mxu1 %vm535_vm1, %v2067_v18  ;;  %v8932_v16 = vld [vmem:[#allocation2 + $0x260] ss:$4 sm:$0xff]  ;;  %1018 = vst.msk [vmem:[#allocation2 + $0x60a] sm:$0xff] %vm535_vm1, %v435_v15  ;;  %v9181_v10 = vld [vmem:[#allocation2 + $0x381] ss:$4 sm:$0xff] }
 0x140   : > { %v8934_v17 = vld [vmem:[#allocation2 + $0x360] ss:$4 sm:$0xff]  ;;  %v2338_v12 = vld [vmem:[#allocation2 + $0x6e5] ss:$4 sm:$0xff] }
 0x141   : > { %v436_v18 = vld [vmem:[%s27472_s15 + $0x4e8] sm:$0xff] }
 0x142   : > { %24077 = vmatmul.mubr.msk.f32.gmra.mrb[8].mxu0 %vm535_vm1, %v8699_v19  ;;  %23363 = vmatmul.mubr.msk.f32.vlgmr.msra.gmra.mrb[0].mxu1 %vm535_vm1, %v2069_v21  ;;  %v2089_v19 = vld [vmem:[#allocation2 + $0x5c4] ss:$4 sm:$0xff]  ;;  %1019 = vst.msk [vmem:[#allocation2 + $0x612] sm:$0xff] %vm535_vm1, %v436_v18  ;;  %v2340_v13 = vld [vmem:[#allocation2 + $0x7e5] ss:$4 sm:$0xff] }
 0x143   : > { %24079 = vmatprep.mubr.msk.f32.mxu0 %vm535_vm1, %v8701_v20  ;;  %23365 = vmatprep.mubr.msk.f32.mxu1 %vm535_vm1, %v2071_v28  ;;  %v438_v20 = vld [vmem:[%s27472_s15 + $0x4f8] sm:$0xff]  ;;  %v463_v21 = vld [vmem:[%s27472_s15 + $0x5c0] sm:$0xff]  ;;  %v468_v28 = vld [vmem:[%s27472_s15 + $0x5e8] sm:$0xff] }
 0x144   : > { %23387 = vmatpush3.msk.msra.mxu1 %vm1231_vm0, %v27891_v52  ;;  %v372_v52 = vld [vmem:[%s27472_s15 + $0x2e8] sm:$0xff]  ;;  %1021 = vst.msk [vmem:[#allocation2 + $0x622] sm:$0xff] %vm535_vm1, %v438_v20  ;;  %1046 = vst.msk [vmem:[#allocation2 + $0x70a] sm:$0xff] %vm535_vm1, %v463_v21 }
 0x145   : > { %23412 = vmatprep.subr.msk.mxu1 %vm1231_vm0, %v27951_v30  ;;  %955 = vst.msk [vmem:[#allocation2 + $0x3d2] sm:$0xff] %vm535_vm1, %v372_v52  ;;  %1051 = vst.msk [vmem:[#allocation2 + $0x732] sm:$0xff] %vm535_vm1, %v468_v28  ;;  %v8950_v52 = vld [vmem:[#allocation2 + $0x7e0] ss:$4 sm:$0xff]  ;;  %v9185_v14 = vld [vmem:[#allocation2 + $0x4a1] ss:$4 sm:$0xff] }
 0x146   : > { %24080 = vmatmul.mubr.msk.f32.gmra.mrb[10].mxu0 %vm535_vm1, %v8703_v27  ;;  %23366 = vmatmul.mubr.msk.f32.gmra.mrb[2].mxu1 %vm535_vm1, %v2073_v33  ;;  %v467_v27 = vld [vmem:[%s27472_s15 + $0x5e0] sm:$0xff]  ;;  %v470_v33 = vld [vmem:[%s27472_s15 + $0x5f8] sm:$0xff] }
 0x147   : > { %24082 = vmatprep.mubr.msk.f32.mxu0 %vm535_vm1, %v8705_v29  ;;  %23368 = vmatprep.mubr.msk.f32.mxu1 %vm535_vm1, %v2075_v39  ;;  %v469_v29 = vld [vmem:[%s27472_s15 + $0x5f0] sm:$0xff]  ;;  %1050 = vst.msk [vmem:[#allocation2 + $0x72a] sm:$0xff] %vm535_vm1, %v467_v27  ;;  %1053 = vst.msk [vmem:[#allocation2 + $0x742] sm:$0xff] %vm535_vm1, %v470_v33  ;;  %v498_v39 = vld [vmem:[%s27472_s15 + $0x6d8] sm:$0xff] }
 0x148   : > { %1052 = vst.msk [vmem:[#allocation2 + $0x73a] sm:$0xff] %vm535_vm1, %v469_v29  ;;  %1081 = vst.msk [vmem:[#allocation2 + $0x842] sm:$0xff] %vm535_vm1, %v498_v39  ;;  %v9187_v15 = vld [vmem:[#allocation2 + $0x5a1] ss:$4 sm:$0xff]  ;;  %v2561_v20 = vld [vmem:[#allocation2 + $0x126] ss:$4 sm:$0xff] }
 0x149   : > { %v9189_v18 = vld [vmem:[#allocation2 + $0x5c1] ss:$4 sm:$0xff]  ;;  %v2567_v28 = vld [vmem:[#allocation2 + $0x266] ss:$4 sm:$0xff] }
 0x14a   : > { %24083 = vmatmul.mubr.msk.f32.gmra.mrb[12].mxu0 %vm535_vm1, %v8707_v42  ;;  %23369 = vmatmul.mubr.msk.f32.gmra.mrb[4].mxu1 %vm535_vm1, %v2077_v47  ;;  %v501_v42 = vld [vmem:[%s27472_s15 + $0x6f0] sm:$0xff] }
 0x14b   : > { %24085 = vmatprep.mubr.msk.f32.mxu0 %vm535_vm1, %v8709_v45  ;;  %23371 = vmatprep.mubr.msk.f32.mxu1 %vm535_vm1, %v2079_v50  ;;  %1084 = vst.msk [vmem:[#allocation2 + $0x85a] sm:$0xff] %vm535_vm1, %v501_v42  ;;  %v2097_v45 = vld [vmem:[#allocation2 + $0x804] ss:$4 sm:$0xff]  ;;  %v9193_v21 = vld [vmem:[#allocation2 + $0x6e1] ss:$4 sm:$0xff] }
 0x14c   : > { %v8946_v47 = vld [vmem:[#allocation2 + $0x6c0] ss:$4 sm:$0xff]  ;;  %v9199_v27 = vld [vmem:[#allocation2 + $0x901] ss:$4 sm:$0xff]  ;;  %v2569_v29 = vld [vmem:[#allocation2 + $0x366] ss:$4 sm:$0xff] }
 0x14d   : > { %v8948_v50 = vld [vmem:[#allocation2 + $0x6e0] ss:$4 sm:$0xff]  ;;  %v2571_v33 = vld [vmem:[#allocation2 + $0x386] ss:$4 sm:$0xff] }
 0x14e   : > { %24086 = vmatmul.mubr.msk.f32.gmra.mrb[14].mxu0 %vm535_vm1, %v8711_v53  ;;  %23372 = vmatmul.mubr.msk.f32.gmra.mrb[6].mxu1 %vm535_vm1, %v2081_v57  ;;  %v2318_v53 = vld [vmem:[#allocation2 + $0x145] ss:$4 sm:$0xff]  ;;  %v2577_v39 = vld [vmem:[#allocation2 + $0x5a6] ss:$4 sm:$0xff] }
 0x14f   : > { %24090 = vmatprep.mubr.msk.f32.mxu0 %vm535_vm1, %v8926_v56  ;;  %23374 = vmatprep.mubr.msk.f32.mxu1 %vm535_vm1, %v2083_v61  ;;  %v8954_v56 = vld [vmem:[#allocation2 + $0x900] ss:$4 sm:$0xff]  ;;  %v2322_v57 = vld [vmem:[#allocation2 + $0x265] ss:$4 sm:$0xff]  ;;  %v2579_v42 = vld [vmem:[#allocation2 + $0x5c6] ss:$4 sm:$0xff] }
 0x150   : > { %v9173_v61 = vld [vmem:[#allocation2 + $0x141] ss:$4 sm:$0xff] }
 0x152   : > { %24091 = vmatmul.mubr.msk.f32.vlgmr.msra.gmra.mrb[0].mxu0 %vm535_vm1, %v8928_v59  ;;  %23375 = vmatmul.mubr.msk.f32.gmra.mrb[8].mxu1 %vm535_vm1, %v2085_v2  ;;  %v9171_v59 = vld [vmem:[#allocation2 + $0x121] ss:$4 sm:$0xff] }
 0x153   : > { %24115 = vmatpush3.msk.msra.mxu0 %vm1231_vm0, %v27914_v3  ;;  %24093 = vmatprep.mubr.msk.f32.mxu0 %vm535_vm1, %v8930_v0  ;;  %v437_v3 = vld [vmem:[%s27472_s15 + $0x4f0] sm:$0xff] }
 0x154   : > { %24140 = vmatprep.subr.msk.mxu0 %vm1231_vm0, %v28026_v8  ;;  %23377 = vmatprep.mubr.msk.f32.mxu1 %vm535_vm1, %v2087_v5  ;;  %1020 = vst.msk [vmem:[#allocation2 + $0x61a] sm:$0xff] %vm535_vm1, %v437_v3  ;;  %v28126_v0 = vld [vmem:[%s30269_s1 + $0xd2] sm:$0x3f] }
 0x155   : > { %v2332_v2 = vld [vmem:[#allocation2 + $0x5a5] ss:$4 sm:$0xff]  ;;  %v2559_v3 = vld [vmem:[#allocation2 + $0x26] ss:$4 sm:$0xff] }
 0x156   : > { %24094 = vmatmul.mubr.msk.f32.gmra.mrb[2].mxu0 %vm535_vm1, %v8932_v16  ;;  %23378 = vmatmul.mubr.msk.f32.gmra.mrb[10].mxu1 %vm535_vm1, %v2089_v19  ;;  %v9179_v5 = vld [vmem:[#allocation2 + $0x361] ss:$4 sm:$0xff] }
 0x157   : > { %24096 = vmatprep.mubr.msk.f32.mxu0 %vm535_vm1, %v8934_v17  ;;  %23380 = vmatprep.mubr.msk.f32.mxu1 %vm535_vm1, %v2091_v25  ;;  %v2342_v16 = vld [vmem:[#allocation2 + $0x805] ss:$4 sm:$0xff]  ;;  %v2557_v17 = vld [vmem:[#allocation2 + $0x6] ss:$4 sm:$0xff] }
 0x158   : > { %v9191_v19 = vld [vmem:[#allocation2 + $0x6c1] ss:$4 sm:$0xff]  ;;  %v2565_v25 = vld [vmem:[#allocation2 + $0x246] ss:$4 sm:$0xff] }
 0x15a   : > { %24097 = vmatmul.mubr.msk.f32.gmra.mrb[4].mxu0 %vm535_vm1, %v8936_v24  ;;  %23381 = vmatmul.mubr.msk.f32.gmra.mrb[12].mxu1 %vm535_vm1, %v2093_v32  ;;  %v2563_v24 = vld [vmem:[#allocation2 + $0x146] ss:$4 sm:$0xff] }
 0x15b   : > { %24099 = vmatprep.mubr.msk.f32.mxu0 %vm535_vm1, %v8938_v31  ;;  %23383 = vmatprep.mubr.msk.f32.mxu1 %vm535_vm1, %v2095_v38  ;;  %v9201_v31 = vld [vmem:[#allocation2 + $0x921] ss:$4 sm:$0xff]  ;;  %v9416_v32 = vld [vmem:[#allocation2 + $0x122] ss:$4 sm:$0xff] }
 0x15c   : > { %v28176_v38 = vld [vmem:[%s30269_s1 + $0xd8] sm:$0x3f] }
 0x15e   : > { %24100 = vmatmul.mubr.msk.f32.gmra.mrb[6].mxu0 %vm535_vm1, %v8940_v37  ;;  %23384 = vmatmul.mubr.msk.f32.gmra.mrb[14].mxu1 %vm535_vm1, %v2097_v45  ;;  %v2575_v37 = vld [vmem:[#allocation2 + $0x4a6] ss:$4 sm:$0xff] }
 0x15f   : > { %24102 = vmatprep.mubr.msk.f32.mxu0 %vm535_vm1, %v8942_v43  ;;  %23388 = vmatprep.mubr.msk.f32.mxu1 %vm535_vm1, %v2312_v11  ;;  %v2581_v43 = vld [vmem:[#allocation2 + $0x6c6] ss:$4 sm:$0xff] }
 0x160   : > { %v9428_v45 = vld [vmem:[#allocation2 + $0x482] ss:$4 sm:$0xff] }
 0x161   : > { %v2583_v11 = vld [vmem:[#allocation2 + $0x6e6] ss:$4 sm:$0xff] }
 0x162   : > { %24103 = vmatmul.mubr.msk.f32.gmra.mrb[8].mxu0 %vm535_vm1, %v8944_v46  ;;  %23389 = vmatmul.mubr.msk.f32.vlgmr.msra.gmra.mrb[0].mxu1 %vm535_vm1, %v2314_v48  ;;  %v2585_v46 = vld [vmem:[#allocation2 + $0x7e6] ss:$4 sm:$0xff] }
 0x163   : > { %24105 = vmatprep.mubr.msk.f32.mxu0 %vm535_vm1, %v8946_v47  ;;  %23391 = vmatprep.mubr.msk.f32.mxu1 %vm535_vm1, %v2316_v49  ;;  %v9430_v47 = vld [vmem:[#allocation2 + $0x4a2] ss:$4 sm:$0xff] }
 0x164   : > { %23413 = vmatpush3.msk.msra.mxu1 %vm1231_vm0, %v27951_v30  ;;  %v8956_v30 = vld [vmem:[#allocation2 + $0x920] ss:$4 sm:$0xff]  ;;  %v9432_v48 = vld [vmem:[#allocation2 + $0x5a2] ss:$4 sm:$0xff] }
 0x165   : > { %23438 = vmatprep.subr.msk.mxu1 %vm1231_vm0, %v28103_v51  ;;  %v2587_v49 = vld [vmem:[#allocation2 + $0x806] ss:$4 sm:$0xff] }
 0x166   : > { %24106 = vmatmul.mubr.msk.f32.gmra.mrb[10].mxu0 %vm535_vm1, %v8948_v50  ;;  %23392 = vmatmul.mubr.msk.f32.gmra.mrb[2].mxu1 %vm535_vm1, %v2318_v53  ;;  %v2802_v50 = vld [vmem:[#allocation2 + $0x7] ss:$4 sm:$0xff] }
 0x167   : > { %24108 = vmatprep.mubr.msk.f32.mxu0 %vm535_vm1, %v8950_v52  ;;  %23394 = vmatprep.mubr.msk.f32.mxu1 %vm535_vm1, %v2320_v54  ;;  %v9436_v52 = vld [vmem:[#allocation2 + $0x6c2] ss:$4 sm:$0xff]  ;;  %v2804_v53 = vld [vmem:[#allocation2 + $0x27] ss:$4 sm:$0xff] }
 0x168   : > { %v2806_v54 = vld [vmem:[#allocation2 + $0x127] ss:$4 sm:$0xff] }
 0x16a   : > { %24109 = vmatmul.mubr.msk.f32.gmra.mrb[12].mxu0 %vm535_vm1, %v8952_v55  ;;  %23395 = vmatmul.mubr.msk.f32.gmra.mrb[4].mxu1 %vm535_vm1, %v2322_v57  ;;  %v9438_v55 = vld [vmem:[#allocation2 + $0x6e2] ss:$4 sm:$0xff] }
 0x16b   : > { %24111 = vmatprep.mubr.msk.f32.mxu0 %vm535_vm1, %v8954_v56  ;;  %23397 = vmatprep.mubr.msk.f32.mxu1 %vm535_vm1, %v2324_v58  ;;  %v28203_v56 = vld [vmem:[%s30269_s1 + $0x36] sm:$0x3f] }
 0x16c   : > { %v9440_v57 = vld [vmem:[#allocation2 + $0x7e2] ss:$4 sm:$0xff]  ;;  %v2808_v58 = vld [vmem:[#allocation2 + $0x147] ss:$4 sm:$0xff] }
 0x16e   : > { %24112 = vmatmul.mubr.msk.f32.gmra.mrb[14].mxu0 %vm535_vm1, %v8956_v30  ;;  %23398 = vmatmul.mubr.msk.f32.gmra.mrb[6].mxu1 %vm535_vm1, %v2326_v60  ;;  %v2810_v30 = vld [vmem:[#allocation2 + $0x247] ss:$4 sm:$0xff]  ;;  %v9444_v60 = vld [vmem:[#allocation2 + $0x902] ss:$4 sm:$0xff] }
 0x16f   : > { %24116 = vmatprep.mubr.msk.f32.mxu0 %vm535_vm1, %v9171_v59  ;;  %23400 = vmatprep.mubr.msk.f32.mxu1 %vm535_vm1, %v2328_v9  ;;  %v9442_v59 = vld [vmem:[#allocation2 + $0x802] ss:$4 sm:$0xff]  ;;  %v2812_v9 = vld [vmem:[#allocation2 + $0x267] ss:$4 sm:$0xff] }
 0x172   : > { %24117 = vmatmul.mubr.msk.f32.vlgmr.msra.gmra.mrb[0].mxu0 %vm535_vm1, %v9173_v61  ;;  %23401 = vmatmul.mubr.msk.f32.gmra.mrb[8].mxu1 %vm535_vm1, %v2330_v63  ;;  %v2814_v61 = vld [vmem:[#allocation2 + $0x367] ss:$4 sm:$0xff] }
 0x173   : > { %24141 = vmatpush3.msk.msra.mxu0 %vm1231_vm0, %v28026_v8  ;;  %24119 = vmatprep.mubr.msk.f32.mxu0 %vm535_vm1, %v9175_v62  ;;  %v9183_v8 = vld [vmem:[#allocation2 + $0x481] ss:$4 sm:$0xff]  ;;  %v9446_v62 = vld [vmem:[#allocation2 + $0x922] ss:$4 sm:$0xff]  ;;  %v9661_v63 = vld [vmem:[#allocation2 + $0x123] ss:$4 sm:$0xff] }
 0x174   : > { %24166 = vmatprep.subr.msk.mxu0 %vm1231_vm0, %v28126_v0  ;;  %23403 = vmatprep.mubr.msk.f32.mxu1 %vm535_vm1, %v2332_v2  ;;  %v2818_v2 = vld [vmem:[#allocation2 + $0x487] ss:$4 sm:$0xff] }
 0x176   : > { %24120 = vmatmul.mubr.msk.f32.gmra.mrb[2].mxu0 %vm535_vm1, %v9177_v4  ;;  %23404 = vmatmul.mubr.msk.f32.gmra.mrb[10].mxu1 %vm535_vm1, %v2334_v6  ;;  %v9663_v4 = vld [vmem:[#allocation2 + $0x143] ss:$4 sm:$0xff] }
 0x177   : > { %24122 = vmatprep.mubr.msk.f32.mxu0 %vm535_vm1, %v9179_v5  ;;  %23406 = vmatprep.mubr.msk.f32.mxu1 %vm535_vm1, %v2336_v7  ;;  %v9665_v5 = vld [vmem:[#allocation2 + $0x243] ss:$4 sm:$0xff] }
 0x178   : > { %v2820_v6 = vld [vmem:[#allocation2 + $0x4a7] ss:$4 sm:$0xff] }
 0x179   : > { %v28226_v7 = vld [vmem:[%s30269_s1 + $0xde] sm:$0x3f] }
 0x17a   : > { %24123 = vmatmul.mubr.msk.f32.gmra.mrb[4].mxu0 %vm535_vm1, %v9181_v10  ;;  %23407 = vmatmul.mubr.msk.f32.gmra.mrb[12].mxu1 %vm535_vm1, %v2338_v12  ;;  %v2822_v10 = vld [vmem:[#allocation2 + $0x5a7] ss:$4 sm:$0xff] }
 0x17b   : > { %24125 = vmatprep.mubr.msk.f32.mxu0 %vm535_vm1, %v9183_v8  ;;  %23409 = vmatprep.mubr.msk.f32.mxu1 %vm535_vm1, %v2340_v13  ;;  %v9667_v8 = vld [vmem:[#allocation2 + $0x263] ss:$4 sm:$0xff] }
 0x17c   : > { %v9669_v12 = vld [vmem:[#allocation2 + $0x363] ss:$4 sm:$0xff] }
 0x17d   : > { %v2824_v13 = vld [vmem:[#allocation2 + $0x5c7] ss:$4 sm:$0xff] }
 0x17e   : > { %24126 = vmatmul.mubr.msk.f32.gmra.mrb[6].mxu0 %vm535_vm1, %v9185_v14  ;;  %23410 = vmatmul.mubr.msk.f32.gmra.mrb[14].mxu1 %vm535_vm1, %v2342_v16  ;;  %v2826_v14 = vld [vmem:[#allocation2 + $0x6c7] ss:$4 sm:$0xff] }
 0x17f   : > { %24128 = vmatprep.mubr.msk.f32.mxu0 %vm535_vm1, %v9187_v15  ;;  %23414 = vmatprep.mubr.msk.f32.mxu1 %vm535_vm1, %v2557_v17  ;;  %v9671_v15 = vld [vmem:[#allocation2 + $0x383] ss:$4 sm:$0xff] }
 0x180   : > { %v9673_v16 = vld [vmem:[#allocation2 + $0x483] ss:$4 sm:$0xff] }
 0x181   : > { %v2828_v17 = vld [vmem:[#allocation2 + $0x6e7] ss:$4 sm:$0xff] }
 0x182   : > { %24129 = vmatmul.mubr.msk.f32.gmra.mrb[8].mxu0 %vm535_vm1, %v9189_v18  ;;  %23415 = vmatmul.mubr.msk.f32.vlgmr.msra.gmra.mrb[0].mxu1 %vm535_vm1, %v2559_v3  ;;  %v2830_v18 = vld [vmem:[#allocation2 + $0x7e7] ss:$4 sm:$0xff] }
 0x183   : > { %24131 = vmatprep.mubr.msk.f32.mxu0 %vm535_vm1, %v9191_v19  ;;  %23417 = vmatprep.mubr.msk.f32.mxu1 %vm535_vm1, %v2561_v20  ;;  %v9675_v19 = vld [vmem:[#allocation2 + $0x4a3] ss:$4 sm:$0xff] }
 0x184   : > { %23439 = vmatpush3.msk.msra.mxu1 %vm1231_vm0, %v28103_v51  ;;  %v9434_v51 = vld [vmem:[#allocation2 + $0x5c2] ss:$4 sm:$0xff]  ;;  %v9677_v3 = vld [vmem:[#allocation2 + $0x5a3] ss:$4 sm:$0xff] }
 0x185   : > { %23464 = vmatprep.subr.msk.mxu1 %vm1231_vm0, %v28153_v22  ;;  %v2832_v20 = vld [vmem:[#allocation2 + $0x807] ss:$4 sm:$0xff] }
 0x186   : > { %24132 = vmatmul.mubr.msk.f32.gmra.mrb[10].mxu0 %vm535_vm1, %v9193_v21  ;;  %23418 = vmatmul.mubr.msk.f32.gmra.mrb[2].mxu1 %vm535_vm1, %v2563_v24  ;;  %v3047_v21 = vld [vmem:[#allocation2 + $0x48] ss:$4 sm:$0xff] }
 0x187   : > { %24134 = vmatprep.mubr.msk.f32.mxu0 %vm535_vm1, %v9195_v23  ;;  %23420 = vmatprep.mubr.msk.f32.mxu1 %vm535_vm1, %v2565_v25  ;;  %v9681_v23 = vld [vmem:[#allocation2 + $0x6c3] ss:$4 sm:$0xff]  ;;  %v3049_v24 = vld [vmem:[#allocation2 + $0x68] ss:$4 sm:$0xff] }
 0x188   : > { %v3051_v25 = vld [vmem:[#allocation2 + $0x168] ss:$4 sm:$0xff] }
 0x18a   : > { %24135 = vmatmul.mubr.msk.f32.gmra.mrb[12].mxu0 %vm535_vm1, %v9197_v26  ;;  %23421 = vmatmul.mubr.msk.f32.gmra.mrb[4].mxu1 %vm535_vm1, %v2567_v28  ;;  %v9683_v26 = vld [vmem:[#allocation2 + $0x6e3] ss:$4 sm:$0xff] }
 0x18b   : > { %24137 = vmatprep.mubr.msk.f32.mxu0 %vm535_vm1, %v9199_v27  ;;  %23423 = vmatprep.mubr.msk.f32.mxu1 %vm535_vm1, %v2569_v29  ;;  %v28253_v27 = vld [vmem:[%s30269_s1 + $0x3c] sm:$0x3f] }
 0x18c   : > { %v9685_v28 = vld [vmem:[#allocation2 + $0x7e3] ss:$4 sm:$0xff]  ;;  %v3053_v29 = vld [vmem:[#allocation2 + $0x188] ss:$4 sm:$0xff] }
 0x18e   : > { %24138 = vmatmul.mubr.msk.f32.gmra.mrb[14].mxu0 %vm535_vm1, %v9201_v31  ;;  %23424 = vmatmul.mubr.msk.f32.gmra.mrb[6].mxu1 %vm535_vm1, %v2571_v33  ;;  %v3055_v31 = vld [vmem:[#allocation2 + $0x288] ss:$4 sm:$0xff]  ;;  %v9689_v33 = vld [vmem:[#allocation2 + $0x903] ss:$4 sm:$0xff] }
 0x18f   : > { %24142 = vmatprep.mubr.msk.f32.mxu0 %vm535_vm1, %v9416_v32  ;;  %23426 = vmatprep.mubr.msk.f32.mxu1 %vm535_vm1, %v2573_v34  ;;  %v9687_v32 = vld [vmem:[#allocation2 + $0x803] ss:$4 sm:$0xff]  ;;  %v3057_v34 = vld [vmem:[#allocation2 + $0x2a8] ss:$4 sm:$0xff] }
 0x192   : > { %24143 = vmatmul.mubr.msk.f32.vlgmr.msra.gmra.mrb[0].mxu0 %vm535_vm1, %v9418_v35  ;;  %23427 = vmatmul.mubr.msk.f32.gmra.mrb[8].mxu1 %vm535_vm1, %v2575_v37  ;;  %v3059_v35 = vld [vmem:[#allocation2 + $0x3a8] ss:$4 sm:$0xff] }
 0x193   : > { %24167 = vmatpush3.msk.msra.mxu0 %vm1231_vm0, %v28126_v0  ;;  %24145 = vmatprep.mubr.msk.f32.mxu0 %vm535_vm1, %v9420_v36  ;;  %v2816_v0 = vld [vmem:[#allocation2 + $0x387] ss:$4 sm:$0xff]  ;;  %v9906_v37 = vld [vmem:[#allocation2 + $0x124] ss:$4 sm:$0xff] }
 0x194   : > { %24192 = vmatprep.subr.msk.mxu0 %vm1231_vm0, %v28176_v38  ;;  %23429 = vmatprep.mubr.msk.f32.mxu1 %vm535_vm1, %v2577_v39  ;;  %v9691_v36 = vld [vmem:[#allocation2 + $0x923] ss:$4 sm:$0xff]  ;;  %v3063_v39 = vld [vmem:[#allocation2 + $0x4c8] ss:$4 sm:$0xff] }
 0x196   : > { %24146 = vmatmul.mubr.msk.f32.gmra.mrb[2].mxu0 %vm535_vm1, %v9422_v40  ;;  %23430 = vmatmul.mubr.msk.f32.gmra.mrb[10].mxu1 %vm535_vm1, %v2579_v42  ;;  %v9908_v40 = vld [vmem:[#allocation2 + $0x144] ss:$4 sm:$0xff] }
 0x197   : > { %24148 = vmatprep.mubr.msk.f32.mxu0 %vm535_vm1, %v9424_v41  ;;  %23432 = vmatprep.mubr.msk.f32.mxu1 %vm535_vm1, %v2581_v43  ;;  %v9910_v41 = vld [vmem:[#allocation2 + $0x244] ss:$4 sm:$0xff] }
 0x198   : > { %v3065_v42 = vld [vmem:[#allocation2 + $0x4e8] ss:$4 sm:$0xff] }
 0x199   : > { %v28276_v43 = vld [vmem:[%s30269_s1 + $0xe4] sm:$0x3f] }
 0x19a   : > { %24149 = vmatmul.mubr.msk.f32.gmra.mrb[4].mxu0 %vm535_vm1, %v9426_v44  ;;  %23433 = vmatmul.mubr.msk.f32.gmra.mrb[12].mxu1 %vm535_vm1, %v2583_v11  ;;  %v3067_v44 = vld [vmem:[#allocation2 + $0x5e8] ss:$4 sm:$0xff] }
 0x19b   : > { %24151 = vmatprep.mubr.msk.f32.mxu0 %vm535_vm1, %v9428_v45  ;;  %23435 = vmatprep.mubr.msk.f32.mxu1 %vm535_vm1, %v2585_v46  ;;  %v9912_v45 = vld [vmem:[#allocation2 + $0x264] ss:$4 sm:$0xff] }
 0x19c   : > { %v9914_v11 = vld [vmem:[#allocation2 + $0x364] ss:$4 sm:$0xff] }
 0x19d   : > { %v3069_v46 = vld [vmem:[#allocation2 + $0x608] ss:$4 sm:$0xff] }
 0x19e   : > { %24152 = vmatmul.mubr.msk.f32.gmra.mrb[6].mxu0 %vm535_vm1, %v9430_v47  ;;  %23436 = vmatmul.mubr.msk.f32.gmra.mrb[14].mxu1 %vm535_vm1, %v2587_v49  ;;  %v3071_v47 = vld [vmem:[#allocation2 + $0x708] ss:$4 sm:$0xff] }
 0x19f   : > { %24154 = vmatprep.mubr.msk.f32.mxu0 %vm535_vm1, %v9432_v48  ;;  %23440 = vmatprep.mubr.msk.f32.mxu1 %vm535_vm1, %v2802_v50  ;;  %v9916_v48 = vld [vmem:[#allocation2 + $0x384] ss:$4 sm:$0xff] }
 0x1a0   : > { %v9918_v49 = vld [vmem:[#allocation2 + $0x484] ss:$4 sm:$0xff] }
 0x1a1   : > { %v3073_v50 = vld [vmem:[#allocation2 + $0x728] ss:$4 sm:$0xff] }
 0x1a2   : > { %24155 = vmatmul.mubr.msk.f32.gmra.mrb[8].mxu0 %vm535_vm1, %v9434_v51  ;;  %23441 = vmatmul.mubr.msk.f32.vlgmr.msra.gmra.mrb[0].mxu1 %vm535_vm1, %v2804_v53  ;;  %v3075_v51 = vld [vmem:[#allocation2 + $0x828] ss:$4 sm:$0xff] }
 0x1a3   : > { %24157 = vmatprep.mubr.msk.f32.mxu0 %vm535_vm1, %v9436_v52  ;;  %23443 = vmatprep.mubr.msk.f32.mxu1 %vm535_vm1, %v2806_v54  ;;  %v9920_v52 = vld [vmem:[#allocation2 + $0x4a4] ss:$4 sm:$0xff] }
 0x1a4   : > { %23465 = vmatpush3.msk.msra.mxu1 %vm1231_vm0, %v28153_v22  ;;  %v9679_v22 = vld [vmem:[#allocation2 + $0x5c3] ss:$4 sm:$0xff]  ;;  %v9922_v53 = vld [vmem:[#allocation2 + $0x5a4] ss:$4 sm:$0xff] }
 0x1a5   : > { %23490 = vmatprep.subr.msk.mxu1 %vm1231_vm0, %v28203_v56  ;;  %v3077_v54 = vld [vmem:[#allocation2 + $0x848] ss:$4 sm:$0xff] }
 0x1a6   : > { %24158 = vmatmul.mubr.msk.f32.gmra.mrb[10].mxu0 %vm535_vm1, %v9438_v55  ;;  %23444 = vmatmul.mubr.msk.f32.gmra.mrb[2].mxu1 %vm535_vm1, %v2808_v58  ;;  %v3292_v55 = vld [vmem:[#allocation2 + $0x49] ss:$4 sm:$0xff] }
 0x1a7   : > { %24160 = vmatprep.mubr.msk.f32.mxu0 %vm535_vm1, %v9440_v57  ;;  %23446 = vmatprep.mubr.msk.f32.mxu1 %vm535_vm1, %v2810_v30  ;;  %v9926_v57 = vld [vmem:[#allocation2 + $0x6c4] ss:$4 sm:$0xff]  ;;  %v3294_v58 = vld [vmem:[#allocation2 + $0x69] ss:$4 sm:$0xff] }
 0x1a8   : > { %v3296_v30 = vld [vmem:[#allocation2 + $0x169] ss:$4 sm:$0xff] }
 0x1aa   : > { %24161 = vmatmul.mubr.msk.f32.gmra.mrb[12].mxu0 %vm535_vm1, %v9442_v59  ;;  %23447 = vmatmul.mubr.msk.f32.gmra.mrb[4].mxu1 %vm535_vm1, %v2812_v9  ;;  %v9928_v59 = vld [vmem:[#allocation2 + $0x6e4] ss:$4 sm:$0xff] }
 0x1ab   : > { %24163 = vmatprep.mubr.msk.f32.mxu0 %vm535_vm1, %v9444_v60  ;;  %23449 = vmatprep.mubr.msk.f32.mxu1 %vm535_vm1, %v2814_v61  ;;  %v9930_v60 = vld [vmem:[#allocation2 + $0x7e4] ss:$4 sm:$0xff]  ;;  %v3298_v61 = vld [vmem:[#allocation2 + $0x189] ss:$4 sm:$0xff] }
 0x1ac   : > { %v28303_v9 = vld [vmem:[%s30269_s1 + $0x42] sm:$0x3f] }
 0x1ae   : > { %24164 = vmatmul.mubr.msk.f32.gmra.mrb[14].mxu0 %vm535_vm1, %v9446_v62  ;;  %23450 = vmatmul.mubr.msk.f32.gmra.mrb[6].mxu1 %vm535_vm1, %v2816_v0  ;;  %v527_v62 = vld [vmem:[%s27472_s15 + $0x7c0] sm:$0xff]  ;;  %v529_v0 = vld [vmem:[%s27472_s15 + $0x7d0] sm:$0xff] }
 0x1af   : > { %24168 = vmatprep.mubr.msk.f32.mxu0 %vm535_vm1, %v9661_v63  ;;  %23452 = vmatprep.mubr.msk.f32.mxu1 %vm535_vm1, %v2818_v2  ;;  %v528_v63 = vld [vmem:[%s27472_s15 + $0x7c8] sm:$0xff]  ;;  %v530_v2 = vld [vmem:[%s27472_s15 + $0x7d8] sm:$0xff]  ;;  %1110 = vst.msk [vmem:[#allocation2 + $0x94a] sm:$0xff] %vm535_vm1, %v527_v62  ;;  %1112 = vst.msk [vmem:[#allocation2 + $0x95a] sm:$0xff] %vm535_vm1, %v529_v0 }
 0x1b0   : > { %1111 = vst.msk [vmem:[#allocation2 + $0x952] sm:$0xff] %vm535_vm1, %v528_v63  ;;  %1113 = vst.msk [vmem:[#allocation2 + $0x962] sm:$0xff] %vm535_vm1, %v530_v2  ;;  %v3565_v62 = vld [vmem:[#allocation2 + $0x82a] ss:$4 sm:$0xff] }
 0x1b1   : > { %v10410_v63 = vld [vmem:[#allocation2 + $0x4a6] ss:$4 sm:$0xff] }
 0x1b2   : > { %24169 = vmatmul.mubr.msk.f32.vlgmr.msra.gmra.mrb[0].mxu0 %vm535_vm1, %v9663_v4  ;;  %23453 = vmatmul.mubr.msk.f32.gmra.mrb[8].mxu1 %vm535_vm1, %v2820_v6  ;;  %v531_v4 = vld [vmem:[%s27472_s15 + $0x7e0] sm:$0xff]  ;;  %v532_v6 = vld [vmem:[%s27472_s15 + $0x7e8] sm:$0xff] }
 0x1b3   : > { %24193 = vmatpush3.msk.msra.mxu0 %vm1231_vm0, %v28176_v38  ;;  %24171 = vmatprep.mubr.msk.f32.mxu0 %vm535_vm1, %v9665_v5  ;;  %v3061_v38 = vld [vmem:[#allocation2 + $0x3c8] ss:$4 sm:$0xff]  ;;  %v3300_v5 = vld [vmem:[#allocation2 + $0x289] ss:$4 sm:$0xff]  ;;  %1114 = vst.msk [vmem:[#allocation2 + $0x96a] sm:$0xff] %vm535_vm1, %v531_v4  ;;  %1115 = vst.msk [vmem:[#allocation2 + $0x972] sm:$0xff] %vm535_vm1, %v532_v6 }
 0x1b4   : > { %24218 = vmatprep.subr.msk.mxu0 %vm1231_vm0, %v28226_v7  ;;  %23455 = vmatprep.mubr.msk.f32.mxu1 %vm535_vm1, %v2822_v10  ;;  %v533_v10 = vld [vmem:[%s27472_s15 + $0x7f0] sm:$0xff] }
 0x1b5   : > { %1116 = vst.msk [vmem:[#allocation2 + $0x97a] sm:$0xff] %vm535_vm1, %v533_v10  ;;  %v10412_v0 = vld [vmem:[#allocation2 + $0x5a6] ss:$4 sm:$0xff]  ;;  %v3782_v4 = vld [vmem:[#allocation2 + $0x4b] ss:$4 sm:$0xff] }
 0x1b6   : > { %24172 = vmatmul.mubr.msk.f32.gmra.mrb[2].mxu0 %vm535_vm1, %v9667_v8  ;;  %23456 = vmatmul.mubr.msk.f32.gmra.mrb[10].mxu1 %vm535_vm1, %v2824_v13  ;;  %v534_v8 = vld [vmem:[%s27472_s15 + $0x7f8] sm:$0xff] }
 0x1b7   : > { %24174 = vmatprep.mubr.msk.f32.mxu0 %vm535_vm1, %v9669_v12  ;;  %23458 = vmatprep.mubr.msk.f32.mxu1 %vm535_vm1, %v2826_v14  ;;  %v9934_v12 = vld [vmem:[#allocation2 + $0x904] ss:$4 sm:$0xff]  ;;  %1117 = vst.msk [vmem:[#allocation2 + $0x982] sm:$0xff] %vm535_vm1, %v534_v8  ;;  %v3302_v13 = vld [vmem:[#allocation2 + $0x2a9] ss:$4 sm:$0xff] }
 0x1b8   : > { %v3304_v14 = vld [vmem:[#allocation2 + $0x3a9] ss:$4 sm:$0xff]  ;;  %v3567_v2 = vld [vmem:[#allocation2 + $0x84a] ss:$4 sm:$0xff]  ;;  %v3786_v10 = vld [vmem:[#allocation2 + $0x16b] ss:$4 sm:$0xff] }
 0x1b9   : > { %v10416_v6 = vld [vmem:[#allocation2 + $0x6c6] ss:$4 sm:$0xff] }
 0x1ba   : > { %24175 = vmatmul.mubr.msk.f32.gmra.mrb[4].mxu0 %vm535_vm1, %v9671_v15  ;;  %23459 = vmatmul.mubr.msk.f32.gmra.mrb[12].mxu1 %vm535_vm1, %v2828_v17  ;;  %v9936_v15 = vld [vmem:[#allocation2 + $0x924] ss:$4 sm:$0xff]  ;;  %v3306_v17 = vld [vmem:[#allocation2 + $0x3c9] ss:$4 sm:$0xff]  ;;  %v10418_v8 = vld [vmem:[#allocation2 + $0x6e6] ss:$4 sm:$0xff] }
 0x1bb   : > { %24177 = vmatprep.mubr.msk.f32.mxu0 %vm535_vm1, %v9673_v16  ;;  %23461 = vmatprep.mubr.msk.f32.mxu1 %vm535_vm1, %v2830_v18  ;;  %v10151_v16 = vld [vmem:[#allocation2 + $0x125] ss:$4 sm:$0xff] }
 0x1bc   : > { %v3308_v18 = vld [vmem:[#allocation2 + $0x4c9] ss:$4 sm:$0xff] }
 0x1be   : > { %24178 = vmatmul.mubr.msk.f32.gmra.mrb[6].mxu0 %vm535_vm1, %v9675_v19  ;;  %23462 = vmatmul.mubr.msk.f32.gmra.mrb[14].mxu1 %vm535_vm1, %v2832_v20  ;;  %v10153_v19 = vld [vmem:[#allocation2 + $0x145] ss:$4 sm:$0xff] }
 0x1bf   : > { %24180 = vmatprep.mubr.msk.f32.mxu0 %vm535_vm1, %v9677_v3  ;;  %23466 = vmatprep.mubr.msk.f32.mxu1 %vm535_vm1, %v3047_v21  ;;  %v10155_v3 = vld [vmem:[#allocation2 + $0x245] ss:$4 sm:$0xff] }
 0x1c0   : > { %v3310_v20 = vld [vmem:[#allocation2 + $0x4e9] ss:$4 sm:$0xff] }
 0x1c1   : > { %v28342_v21 = vld [vmem:[%s30269_s1 + $0xea] sm:$0x3f] }
 0x1c2   : > { %24181 = vmatmul.mubr.msk.f32.gmra.mrb[8].mxu0 %vm535_vm1, %v9679_v22  ;;  %23467 = vmatmul.mubr.msk.f32.vlgmr.msra.gmra.mrb[0].mxu1 %vm535_vm1, %v3049_v24  ;;  %v3312_v22 = vld [vmem:[#allocation2 + $0x5e9] ss:$4 sm:$0xff] }
 0x1c3   : > { %24183 = vmatprep.mubr.msk.f32.mxu0 %vm535_vm1, %v9681_v23  ;;  %23469 = vmatprep.mubr.msk.f32.mxu1 %vm535_vm1, %v3051_v25  ;;  %v10157_v23 = vld [vmem:[#allocation2 + $0x265] ss:$4 sm:$0xff] }
 0x1c4   : > { %23491 = vmatpush3.msk.msra.mxu1 %vm1231_vm0, %v28203_v56  ;;  %v9924_v56 = vld [vmem:[#allocation2 + $0x5c4] ss:$4 sm:$0xff]  ;;  %v10159_v24 = vld [vmem:[#allocation2 + $0x365] ss:$4 sm:$0xff] }
 0x1c5   : > { %23516 = vmatprep.subr.msk.mxu1 %vm1231_vm0, %v28253_v27  ;;  %v3314_v25 = vld [vmem:[#allocation2 + $0x609] ss:$4 sm:$0xff] }
 0x1c6   : > { %24184 = vmatmul.mubr.msk.f32.gmra.mrb[10].mxu0 %vm535_vm1, %v9683_v26  ;;  %23470 = vmatmul.mubr.msk.f32.gmra.mrb[2].mxu1 %vm535_vm1, %v3053_v29  ;;  %v3316_v26 = vld [vmem:[#allocation2 + $0x709] ss:$4 sm:$0xff] }
 0x1c7   : > { %24186 = vmatprep.mubr.msk.f32.mxu0 %vm535_vm1, %v9685_v28  ;;  %23472 = vmatprep.mubr.msk.f32.mxu1 %vm535_vm1, %v3055_v31  ;;  %v10163_v28 = vld [vmem:[#allocation2 + $0x485] ss:$4 sm:$0xff] }
 0x1c8   : > { %v3318_v29 = vld [vmem:[#allocation2 + $0x729] ss:$4 sm:$0xff] }
 0x1c9   : > { %v3320_v31 = vld [vmem:[#allocation2 + $0x829] ss:$4 sm:$0xff] }
 0x1ca   : > { %24187 = vmatmul.mubr.msk.f32.gmra.mrb[12].mxu0 %vm535_vm1, %v9687_v32  ;;  %23473 = vmatmul.mubr.msk.f32.gmra.mrb[4].mxu1 %vm535_vm1, %v3057_v34  ;;  %v10165_v32 = vld [vmem:[#allocation2 + $0x4a5] ss:$4 sm:$0xff] }
 0x1cb   : > { %24189 = vmatprep.mubr.msk.f32.mxu0 %vm535_vm1, %v9689_v33  ;;  %23475 = vmatprep.mubr.msk.f32.mxu1 %vm535_vm1, %v3059_v35  ;;  %v10167_v33 = vld [vmem:[#allocation2 + $0x5a5] ss:$4 sm:$0xff]  ;;  %v3537_v35 = vld [vmem:[#allocation2 + $0x4a] ss:$4 sm:$0xff] }
 0x1cc   : > { %v3322_v34 = vld [vmem:[#allocation2 + $0x849] ss:$4 sm:$0xff] }
 0x1ce   : > { %24190 = vmatmul.mubr.msk.f32.gmra.mrb[14].mxu0 %vm535_vm1, %v9691_v36  ;;  %23476 = vmatmul.mubr.msk.f32.gmra.mrb[6].mxu1 %vm535_vm1, %v3061_v38  ;;  %v10169_v36 = vld [vmem:[#allocation2 + $0x5c5] ss:$4 sm:$0xff]  ;;  %v3539_v38 = vld [vmem:[#allocation2 + $0x6a] ss:$4 sm:$0xff] }
 0x1cf   : > { %24194 = vmatprep.mubr.msk.f32.mxu0 %vm535_vm1, %v9906_v37  ;;  %23478 = vmatprep.mubr.msk.f32.mxu1 %vm535_vm1, %v3063_v39  ;;  %v10171_v37 = vld [vmem:[#allocation2 + $0x6c5] ss:$4 sm:$0xff]  ;;  %v3541_v39 = vld [vmem:[#allocation2 + $0x16a] ss:$4 sm:$0xff] }
 0x1d2   : > { %24195 = vmatmul.mubr.msk.f32.vlgmr.msra.gmra.mrb[0].mxu0 %vm535_vm1, %v9908_v40  ;;  %23479 = vmatmul.mubr.msk.f32.gmra.mrb[8].mxu1 %vm535_vm1, %v3065_v42  ;;  %v10173_v40 = vld [vmem:[#allocation2 + $0x6e5] ss:$4 sm:$0xff] }
 0x1d3   : > { %24219 = vmatpush3.msk.msra.mxu0 %vm1231_vm0, %v28226_v7  ;;  %24197 = vmatprep.mubr.msk.f32.mxu0 %vm535_vm1, %v9910_v41  ;;  %v9932_v7 = vld [vmem:[#allocation2 + $0x804] ss:$4 sm:$0xff]  ;;  %v10175_v42 = vld [vmem:[#allocation2 + $0x7e5] ss:$4 sm:$0xff] }
 0x1d4   : > { %24244 = vmatprep.subr.msk.mxu0 %vm1231_vm0, %v28276_v43  ;;  %23481 = vmatprep.mubr.msk.f32.mxu1 %vm535_vm1, %v3067_v44  ;;  %v28369_v41 = vld [vmem:[%s30269_s1 + $0x48] sm:$0x3f] }
 0x1d5   : > { %v3545_v44 = vld [vmem:[#allocation2 + $0x28a] ss:$4 sm:$0xff] }
 0x1d6   : > { %24198 = vmatmul.mubr.msk.f32.gmra.mrb[2].mxu0 %vm535_vm1, %v9912_v45  ;;  %23482 = vmatmul.mubr.msk.f32.gmra.mrb[10].mxu1 %vm535_vm1, %v3069_v46  ;;  %v10177_v45 = vld [vmem:[#allocation2 + $0x805] ss:$4 sm:$0xff]  ;;  %v3547_v46 = vld [vmem:[#allocation2 + $0x2aa] ss:$4 sm:$0xff] }
 0x1d7   : > { %24200 = vmatprep.mubr.msk.f32.mxu0 %vm535_vm1, %v9914_v11  ;;  %23484 = vmatprep.mubr.msk.f32.mxu1 %vm535_vm1, %v3071_v47  ;;  %v10179_v11 = vld [vmem:[#allocation2 + $0x905] ss:$4 sm:$0xff]  ;;  %v3549_v47 = vld [vmem:[#allocation2 + $0x3aa] ss:$4 sm:$0xff] }
 0x1da   : > { %24201 = vmatmul.mubr.msk.f32.gmra.mrb[4].mxu0 %vm535_vm1, %v9916_v48  ;;  %23485 = vmatmul.mubr.msk.f32.gmra.mrb[12].mxu1 %vm535_vm1, %v3073_v50  ;;  %v10181_v48 = vld [vmem:[#allocation2 + $0x925] ss:$4 sm:$0xff]  ;;  %v3551_v50 = vld [vmem:[#allocation2 + $0x3ca] ss:$4 sm:$0xff] }
 0x1db   : > { %24203 = vmatprep.mubr.msk.f32.mxu0 %vm535_vm1, %v9918_v49  ;;  %23487 = vmatprep.mubr.msk.f32.mxu1 %vm535_vm1, %v3075_v51  ;;  %v10396_v49 = vld [vmem:[#allocation2 + $0x126] ss:$4 sm:$0xff] }
 0x1dc   : > { %v3553_v51 = vld [vmem:[#allocation2 + $0x4ca] ss:$4 sm:$0xff] }
 0x1de   : > { %24204 = vmatmul.mubr.msk.f32.gmra.mrb[6].mxu0 %vm535_vm1, %v9920_v52  ;;  %23488 = vmatmul.mubr.msk.f32.gmra.mrb[14].mxu1 %vm535_vm1, %v3077_v54  ;;  %v10398_v52 = vld [vmem:[#allocation2 + $0x146] ss:$4 sm:$0xff] }
 0x1df   : > { %24206 = vmatprep.mubr.msk.f32.mxu0 %vm535_vm1, %v9922_v53  ;;  %23492 = vmatprep.mubr.msk.f32.mxu1 %vm535_vm1, %v3292_v55  ;;  %v10400_v53 = vld [vmem:[#allocation2 + $0x246] ss:$4 sm:$0xff] }
 0x1e0   : > { %v3555_v54 = vld [vmem:[#allocation2 + $0x4ea] ss:$4 sm:$0xff] }
 0x1e1   : > { %v28392_v55 = vld [vmem:[%s30269_s1 + $0xf0] sm:$0x3f] }
 0x1e2   : > { %24207 = vmatmul.mubr.msk.f32.gmra.mrb[8].mxu0 %vm535_vm1, %v9924_v56  ;;  %23493 = vmatmul.mubr.msk.f32.vlgmr.msra.gmra.mrb[0].mxu1 %vm535_vm1, %v3294_v58  ;;  %v3557_v56 = vld [vmem:[#allocation2 + $0x5ea] ss:$4 sm:$0xff] }
 0x1e3   : > { %24209 = vmatprep.mubr.msk.f32.mxu0 %vm535_vm1, %v9926_v57  ;;  %23495 = vmatprep.mubr.msk.f32.mxu1 %vm535_vm1, %v3296_v30  ;;  %v10402_v57 = vld [vmem:[#allocation2 + $0x266] ss:$4 sm:$0xff] }
 0x1e4   : > { %23517 = vmatpush3.msk.msra.mxu1 %vm1231_vm0, %v28253_v27  ;;  %v10161_v27 = vld [vmem:[#allocation2 + $0x385] ss:$4 sm:$0xff]  ;;  %v10404_v58 = vld [vmem:[#allocation2 + $0x366] ss:$4 sm:$0xff] }
 0x1e5   : > { %23542 = vmatprep.subr.msk.mxu1 %vm1231_vm0, %v28303_v9  ;;  %v3559_v30 = vld [vmem:[#allocation2 + $0x60a] ss:$4 sm:$0xff] }
 0x1e6   : > { %24210 = vmatmul.mubr.msk.f32.gmra.mrb[10].mxu0 %vm535_vm1, %v9928_v59  ;;  %23496 = vmatmul.mubr.msk.f32.gmra.mrb[2].mxu1 %vm535_vm1, %v3298_v61  ;;  %v3561_v59 = vld [vmem:[#allocation2 + $0x70a] ss:$4 sm:$0xff] }
 0x1e7   : > { %24212 = vmatprep.mubr.msk.f32.mxu0 %vm535_vm1, %v9930_v60  ;;  %23498 = vmatprep.mubr.msk.f32.mxu1 %vm535_vm1, %v3300_v5  ;;  %v10406_v60 = vld [vmem:[#allocation2 + $0x386] ss:$4 sm:$0xff] }
 0x1e8   : > { %v3563_v61 = vld [vmem:[#allocation2 + $0x72a] ss:$4 sm:$0xff] }
 0x1e9   : > { %v10414_v5 = vld [vmem:[#allocation2 + $0x5c6] ss:$4 sm:$0xff] }
 0x1ea   : > { %24213 = vmatmul.mubr.msk.f32.gmra.mrb[12].mxu0 %vm535_vm1, %v9932_v7  ;;  %23499 = vmatmul.mubr.msk.f32.gmra.mrb[4].mxu1 %vm535_vm1, %v3302_v13  ;;  %v3784_v7 = vld [vmem:[#allocation2 + $0x6b] ss:$4 sm:$0xff]  ;;  %v10420_v13 = vld [vmem:[#allocation2 + $0x7e6] ss:$4 sm:$0xff] }
 0x1eb   : > { %24215 = vmatprep.mubr.msk.f32.mxu0 %vm535_vm1, %v9934_v12  ;;  %23501 = vmatprep.mubr.msk.f32.mxu1 %vm535_vm1, %v3304_v14  ;;  %v28419_v12 = vld [vmem:[%s30269_s1 + $0x4e] sm:$0x3f] }
 0x1ec   : > { %v3788_v14 = vld [vmem:[#allocation2 + $0x18b] ss:$4 sm:$0xff] }
 0x1ee   : > { %24216 = vmatmul.mubr.msk.f32.gmra.mrb[14].mxu0 %vm535_vm1, %v9936_v15  ;;  %23502 = vmatmul.mubr.msk.f32.gmra.mrb[6].mxu1 %vm535_vm1, %v3306_v17  ;;  %v3790_v15 = vld [vmem:[#allocation2 + $0x28b] ss:$4 sm:$0xff]  ;;  %v10424_v17 = vld [vmem:[#allocation2 + $0x906] ss:$4 sm:$0xff] }
 0x1ef   : > { %24220 = vmatprep.mubr.msk.f32.mxu0 %vm535_vm1, %v10151_v16  ;;  %23504 = vmatprep.mubr.msk.f32.mxu1 %vm535_vm1, %v3308_v18  ;;  %v10422_v16 = vld [vmem:[#allocation2 + $0x806] ss:$4 sm:$0xff]  ;;  %v3792_v18 = vld [vmem:[#allocation2 + $0x2ab] ss:$4 sm:$0xff] }
 0x1f2   : > { %24221 = vmatmul.mubr.msk.f32.vlgmr.msra.gmra.mrb[0].mxu0 %vm535_vm1, %v10153_v19  ;;  %23505 = vmatmul.mubr.msk.f32.gmra.mrb[8].mxu1 %vm535_vm1, %v3310_v20  ;;  %v3794_v19 = vld [vmem:[#allocation2 + $0x3ab] ss:$4 sm:$0xff] }
 0x1f3   : > { %24245 = vmatpush3.msk.msra.mxu0 %vm1231_vm0, %v28276_v43  ;;  %24223 = vmatprep.mubr.msk.f32.mxu0 %vm535_vm1, %v10155_v3  ;;  %v3543_v43 = vld [vmem:[#allocation2 + $0x18a] ss:$4 sm:$0xff]  ;;  %v10641_v20 = vld [vmem:[#allocation2 + $0x127] ss:$4 sm:$0xff] }
 0x1f4   : > { %24270 = vmatprep.subr.msk.mxu0 %vm1231_vm0, %v28342_v21  ;;  %23507 = vmatprep.mubr.msk.f32.mxu1 %vm535_vm1, %v3312_v22  ;;  %v10426_v3 = vld [vmem:[#allocation2 + $0x926] ss:$4 sm:$0xff]  ;;  %v3798_v22 = vld [vmem:[#allocation2 + $0x4cb] ss:$4 sm:$0xff] }
 0x1f6   : > { %24224 = vmatmul.mubr.msk.f32.gmra.mrb[2].mxu0 %vm535_vm1, %v10157_v23  ;;  %23508 = vmatmul.mubr.msk.f32.gmra.mrb[10].mxu1 %vm535_vm1, %v3314_v25  ;;  %v10643_v23 = vld [vmem:[#allocation2 + $0x147] ss:$4 sm:$0xff] }
 0x1f7   : > { %24226 = vmatprep.mubr.msk.f32.mxu0 %vm535_vm1, %v10159_v24  ;;  %23510 = vmatprep.mubr.msk.f32.mxu1 %vm535_vm1, %v3316_v26  ;;  %v10645_v24 = vld [vmem:[#allocation2 + $0x247] ss:$4 sm:$0xff] }
 0x1f8   : > { %v3800_v25 = vld [vmem:[#allocation2 + $0x4eb] ss:$4 sm:$0xff] }
 0x1f9   : > { %v28442_v26 = vld [vmem:[%s30269_s1 + $0xf6] sm:$0x3f] }
 0x1fa   : > { %24227 = vmatmul.mubr.msk.f32.gmra.mrb[4].mxu0 %vm535_vm1, %v10161_v27  ;;  %23511 = vmatmul.mubr.msk.f32.gmra.mrb[12].mxu1 %vm535_vm1, %v3318_v29  ;;  %v3802_v27 = vld [vmem:[#allocation2 + $0x5eb] ss:$4 sm:$0xff] }
 0x1fb   : > { %24229 = vmatprep.mubr.msk.f32.mxu0 %vm535_vm1, %v10163_v28  ;;  %23513 = vmatprep.mubr.msk.f32.mxu1 %vm535_vm1, %v3320_v31  ;;  %v10647_v28 = vld [vmem:[#allocation2 + $0x267] ss:$4 sm:$0xff] }
 0x1fc   : > { %v10649_v29 = vld [vmem:[#allocation2 + $0x367] ss:$4 sm:$0xff] }
 0x1fd   : > { %v3804_v31 = vld [vmem:[#allocation2 + $0x60b] ss:$4 sm:$0xff] }
 0x1fe   : > { %24230 = vmatmul.mubr.msk.f32.gmra.mrb[6].mxu0 %vm535_vm1, %v10165_v32  ;;  %23514 = vmatmul.mubr.msk.f32.gmra.mrb[14].mxu1 %vm535_vm1, %v3322_v34  ;;  %v3806_v32 = vld [vmem:[#allocation2 + $0x70b] ss:$4 sm:$0xff] }
 0x1ff   : > { %24232 = vmatprep.mubr.msk.f32.mxu0 %vm535_vm1, %v10167_v33  ;;  %23518 = vmatprep.mubr.msk.f32.mxu1 %vm535_vm1, %v3537_v35  ;;  %v10651_v33 = vld [vmem:[#allocation2 + $0x387] ss:$4 sm:$0xff] }
 0x200   : > { %v10653_v34 = vld [vmem:[#allocation2 + $0x487] ss:$4 sm:$0xff] }
 0x201   : > { %v3808_v35 = vld [vmem:[#allocation2 + $0x72b] ss:$4 sm:$0xff] }
 0x202   : > { %24233 = vmatmul.mubr.msk.f32.gmra.mrb[8].mxu0 %vm535_vm1, %v10169_v36  ;;  %23519 = vmatmul.mubr.msk.f32.vlgmr.msra.gmra.mrb[0].mxu1 %vm535_vm1, %v3539_v38  ;;  %v3810_v36 = vld [vmem:[#allocation2 + $0x82b] ss:$4 sm:$0xff] }
 0x203   : > { %24235 = vmatprep.mubr.msk.f32.mxu0 %vm535_vm1, %v10171_v37  ;;  %23521 = vmatprep.mubr.msk.f32.mxu1 %vm535_vm1, %v3541_v39  ;;  %v10655_v37 = vld [vmem:[#allocation2 + $0x4a7] ss:$4 sm:$0xff] }
 0x204   : > { %23543 = vmatpush3.msk.msra.mxu1 %vm1231_vm0, %v28303_v9  ;;  %v10408_v9 = vld [vmem:[#allocation2 + $0x486] ss:$4 sm:$0xff]  ;;  %v10657_v38 = vld [vmem:[#allocation2 + $0x5a7] ss:$4 sm:$0xff] }
 0x205   : > { %23568 = vmatprep.subr.msk.mxu1 %vm1231_vm0, %v28369_v41  ;;  %v3812_v39 = vld [vmem:[#allocation2 + $0x84b] ss:$4 sm:$0xff] }
 0x206   : > { %24236 = vmatmul.mubr.msk.f32.gmra.mrb[10].mxu0 %vm535_vm1, %v10173_v40  ;;  %23522 = vmatmul.mubr.msk.f32.gmra.mrb[2].mxu1 %vm535_vm1, %v3543_v43  ;;  %v279_v40 = vld [vmem:[%s27472_s15] sm:$0xff]  ;;  %v282_v43 = vld [vmem:[%s27472_s15 + $0x18] sm:$0xff] }
 0x207   : > { %24238 = vmatprep.mubr.msk.f32.mxu0 %vm535_vm1, %v10175_v42  ;;  %23524 = vmatprep.mubr.msk.f32.mxu1 %vm535_vm1, %v3545_v44  ;;  %v281_v42 = vld [vmem:[%s27472_s15 + $0x10] sm:$0xff]  ;;  %862 = vst.msk [vmem:[#allocation2 + $0x92] sm:$0xff] %vm535_vm1, %v279_v40  ;;  %v283_v44 = vld [vmem:[%s27472_s15 + $0x20] sm:$0xff]  ;;  %865 = vst.msk [vmem:[#allocation2 + $0xaa] sm:$0xff] %vm535_vm1, %v282_v43 }
 0x208   : > { %864 = vst.msk [vmem:[#allocation2 + $0xa2] sm:$0xff] %vm535_vm1, %v281_v42  ;;  %866 = vst.msk [vmem:[#allocation2 + $0xb2] sm:$0xff] %vm535_vm1, %v283_v44  ;;  %v439_v40 = vld [vmem:[%s27472_s15 + $0x500] sm:$0xff]  ;;  %v440_v42 = vld [vmem:[%s27472_s15 + $0x508] sm:$0xff] }
 0x209   : > { %v441_v43 = vld [vmem:[%s27472_s15 + $0x510] sm:$0xff]  ;;  %1022 = vst.msk [vmem:[#allocation2 + $0x632] sm:$0xff] %vm535_vm1, %v439_v40  ;;  %v442_v44 = vld [vmem:[%s27472_s15 + $0x518] sm:$0xff]  ;;  %1023 = vst.msk [vmem:[#allocation2 + $0x63a] sm:$0xff] %vm535_vm1, %v440_v42 }
 0x20a   : > { %24239 = vmatmul.mubr.msk.f32.gmra.mrb[12].mxu0 %vm535_vm1, %v10177_v45  ;;  %23525 = vmatmul.mubr.msk.f32.gmra.mrb[4].mxu1 %vm535_vm1, %v3547_v46  ;;  %v10659_v45 = vld [vmem:[#allocation2 + $0x5c7] ss:$4 sm:$0xff]  ;;  %1024 = vst.msk [vmem:[#allocation2 + $0x642] sm:$0xff] %vm535_vm1, %v441_v43  ;;  %1025 = vst.msk [vmem:[#allocation2 + $0x64a] sm:$0xff] %vm535_vm1, %v442_v44  ;;  %v11141_v40 = vld [vmem:[#allocation2 + $0x3c9] ss:$4 sm:$0xff] }
 0x20b   : > { %24241 = vmatprep.mubr.msk.f32.mxu0 %vm535_vm1, %v10179_v11  ;;  %23527 = vmatprep.mubr.msk.f32.mxu1 %vm535_vm1, %v3549_v47  ;;  %v4027_v11 = vld [vmem:[#allocation2 + $0x4c] ss:$4 sm:$0xff]  ;;  %v10661_v47 = vld [vmem:[#allocation2 + $0x6c7] ss:$4 sm:$0xff]  ;;  %v4298_v42 = vld [vmem:[#allocation2 + $0x72d] ss:$4 sm:$0xff] }
 0x20c   : > { %v284_v46 = vld [vmem:[%s27472_s15 + $0x28] sm:$0xff] }
 0x20d   : > { %867 = vst.msk [vmem:[#allocation2 + $0xba] sm:$0xff] %vm535_vm1, %v284_v46  ;;  %v10892_v46 = vld [vmem:[#allocation2 + $0x2a8] ss:$4 sm:$0xff]  ;;  %v4300_v43 = vld [vmem:[#allocation2 + $0x82d] ss:$4 sm:$0xff] }
 0x20e   : > { %24242 = vmatmul.mubr.msk.f32.gmra.mrb[14].mxu0 %vm535_vm1, %v10181_v48  ;;  %23528 = vmatmul.mubr.msk.f32.gmra.mrb[6].mxu1 %vm535_vm1, %v3551_v50  ;;  %v285_v48 = vld [vmem:[%s27472_s15 + $0x30] sm:$0xff] }
 0x20f   : > { %24246 = vmatprep.mubr.msk.f32.mxu0 %vm535_vm1, %v10396_v49  ;;  %23530 = vmatprep.mubr.msk.f32.mxu1 %vm535_vm1, %v3553_v51  ;;  %v286_v49 = vld [vmem:[%s27472_s15 + $0x38] sm:$0xff]  ;;  %868 = vst.msk [vmem:[#allocation2 + $0xc2] sm:$0xff] %vm535_vm1, %v285_v48  ;;  %v311_v51 = vld [vmem:[%s27472_s15 + $0x100] sm:$0xff]  ;;  %v445_v48 = vld [vmem:[%s27472_s15 + $0x530] sm:$0xff] }
 0x210   : > { %v4029_v50 = vld [vmem:[#allocation2 + $0x6c] ss:$4 sm:$0xff]  ;;  %869 = vst.msk [vmem:[#allocation2 + $0xca] sm:$0xff] %vm535_vm1, %v286_v49  ;;  %894 = vst.msk [vmem:[#allocation2 + $0x1b2] sm:$0xff] %vm535_vm1, %v311_v51  ;;  %v11145_v44 = vld [vmem:[#allocation2 + $0x4e9] ss:$4 sm:$0xff] }
 0x211   : > { %v4049_v49 = vld [vmem:[#allocation2 + $0x60c] ss:$4 sm:$0xff]  ;;  %1028 = vst.msk [vmem:[#allocation2 + $0x662] sm:$0xff] %vm535_vm1, %v445_v48  ;;  %v11151_v48 = vld [vmem:[#allocation2 + $0x709] ss:$4 sm:$0xff] }
 0x212   : > { %24247 = vmatmul.mubr.msk.f32.vlgmr.msra.gmra.mrb[0].mxu0 %vm535_vm1, %v10398_v52  ;;  %23531 = vmatmul.mubr.msk.f32.gmra.mrb[8].mxu1 %vm535_vm1, %v3555_v54  ;;  %v312_v52 = vld [vmem:[%s27472_s15 + $0x108] sm:$0xff]  ;;  %v313_v54 = vld [vmem:[%s27472_s15 + $0x110] sm:$0xff] }
 0x213   : > { %24271 = vmatpush3.msk.msra.mxu0 %vm1231_vm0, %v28342_v21  ;;  %24249 = vmatprep.mubr.msk.f32.mxu0 %vm535_vm1, %v10400_v53  ;;  %v3796_v21 = vld [vmem:[#allocation2 + $0x3cb] ss:$4 sm:$0xff]  ;;  %895 = vst.msk [vmem:[#allocation2 + $0x1ba] sm:$0xff] %vm535_vm1, %v312_v52  ;;  %896 = vst.msk [vmem:[#allocation2 + $0x1c2] sm:$0xff] %vm535_vm1, %v313_v54  ;;  %v10896_v51 = vld [vmem:[#allocation2 + $0x3c8] ss:$4 sm:$0xff] }
 0x214   : > { %24296 = vmatprep.subr.msk.mxu0 %vm1231_vm0, %v28392_v55  ;;  %23533 = vmatprep.mubr.msk.f32.mxu1 %vm535_vm1, %v3557_v56  ;;  %v10663_v53 = vld [vmem:[#allocation2 + $0x6e7] ss:$4 sm:$0xff]  ;;  %v4051_v54 = vld [vmem:[#allocation2 + $0x70c] ss:$4 sm:$0xff] }
 0x215   : > { %v315_v56 = vld [vmem:[%s27472_s15 + $0x120] sm:$0xff]  ;;  %v472_v52 = vld [vmem:[%s27472_s15 + $0x608] sm:$0xff] }
 0x216   : > { %24250 = vmatmul.mubr.msk.f32.gmra.mrb[2].mxu0 %vm535_vm1, %v10402_v57  ;;  %23534 = vmatmul.mubr.msk.f32.gmra.mrb[10].mxu1 %vm535_vm1, %v3559_v30  ;;  %v4031_v57 = vld [vmem:[#allocation2 + $0x16c] ss:$4 sm:$0xff]  ;;  %898 = vst.msk [vmem:[#allocation2 + $0x1d2] sm:$0xff] %vm535_vm1, %v315_v56  ;;  %1055 = vst.msk [vmem:[#allocation2 + $0x75a] sm:$0xff] %vm535_vm1, %v472_v52  ;;  %v11155_v52 = vld [vmem:[#allocation2 + $0x829] ss:$4 sm:$0xff] }
 0x217   : > { %24252 = vmatprep.mubr.msk.f32.mxu0 %vm535_vm1, %v10404_v58  ;;  %23536 = vmatprep.mubr.msk.f32.mxu1 %vm535_vm1, %v3561_v59  ;;  %v10665_v58 = vld [vmem:[#allocation2 + $0x7e7] ss:$4 sm:$0xff] }
 0x218   : > { %v316_v30 = vld [vmem:[%s27472_s15 + $0x128] sm:$0xff]  ;;  %v28496_v59 = vld [vmem:[%s30269_s1 + $0x54] sm:$0x3f]  ;;  %v475_v56 = vld [vmem:[%s27472_s15 + $0x620] sm:$0xff] }
 0x219   : > { %899 = vst.msk [vmem:[#allocation2 + $0x1da] sm:$0xff] %vm535_vm1, %v316_v30  ;;  %v478_v30 = vld [vmem:[%s27472_s15 + $0x638] sm:$0xff]  ;;  %1058 = vst.msk [vmem:[#allocation2 + $0x772] sm:$0xff] %vm535_vm1, %v475_v56 }
 0x21a   : > { %24253 = vmatmul.mubr.msk.f32.gmra.mrb[4].mxu0 %vm535_vm1, %v10406_v60  ;;  %23537 = vmatmul.mubr.msk.f32.gmra.mrb[12].mxu1 %vm535_vm1, %v3563_v61  ;;  %v317_v60 = vld [vmem:[%s27472_s15 + $0x130] sm:$0xff]  ;;  %1061 = vst.msk [vmem:[#allocation2 + $0x78a] sm:$0xff] %vm535_vm1, %v478_v30 }
 0x21b   : > { %24255 = vmatprep.mubr.msk.f32.mxu0 %vm535_vm1, %v10408_v9  ;;  %23539 = vmatprep.mubr.msk.f32.mxu1 %vm535_vm1, %v3565_v62  ;;  %v318_v9 = vld [vmem:[%s27472_s15 + $0x138] sm:$0xff]  ;;  %900 = vst.msk [vmem:[#allocation2 + $0x1e2] sm:$0xff] %vm535_vm1, %v317_v60  ;;  %v343_v62 = vld [vmem:[%s27472_s15 + $0x200] sm:$0xff] }
 0x21c   : > { %v4033_v61 = vld [vmem:[#allocation2 + $0x18c] ss:$4 sm:$0xff]  ;;  %901 = vst.msk [vmem:[#allocation2 + $0x1ea] sm:$0xff] %vm535_vm1, %v318_v9  ;;  %926 = vst.msk [vmem:[#allocation2 + $0x2d2] sm:$0xff] %vm535_vm1, %v343_v62  ;;  %v11159_v56 = vld [vmem:[#allocation2 + $0x949] ss:$4 sm:$0xff] }
 0x21d   : > { %v10898_v60 = vld [vmem:[#allocation2 + $0x4c8] ss:$4 sm:$0xff]  ;;  %v11161_v30 = vld [vmem:[#allocation2 + $0x969] ss:$4 sm:$0xff] }
 0x21e   : > { %24256 = vmatmul.mubr.msk.f32.gmra.mrb[6].mxu0 %vm535_vm1, %v10410_v63  ;;  %23540 = vmatmul.mubr.msk.f32.gmra.mrb[14].mxu1 %vm535_vm1, %v3567_v2  ;;  %v344_v63 = vld [vmem:[%s27472_s15 + $0x208] sm:$0xff]  ;;  %v345_v2 = vld [vmem:[%s27472_s15 + $0x210] sm:$0xff] }
 0x21f   : > { %24258 = vmatprep.mubr.msk.f32.mxu0 %vm535_vm1, %v10412_v0  ;;  %23544 = vmatprep.mubr.msk.f32.mxu1 %vm535_vm1, %v3782_v4  ;;  %v10667_v0 = vld [vmem:[#allocation2 + $0x807] ss:$4 sm:$0xff]  ;;  %927 = vst.msk [vmem:[#allocation2 + $0x2da] sm:$0xff] %vm535_vm1, %v344_v63  ;;  %928 = vst.msk [vmem:[#allocation2 + $0x2e2] sm:$0xff] %vm535_vm1, %v345_v2  ;;  %v4053_v9 = vld [vmem:[#allocation2 + $0x72c] ss:$4 sm:$0xff] }
 0x220   : > { %v346_v4 = vld [vmem:[%s27472_s15 + $0x218] sm:$0xff]  ;;  %v504_v62 = vld [vmem:[%s27472_s15 + $0x708] sm:$0xff]  ;;  %v505_v63 = vld [vmem:[%s27472_s15 + $0x710] sm:$0xff] }
 0x221   : > { %929 = vst.msk [vmem:[#allocation2 + $0x2ea] sm:$0xff] %vm535_vm1, %v346_v4  ;;  %v10900_v2 = vld [vmem:[#allocation2 + $0x4e8] ss:$4 sm:$0xff]  ;;  %1087 = vst.msk [vmem:[#allocation2 + $0x87a] sm:$0xff] %vm535_vm1, %v504_v62  ;;  %v11378_v62 = vld [vmem:[#allocation2 + $0x18a] ss:$4 sm:$0xff] }
 0x222   : > { %24259 = vmatmul.mubr.msk.f32.gmra.mrb[8].mxu0 %vm535_vm1, %v10414_v5  ;;  %23545 = vmatmul.mubr.msk.f32.vlgmr.msra.gmra.mrb[0].mxu1 %vm535_vm1, %v3784_v7  ;;  %v4035_v5 = vld [vmem:[#allocation2 + $0x28c] ss:$4 sm:$0xff]  ;;  %1088 = vst.msk [vmem:[#allocation2 + $0x882] sm:$0xff] %vm535_vm1, %v505_v63  ;;  %v11380_v63 = vld [vmem:[#allocation2 + $0x28a] ss:$4 sm:$0xff] }
 0x223   : > { %24261 = vmatprep.mubr.msk.f32.mxu0 %vm535_vm1, %v10416_v6  ;;  %23547 = vmatprep.mubr.msk.f32.mxu1 %vm535_vm1, %v3786_v10  ;;  %v347_v6 = vld [vmem:[%s27472_s15 + $0x220] sm:$0xff]  ;;  %v348_v7 = vld [vmem:[%s27472_s15 + $0x228] sm:$0xff] }
 0x224   : > { %23569 = vmatpush3.msk.msra.mxu1 %vm1231_vm0, %v28369_v41  ;;  %v280_v41 = vld [vmem:[%s27472_s15 + $0x8] sm:$0xff]  ;;  %930 = vst.msk [vmem:[#allocation2 + $0x2f2] sm:$0xff] %vm535_vm1, %v347_v6  ;;  %931 = vst.msk [vmem:[#allocation2 + $0x2fa] sm:$0xff] %vm535_vm1, %v348_v7  ;;  %v509_v7 = vld [vmem:[%s27472_s15 + $0x730] sm:$0xff] }
 0x225   : > { %23594 = vmatprep.subr.msk.mxu1 %vm1231_vm0, %v28419_v12  ;;  %863 = vst.msk [vmem:[#allocation2 + $0x9a] sm:$0xff] %vm535_vm1, %v280_v41  ;;  %v10669_v10 = vld [vmem:[#allocation2 + $0x907] ss:$4 sm:$0xff]  ;;  %v4055_v4 = vld [vmem:[#allocation2 + $0x82c] ss:$4 sm:$0xff]  ;;  %1092 = vst.msk [vmem:[#allocation2 + $0x8a2] sm:$0xff] %vm535_vm1, %v509_v7 }
 0x226   : > { %24262 = vmatmul.mubr.msk.f32.gmra.mrb[10].mxu0 %vm535_vm1, %v10418_v8  ;;  %23548 = vmatmul.mubr.msk.f32.gmra.mrb[2].mxu1 %vm535_vm1, %v3788_v14  ;;  %v349_v8 = vld [vmem:[%s27472_s15 + $0x230] sm:$0xff]  ;;  %v375_v14 = vld [vmem:[%s27472_s15 + $0x300] sm:$0xff]  ;;  %v508_v6 = vld [vmem:[%s27472_s15 + $0x728] sm:$0xff] }
 0x227   : > { %24264 = vmatprep.mubr.msk.f32.mxu0 %vm535_vm1, %v10420_v13  ;;  %23550 = vmatprep.mubr.msk.f32.mxu1 %vm535_vm1, %v3790_v15  ;;  %v4037_v13 = vld [vmem:[#allocation2 + $0x2ac] ss:$4 sm:$0xff]  ;;  %932 = vst.msk [vmem:[#allocation2 + $0x302] sm:$0xff] %vm535_vm1, %v349_v8  ;;  %958 = vst.msk [vmem:[#allocation2 + $0x3f2] sm:$0xff] %vm535_vm1, %v375_v14  ;;  %v4539_v7 = vld [vmem:[#allocation2 + $0x60e] ss:$4 sm:$0xff] }
 0x228   : > { %v376_v15 = vld [vmem:[%s27472_s15 + $0x308] sm:$0xff]  ;;  %v28572_v41 = vld [vmem:[%s30269_s1 + $0xfc] sm:$0x3f]  ;;  %1091 = vst.msk [vmem:[#allocation2 + $0x89a] sm:$0xff] %vm535_vm1, %v508_v6 }
 0x229   : > { %959 = vst.msk [vmem:[#allocation2 + $0x3fa] sm:$0xff] %vm535_vm1, %v376_v15  ;;  %v10902_v8 = vld [vmem:[#allocation2 + $0x5e8] ss:$4 sm:$0xff]  ;;  %v11384_v6 = vld [vmem:[#allocation2 + $0x3aa] ss:$4 sm:$0xff] }
 0x22a   : > { %24265 = vmatmul.mubr.msk.f32.gmra.mrb[12].mxu0 %vm535_vm1, %v10422_v16  ;;  %23551 = vmatmul.mubr.msk.f32.gmra.mrb[4].mxu1 %vm535_vm1, %v3792_v18  ;;  %v10671_v16 = vld [vmem:[#allocation2 + $0x927] ss:$4 sm:$0xff]  ;;  %v10904_v14 = vld [vmem:[#allocation2 + $0x608] ss:$4 sm:$0xff] }
 0x22b   : > { %24267 = vmatprep.mubr.msk.f32.mxu0 %vm535_vm1, %v10424_v17  ;;  %23553 = vmatprep.mubr.msk.f32.mxu1 %vm535_vm1, %v3794_v19  ;;  %v377_v17 = vld [vmem:[%s27472_s15 + $0x310] sm:$0xff]  ;;  %v378_v18 = vld [vmem:[%s27472_s15 + $0x318] sm:$0xff] }
 0x22c   : > { %v4039_v19 = vld [vmem:[#allocation2 + $0x3ac] ss:$4 sm:$0xff]  ;;  %960 = vst.msk [vmem:[#allocation2 + $0x402] sm:$0xff] %vm535_vm1, %v377_v17  ;;  %961 = vst.msk [vmem:[#allocation2 + $0x40a] sm:$0xff] %vm535_vm1, %v378_v18  ;;  %v4276_v17 = vld [vmem:[#allocation2 + $0x16d] ss:$4 sm:$0xff] }
 0x22d   : > { %v10906_v15 = vld [vmem:[#allocation2 + $0x708] ss:$4 sm:$0xff] }
 0x22e   : > { %24268 = vmatmul.mubr.msk.f32.gmra.mrb[14].mxu0 %vm535_vm1, %v10426_v3  ;;  %23554 = vmatmul.mubr.msk.f32.gmra.mrb[6].mxu1 %vm535_vm1, %v3796_v21  ;;  %v379_v3 = vld [vmem:[%s27472_s15 + $0x320] sm:$0xff] }
 0x22f   : > { %24272 = vmatprep.mubr.msk.f32.mxu0 %vm535_vm1, %v10641_v20  ;;  %23556 = vmatprep.mubr.msk.f32.mxu1 %vm535_vm1, %v3798_v22  ;;  %v380_v20 = vld [vmem:[%s27472_s15 + $0x328] sm:$0xff]  ;;  %v381_v22 = vld [vmem:[%s27472_s15 + $0x330] sm:$0xff]  ;;  %962 = vst.msk [vmem:[#allocation2 + $0x412] sm:$0xff] %vm535_vm1, %v379_v3 }
 0x230   : > { %v10886_v21 = vld [vmem:[#allocation2 + $0x168] ss:$4 sm:$0xff]  ;;  %963 = vst.msk [vmem:[#allocation2 + $0x41a] sm:$0xff] %vm535_vm1, %v380_v20  ;;  %964 = vst.msk [vmem:[#allocation2 + $0x422] sm:$0xff] %vm535_vm1, %v381_v22  ;;  %v4278_v20 = vld [vmem:[#allocation2 + $0x18d] ss:$4 sm:$0xff] }
 0x231   : > { %v10908_v18 = vld [vmem:[#allocation2 + $0x728] ss:$4 sm:$0xff] }
 0x232   : > { %24273 = vmatmul.mubr.msk.f32.vlgmr.msra.gmra.mrb[0].mxu0 %vm535_vm1, %v10643_v23  ;;  %23557 = vmatmul.mubr.msk.f32.gmra.mrb[8].mxu1 %vm535_vm1, %v3800_v25  ;;  %v382_v23 = vld [vmem:[%s27472_s15 + $0x338] sm:$0xff]  ;;  %v407_v25 = vld [vmem:[%s27472_s15 + $0x400] sm:$0xff] }
 0x233   : > { %24297 = vmatpush3.msk.msra.mxu0 %vm1231_vm0, %v28392_v55  ;;  %24275 = vmatprep.mubr.msk.f32.mxu0 %vm535_vm1, %v10645_v24  ;;  %v314_v55 = vld [vmem:[%s27472_s15 + $0x118] sm:$0xff]  ;;  %965 = vst.msk [vmem:[#allocation2 + $0x42a] sm:$0xff] %vm535_vm1, %v382_v23  ;;  %990 = vst.msk [vmem:[#allocation2 + $0x512] sm:$0xff] %vm535_vm1, %v407_v25 }
 0x234   : > { %24322 = vmatprep.subr.msk.mxu0 %vm1231_vm0, %v28442_v26  ;;  %23559 = vmatprep.mubr.msk.f32.mxu1 %vm535_vm1, %v3802_v27  ;;  %897 = vst.msk [vmem:[#allocation2 + $0x1ca] sm:$0xff] %vm535_vm1, %v314_v55  ;;  %v4041_v24 = vld [vmem:[#allocation2 + $0x3cc] ss:$4 sm:$0xff]  ;;  %v4284_v25 = vld [vmem:[#allocation2 + $0x3ad] ss:$4 sm:$0xff] }
 0x235   : > { %v408_v27 = vld [vmem:[%s27472_s15 + $0x408] sm:$0xff]  ;;  %v474_v55 = vld [vmem:[%s27472_s15 + $0x618] sm:$0xff] }
 0x236   : > { %24276 = vmatmul.mubr.msk.f32.gmra.mrb[2].mxu0 %vm535_vm1, %v10647_v28  ;;  %23560 = vmatmul.mubr.msk.f32.gmra.mrb[10].mxu1 %vm535_vm1, %v3804_v31  ;;  %v10888_v28 = vld [vmem:[#allocation2 + $0x188] ss:$4 sm:$0xff]  ;;  %991 = vst.msk [vmem:[#allocation2 + $0x51a] sm:$0xff] %vm535_vm1, %v408_v27  ;;  %1057 = vst.msk [vmem:[#allocation2 + $0x76a] sm:$0xff] %vm535_vm1, %v474_v55  ;;  %v11131_v27 = vld [vmem:[#allocation2 + $0x169] ss:$4 sm:$0xff] }
 0x237   : > { %24278 = vmatprep.mubr.msk.f32.mxu0 %vm535_vm1, %v10649_v29  ;;  %23562 = vmatprep.mubr.msk.f32.mxu1 %vm535_vm1, %v3806_v32  ;;  %v409_v29 = vld [vmem:[%s27472_s15 + $0x410] sm:$0xff]  ;;  %v410_v31 = vld [vmem:[%s27472_s15 + $0x418] sm:$0xff] }
 0x238   : > { %v4043_v32 = vld [vmem:[#allocation2 + $0x4cc] ss:$4 sm:$0xff]  ;;  %992 = vst.msk [vmem:[#allocation2 + $0x522] sm:$0xff] %vm535_vm1, %v409_v29  ;;  %993 = vst.msk [vmem:[#allocation2 + $0x52a] sm:$0xff] %vm535_vm1, %v410_v31  ;;  %v4288_v29 = vld [vmem:[#allocation2 + $0x4cd] ss:$4 sm:$0xff] }
 0x239   : > { %v10910_v3 = vld [vmem:[#allocation2 + $0x828] ss:$4 sm:$0xff]  ;;  %v11133_v31 = vld [vmem:[#allocation2 + $0x189] ss:$4 sm:$0xff] }
 0x23a   : > { %24279 = vmatmul.mubr.msk.f32.gmra.mrb[4].mxu0 %vm535_vm1, %v10651_v33  ;;  %23563 = vmatmul.mubr.msk.f32.gmra.mrb[12].mxu1 %vm535_vm1, %v3808_v35  ;;  %v411_v33 = vld [vmem:[%s27472_s15 + $0x420] sm:$0xff] }
 0x23b   : > { %24281 = vmatprep.mubr.msk.f32.mxu0 %vm535_vm1, %v10653_v34  ;;  %23565 = vmatprep.mubr.msk.f32.mxu1 %vm535_vm1, %v3810_v36  ;;  %v412_v34 = vld [vmem:[%s27472_s15 + $0x428] sm:$0xff]  ;;  %994 = vst.msk [vmem:[#allocation2 + $0x532] sm:$0xff] %vm535_vm1, %v411_v33 }
 0x23c   : > { %v10890_v35 = vld [vmem:[#allocation2 + $0x288] ss:$4 sm:$0xff]  ;;  %995 = vst.msk [vmem:[#allocation2 + $0x53a] sm:$0xff] %vm535_vm1, %v412_v34  ;;  %v4290_v33 = vld [vmem:[#allocation2 + $0x4ed] ss:$4 sm:$0xff] }
 0x23d   : > { %v4045_v36 = vld [vmem:[#allocation2 + $0x4ec] ss:$4 sm:$0xff]  ;;  %v11157_v55 = vld [vmem:[#allocation2 + $0x849] ss:$4 sm:$0xff] }
 0x23e   : > { %24282 = vmatmul.mubr.msk.f32.gmra.mrb[6].mxu0 %vm535_vm1, %v10655_v37  ;;  %23566 = vmatmul.mubr.msk.f32.gmra.mrb[14].mxu1 %vm535_vm1, %v3812_v39  ;;  %v413_v37 = vld [vmem:[%s27472_s15 + $0x430] sm:$0xff]  ;;  %v414_v39 = vld [vmem:[%s27472_s15 + $0x438] sm:$0xff]  ;;  %v28670_v34 = vld [vmem:[%s30269_s1 + $0x102] sm:$0x3f] }
 0x23f   : > { %24284 = vmatprep.mubr.msk.f32.mxu0 %vm535_vm1, %v10657_v38  ;;  %23570 = vmatprep.mubr.msk.f32.mxu1 %vm535_vm1, %v4027_v11  ;;  %v4047_v38 = vld [vmem:[#allocation2 + $0x5ec] ss:$4 sm:$0xff]  ;;  %996 = vst.msk [vmem:[#allocation2 + $0x542] sm:$0xff] %vm535_vm1, %v413_v37  ;;  %997 = vst.msk [vmem:[#allocation2 + $0x54a] sm:$0xff] %vm535_vm1, %v414_v39  ;;  %v11139_v37 = vld [vmem:[#allocation2 + $0x3a9] ss:$4 sm:$0xff] }
 0x240   : > { %v444_v11 = vld [vmem:[%s27472_s15 + $0x528] sm:$0xff] }
 0x241   : > { %1027 = vst.msk [vmem:[#allocation2 + $0x65a] sm:$0xff] %vm535_vm1, %v444_v11  ;;  %v10912_v22 = vld [vmem:[#allocation2 + $0x848] ss:$4 sm:$0xff]  ;;  %v4296_v39 = vld [vmem:[#allocation2 + $0x70d] ss:$4 sm:$0xff] }
 0x242   : > { %24285 = vmatmul.mubr.msk.f32.gmra.mrb[8].mxu0 %vm535_vm1, %v10659_v45  ;;  %23571 = vmatmul.mubr.msk.f32.vlgmr.msra.gmra.mrb[0].mxu1 %vm535_vm1, %v4029_v50  ;;  %v443_v45 = vld [vmem:[%s27472_s15 + $0x520] sm:$0xff] }
 0x243   : > { %24287 = vmatprep.mubr.msk.f32.mxu0 %vm535_vm1, %v10661_v47  ;;  %23573 = vmatprep.mubr.msk.f32.mxu1 %vm535_vm1, %v4031_v57  ;;  %v10894_v47 = vld [vmem:[#allocation2 + $0x3a8] ss:$4 sm:$0xff]  ;;  %1026 = vst.msk [vmem:[#allocation2 + $0x652] sm:$0xff] %vm535_vm1, %v443_v45  ;;  %v11147_v45 = vld [vmem:[#allocation2 + $0x5e9] ss:$4 sm:$0xff] }
 0x244   : > { %23595 = vmatpush3.msk.msra.mxu1 %vm1231_vm0, %v28419_v12  ;;  %v350_v12 = vld [vmem:[%s27472_s15 + $0x238] sm:$0xff]  ;;  %v471_v50 = vld [vmem:[%s27472_s15 + $0x600] sm:$0xff]  ;;  %v476_v57 = vld [vmem:[%s27472_s15 + $0x628] sm:$0xff] }
 0x245   : > { %23620 = vmatprep.subr.msk.mxu1 %vm1231_vm0, %v28496_v59  ;;  %933 = vst.msk [vmem:[#allocation2 + $0x30a] sm:$0xff] %vm535_vm1, %v350_v12  ;;  %1054 = vst.msk [vmem:[#allocation2 + $0x752] sm:$0xff] %vm535_vm1, %v471_v50  ;;  %v4057_v12 = vld [vmem:[#allocation2 + $0x84c] ss:$4 sm:$0xff]  ;;  %v4302_v11 = vld [vmem:[#allocation2 + $0x84d] ss:$4 sm:$0xff] }
 0x246   : > { %24288 = vmatmul.mubr.msk.f32.gmra.mrb[10].mxu0 %vm535_vm1, %v10663_v53  ;;  %23574 = vmatmul.mubr.msk.f32.gmra.mrb[2].mxu1 %vm535_vm1, %v4033_v61  ;;  %v473_v53 = vld [vmem:[%s27472_s15 + $0x610] sm:$0xff]  ;;  %1059 = vst.msk [vmem:[#allocation2 + $0x77a] sm:$0xff] %vm535_vm1, %v476_v57  ;;  %v503_v61 = vld [vmem:[%s27472_s15 + $0x700] sm:$0xff] }
 0x247   : > { %24290 = vmatprep.mubr.msk.f32.mxu0 %vm535_vm1, %v10665_v58  ;;  %23576 = vmatprep.mubr.msk.f32.mxu1 %vm535_vm1, %v4035_v5  ;;  %1056 = vst.msk [vmem:[#allocation2 + $0x762] sm:$0xff] %vm535_vm1, %v473_v53  ;;  %v477_v58 = vld [vmem:[%s27472_s15 + $0x630] sm:$0xff]  ;;  %1086 = vst.msk [vmem:[#allocation2 + $0x872] sm:$0xff] %vm535_vm1, %v503_v61  ;;  %v507_v5 = vld [vmem:[%s27472_s15 + $0x720] sm:$0xff] }
 0x248   : > { %1060 = vst.msk [vmem:[#allocation2 + $0x782] sm:$0xff] %vm535_vm1, %v477_v58  ;;  %1090 = vst.msk [vmem:[#allocation2 + $0x892] sm:$0xff] %vm535_vm1, %v507_v5  ;;  %v10914_v23 = vld [vmem:[#allocation2 + $0x948] ss:$4 sm:$0xff]  ;;  %v11153_v50 = vld [vmem:[#allocation2 + $0x729] ss:$4 sm:$0xff] }
 0x249   : > { %v4523_v53 = vld [vmem:[#allocation2 + $0x18e] ss:$4 sm:$0xff] }
 0x24a   : > { %24291 = vmatmul.mubr.msk.f32.gmra.mrb[12].mxu0 %vm535_vm1, %v10667_v0  ;;  %23577 = vmatmul.mubr.msk.f32.gmra.mrb[4].mxu1 %vm535_vm1, %v4037_v13  ;;  %v506_v0 = vld [vmem:[%s27472_s15 + $0x718] sm:$0xff] }
 0x24b   : > { %24293 = vmatprep.mubr.msk.f32.mxu0 %vm535_vm1, %v10669_v10  ;;  %23579 = vmatprep.mubr.msk.f32.mxu1 %vm535_vm1, %v4039_v19  ;;  %1089 = vst.msk [vmem:[#allocation2 + $0x88a] sm:$0xff] %vm535_vm1, %v506_v0  ;;  %v510_v10 = vld [vmem:[%s27472_s15 + $0x738] sm:$0xff] }
 0x24c   : > { %1093 = vst.msk [vmem:[#allocation2 + $0x8aa] sm:$0xff] %vm535_vm1, %v510_v10  ;;  %v4272_v13 = vld [vmem:[#allocation2 + $0x4d] ss:$4 sm:$0xff]  ;;  %v4527_v57 = vld [vmem:[#allocation2 + $0x2ae] ss:$4 sm:$0xff] }
 0x24d   : > { %v28647_v19 = vld [vmem:[%s30269_s1 + $0x5a] sm:$0x3f] }
 0x24e   : > { %24294 = vmatmul.mubr.msk.f32.gmra.mrb[14].mxu0 %vm535_vm1, %v10671_v16  ;;  %23580 = vmatmul.mubr.msk.f32.gmra.mrb[6].mxu1 %vm535_vm1, %v4041_v24  ;;  %v4274_v16 = vld [vmem:[#allocation2 + $0x6d] ss:$4 sm:$0xff]  ;;  %v4529_v58 = vld [vmem:[#allocation2 + $0x3ae] ss:$4 sm:$0xff] }
 0x24f   : > { %24298 = vmatprep.mubr.msk.f32.mxu0 %vm535_vm1, %v10886_v21  ;;  %23582 = vmatprep.mubr.msk.f32.mxu1 %vm535_vm1, %v4043_v32  ;;  %v4280_v21 = vld [vmem:[#allocation2 + $0x28d] ss:$4 sm:$0xff]  ;;  %v4533_v61 = vld [vmem:[#allocation2 + $0x4ce] ss:$4 sm:$0xff] }
 0x250   : > { %v4282_v24 = vld [vmem:[#allocation2 + $0x2ad] ss:$4 sm:$0xff]  ;;  %v4535_v0 = vld [vmem:[#allocation2 + $0x4ee] ss:$4 sm:$0xff] }
 0x251   : > { %v11135_v32 = vld [vmem:[#allocation2 + $0x289] ss:$4 sm:$0xff]  ;;  %v11382_v5 = vld [vmem:[#allocation2 + $0x2aa] ss:$4 sm:$0xff] }
 0x252   : > { %24299 = vmatmul.mubr.msk.f32.vlgmr.msra.gmra.mrb[0].mxu0 %vm535_vm1, %v10888_v28  ;;  %23583 = vmatmul.mubr.msk.f32.gmra.mrb[8].mxu1 %vm535_vm1, %v4045_v36  ;;  %v4286_v28 = vld [vmem:[#allocation2 + $0x3cd] ss:$4 sm:$0xff]  ;;  %v4541_v10 = vld [vmem:[#allocation2 + $0x70e] ss:$4 sm:$0xff] }
 0x253   : > { %24323 = vmatpush3.msk.msra.mxu0 %vm1231_vm0, %v28442_v26  ;;  %24301 = vmatprep.mubr.msk.f32.mxu0 %vm535_vm1, %v10890_v35  ;;  %v446_v26 = vld [vmem:[%s27472_s15 + $0x538] sm:$0xff] }
 0x254   : > { %24348 = vmatprep.subr.msk.mxu0 %vm1231_vm0, %v28572_v41  ;;  %23585 = vmatprep.mubr.msk.f32.mxu1 %vm535_vm1, %v4047_v38  ;;  %1029 = vst.msk [vmem:[#allocation2 + $0x66a] sm:$0xff] %vm535_vm1, %v446_v26  ;;  %v4292_v35 = vld [vmem:[#allocation2 + $0x5ed] ss:$4 sm:$0xff]  ;;  %v4521_v26 = vld [vmem:[#allocation2 + $0x16e] ss:$4 sm:$0xff] }
 0x255   : > { %v11137_v36 = vld [vmem:[#allocation2 + $0x2a9] ss:$4 sm:$0xff] }
 0x256   : > { %24302 = vmatmul.mubr.msk.f32.gmra.mrb[2].mxu0 %vm535_vm1, %v10892_v46  ;;  %23586 = vmatmul.mubr.msk.f32.gmra.mrb[10].mxu1 %vm535_vm1, %v4049_v49  ;;  %v4294_v38 = vld [vmem:[#allocation2 + $0x60d] ss:$4 sm:$0xff]  ;;  %v4517_v46 = vld [vmem:[#allocation2 + $0x4e] ss:$4 sm:$0xff] }
 0x257   : > { %24304 = vmatprep.mubr.msk.f32.mxu0 %vm535_vm1, %v10894_v47  ;;  %23588 = vmatprep.mubr.msk.f32.mxu1 %vm535_vm1, %v4051_v54  ;;  %v11149_v47 = vld [vmem:[#allocation2 + $0x609] ss:$4 sm:$0xff]  ;;  %v4519_v49 = vld [vmem:[#allocation2 + $0x6e] ss:$4 sm:$0xff] }
 0x258   : > { %v4525_v54 = vld [vmem:[#allocation2 + $0x28e] ss:$4 sm:$0xff] }
 0x25a   : > { %24305 = vmatmul.mubr.msk.f32.gmra.mrb[4].mxu0 %vm535_vm1, %v10896_v51  ;;  %23589 = vmatmul.mubr.msk.f32.gmra.mrb[12].mxu1 %vm535_vm1, %v4053_v9  ;;  %v28697_v51 = vld [vmem:[%s30269_s1 + $0x60] sm:$0x3f] }
 0x25b   : > { %24307 = vmatprep.mubr.msk.f32.mxu0 %vm535_vm1, %v10898_v60  ;;  %23591 = vmatprep.mubr.msk.f32.mxu1 %vm535_vm1, %v4055_v4  ;;  %v11376_v60 = vld [vmem:[#allocation2 + $0x16a] ss:$4 sm:$0xff] }
 0x25c   : > { %v4531_v9 = vld [vmem:[#allocation2 + $0x3ce] ss:$4 sm:$0xff] }
 0x25d   : > { %v4537_v4 = vld [vmem:[#allocation2 + $0x5ee] ss:$4 sm:$0xff] }
 0x25e   : > { %24308 = vmatmul.mubr.msk.f32.gmra.mrb[6].mxu0 %vm535_vm1, %v10900_v2  ;;  %23592 = vmatmul.mubr.msk.f32.gmra.mrb[14].mxu1 %vm535_vm1, %v4057_v12  ;;  %v28720_v2 = vld [vmem:[%s30269_s1 + $0x108] sm:$0x3f] }
 0x25f   : > { %24310 = vmatprep.mubr.msk.f32.mxu0 %vm535_vm1, %v10902_v8  ;;  %23596 = vmatprep.mubr.msk.f32.mxu1 %vm535_vm1, %v4272_v13  ;;  %v11386_v8 = vld [vmem:[#allocation2 + $0x3ca] ss:$4 sm:$0xff] }
 0x260   : > { %v11388_v12 = vld [vmem:[#allocation2 + $0x4ca] ss:$4 sm:$0xff] }
 0x261   : > { %v4543_v13 = vld [vmem:[#allocation2 + $0x72e] ss:$4 sm:$0xff] }
 0x262   : > { %24311 = vmatmul.mubr.msk.f32.gmra.mrb[8].mxu0 %vm535_vm1, %v10904_v14  ;;  %23597 = vmatmul.mubr.msk.f32.vlgmr.msra.gmra.mrb[0].mxu1 %vm535_vm1, %v4274_v16  ;;  %v4545_v14 = vld [vmem:[#allocation2 + $0x82e] ss:$4 sm:$0xff] }
 0x263   : > { %24313 = vmatprep.mubr.msk.f32.mxu0 %vm535_vm1, %v10906_v15  ;;  %23599 = vmatprep.mubr.msk.f32.mxu1 %vm535_vm1, %v4276_v17  ;;  %v11390_v15 = vld [vmem:[#allocation2 + $0x4ea] ss:$4 sm:$0xff] }
 0x264   : > { %23621 = vmatpush3.msk.msra.mxu1 %vm1231_vm0, %v28496_v59  ;;  %v10916_v59 = vld [vmem:[#allocation2 + $0x968] ss:$4 sm:$0xff]  ;;  %v11392_v16 = vld [vmem:[#allocation2 + $0x5ea] ss:$4 sm:$0xff] }
 0x265   : > { %23646 = vmatprep.subr.msk.mxu1 %vm1231_vm0, %v28647_v19  ;;  %v4547_v17 = vld [vmem:[#allocation2 + $0x84e] ss:$4 sm:$0xff] }
 0x266   : > { %24314 = vmatmul.mubr.msk.f32.gmra.mrb[10].mxu0 %vm535_vm1, %v10908_v18  ;;  %23600 = vmatmul.mubr.msk.f32.gmra.mrb[2].mxu1 %vm535_vm1, %v4278_v20  ;;  %v4762_v18 = vld [vmem:[#allocation2 + $0x4f] ss:$4 sm:$0xff] }
 0x267   : > { %24316 = vmatprep.mubr.msk.f32.mxu0 %vm535_vm1, %v10910_v3  ;;  %23602 = vmatprep.mubr.msk.f32.mxu1 %vm535_vm1, %v4280_v21  ;;  %v11396_v3 = vld [vmem:[#allocation2 + $0x70a] ss:$4 sm:$0xff]  ;;  %v4764_v20 = vld [vmem:[#allocation2 + $0x6f] ss:$4 sm:$0xff] }
 0x268   : > { %v4766_v21 = vld [vmem:[#allocation2 + $0x16f] ss:$4 sm:$0xff] }
 0x26a   : > { %24317 = vmatmul.mubr.msk.f32.gmra.mrb[12].mxu0 %vm535_vm1, %v10912_v22  ;;  %23603 = vmatmul.mubr.msk.f32.gmra.mrb[4].mxu1 %vm535_vm1, %v4282_v24  ;;  %v11398_v22 = vld [vmem:[#allocation2 + $0x72a] ss:$4 sm:$0xff] }
 0x26b   : > { %24319 = vmatprep.mubr.msk.f32.mxu0 %vm535_vm1, %v10914_v23  ;;  %23605 = vmatprep.mubr.msk.f32.mxu1 %vm535_vm1, %v4284_v25  ;;  %v28747_v23 = vld [vmem:[%s30269_s1 + $0x66] sm:$0x3f] }
 0x26c   : > { %v11400_v24 = vld [vmem:[#allocation2 + $0x82a] ss:$4 sm:$0xff]  ;;  %v4768_v25 = vld [vmem:[#allocation2 + $0x18f] ss:$4 sm:$0xff] }
 0x26e   : > { %24320 = vmatmul.mubr.msk.f32.gmra.mrb[14].mxu0 %vm535_vm1, %v10916_v59  ;;  %23606 = vmatmul.mubr.msk.f32.gmra.mrb[6].mxu1 %vm535_vm1, %v4286_v28  ;;  %v4770_v59 = vld [vmem:[#allocation2 + $0x28f] ss:$4 sm:$0xff]  ;;  %v11404_v28 = vld [vmem:[#allocation2 + $0x94a] ss:$4 sm:$0xff] }
 0x26f   : > { %24324 = vmatprep.mubr.msk.f32.mxu0 %vm535_vm1, %v11131_v27  ;;  %23608 = vmatprep.mubr.msk.f32.mxu1 %vm535_vm1, %v4288_v29  ;;  %v11402_v27 = vld [vmem:[#allocation2 + $0x84a] ss:$4 sm:$0xff]  ;;  %v4772_v29 = vld [vmem:[#allocation2 + $0x2af] ss:$4 sm:$0xff] }
 0x272   : > { %24325 = vmatmul.mubr.msk.f32.vlgmr.msra.gmra.mrb[0].mxu0 %vm535_vm1, %v11133_v31  ;;  %23609 = vmatmul.mubr.msk.f32.gmra.mrb[8].mxu1 %vm535_vm1, %v4290_v33  ;;  %v4774_v31 = vld [vmem:[#allocation2 + $0x3af] ss:$4 sm:$0xff] }
 0x273   : > { %24349 = vmatpush3.msk.msra.mxu0 %vm1231_vm0, %v28572_v41  ;;  %24327 = vmatprep.mubr.msk.f32.mxu0 %vm535_vm1, %v11135_v32  ;;  %v11143_v41 = vld [vmem:[#allocation2 + $0x4c9] ss:$4 sm:$0xff]  ;;  %v11406_v32 = vld [vmem:[#allocation2 + $0x96a] ss:$4 sm:$0xff]  ;;  %v11621_v33 = vld [vmem:[#allocation2 + $0x16b] ss:$4 sm:$0xff] }
 0x274   : > { %24374 = vmatprep.subr.msk.mxu0 %vm1231_vm0, %v28670_v34  ;;  %23611 = vmatprep.mubr.msk.f32.mxu1 %vm535_vm1, %v4292_v35  ;;  %v4778_v35 = vld [vmem:[#allocation2 + $0x4cf] ss:$4 sm:$0xff] }
 0x276   : > { %24328 = vmatmul.mubr.msk.f32.gmra.mrb[2].mxu0 %vm535_vm1, %v11137_v36  ;;  %23612 = vmatmul.mubr.msk.f32.gmra.mrb[10].mxu1 %vm535_vm1, %v4294_v38  ;;  %v11623_v36 = vld [vmem:[#allocation2 + $0x18b] ss:$4 sm:$0xff] }
 0x277   : > { %24330 = vmatprep.mubr.msk.f32.mxu0 %vm535_vm1, %v11139_v37  ;;  %23614 = vmatprep.mubr.msk.f32.mxu1 %vm535_vm1, %v4296_v39  ;;  %v11625_v37 = vld [vmem:[#allocation2 + $0x28b] ss:$4 sm:$0xff] }
 0x278   : > { %v4780_v38 = vld [vmem:[#allocation2 + $0x4ef] ss:$4 sm:$0xff] }
 0x279   : > { %v28770_v39 = vld [vmem:[%s30269_s1 + $0x10e] sm:$0x3f] }
 0x27a   : > { %24331 = vmatmul.mubr.msk.f32.gmra.mrb[4].mxu0 %vm535_vm1, %v11141_v40  ;;  %23615 = vmatmul.mubr.msk.f32.gmra.mrb[12].mxu1 %vm535_vm1, %v4298_v42  ;;  %v4782_v40 = vld [vmem:[#allocation2 + $0x5ef] ss:$4 sm:$0xff] }
 0x27b   : > { %24333 = vmatprep.mubr.msk.f32.mxu0 %vm535_vm1, %v11143_v41  ;;  %23617 = vmatprep.mubr.msk.f32.mxu1 %vm535_vm1, %v4300_v43  ;;  %v11627_v41 = vld [vmem:[#allocation2 + $0x2ab] ss:$4 sm:$0xff] }
 0x27c   : > { %v11629_v42 = vld [vmem:[#allocation2 + $0x3ab] ss:$4 sm:$0xff] }
 0x27d   : > { %v4784_v43 = vld [vmem:[#allocation2 + $0x60f] ss:$4 sm:$0xff] }
 0x27e   : > { %24334 = vmatmul.mubr.msk.f32.gmra.mrb[6].mxu0 %vm535_vm1, %v11145_v44  ;;  %23618 = vmatmul.mubr.msk.f32.gmra.mrb[14].mxu1 %vm535_vm1, %v4302_v11  ;;  %v4786_v44 = vld [vmem:[#allocation2 + $0x70f] ss:$4 sm:$0xff] }
 0x27f   : > { %24336 = vmatprep.mubr.msk.f32.mxu0 %vm535_vm1, %v11147_v45  ;;  %23622 = vmatprep.mubr.msk.f32.mxu1 %vm535_vm1, %v4517_v46  ;;  %v11631_v45 = vld [vmem:[#allocation2 + $0x3cb] ss:$4 sm:$0xff] }
 0x280   : > { %v11633_v11 = vld [vmem:[#allocation2 + $0x4cb] ss:$4 sm:$0xff] }
 0x281   : > { %v4788_v46 = vld [vmem:[#allocation2 + $0x72f] ss:$4 sm:$0xff] }
 0x282   : > { %24337 = vmatmul.mubr.msk.f32.gmra.mrb[8].mxu0 %vm535_vm1, %v11149_v47  ;;  %23623 = vmatmul.mubr.msk.f32.vlgmr.msra.gmra.mrb[0].mxu1 %vm535_vm1, %v4519_v49  ;;  %v4790_v47 = vld [vmem:[#allocation2 + $0x82f] ss:$4 sm:$0xff] }
 0x283   : > { %24339 = vmatprep.mubr.msk.f32.mxu0 %vm535_vm1, %v11151_v48  ;;  %23625 = vmatprep.mubr.msk.f32.mxu1 %vm535_vm1, %v4521_v26  ;;  %v11635_v48 = vld [vmem:[#allocation2 + $0x4eb] ss:$4 sm:$0xff] }
 0x284   : > { %23647 = vmatpush3.msk.msra.mxu1 %vm1231_vm0, %v28647_v19  ;;  %v11394_v19 = vld [vmem:[#allocation2 + $0x60a] ss:$4 sm:$0xff]  ;;  %v11637_v49 = vld [vmem:[#allocation2 + $0x5eb] ss:$4 sm:$0xff] }
 0x285   : > { %23672 = vmatprep.subr.msk.mxu1 %vm1231_vm0, %v28697_v51  ;;  %v4792_v26 = vld [vmem:[#allocation2 + $0x84f] ss:$4 sm:$0xff] }
 0x286   : > { %24340 = vmatmul.mubr.msk.f32.gmra.mrb[10].mxu0 %vm535_vm1, %v11153_v50  ;;  %23626 = vmatmul.mubr.msk.f32.gmra.mrb[2].mxu1 %vm535_vm1, %v4523_v53  ;;  %v5006_v50 = vld [vmem:[#allocation2 + $0x90] ss:$4 sm:$0xff] }
 0x287   : > { %24342 = vmatprep.mubr.msk.f32.mxu0 %vm535_vm1, %v11155_v52  ;;  %23628 = vmatprep.mubr.msk.f32.mxu1 %vm535_vm1, %v4525_v54  ;;  %v11641_v52 = vld [vmem:[#allocation2 + $0x70b] ss:$4 sm:$0xff]  ;;  %v5008_v53 = vld [vmem:[#allocation2 + $0xb0] ss:$4 sm:$0xff] }
 0x288   : > { %v5010_v54 = vld [vmem:[#allocation2 + $0x1b0] ss:$4 sm:$0xff] }
 0x28a   : > { %24343 = vmatmul.mubr.msk.f32.gmra.mrb[12].mxu0 %vm535_vm1, %v11157_v55  ;;  %23629 = vmatmul.mubr.msk.f32.gmra.mrb[4].mxu1 %vm535_vm1, %v4527_v57  ;;  %v11643_v55 = vld [vmem:[#allocation2 + $0x72b] ss:$4 sm:$0xff] }
 0x28b   : > { %24345 = vmatprep.mubr.msk.f32.mxu0 %vm535_vm1, %v11159_v56  ;;  %23631 = vmatprep.mubr.msk.f32.mxu1 %vm535_vm1, %v4529_v58  ;;  %v28797_v56 = vld [vmem:[%s30269_s1 + $0x6c] sm:$0x3f] }
 0x28c   : > { %v11645_v57 = vld [vmem:[#allocation2 + $0x82b] ss:$4 sm:$0xff]  ;;  %v5012_v58 = vld [vmem:[#allocation2 + $0x1d0] ss:$4 sm:$0xff] }
 0x28e   : > { %24346 = vmatmul.mubr.msk.f32.gmra.mrb[14].mxu0 %vm535_vm1, %v11161_v30  ;;  %23632 = vmatmul.mubr.msk.f32.gmra.mrb[6].mxu1 %vm535_vm1, %v4531_v9  ;;  %v5014_v30 = vld [vmem:[#allocation2 + $0x2d0] ss:$4 sm:$0xff]  ;;  %v11649_v9 = vld [vmem:[#allocation2 + $0x94b] ss:$4 sm:$0xff] }
 0x28f   : > { %24350 = vmatprep.mubr.msk.f32.mxu0 %vm535_vm1, %v11376_v60  ;;  %23634 = vmatprep.mubr.msk.f32.mxu1 %vm535_vm1, %v4533_v61  ;;  %v11647_v60 = vld [vmem:[#allocation2 + $0x84b] ss:$4 sm:$0xff]  ;;  %v5016_v61 = vld [vmem:[#allocation2 + $0x2f0] ss:$4 sm:$0xff] }
 0x292   : > { %24351 = vmatmul.mubr.msk.f32.vlgmr.msra.gmra.mrb[0].mxu0 %vm535_vm1, %v11378_v62  ;;  %23635 = vmatmul.mubr.msk.f32.gmra.mrb[8].mxu1 %vm535_vm1, %v4535_v0  ;;  %v5018_v62 = vld [vmem:[#allocation2 + $0x3f0] ss:$4 sm:$0xff] }
 0x293   : > { %24375 = vmatpush3.msk.msra.mxu0 %vm1231_vm0, %v28670_v34  ;;  %24353 = vmatprep.mubr.msk.f32.mxu0 %vm535_vm1, %v11380_v63  ;;  %v4776_v34 = vld [vmem:[#allocation2 + $0x3cf] ss:$4 sm:$0xff]  ;;  %v11866_v0 = vld [vmem:[#allocation2 + $0x16c] ss:$4 sm:$0xff] }
 0x294   : > { %24400 = vmatprep.subr.msk.mxu0 %vm1231_vm0, %v28720_v2  ;;  %23637 = vmatprep.mubr.msk.f32.mxu1 %vm535_vm1, %v4537_v4  ;;  %v11651_v63 = vld [vmem:[#allocation2 + $0x96b] ss:$4 sm:$0xff]  ;;  %v5022_v4 = vld [vmem:[#allocation2 + $0x510] ss:$4 sm:$0xff] }
 0x296   : > { %24354 = vmatmul.mubr.msk.f32.gmra.mrb[2].mxu0 %vm535_vm1, %v11382_v5  ;;  %23638 = vmatmul.mubr.msk.f32.gmra.mrb[10].mxu1 %vm535_vm1, %v4539_v7  ;;  %v11868_v5 = vld [vmem:[#allocation2 + $0x18c] ss:$4 sm:$0xff] }
 0x297   : > { %24356 = vmatprep.mubr.msk.f32.mxu0 %vm535_vm1, %v11384_v6  ;;  %23640 = vmatprep.mubr.msk.f32.mxu1 %vm535_vm1, %v4541_v10  ;;  %v11870_v6 = vld [vmem:[#allocation2 + $0x28c] ss:$4 sm:$0xff] }
 0x298   : > { %v5024_v7 = vld [vmem:[#allocation2 + $0x530] ss:$4 sm:$0xff] }
 0x299   : > { %v28820_v10 = vld [vmem:[%s30269_s1 + $0x114] sm:$0x3f] }
 0x29a   : > { %24357 = vmatmul.mubr.msk.f32.gmra.mrb[4].mxu0 %vm535_vm1, %v11386_v8  ;;  %23641 = vmatmul.mubr.msk.f32.gmra.mrb[12].mxu1 %vm535_vm1, %v4543_v13  ;;  %v5026_v8 = vld [vmem:[#allocation2 + $0x630] ss:$4 sm:$0xff] }
 0x29b   : > { %24359 = vmatprep.mubr.msk.f32.mxu0 %vm535_vm1, %v11388_v12  ;;  %23643 = vmatprep.mubr.msk.f32.mxu1 %vm535_vm1, %v4545_v14  ;;  %v11872_v12 = vld [vmem:[#allocation2 + $0x2ac] ss:$4 sm:$0xff] }
 0x29c   : > { %v11874_v13 = vld [vmem:[#allocation2 + $0x3ac] ss:$4 sm:$0xff] }
 0x29d   : > { %v5028_v14 = vld [vmem:[#allocation2 + $0x650] ss:$4 sm:$0xff] }
 0x29e   : > { %24360 = vmatmul.mubr.msk.f32.gmra.mrb[6].mxu0 %vm535_vm1, %v11390_v15  ;;  %23644 = vmatmul.mubr.msk.f32.gmra.mrb[14].mxu1 %vm535_vm1, %v4547_v17  ;;  %v5030_v15 = vld [vmem:[#allocation2 + $0x750] ss:$4 sm:$0xff] }
 0x29f   : > { %24362 = vmatprep.mubr.msk.f32.mxu0 %vm535_vm1, %v11392_v16  ;;  %23648 = vmatprep.mubr.msk.f32.mxu1 %vm535_vm1, %v4762_v18  ;;  %v11876_v16 = vld [vmem:[#allocation2 + $0x3cc] ss:$4 sm:$0xff] }
 0x2a0   : > { %v11878_v17 = vld [vmem:[#allocation2 + $0x4cc] ss:$4 sm:$0xff] }
 0x2a1   : > { %v5032_v18 = vld [vmem:[#allocation2 + $0x770] ss:$4 sm:$0xff] }
 0x2a2   : > { %24363 = vmatmul.mubr.msk.f32.gmra.mrb[8].mxu0 %vm535_vm1, %v11394_v19  ;;  %23649 = vmatmul.mubr.msk.f32.vlgmr.msra.gmra.mrb[0].mxu1 %vm535_vm1, %v4764_v20  ;;  %v5034_v19 = vld [vmem:[#allocation2 + $0x870] ss:$4 sm:$0xff] }
 0x2a3   : > { %24365 = vmatprep.mubr.msk.f32.mxu0 %vm535_vm1, %v11396_v3  ;;  %23651 = vmatprep.mubr.msk.f32.mxu1 %vm535_vm1, %v4766_v21  ;;  %v11880_v3 = vld [vmem:[#allocation2 + $0x4ec] ss:$4 sm:$0xff] }
 0x2a4   : > { %23673 = vmatpush3.msk.msra.mxu1 %vm1231_vm0, %v28697_v51  ;;  %v11639_v51 = vld [vmem:[#allocation2 + $0x60b] ss:$4 sm:$0xff]  ;;  %v11882_v20 = vld [vmem:[#allocation2 + $0x5ec] ss:$4 sm:$0xff] }
 0x2a5   : > { %23698 = vmatprep.subr.msk.mxu1 %vm1231_vm0, %v28747_v23  ;;  %v5036_v21 = vld [vmem:[#allocation2 + $0x890] ss:$4 sm:$0xff] }
 0x2a6   : > { %24366 = vmatmul.mubr.msk.f32.gmra.mrb[10].mxu0 %vm535_vm1, %v11398_v22  ;;  %23652 = vmatmul.mubr.msk.f32.gmra.mrb[2].mxu1 %vm535_vm1, %v4768_v25  ;;  %v5251_v22 = vld [vmem:[#allocation2 + $0x91] ss:$4 sm:$0xff] }
 0x2a7   : > { %24368 = vmatprep.mubr.msk.f32.mxu0 %vm535_vm1, %v11400_v24  ;;  %23654 = vmatprep.mubr.msk.f32.mxu1 %vm535_vm1, %v4770_v59  ;;  %v11886_v24 = vld [vmem:[#allocation2 + $0x70c] ss:$4 sm:$0xff]  ;;  %v5253_v25 = vld [vmem:[#allocation2 + $0xb1] ss:$4 sm:$0xff] }
 0x2a8   : > { %v5255_v59 = vld [vmem:[#allocation2 + $0x1b1] ss:$4 sm:$0xff] }
 0x2aa   : > { %24369 = vmatmul.mubr.msk.f32.gmra.mrb[12].mxu0 %vm535_vm1, %v11402_v27  ;;  %23655 = vmatmul.mubr.msk.f32.gmra.mrb[4].mxu1 %vm535_vm1, %v4772_v29  ;;  %v11888_v27 = vld [vmem:[#allocation2 + $0x72c] ss:$4 sm:$0xff] }
 0x2ab   : > { %24371 = vmatprep.mubr.msk.f32.mxu0 %vm535_vm1, %v11404_v28  ;;  %23657 = vmatprep.mubr.msk.f32.mxu1 %vm535_vm1, %v4774_v31  ;;  %v28847_v28 = vld [vmem:[%s30269_s1 + $0x72] sm:$0x3f] }
 0x2ac   : > { %v11890_v29 = vld [vmem:[#allocation2 + $0x82c] ss:$4 sm:$0xff]  ;;  %v5257_v31 = vld [vmem:[#allocation2 + $0x1d1] ss:$4 sm:$0xff] }
 0x2ae   : > { %24372 = vmatmul.mubr.msk.f32.gmra.mrb[14].mxu0 %vm535_vm1, %v11406_v32  ;;  %23658 = vmatmul.mubr.msk.f32.gmra.mrb[6].mxu1 %vm535_vm1, %v4776_v34  ;;  %v5259_v32 = vld [vmem:[#allocation2 + $0x2d1] ss:$4 sm:$0xff]  ;;  %v11894_v34 = vld [vmem:[#allocation2 + $0x94c] ss:$4 sm:$0xff] }
 0x2af   : > { %24376 = vmatprep.mubr.msk.f32.mxu0 %vm535_vm1, %v11621_v33  ;;  %23660 = vmatprep.mubr.msk.f32.mxu1 %vm535_vm1, %v4778_v35  ;;  %v11892_v33 = vld [vmem:[#allocation2 + $0x84c] ss:$4 sm:$0xff]  ;;  %v5261_v35 = vld [vmem:[#allocation2 + $0x2f1] ss:$4 sm:$0xff] }
 0x2b2   : > { %24377 = vmatmul.mubr.msk.f32.vlgmr.msra.gmra.mrb[0].mxu0 %vm535_vm1, %v11623_v36  ;;  %23661 = vmatmul.mubr.msk.f32.gmra.mrb[8].mxu1 %vm535_vm1, %v4780_v38  ;;  %v5263_v36 = vld [vmem:[#allocation2 + $0x3f1] ss:$4 sm:$0xff] }
 0x2b3   : > { %24401 = vmatpush3.msk.msra.mxu0 %vm1231_vm0, %v28720_v2  ;;  %24379 = vmatprep.mubr.msk.f32.mxu0 %vm535_vm1, %v11625_v37  ;;  %v5020_v2 = vld [vmem:[#allocation2 + $0x410] ss:$4 sm:$0xff]  ;;  %v12111_v38 = vld [vmem:[#allocation2 + $0x16d] ss:$4 sm:$0xff] }
 0x2b4   : > { %24426 = vmatprep.subr.msk.mxu0 %vm1231_vm0, %v28770_v39  ;;  %23663 = vmatprep.mubr.msk.f32.mxu1 %vm535_vm1, %v4782_v40  ;;  %v11896_v37 = vld [vmem:[#allocation2 + $0x96c] ss:$4 sm:$0xff]  ;;  %v5267_v40 = vld [vmem:[#allocation2 + $0x511] ss:$4 sm:$0xff] }
 0x2b6   : > { %24380 = vmatmul.mubr.msk.f32.gmra.mrb[2].mxu0 %vm535_vm1, %v11627_v41  ;;  %23664 = vmatmul.mubr.msk.f32.gmra.mrb[10].mxu1 %vm535_vm1, %v4784_v43  ;;  %v12113_v41 = vld [vmem:[#allocation2 + $0x18d] ss:$4 sm:$0xff] }
 0x2b7   : > { %24382 = vmatprep.mubr.msk.f32.mxu0 %vm535_vm1, %v11629_v42  ;;  %23666 = vmatprep.mubr.msk.f32.mxu1 %vm535_vm1, %v4786_v44  ;;  %v12115_v42 = vld [vmem:[#allocation2 + $0x28d] ss:$4 sm:$0xff] }
 0x2b8   : > { %v5269_v43 = vld [vmem:[#allocation2 + $0x531] ss:$4 sm:$0xff] }
 0x2b9   : > { %v28870_v44 = vld [vmem:[%s30269_s1 + $0x11a] sm:$0x3f] }
 0x2ba   : > { %24383 = vmatmul.mubr.msk.f32.gmra.mrb[4].mxu0 %vm535_vm1, %v11631_v45  ;;  %23667 = vmatmul.mubr.msk.f32.gmra.mrb[12].mxu1 %vm535_vm1, %v4788_v46  ;;  %v5271_v45 = vld [vmem:[#allocation2 + $0x631] ss:$4 sm:$0xff] }
 0x2bb   : > { %24385 = vmatprep.mubr.msk.f32.mxu0 %vm535_vm1, %v11633_v11  ;;  %23669 = vmatprep.mubr.msk.f32.mxu1 %vm535_vm1, %v4790_v47  ;;  %v12117_v11 = vld [vmem:[#allocation2 + $0x2ad] ss:$4 sm:$0xff] }
 0x2bc   : > { %v12119_v46 = vld [vmem:[#allocation2 + $0x3ad] ss:$4 sm:$0xff] }
 0x2bd   : > { %v5273_v47 = vld [vmem:[#allocation2 + $0x651] ss:$4 sm:$0xff] }
 0x2be   : > { %24386 = vmatmul.mubr.msk.f32.gmra.mrb[6].mxu0 %vm535_vm1, %v11635_v48  ;;  %23670 = vmatmul.mubr.msk.f32.gmra.mrb[14].mxu1 %vm535_vm1, %v4792_v26  ;;  %v5275_v48 = vld [vmem:[#allocation2 + $0x751] ss:$4 sm:$0xff] }
 0x2bf   : > { %24388 = vmatprep.mubr.msk.f32.mxu0 %vm535_vm1, %v11637_v49  ;;  %23674 = vmatprep.mubr.msk.f32.mxu1 %vm535_vm1, %v5006_v50  ;;  %v12121_v49 = vld [vmem:[#allocation2 + $0x3cd] ss:$4 sm:$0xff] }
 0x2c0   : > { %v12123_v26 = vld [vmem:[#allocation2 + $0x4cd] ss:$4 sm:$0xff] }
 0x2c1   : > { %v5277_v50 = vld [vmem:[#allocation2 + $0x771] ss:$4 sm:$0xff] }
 0x2c2   : > { %24389 = vmatmul.mubr.msk.f32.gmra.mrb[8].mxu0 %vm535_vm1, %v11639_v51  ;;  %23675 = vmatmul.mubr.msk.f32.vlgmr.msra.gmra.mrb[0].mxu1 %vm535_vm1, %v5008_v53  ;;  %v5279_v51 = vld [vmem:[#allocation2 + $0x871] ss:$4 sm:$0xff] }
 0x2c3   : > { %24391 = vmatprep.mubr.msk.f32.mxu0 %vm535_vm1, %v11641_v52  ;;  %23677 = vmatprep.mubr.msk.f32.mxu1 %vm535_vm1, %v5010_v54  ;;  %v12125_v52 = vld [vmem:[#allocation2 + $0x4ed] ss:$4 sm:$0xff] }
 0x2c4   : > { %23699 = vmatpush3.msk.msra.mxu1 %vm1231_vm0, %v28747_v23  ;;  %v11884_v23 = vld [vmem:[#allocation2 + $0x60c] ss:$4 sm:$0xff]  ;;  %v12127_v53 = vld [vmem:[#allocation2 + $0x5ed] ss:$4 sm:$0xff] }
 0x2c5   : > { %23724 = vmatprep.subr.msk.mxu1 %vm1231_vm0, %v28797_v56  ;;  %v5281_v54 = vld [vmem:[#allocation2 + $0x891] ss:$4 sm:$0xff] }
 0x2c6   : > { %24392 = vmatmul.mubr.msk.f32.gmra.mrb[10].mxu0 %vm535_vm1, %v11643_v55  ;;  %23678 = vmatmul.mubr.msk.f32.gmra.mrb[2].mxu1 %vm535_vm1, %v5012_v58  ;;  %v5496_v55 = vld [vmem:[#allocation2 + $0x92] ss:$4 sm:$0xff] }
 0x2c7   : > { %24394 = vmatprep.mubr.msk.f32.mxu0 %vm535_vm1, %v11645_v57  ;;  %23680 = vmatprep.mubr.msk.f32.mxu1 %vm535_vm1, %v5014_v30  ;;  %v12131_v57 = vld [vmem:[#allocation2 + $0x70d] ss:$4 sm:$0xff]  ;;  %v5498_v58 = vld [vmem:[#allocation2 + $0xb2] ss:$4 sm:$0xff] }
 0x2c8   : > { %v5500_v30 = vld [vmem:[#allocation2 + $0x1b2] ss:$4 sm:$0xff] }
 0x2ca   : > { %24395 = vmatmul.mubr.msk.f32.gmra.mrb[12].mxu0 %vm535_vm1, %v11647_v60  ;;  %23681 = vmatmul.mubr.msk.f32.gmra.mrb[4].mxu1 %vm535_vm1, %v5016_v61  ;;  %v12133_v60 = vld [vmem:[#allocation2 + $0x72d] ss:$4 sm:$0xff] }
 0x2cb   : > { %24397 = vmatprep.mubr.msk.f32.mxu0 %vm535_vm1, %v11649_v9  ;;  %23683 = vmatprep.mubr.msk.f32.mxu1 %vm535_vm1, %v5018_v62  ;;  %v28897_v9 = vld [vmem:[%s30269_s1 + $0x78] sm:$0x3f] }
 0x2cc   : > { %v12135_v61 = vld [vmem:[#allocation2 + $0x82d] ss:$4 sm:$0xff]  ;;  %v5502_v62 = vld [vmem:[#allocation2 + $0x1d2] ss:$4 sm:$0xff] }
 0x2ce   : > { %24398 = vmatmul.mubr.msk.f32.gmra.mrb[14].mxu0 %vm535_vm1, %v11651_v63  ;;  %23684 = vmatmul.mubr.msk.f32.gmra.mrb[6].mxu1 %vm535_vm1, %v5020_v2  ;;  %v5504_v63 = vld [vmem:[#allocation2 + $0x2d2] ss:$4 sm:$0xff]  ;;  %v12139_v2 = vld [vmem:[#allocation2 + $0x94d] ss:$4 sm:$0xff] }
 0x2cf   : > { %24402 = vmatprep.mubr.msk.f32.mxu0 %vm535_vm1, %v11866_v0  ;;  %23686 = vmatprep.mubr.msk.f32.mxu1 %vm535_vm1, %v5022_v4  ;;  %v12137_v0 = vld [vmem:[#allocation2 + $0x84d] ss:$4 sm:$0xff]  ;;  %v5506_v4 = vld [vmem:[#allocation2 + $0x2f2] ss:$4 sm:$0xff] }
 0x2d2   : > { %24403 = vmatmul.mubr.msk.f32.vlgmr.msra.gmra.mrb[0].mxu0 %vm535_vm1, %v11868_v5  ;;  %23687 = vmatmul.mubr.msk.f32.gmra.mrb[8].mxu1 %vm535_vm1, %v5024_v7  ;;  %v5508_v5 = vld [vmem:[#allocation2 + $0x3f2] ss:$4 sm:$0xff] }
 0x2d3   : > { %24427 = vmatpush3.msk.msra.mxu0 %vm1231_vm0, %v28770_v39  ;;  %24405 = vmatprep.mubr.msk.f32.mxu0 %vm535_vm1, %v11870_v6  ;;  %v5265_v39 = vld [vmem:[#allocation2 + $0x411] ss:$4 sm:$0xff]  ;;  %v12356_v7 = vld [vmem:[#allocation2 + $0x16e] ss:$4 sm:$0xff] }
 0x2d4   : > { %24452 = vmatprep.subr.msk.mxu0 %vm1231_vm0, %v28820_v10  ;;  %23689 = vmatprep.mubr.msk.f32.mxu1 %vm535_vm1, %v5026_v8  ;;  %v12141_v6 = vld [vmem:[#allocation2 + $0x96d] ss:$4 sm:$0xff]  ;;  %v5512_v8 = vld [vmem:[#allocation2 + $0x512] ss:$4 sm:$0xff] }
 0x2d6   : > { %24406 = vmatmul.mubr.msk.f32.gmra.mrb[2].mxu0 %vm535_vm1, %v11872_v12  ;;  %23690 = vmatmul.mubr.msk.f32.gmra.mrb[10].mxu1 %vm535_vm1, %v5028_v14  ;;  %v12358_v12 = vld [vmem:[#allocation2 + $0x18e] ss:$4 sm:$0xff] }
 0x2d7   : > { %24408 = vmatprep.mubr.msk.f32.mxu0 %vm535_vm1, %v11874_v13  ;;  %23692 = vmatprep.mubr.msk.f32.mxu1 %vm535_vm1, %v5030_v15  ;;  %v12360_v13 = vld [vmem:[#allocation2 + $0x28e] ss:$4 sm:$0xff] }
 0x2d8   : > { %v5514_v14 = vld [vmem:[#allocation2 + $0x532] ss:$4 sm:$0xff] }
 0x2d9   : > { %v28920_v15 = vld [vmem:[%s30269_s1 + $0x120] sm:$0x3f] }
 0x2da   : > { %24409 = vmatmul.mubr.msk.f32.gmra.mrb[4].mxu0 %vm535_vm1, %v11876_v16  ;;  %23693 = vmatmul.mubr.msk.f32.gmra.mrb[12].mxu1 %vm535_vm1, %v5032_v18  ;;  %v5516_v16 = vld [vmem:[#allocation2 + $0x632] ss:$4 sm:$0xff] }
 0x2db   : > { %24411 = vmatprep.mubr.msk.f32.mxu0 %vm535_vm1, %v11878_v17  ;;  %23695 = vmatprep.mubr.msk.f32.mxu1 %vm535_vm1, %v5034_v19  ;;  %v12362_v17 = vld [vmem:[#allocation2 + $0x2ae] ss:$4 sm:$0xff] }
 0x2dc   : > { %v12364_v18 = vld [vmem:[#allocation2 + $0x3ae] ss:$4 sm:$0xff] }
 0x2dd   : > { %v5518_v19 = vld [vmem:[#allocation2 + $0x652] ss:$4 sm:$0xff] }
 0x2de   : > { %24412 = vmatmul.mubr.msk.f32.gmra.mrb[6].mxu0 %vm535_vm1, %v11880_v3  ;;  %23696 = vmatmul.mubr.msk.f32.gmra.mrb[14].mxu1 %vm535_vm1, %v5036_v21  ;;  %v5520_v3 = vld [vmem:[#allocation2 + $0x752] ss:$4 sm:$0xff] }
 0x2df   : > { %24414 = vmatprep.mubr.msk.f32.mxu0 %vm535_vm1, %v11882_v20  ;;  %23700 = vmatprep.mubr.msk.f32.mxu1 %vm535_vm1, %v5251_v22  ;;  %v12366_v20 = vld [vmem:[#allocation2 + $0x3ce] ss:$4 sm:$0xff] }
 0x2e0   : > { %v12368_v21 = vld [vmem:[#allocation2 + $0x4ce] ss:$4 sm:$0xff] }
 0x2e1   : > { %v5522_v22 = vld [vmem:[#allocation2 + $0x772] ss:$4 sm:$0xff] }
 0x2e2   : > { %24415 = vmatmul.mubr.msk.f32.gmra.mrb[8].mxu0 %vm535_vm1, %v11884_v23  ;;  %23701 = vmatmul.mubr.msk.f32.vlgmr.msra.gmra.mrb[0].mxu1 %vm535_vm1, %v5253_v25  ;;  %v5524_v23 = vld [vmem:[#allocation2 + $0x872] ss:$4 sm:$0xff] }
 0x2e3   : > { %24417 = vmatprep.mubr.msk.f32.mxu0 %vm535_vm1, %v11886_v24  ;;  %23703 = vmatprep.mubr.msk.f32.mxu1 %vm535_vm1, %v5255_v59  ;;  %v12370_v24 = vld [vmem:[#allocation2 + $0x4ee] ss:$4 sm:$0xff] }
 0x2e4   : > { %23725 = vmatpush3.msk.msra.mxu1 %vm1231_vm0, %v28797_v56  ;;  %v12129_v56 = vld [vmem:[#allocation2 + $0x60d] ss:$4 sm:$0xff]  ;;  %v12372_v25 = vld [vmem:[#allocation2 + $0x5ee] ss:$4 sm:$0xff] }
 0x2e5   : > { %23750 = vmatprep.subr.msk.mxu1 %vm1231_vm0, %v28847_v28  ;;  %v5526_v59 = vld [vmem:[#allocation2 + $0x892] ss:$4 sm:$0xff] }
 0x2e6   : > { %24418 = vmatmul.mubr.msk.f32.gmra.mrb[10].mxu0 %vm535_vm1, %v11888_v27  ;;  %23704 = vmatmul.mubr.msk.f32.gmra.mrb[2].mxu1 %vm535_vm1, %v5257_v31  ;;  %v5741_v27 = vld [vmem:[#allocation2 + $0x93] ss:$4 sm:$0xff] }
 0x2e7   : > { %24420 = vmatprep.mubr.msk.f32.mxu0 %vm535_vm1, %v11890_v29  ;;  %23706 = vmatprep.mubr.msk.f32.mxu1 %vm535_vm1, %v5259_v32  ;;  %v12376_v29 = vld [vmem:[#allocation2 + $0x70e] ss:$4 sm:$0xff]  ;;  %v5743_v31 = vld [vmem:[#allocation2 + $0xb3] ss:$4 sm:$0xff] }
 0x2e8   : > { %v5745_v32 = vld [vmem:[#allocation2 + $0x1b3] ss:$4 sm:$0xff] }
 0x2ea   : > { %24421 = vmatmul.mubr.msk.f32.gmra.mrb[12].mxu0 %vm535_vm1, %v11892_v33  ;;  %23707 = vmatmul.mubr.msk.f32.gmra.mrb[4].mxu1 %vm535_vm1, %v5261_v35  ;;  %v12378_v33 = vld [vmem:[#allocation2 + $0x72e] ss:$4 sm:$0xff] }
 0x2eb   : > { %24423 = vmatprep.mubr.msk.f32.mxu0 %vm535_vm1, %v11894_v34  ;;  %23709 = vmatprep.mubr.msk.f32.mxu1 %vm535_vm1, %v5263_v36  ;;  %v28947_v34 = vld [vmem:[%s30269_s1 + $0x7e] sm:$0x3f] }
 0x2ec   : > { %v12380_v35 = vld [vmem:[#allocation2 + $0x82e] ss:$4 sm:$0xff]  ;;  %v5747_v36 = vld [vmem:[#allocation2 + $0x1d3] ss:$4 sm:$0xff] }
 0x2ee   : > { %24424 = vmatmul.mubr.msk.f32.gmra.mrb[14].mxu0 %vm535_vm1, %v11896_v37  ;;  %23710 = vmatmul.mubr.msk.f32.gmra.mrb[6].mxu1 %vm535_vm1, %v5265_v39  ;;  %v5749_v37 = vld [vmem:[#allocation2 + $0x2d3] ss:$4 sm:$0xff]  ;;  %v12384_v39 = vld [vmem:[#allocation2 + $0x94e] ss:$4 sm:$0xff] }
 0x2ef   : > { %24428 = vmatprep.mubr.msk.f32.mxu0 %vm535_vm1, %v12111_v38  ;;  %23712 = vmatprep.mubr.msk.f32.mxu1 %vm535_vm1, %v5267_v40  ;;  %v12382_v38 = vld [vmem:[#allocation2 + $0x84e] ss:$4 sm:$0xff]  ;;  %v5751_v40 = vld [vmem:[#allocation2 + $0x2f3] ss:$4 sm:$0xff] }
 0x2f2   : > { %24429 = vmatmul.mubr.msk.f32.vlgmr.msra.gmra.mrb[0].mxu0 %vm535_vm1, %v12113_v41  ;;  %23713 = vmatmul.mubr.msk.f32.gmra.mrb[8].mxu1 %vm535_vm1, %v5269_v43  ;;  %v5753_v41 = vld [vmem:[#allocation2 + $0x3f3] ss:$4 sm:$0xff] }
 0x2f3   : > { %24453 = vmatpush3.msk.msra.mxu0 %vm1231_vm0, %v28820_v10  ;;  %24431 = vmatprep.mubr.msk.f32.mxu0 %vm535_vm1, %v12115_v42  ;;  %v5510_v10 = vld [vmem:[#allocation2 + $0x412] ss:$4 sm:$0xff]  ;;  %v12601_v43 = vld [vmem:[#allocation2 + $0x16f] ss:$4 sm:$0xff] }
 0x2f4   : > { %24478 = vmatprep.subr.msk.mxu0 %vm1231_vm0, %v28870_v44  ;;  %23715 = vmatprep.mubr.msk.f32.mxu1 %vm535_vm1, %v5271_v45  ;;  %v12386_v42 = vld [vmem:[#allocation2 + $0x96e] ss:$4 sm:$0xff]  ;;  %v5757_v45 = vld [vmem:[#allocation2 + $0x513] ss:$4 sm:$0xff] }
 0x2f6   : > { %24432 = vmatmul.mubr.msk.f32.gmra.mrb[2].mxu0 %vm535_vm1, %v12117_v11  ;;  %23716 = vmatmul.mubr.msk.f32.gmra.mrb[10].mxu1 %vm535_vm1, %v5273_v47  ;;  %v12603_v11 = vld [vmem:[#allocation2 + $0x18f] ss:$4 sm:$0xff] }
 0x2f7   : > { %24434 = vmatprep.mubr.msk.f32.mxu0 %vm535_vm1, %v12119_v46  ;;  %23718 = vmatprep.mubr.msk.f32.mxu1 %vm535_vm1, %v5275_v48  ;;  %v12605_v46 = vld [vmem:[#allocation2 + $0x28f] ss:$4 sm:$0xff] }
 0x2f8   : > { %v5759_v47 = vld [vmem:[#allocation2 + $0x533] ss:$4 sm:$0xff] }
 0x2f9   : > { %v28970_v48 = vld [vmem:[%s30269_s1 + $0x126] sm:$0x3f] }
 0x2fa   : > { %24435 = vmatmul.mubr.msk.f32.gmra.mrb[4].mxu0 %vm535_vm1, %v12121_v49  ;;  %23719 = vmatmul.mubr.msk.f32.gmra.mrb[12].mxu1 %vm535_vm1, %v5277_v50  ;;  %v5761_v49 = vld [vmem:[#allocation2 + $0x633] ss:$4 sm:$0xff] }
 0x2fb   : > { %24437 = vmatprep.mubr.msk.f32.mxu0 %vm535_vm1, %v12123_v26  ;;  %23721 = vmatprep.mubr.msk.f32.mxu1 %vm535_vm1, %v5279_v51  ;;  %v12607_v26 = vld [vmem:[#allocation2 + $0x2af] ss:$4 sm:$0xff] }
 0x2fc   : > { %v12609_v50 = vld [vmem:[#allocation2 + $0x3af] ss:$4 sm:$0xff] }
 0x2fd   : > { %v5763_v51 = vld [vmem:[#allocation2 + $0x653] ss:$4 sm:$0xff] }
 0x2fe   : > { %24438 = vmatmul.mubr.msk.f32.gmra.mrb[6].mxu0 %vm535_vm1, %v12125_v52  ;;  %23722 = vmatmul.mubr.msk.f32.gmra.mrb[14].mxu1 %vm535_vm1, %v5281_v54  ;;  %v5765_v52 = vld [vmem:[#allocation2 + $0x753] ss:$4 sm:$0xff] }
 0x2ff   : > { %24440 = vmatprep.mubr.msk.f32.mxu0 %vm535_vm1, %v12127_v53  ;;  %23726 = vmatprep.mubr.msk.f32.mxu1 %vm535_vm1, %v5496_v55  ;;  %v12611_v53 = vld [vmem:[#allocation2 + $0x3cf] ss:$4 sm:$0xff] }
 0x300   : > { %v12613_v54 = vld [vmem:[#allocation2 + $0x4cf] ss:$4 sm:$0xff] }
 0x301   : > { %v5767_v55 = vld [vmem:[#allocation2 + $0x773] ss:$4 sm:$0xff] }
 0x302   : > { %24441 = vmatmul.mubr.msk.f32.gmra.mrb[8].mxu0 %vm535_vm1, %v12129_v56  ;;  %23727 = vmatmul.mubr.msk.f32.vlgmr.msra.gmra.mrb[0].mxu1 %vm535_vm1, %v5498_v58  ;;  %v5769_v56 = vld [vmem:[#allocation2 + $0x873] ss:$4 sm:$0xff] }
 0x303   : > { %24443 = vmatprep.mubr.msk.f32.mxu0 %vm535_vm1, %v12131_v57  ;;  %23729 = vmatprep.mubr.msk.f32.mxu1 %vm535_vm1, %v5500_v30  ;;  %v12615_v57 = vld [vmem:[#allocation2 + $0x4ef] ss:$4 sm:$0xff] }
 0x304   : > { %23751 = vmatpush3.msk.msra.mxu1 %vm1231_vm0, %v28847_v28  ;;  %v12374_v28 = vld [vmem:[#allocation2 + $0x60e] ss:$4 sm:$0xff]  ;;  %v12617_v58 = vld [vmem:[#allocation2 + $0x5ef] ss:$4 sm:$0xff] }
 0x305   : > { %23776 = vmatprep.subr.msk.mxu1 %vm1231_vm0, %v28897_v9  ;;  %v5771_v30 = vld [vmem:[#allocation2 + $0x893] ss:$4 sm:$0xff] }
 0x306   : > { %24444 = vmatmul.mubr.msk.f32.gmra.mrb[10].mxu0 %vm535_vm1, %v12133_v60  ;;  %23730 = vmatmul.mubr.msk.f32.gmra.mrb[2].mxu1 %vm535_vm1, %v5502_v62  ;;  %v5986_v60 = vld [vmem:[#allocation2 + $0x94] ss:$4 sm:$0xff] }
 0x307   : > { %24446 = vmatprep.mubr.msk.f32.mxu0 %vm535_vm1, %v12135_v61  ;;  %23732 = vmatprep.mubr.msk.f32.mxu1 %vm535_vm1, %v5504_v63  ;;  %v12621_v61 = vld [vmem:[#allocation2 + $0x70f] ss:$4 sm:$0xff]  ;;  %v5988_v62 = vld [vmem:[#allocation2 + $0xb4] ss:$4 sm:$0xff] }
 0x308   : > { %v5990_v63 = vld [vmem:[#allocation2 + $0x1b4] ss:$4 sm:$0xff] }
 0x30a   : > { %24447 = vmatmul.mubr.msk.f32.gmra.mrb[12].mxu0 %vm535_vm1, %v12137_v0  ;;  %23733 = vmatmul.mubr.msk.f32.gmra.mrb[4].mxu1 %vm535_vm1, %v5506_v4  ;;  %v12623_v0 = vld [vmem:[#allocation2 + $0x72f] ss:$4 sm:$0xff] }
 0x30b   : > { %24449 = vmatprep.mubr.msk.f32.mxu0 %vm535_vm1, %v12139_v2  ;;  %23735 = vmatprep.mubr.msk.f32.mxu1 %vm535_vm1, %v5508_v5  ;;  %v28997_v2 = vld [vmem:[%s30269_s1 + $0x84] sm:$0x3f] }
 0x30c   : > { %v12625_v4 = vld [vmem:[#allocation2 + $0x82f] ss:$4 sm:$0xff]  ;;  %v5992_v5 = vld [vmem:[#allocation2 + $0x1d4] ss:$4 sm:$0xff] }
 0x30e   : > { %24450 = vmatmul.mubr.msk.f32.gmra.mrb[14].mxu0 %vm535_vm1, %v12141_v6  ;;  %23736 = vmatmul.mubr.msk.f32.gmra.mrb[6].mxu1 %vm535_vm1, %v5510_v10  ;;  %v5994_v6 = vld [vmem:[#allocation2 + $0x2d4] ss:$4 sm:$0xff]  ;;  %v12629_v10 = vld [vmem:[#allocation2 + $0x94f] ss:$4 sm:$0xff] }
 0x30f   : > { %24454 = vmatprep.mubr.msk.f32.mxu0 %vm535_vm1, %v12356_v7  ;;  %23738 = vmatprep.mubr.msk.f32.mxu1 %vm535_vm1, %v5512_v8  ;;  %v12627_v7 = vld [vmem:[#allocation2 + $0x84f] ss:$4 sm:$0xff]  ;;  %v5996_v8 = vld [vmem:[#allocation2 + $0x2f4] ss:$4 sm:$0xff] }
 0x312   : > { %24455 = vmatmul.mubr.msk.f32.vlgmr.msra.gmra.mrb[0].mxu0 %vm535_vm1, %v12358_v12  ;;  %23739 = vmatmul.mubr.msk.f32.gmra.mrb[8].mxu1 %vm535_vm1, %v5514_v14  ;;  %v5998_v12 = vld [vmem:[#allocation2 + $0x3f4] ss:$4 sm:$0xff] }
 0x313   : > { %24479 = vmatpush3.msk.msra.mxu0 %vm1231_vm0, %v28870_v44  ;;  %24457 = vmatprep.mubr.msk.f32.mxu0 %vm535_vm1, %v12360_v13  ;;  %v5755_v44 = vld [vmem:[#allocation2 + $0x413] ss:$4 sm:$0xff]  ;;  %v12846_v14 = vld [vmem:[#allocation2 + $0x1b0] ss:$4 sm:$0xff] }
 0x314   : > { %24504 = vmatprep.subr.msk.mxu0 %vm1231_vm0, %v28920_v15  ;;  %23741 = vmatprep.mubr.msk.f32.mxu1 %vm535_vm1, %v5516_v16  ;;  %v12631_v13 = vld [vmem:[#allocation2 + $0x96f] ss:$4 sm:$0xff]  ;;  %v6002_v16 = vld [vmem:[#allocation2 + $0x514] ss:$4 sm:$0xff] }
 0x316   : > { %24458 = vmatmul.mubr.msk.f32.gmra.mrb[2].mxu0 %vm535_vm1, %v12362_v17  ;;  %23742 = vmatmul.mubr.msk.f32.gmra.mrb[10].mxu1 %vm535_vm1, %v5518_v19  ;;  %v12848_v17 = vld [vmem:[#allocation2 + $0x1d0] ss:$4 sm:$0xff] }
 0x317   : > { %24460 = vmatprep.mubr.msk.f32.mxu0 %vm535_vm1, %v12364_v18  ;;  %23744 = vmatprep.mubr.msk.f32.mxu1 %vm535_vm1, %v5520_v3  ;;  %v12850_v18 = vld [vmem:[#allocation2 + $0x2d0] ss:$4 sm:$0xff] }
 0x318   : > { %v6004_v19 = vld [vmem:[#allocation2 + $0x534] ss:$4 sm:$0xff] }
 0x319   : > { %v29020_v3 = vld [vmem:[%s30269_s1 + $0x12c] sm:$0x3f] }
 0x31a   : > { %24461 = vmatmul.mubr.msk.f32.gmra.mrb[4].mxu0 %vm535_vm1, %v12366_v20  ;;  %23745 = vmatmul.mubr.msk.f32.gmra.mrb[12].mxu1 %vm535_vm1, %v5522_v22  ;;  %v6006_v20 = vld [vmem:[#allocation2 + $0x634] ss:$4 sm:$0xff] }
 0x31b   : > { %24463 = vmatprep.mubr.msk.f32.mxu0 %vm535_vm1, %v12368_v21  ;;  %23747 = vmatprep.mubr.msk.f32.mxu1 %vm535_vm1, %v5524_v23  ;;  %v12852_v21 = vld [vmem:[#allocation2 + $0x2f0] ss:$4 sm:$0xff] }
 0x31c   : > { %v12854_v22 = vld [vmem:[#allocation2 + $0x3f0] ss:$4 sm:$0xff] }
 0x31d   : > { %v6008_v23 = vld [vmem:[#allocation2 + $0x654] ss:$4 sm:$0xff] }
 0x31e   : > { %24464 = vmatmul.mubr.msk.f32.gmra.mrb[6].mxu0 %vm535_vm1, %v12370_v24  ;;  %23748 = vmatmul.mubr.msk.f32.gmra.mrb[14].mxu1 %vm535_vm1, %v5526_v59  ;;  %v6010_v24 = vld [vmem:[#allocation2 + $0x754] ss:$4 sm:$0xff] }
 0x31f   : > { %24466 = vmatprep.mubr.msk.f32.mxu0 %vm535_vm1, %v12372_v25  ;;  %23752 = vmatprep.mubr.msk.f32.mxu1 %vm535_vm1, %v5741_v27  ;;  %v12856_v25 = vld [vmem:[#allocation2 + $0x410] ss:$4 sm:$0xff] }
 0x320   : > { %v12858_v59 = vld [vmem:[#allocation2 + $0x510] ss:$4 sm:$0xff] }
 0x321   : > { %v6012_v27 = vld [vmem:[#allocation2 + $0x774] ss:$4 sm:$0xff] }
 0x322   : > { %24467 = vmatmul.mubr.msk.f32.gmra.mrb[8].mxu0 %vm535_vm1, %v12374_v28  ;;  %23753 = vmatmul.mubr.msk.f32.vlgmr.msra.gmra.mrb[0].mxu1 %vm535_vm1, %v5743_v31  ;;  %v6014_v28 = vld [vmem:[#allocation2 + $0x874] ss:$4 sm:$0xff] }
 0x323   : > { %24469 = vmatprep.mubr.msk.f32.mxu0 %vm535_vm1, %v12376_v29  ;;  %23755 = vmatprep.mubr.msk.f32.mxu1 %vm535_vm1, %v5745_v32  ;;  %v12860_v29 = vld [vmem:[#allocation2 + $0x530] ss:$4 sm:$0xff] }
 0x324   : > { %23777 = vmatpush3.msk.msra.mxu1 %vm1231_vm0, %v28897_v9  ;;  %v12619_v9 = vld [vmem:[#allocation2 + $0x60f] ss:$4 sm:$0xff]  ;;  %v12862_v31 = vld [vmem:[#allocation2 + $0x630] ss:$4 sm:$0xff] }
 0x325   : > { %23802 = vmatprep.subr.msk.mxu1 %vm1231_vm0, %v28947_v34  ;;  %v6016_v32 = vld [vmem:[#allocation2 + $0x894] ss:$4 sm:$0xff] }
 0x326   : > { %24470 = vmatmul.mubr.msk.f32.gmra.mrb[10].mxu0 %vm535_vm1, %v12378_v33  ;;  %23756 = vmatmul.mubr.msk.f32.gmra.mrb[2].mxu1 %vm535_vm1, %v5747_v36  ;;  %v6231_v33 = vld [vmem:[#allocation2 + $0x95] ss:$4 sm:$0xff] }
 0x327   : > { %24472 = vmatprep.mubr.msk.f32.mxu0 %vm535_vm1, %v12380_v35  ;;  %23758 = vmatprep.mubr.msk.f32.mxu1 %vm535_vm1, %v5749_v37  ;;  %v12866_v35 = vld [vmem:[#allocation2 + $0x750] ss:$4 sm:$0xff]  ;;  %v6233_v36 = vld [vmem:[#allocation2 + $0xb5] ss:$4 sm:$0xff] }
 0x328   : > { %v6235_v37 = vld [vmem:[#allocation2 + $0x1b5] ss:$4 sm:$0xff] }
 0x32a   : > { %24473 = vmatmul.mubr.msk.f32.gmra.mrb[12].mxu0 %vm535_vm1, %v12382_v38  ;;  %23759 = vmatmul.mubr.msk.f32.gmra.mrb[4].mxu1 %vm535_vm1, %v5751_v40  ;;  %v12868_v38 = vld [vmem:[#allocation2 + $0x770] ss:$4 sm:$0xff] }
 0x32b   : > { %24475 = vmatprep.mubr.msk.f32.mxu0 %vm535_vm1, %v12384_v39  ;;  %23761 = vmatprep.mubr.msk.f32.mxu1 %vm535_vm1, %v5753_v41  ;;  %v29047_v39 = vld [vmem:[%s30269_s1 + $0x8a] sm:$0x3f] }
 0x32c   : > { %v12870_v40 = vld [vmem:[#allocation2 + $0x870] ss:$4 sm:$0xff]  ;;  %v6237_v41 = vld [vmem:[#allocation2 + $0x1d5] ss:$4 sm:$0xff] }
 0x32e   : > { %24476 = vmatmul.mubr.msk.f32.gmra.mrb[14].mxu0 %vm535_vm1, %v12386_v42  ;;  %23762 = vmatmul.mubr.msk.f32.gmra.mrb[6].mxu1 %vm535_vm1, %v5755_v44  ;;  %v6239_v42 = vld [vmem:[#allocation2 + $0x2d5] ss:$4 sm:$0xff]  ;;  %v12874_v44 = vld [vmem:[#allocation2 + $0x990] ss:$4 sm:$0xff] }
 0x32f   : > { %24480 = vmatprep.mubr.msk.f32.mxu0 %vm535_vm1, %v12601_v43  ;;  %23764 = vmatprep.mubr.msk.f32.mxu1 %vm535_vm1, %v5757_v45  ;;  %v12872_v43 = vld [vmem:[#allocation2 + $0x890] ss:$4 sm:$0xff]  ;;  %v6241_v45 = vld [vmem:[#allocation2 + $0x2f5] ss:$4 sm:$0xff] }
 0x332   : > { %24481 = vmatmul.mubr.msk.f32.vlgmr.msra.gmra.mrb[0].mxu0 %vm535_vm1, %v12603_v11  ;;  %23765 = vmatmul.mubr.msk.f32.gmra.mrb[8].mxu1 %vm535_vm1, %v5759_v47  ;;  %v6243_v11 = vld [vmem:[#allocation2 + $0x3f5] ss:$4 sm:$0xff] }
 0x333   : > { %24505 = vmatpush3.msk.msra.mxu0 %vm1231_vm0, %v28920_v15  ;;  %24483 = vmatprep.mubr.msk.f32.mxu0 %vm535_vm1, %v12605_v46  ;;  %v6000_v15 = vld [vmem:[#allocation2 + $0x414] ss:$4 sm:$0xff]  ;;  %v13091_v47 = vld [vmem:[#allocation2 + $0x1b1] ss:$4 sm:$0xff] }
 0x334   : > { %24530 = vmatprep.subr.msk.mxu0 %vm1231_vm0, %v28970_v48  ;;  %23767 = vmatprep.mubr.msk.f32.mxu1 %vm535_vm1, %v5761_v49  ;;  %v12876_v46 = vld [vmem:[#allocation2 + $0x9b0] ss:$4 sm:$0xff]  ;;  %v6247_v49 = vld [vmem:[#allocation2 + $0x515] ss:$4 sm:$0xff] }
 0x336   : > { %24484 = vmatmul.mubr.msk.f32.gmra.mrb[2].mxu0 %vm535_vm1, %v12607_v26  ;;  %23768 = vmatmul.mubr.msk.f32.gmra.mrb[10].mxu1 %vm535_vm1, %v5763_v51  ;;  %v13093_v26 = vld [vmem:[#allocation2 + $0x1d1] ss:$4 sm:$0xff] }
 0x337   : > { %24486 = vmatprep.mubr.msk.f32.mxu0 %vm535_vm1, %v12609_v50  ;;  %23770 = vmatprep.mubr.msk.f32.mxu1 %vm535_vm1, %v5765_v52  ;;  %v13095_v50 = vld [vmem:[#allocation2 + $0x2d1] ss:$4 sm:$0xff] }
 0x338   : > { %v6249_v51 = vld [vmem:[#allocation2 + $0x535] ss:$4 sm:$0xff] }
 0x339   : > { %v29070_v52 = vld [vmem:[%s30269_s1 + $0x132] sm:$0x3f] }
 0x33a   : > { %24487 = vmatmul.mubr.msk.f32.gmra.mrb[4].mxu0 %vm535_vm1, %v12611_v53  ;;  %23771 = vmatmul.mubr.msk.f32.gmra.mrb[12].mxu1 %vm535_vm1, %v5767_v55  ;;  %v6251_v53 = vld [vmem:[#allocation2 + $0x635] ss:$4 sm:$0xff] }
 0x33b   : > { %24489 = vmatprep.mubr.msk.f32.mxu0 %vm535_vm1, %v12613_v54  ;;  %23773 = vmatprep.mubr.msk.f32.mxu1 %vm535_vm1, %v5769_v56  ;;  %v13097_v54 = vld [vmem:[#allocation2 + $0x2f1] ss:$4 sm:$0xff] }
 0x33c   : > { %v13099_v55 = vld [vmem:[#allocation2 + $0x3f1] ss:$4 sm:$0xff] }
 0x33d   : > { %v6253_v56 = vld [vmem:[#allocation2 + $0x655] ss:$4 sm:$0xff] }
 0x33e   : > { %24490 = vmatmul.mubr.msk.f32.gmra.mrb[6].mxu0 %vm535_vm1, %v12615_v57  ;;  %23774 = vmatmul.mubr.msk.f32.gmra.mrb[14].mxu1 %vm535_vm1, %v5771_v30  ;;  %v6255_v57 = vld [vmem:[#allocation2 + $0x755] ss:$4 sm:$0xff] }
 0x33f   : > { %24492 = vmatprep.mubr.msk.f32.mxu0 %vm535_vm1, %v12617_v58  ;;  %23778 = vmatprep.mubr.msk.f32.mxu1 %vm535_vm1, %v5986_v60  ;;  %v13101_v58 = vld [vmem:[#allocation2 + $0x411] ss:$4 sm:$0xff] }
 0x340   : > { %v13103_v30 = vld [vmem:[#allocation2 + $0x511] ss:$4 sm:$0xff] }
 0x341   : > { %v6257_v60 = vld [vmem:[#allocation2 + $0x775] ss:$4 sm:$0xff] }
 0x342   : > { %24493 = vmatmul.mubr.msk.f32.gmra.mrb[8].mxu0 %vm535_vm1, %v12619_v9  ;;  %23779 = vmatmul.mubr.msk.f32.vlgmr.msra.gmra.mrb[0].mxu1 %vm535_vm1, %v5988_v62  ;;  %v6259_v9 = vld [vmem:[#allocation2 + $0x875] ss:$4 sm:$0xff] }
 0x343   : > { %24495 = vmatprep.mubr.msk.f32.mxu0 %vm535_vm1, %v12621_v61  ;;  %23781 = vmatprep.mubr.msk.f32.mxu1 %vm535_vm1, %v5990_v63  ;;  %v13105_v61 = vld [vmem:[#allocation2 + $0x531] ss:$4 sm:$0xff] }
 0x344   : > { %23803 = vmatpush3.msk.msra.mxu1 %vm1231_vm0, %v28947_v34  ;;  %v12864_v34 = vld [vmem:[#allocation2 + $0x650] ss:$4 sm:$0xff]  ;;  %v13107_v62 = vld [vmem:[#allocation2 + $0x631] ss:$4 sm:$0xff] }
 0x345   : > { %23828 = vmatprep.subr.msk.mxu1 %vm1231_vm0, %v28997_v2  ;;  %v6261_v63 = vld [vmem:[#allocation2 + $0x895] ss:$4 sm:$0xff] }
 0x346   : > { %24496 = vmatmul.mubr.msk.f32.gmra.mrb[10].mxu0 %vm535_vm1, %v12623_v0  ;;  %23782 = vmatmul.mubr.msk.f32.gmra.mrb[2].mxu1 %vm535_vm1, %v5992_v5  ;;  %v6476_v0 = vld [vmem:[#allocation2 + $0x96] ss:$4 sm:$0xff] }
 0x347   : > { %24498 = vmatprep.mubr.msk.f32.mxu0 %vm535_vm1, %v12625_v4  ;;  %23784 = vmatprep.mubr.msk.f32.mxu1 %vm535_vm1, %v5994_v6  ;;  %v13111_v4 = vld [vmem:[#allocation2 + $0x751] ss:$4 sm:$0xff]  ;;  %v6478_v5 = vld [vmem:[#allocation2 + $0xb6] ss:$4 sm:$0xff] }
 0x348   : > { %v6480_v6 = vld [vmem:[#allocation2 + $0x1b6] ss:$4 sm:$0xff] }
 0x34a   : > { %24499 = vmatmul.mubr.msk.f32.gmra.mrb[12].mxu0 %vm535_vm1, %v12627_v7  ;;  %23785 = vmatmul.mubr.msk.f32.gmra.mrb[4].mxu1 %vm535_vm1, %v5996_v8  ;;  %v13113_v7 = vld [vmem:[#allocation2 + $0x771] ss:$4 sm:$0xff] }
 0x34b   : > { %24501 = vmatprep.mubr.msk.f32.mxu0 %vm535_vm1, %v12629_v10  ;;  %23787 = vmatprep.mubr.msk.f32.mxu1 %vm535_vm1, %v5998_v12  ;;  %v29097_v10 = vld [vmem:[%s30269_s1 + $0x90] sm:$0x3f] }
 0x34c   : > { %v13115_v8 = vld [vmem:[#allocation2 + $0x871] ss:$4 sm:$0xff]  ;;  %v6482_v12 = vld [vmem:[#allocation2 + $0x1d6] ss:$4 sm:$0xff] }
 0x34e   : > { %24502 = vmatmul.mubr.msk.f32.gmra.mrb[14].mxu0 %vm535_vm1, %v12631_v13  ;;  %23788 = vmatmul.mubr.msk.f32.gmra.mrb[6].mxu1 %vm535_vm1, %v6000_v15  ;;  %v6484_v13 = vld [vmem:[#allocation2 + $0x2d6] ss:$4 sm:$0xff]  ;;  %v13119_v15 = vld [vmem:[#allocation2 + $0x991] ss:$4 sm:$0xff] }
 0x34f   : > { %24506 = vmatprep.mubr.msk.f32.mxu0 %vm535_vm1, %v12846_v14  ;;  %23790 = vmatprep.mubr.msk.f32.mxu1 %vm535_vm1, %v6002_v16  ;;  %v13117_v14 = vld [vmem:[#allocation2 + $0x891] ss:$4 sm:$0xff]  ;;  %v6486_v16 = vld [vmem:[#allocation2 + $0x2f6] ss:$4 sm:$0xff] }
 0x352   : > { %24507 = vmatmul.mubr.msk.f32.vlgmr.msra.gmra.mrb[0].mxu0 %vm535_vm1, %v12848_v17  ;;  %23791 = vmatmul.mubr.msk.f32.gmra.mrb[8].mxu1 %vm535_vm1, %v6004_v19  ;;  %v6488_v17 = vld [vmem:[#allocation2 + $0x3f6] ss:$4 sm:$0xff] }
 0x353   : > { %24531 = vmatpush3.msk.msra.mxu0 %vm1231_vm0, %v28970_v48  ;;  %24509 = vmatprep.mubr.msk.f32.mxu0 %vm535_vm1, %v12850_v18  ;;  %v6245_v48 = vld [vmem:[#allocation2 + $0x415] ss:$4 sm:$0xff]  ;;  %v13336_v19 = vld [vmem:[#allocation2 + $0x1b2] ss:$4 sm:$0xff] }
 0x354   : > { %24556 = vmatprep.subr.msk.mxu0 %vm1231_vm0, %v29020_v3  ;;  %23793 = vmatprep.mubr.msk.f32.mxu1 %vm535_vm1, %v6006_v20  ;;  %v13121_v18 = vld [vmem:[#allocation2 + $0x9b1] ss:$4 sm:$0xff]  ;;  %v6492_v20 = vld [vmem:[#allocation2 + $0x516] ss:$4 sm:$0xff] }
 0x356   : > { %24510 = vmatmul.mubr.msk.f32.gmra.mrb[2].mxu0 %vm535_vm1, %v12852_v21  ;;  %23794 = vmatmul.mubr.msk.f32.gmra.mrb[10].mxu1 %vm535_vm1, %v6008_v23  ;;  %v13338_v21 = vld [vmem:[#allocation2 + $0x1d2] ss:$4 sm:$0xff] }
 0x357   : > { %24512 = vmatprep.mubr.msk.f32.mxu0 %vm535_vm1, %v12854_v22  ;;  %23796 = vmatprep.mubr.msk.f32.mxu1 %vm535_vm1, %v6010_v24  ;;  %v13340_v22 = vld [vmem:[#allocation2 + $0x2d2] ss:$4 sm:$0xff] }
 0x358   : > { %v6494_v23 = vld [vmem:[#allocation2 + $0x536] ss:$4 sm:$0xff] }
 0x359   : > { %v29120_v24 = vld [vmem:[%s30269_s1 + $0x138] sm:$0x3f] }
 0x35a   : > { %24513 = vmatmul.mubr.msk.f32.gmra.mrb[4].mxu0 %vm535_vm1, %v12856_v25  ;;  %23797 = vmatmul.mubr.msk.f32.gmra.mrb[12].mxu1 %vm535_vm1, %v6012_v27  ;;  %v6496_v25 = vld [vmem:[#allocation2 + $0x636] ss:$4 sm:$0xff] }
 0x35b   : > { %24515 = vmatprep.mubr.msk.f32.mxu0 %vm535_vm1, %v12858_v59  ;;  %23799 = vmatprep.mubr.msk.f32.mxu1 %vm535_vm1, %v6014_v28  ;;  %v13342_v59 = vld [vmem:[#allocation2 + $0x2f2] ss:$4 sm:$0xff] }
 0x35c   : > { %v13344_v27 = vld [vmem:[#allocation2 + $0x3f2] ss:$4 sm:$0xff] }
 0x35d   : > { %v6498_v28 = vld [vmem:[#allocation2 + $0x656] ss:$4 sm:$0xff] }
 0x35e   : > { %24516 = vmatmul.mubr.msk.f32.gmra.mrb[6].mxu0 %vm535_vm1, %v12860_v29  ;;  %23800 = vmatmul.mubr.msk.f32.gmra.mrb[14].mxu1 %vm535_vm1, %v6016_v32  ;;  %v6500_v29 = vld [vmem:[#allocation2 + $0x756] ss:$4 sm:$0xff] }
 0x35f   : > { %24518 = vmatprep.mubr.msk.f32.mxu0 %vm535_vm1, %v12862_v31  ;;  %23804 = vmatprep.mubr.msk.f32.mxu1 %vm535_vm1, %v6231_v33  ;;  %v13346_v31 = vld [vmem:[#allocation2 + $0x412] ss:$4 sm:$0xff] }
 0x360   : > { %v13348_v32 = vld [vmem:[#allocation2 + $0x512] ss:$4 sm:$0xff] }
 0x361   : > { %v6502_v33 = vld [vmem:[#allocation2 + $0x776] ss:$4 sm:$0xff] }
 0x362   : > { %24519 = vmatmul.mubr.msk.f32.gmra.mrb[8].mxu0 %vm535_vm1, %v12864_v34  ;;  %23805 = vmatmul.mubr.msk.f32.vlgmr.msra.gmra.mrb[0].mxu1 %vm535_vm1, %v6233_v36  ;;  %v6504_v34 = vld [vmem:[#allocation2 + $0x876] ss:$4 sm:$0xff] }
 0x363   : > { %24521 = vmatprep.mubr.msk.f32.mxu0 %vm535_vm1, %v12866_v35  ;;  %23807 = vmatprep.mubr.msk.f32.mxu1 %vm535_vm1, %v6235_v37  ;;  %v13350_v35 = vld [vmem:[#allocation2 + $0x532] ss:$4 sm:$0xff] }
 0x364   : > { %23829 = vmatpush3.msk.msra.mxu1 %vm1231_vm0, %v28997_v2  ;;  %v13109_v2 = vld [vmem:[#allocation2 + $0x651] ss:$4 sm:$0xff]  ;;  %v13352_v36 = vld [vmem:[#allocation2 + $0x632] ss:$4 sm:$0xff] }
 0x365   : > { %23854 = vmatprep.subr.msk.mxu1 %vm1231_vm0, %v29047_v39  ;;  %v6506_v37 = vld [vmem:[#allocation2 + $0x896] ss:$4 sm:$0xff] }
 0x366   : > { %24522 = vmatmul.mubr.msk.f32.gmra.mrb[10].mxu0 %vm535_vm1, %v12868_v38  ;;  %23808 = vmatmul.mubr.msk.f32.gmra.mrb[2].mxu1 %vm535_vm1, %v6237_v41  ;;  %v6721_v38 = vld [vmem:[#allocation2 + $0x97] ss:$4 sm:$0xff] }
 0x367   : > { %24524 = vmatprep.mubr.msk.f32.mxu0 %vm535_vm1, %v12870_v40  ;;  %23810 = vmatprep.mubr.msk.f32.mxu1 %vm535_vm1, %v6239_v42  ;;  %v13356_v40 = vld [vmem:[#allocation2 + $0x752] ss:$4 sm:$0xff]  ;;  %v6723_v41 = vld [vmem:[#allocation2 + $0xb7] ss:$4 sm:$0xff] }
 0x368   : > { %v6725_v42 = vld [vmem:[#allocation2 + $0x1b7] ss:$4 sm:$0xff] }
 0x36a   : > { %24525 = vmatmul.mubr.msk.f32.gmra.mrb[12].mxu0 %vm535_vm1, %v12872_v43  ;;  %23811 = vmatmul.mubr.msk.f32.gmra.mrb[4].mxu1 %vm535_vm1, %v6241_v45  ;;  %v13358_v43 = vld [vmem:[#allocation2 + $0x772] ss:$4 sm:$0xff] }
 0x36b   : > { %24527 = vmatprep.mubr.msk.f32.mxu0 %vm535_vm1, %v12874_v44  ;;  %23813 = vmatprep.mubr.msk.f32.mxu1 %vm535_vm1, %v6243_v11  ;;  %v29147_v44 = vld [vmem:[%s30269_s1 + $0x96] sm:$0x3f] }
 0x36c   : > { %v13360_v45 = vld [vmem:[#allocation2 + $0x872] ss:$4 sm:$0xff]  ;;  %v6727_v11 = vld [vmem:[#allocation2 + $0x1d7] ss:$4 sm:$0xff] }
 0x36e   : > { %24528 = vmatmul.mubr.msk.f32.gmra.mrb[14].mxu0 %vm535_vm1, %v12876_v46  ;;  %23814 = vmatmul.mubr.msk.f32.gmra.mrb[6].mxu1 %vm535_vm1, %v6245_v48  ;;  %v6729_v46 = vld [vmem:[#allocation2 + $0x2d7] ss:$4 sm:$0xff]  ;;  %v13364_v48 = vld [vmem:[#allocation2 + $0x992] ss:$4 sm:$0xff] }
 0x36f   : > { %24532 = vmatprep.mubr.msk.f32.mxu0 %vm535_vm1, %v13091_v47  ;;  %23816 = vmatprep.mubr.msk.f32.mxu1 %vm535_vm1, %v6247_v49  ;;  %v13362_v47 = vld [vmem:[#allocation2 + $0x892] ss:$4 sm:$0xff]  ;;  %v6731_v49 = vld [vmem:[#allocation2 + $0x2f7] ss:$4 sm:$0xff] }
 0x372   : > { %24533 = vmatmul.mubr.msk.f32.vlgmr.msra.gmra.mrb[0].mxu0 %vm535_vm1, %v13093_v26  ;;  %23817 = vmatmul.mubr.msk.f32.gmra.mrb[8].mxu1 %vm535_vm1, %v6249_v51  ;;  %v6733_v26 = vld [vmem:[#allocation2 + $0x3f7] ss:$4 sm:$0xff] }
 0x373   : > { %24557 = vmatpush3.msk.msra.mxu0 %vm1231_vm0, %v29020_v3  ;;  %24535 = vmatprep.mubr.msk.f32.mxu0 %vm535_vm1, %v13095_v50  ;;  %v6490_v3 = vld [vmem:[#allocation2 + $0x416] ss:$4 sm:$0xff]  ;;  %v13581_v51 = vld [vmem:[#allocation2 + $0x1b3] ss:$4 sm:$0xff] }
 0x374   : > { %24582 = vmatprep.subr.msk.mxu0 %vm1231_vm0, %v29070_v52  ;;  %23819 = vmatprep.mubr.msk.f32.mxu1 %vm535_vm1, %v6251_v53  ;;  %v13366_v50 = vld [vmem:[#allocation2 + $0x9b2] ss:$4 sm:$0xff]  ;;  %v6737_v53 = vld [vmem:[#allocation2 + $0x517] ss:$4 sm:$0xff] }
 0x376   : > { %24536 = vmatmul.mubr.msk.f32.gmra.mrb[2].mxu0 %vm535_vm1, %v13097_v54  ;;  %23820 = vmatmul.mubr.msk.f32.gmra.mrb[10].mxu1 %vm535_vm1, %v6253_v56  ;;  %v13583_v54 = vld [vmem:[#allocation2 + $0x1d3] ss:$4 sm:$0xff] }
 0x377   : > { %24538 = vmatprep.mubr.msk.f32.mxu0 %vm535_vm1, %v13099_v55  ;;  %23822 = vmatprep.mubr.msk.f32.mxu1 %vm535_vm1, %v6255_v57  ;;  %v13585_v55 = vld [vmem:[#allocation2 + $0x2d3] ss:$4 sm:$0xff] }
 0x378   : > { %v6739_v56 = vld [vmem:[#allocation2 + $0x537] ss:$4 sm:$0xff] }
 0x379   : > { %v29170_v57 = vld [vmem:[%s30269_s1 + $0x13e] sm:$0x3f] }
 0x37a   : > { %24539 = vmatmul.mubr.msk.f32.gmra.mrb[4].mxu0 %vm535_vm1, %v13101_v58  ;;  %23823 = vmatmul.mubr.msk.f32.gmra.mrb[12].mxu1 %vm535_vm1, %v6257_v60  ;;  %v6741_v58 = vld [vmem:[#allocation2 + $0x637] ss:$4 sm:$0xff] }
 0x37b   : > { %24541 = vmatprep.mubr.msk.f32.mxu0 %vm535_vm1, %v13103_v30  ;;  %23825 = vmatprep.mubr.msk.f32.mxu1 %vm535_vm1, %v6259_v9  ;;  %v13587_v30 = vld [vmem:[#allocation2 + $0x2f3] ss:$4 sm:$0xff] }
 0x37c   : > { %v13589_v60 = vld [vmem:[#allocation2 + $0x3f3] ss:$4 sm:$0xff] }
 0x37d   : > { %v6743_v9 = vld [vmem:[#allocation2 + $0x657] ss:$4 sm:$0xff] }
 0x37e   : > { %24542 = vmatmul.mubr.msk.f32.gmra.mrb[6].mxu0 %vm535_vm1, %v13105_v61  ;;  %23826 = vmatmul.mubr.msk.f32.gmra.mrb[14].mxu1 %vm535_vm1, %v6261_v63  ;;  %v6745_v61 = vld [vmem:[#allocation2 + $0x757] ss:$4 sm:$0xff] }
 0x37f   : > { %24544 = vmatprep.mubr.msk.f32.mxu0 %vm535_vm1, %v13107_v62  ;;  %23830 = vmatprep.mubr.msk.f32.mxu1 %vm535_vm1, %v6476_v0  ;;  %v13591_v62 = vld [vmem:[#allocation2 + $0x413] ss:$4 sm:$0xff] }
 0x380   : > { %v13593_v63 = vld [vmem:[#allocation2 + $0x513] ss:$4 sm:$0xff] }
 0x381   : > { %v6747_v0 = vld [vmem:[#allocation2 + $0x777] ss:$4 sm:$0xff] }
 0x382   : > { %24545 = vmatmul.mubr.msk.f32.gmra.mrb[8].mxu0 %vm535_vm1, %v13109_v2  ;;  %23831 = vmatmul.mubr.msk.f32.vlgmr.msra.gmra.mrb[0].mxu1 %vm535_vm1, %v6478_v5  ;;  %v6749_v2 = vld [vmem:[#allocation2 + $0x877] ss:$4 sm:$0xff] }
 0x383   : > { %24547 = vmatprep.mubr.msk.f32.mxu0 %vm535_vm1, %v13111_v4  ;;  %23833 = vmatprep.mubr.msk.f32.mxu1 %vm535_vm1, %v6480_v6  ;;  %v13595_v4 = vld [vmem:[#allocation2 + $0x533] ss:$4 sm:$0xff] }
 0x384   : > { %23855 = vmatpush3.msk.msra.mxu1 %vm1231_vm0, %v29047_v39  ;;  %v13354_v39 = vld [vmem:[#allocation2 + $0x652] ss:$4 sm:$0xff]  ;;  %v13597_v5 = vld [vmem:[#allocation2 + $0x633] ss:$4 sm:$0xff] }
 0x385   : > { %23880 = vmatprep.subr.msk.mxu1 %vm1231_vm0, %v29097_v10  ;;  %v6751_v6 = vld [vmem:[#allocation2 + $0x897] ss:$4 sm:$0xff] }
 0x386   : > { %24548 = vmatmul.mubr.msk.f32.gmra.mrb[10].mxu0 %vm535_vm1, %v13113_v7  ;;  %23834 = vmatmul.mubr.msk.f32.gmra.mrb[2].mxu1 %vm535_vm1, %v6482_v12  ;;  %v6966_v7 = vld [vmem:[#allocation2 + $0xd8] ss:$4 sm:$0xff] }
 0x387   : > { %24550 = vmatprep.mubr.msk.f32.mxu0 %vm535_vm1, %v13115_v8  ;;  %23836 = vmatprep.mubr.msk.f32.mxu1 %vm535_vm1, %v6484_v13  ;;  %v13601_v8 = vld [vmem:[#allocation2 + $0x753] ss:$4 sm:$0xff]  ;;  %v6968_v12 = vld [vmem:[#allocation2 + $0xf8] ss:$4 sm:$0xff] }
 0x388   : > { %v6970_v13 = vld [vmem:[#allocation2 + $0x1f8] ss:$4 sm:$0xff] }
 0x38a   : > { %24551 = vmatmul.mubr.msk.f32.gmra.mrb[12].mxu0 %vm535_vm1, %v13117_v14  ;;  %23837 = vmatmul.mubr.msk.f32.gmra.mrb[4].mxu1 %vm535_vm1, %v6486_v16  ;;  %v13603_v14 = vld [vmem:[#allocation2 + $0x773] ss:$4 sm:$0xff] }
 0x38b   : > { %24553 = vmatprep.mubr.msk.f32.mxu0 %vm535_vm1, %v13119_v15  ;;  %23839 = vmatprep.mubr.msk.f32.mxu1 %vm535_vm1, %v6488_v17  ;;  %v29197_v15 = vld [vmem:[%s30269_s1 + $0x9c] sm:$0x3f] }
 0x38c   : > { %v13605_v16 = vld [vmem:[#allocation2 + $0x873] ss:$4 sm:$0xff]  ;;  %v6972_v17 = vld [vmem:[#allocation2 + $0x218] ss:$4 sm:$0xff] }
 0x38e   : > { %24554 = vmatmul.mubr.msk.f32.gmra.mrb[14].mxu0 %vm535_vm1, %v13121_v18  ;;  %23840 = vmatmul.mubr.msk.f32.gmra.mrb[6].mxu1 %vm535_vm1, %v6490_v3  ;;  %v6974_v18 = vld [vmem:[#allocation2 + $0x318] ss:$4 sm:$0xff]  ;;  %v13609_v3 = vld [vmem:[#allocation2 + $0x993] ss:$4 sm:$0xff] }
 0x38f   : > { %24558 = vmatprep.mubr.msk.f32.mxu0 %vm535_vm1, %v13336_v19  ;;  %23842 = vmatprep.mubr.msk.f32.mxu1 %vm535_vm1, %v6492_v20  ;;  %v13607_v19 = vld [vmem:[#allocation2 + $0x893] ss:$4 sm:$0xff]  ;;  %v6976_v20 = vld [vmem:[#allocation2 + $0x338] ss:$4 sm:$0xff] }
 0x392   : > { %24559 = vmatmul.mubr.msk.f32.vlgmr.msra.gmra.mrb[0].mxu0 %vm535_vm1, %v13338_v21  ;;  %23843 = vmatmul.mubr.msk.f32.gmra.mrb[8].mxu1 %vm535_vm1, %v6494_v23  ;;  %v6978_v21 = vld [vmem:[#allocation2 + $0x438] ss:$4 sm:$0xff] }
 0x393   : > { %24583 = vmatpush3.msk.msra.mxu0 %vm1231_vm0, %v29070_v52  ;;  %24561 = vmatprep.mubr.msk.f32.mxu0 %vm535_vm1, %v13340_v22  ;;  %v6735_v52 = vld [vmem:[#allocation2 + $0x417] ss:$4 sm:$0xff]  ;;  %v13826_v23 = vld [vmem:[#allocation2 + $0x1b4] ss:$4 sm:$0xff] }
 0x394   : > { %24608 = vmatprep.subr.msk.mxu0 %vm1231_vm0, %v29120_v24  ;;  %23845 = vmatprep.mubr.msk.f32.mxu1 %vm535_vm1, %v6496_v25  ;;  %v13611_v22 = vld [vmem:[#allocation2 + $0x9b3] ss:$4 sm:$0xff]  ;;  %v6982_v25 = vld [vmem:[#allocation2 + $0x558] ss:$4 sm:$0xff] }
 0x396   : > { %24562 = vmatmul.mubr.msk.f32.gmra.mrb[2].mxu0 %vm535_vm1, %v13342_v59  ;;  %23846 = vmatmul.mubr.msk.f32.gmra.mrb[10].mxu1 %vm535_vm1, %v6498_v28  ;;  %v13828_v59 = vld [vmem:[#allocation2 + $0x1d4] ss:$4 sm:$0xff] }
 0x397   : > { %24564 = vmatprep.mubr.msk.f32.mxu0 %vm535_vm1, %v13344_v27  ;;  %23848 = vmatprep.mubr.msk.f32.mxu1 %vm535_vm1, %v6500_v29  ;;  %v13830_v27 = vld [vmem:[#allocation2 + $0x2d4] ss:$4 sm:$0xff] }
 0x398   : > { %v6984_v28 = vld [vmem:[#allocation2 + $0x578] ss:$4 sm:$0xff] }
 0x399   : > { %v29220_v29 = vld [vmem:[%s30269_s1 + $0x144] sm:$0x3f] }
 0x39a   : > { %24565 = vmatmul.mubr.msk.f32.gmra.mrb[4].mxu0 %vm535_vm1, %v13346_v31  ;;  %23849 = vmatmul.mubr.msk.f32.gmra.mrb[12].mxu1 %vm535_vm1, %v6502_v33  ;;  %v6986_v31 = vld [vmem:[#allocation2 + $0x678] ss:$4 sm:$0xff] }
 0x39b   : > { %24567 = vmatprep.mubr.msk.f32.mxu0 %vm535_vm1, %v13348_v32  ;;  %23851 = vmatprep.mubr.msk.f32.mxu1 %vm535_vm1, %v6504_v34  ;;  %v13832_v32 = vld [vmem:[#allocation2 + $0x2f4] ss:$4 sm:$0xff] }
 0x39c   : > { %v13834_v33 = vld [vmem:[#allocation2 + $0x3f4] ss:$4 sm:$0xff] }
 0x39d   : > { %v6988_v34 = vld [vmem:[#allocation2 + $0x698] ss:$4 sm:$0xff] }
 0x39e   : > { %24568 = vmatmul.mubr.msk.f32.gmra.mrb[6].mxu0 %vm535_vm1, %v13350_v35  ;;  %23852 = vmatmul.mubr.msk.f32.gmra.mrb[14].mxu1 %vm535_vm1, %v6506_v37  ;;  %v6990_v35 = vld [vmem:[#allocation2 + $0x798] ss:$4 sm:$0xff] }
 0x39f   : > { %24570 = vmatprep.mubr.msk.f32.mxu0 %vm535_vm1, %v13352_v36  ;;  %23856 = vmatprep.mubr.msk.f32.mxu1 %vm535_vm1, %v6721_v38  ;;  %v13836_v36 = vld [vmem:[#allocation2 + $0x414] ss:$4 sm:$0xff] }
 0x3a0   : > { %v13838_v37 = vld [vmem:[#allocation2 + $0x514] ss:$4 sm:$0xff] }
 0x3a1   : > { %v6992_v38 = vld [vmem:[#allocation2 + $0x7b8] ss:$4 sm:$0xff] }
 0x3a2   : > { %24571 = vmatmul.mubr.msk.f32.gmra.mrb[8].mxu0 %vm535_vm1, %v13354_v39  ;;  %23857 = vmatmul.mubr.msk.f32.vlgmr.msra.gmra.mrb[0].mxu1 %vm535_vm1, %v6723_v41  ;;  %v6994_v39 = vld [vmem:[#allocation2 + $0x8b8] ss:$4 sm:$0xff] }
 0x3a3   : > { %24573 = vmatprep.mubr.msk.f32.mxu0 %vm535_vm1, %v13356_v40  ;;  %23859 = vmatprep.mubr.msk.f32.mxu1 %vm535_vm1, %v6725_v42  ;;  %v13840_v40 = vld [vmem:[#allocation2 + $0x534] ss:$4 sm:$0xff] }
 0x3a4   : > { %23881 = vmatpush3.msk.msra.mxu1 %vm1231_vm0, %v29097_v10  ;;  %v13599_v10 = vld [vmem:[#allocation2 + $0x653] ss:$4 sm:$0xff]  ;;  %v13842_v41 = vld [vmem:[#allocation2 + $0x634] ss:$4 sm:$0xff] }
 0x3a5   : > { %23906 = vmatprep.subr.msk.mxu1 %vm1231_vm0, %v29147_v44  ;;  %v6996_v42 = vld [vmem:[#allocation2 + $0x8d8] ss:$4 sm:$0xff] }
 0x3a6   : > { %24574 = vmatmul.mubr.msk.f32.gmra.mrb[10].mxu0 %vm535_vm1, %v13358_v43  ;;  %23860 = vmatmul.mubr.msk.f32.gmra.mrb[2].mxu1 %vm535_vm1, %v6727_v11  ;;  %v7211_v43 = vld [vmem:[#allocation2 + $0xd9] ss:$4 sm:$0xff] }
 0x3a7   : > { %24576 = vmatprep.mubr.msk.f32.mxu0 %vm535_vm1, %v13360_v45  ;;  %23862 = vmatprep.mubr.msk.f32.mxu1 %vm535_vm1, %v6729_v46  ;;  %v13846_v45 = vld [vmem:[#allocation2 + $0x754] ss:$4 sm:$0xff]  ;;  %v7213_v11 = vld [vmem:[#allocation2 + $0xf9] ss:$4 sm:$0xff] }
 0x3a8   : > { %v7215_v46 = vld [vmem:[#allocation2 + $0x1f9] ss:$4 sm:$0xff] }
 0x3aa   : > { %24577 = vmatmul.mubr.msk.f32.gmra.mrb[12].mxu0 %vm535_vm1, %v13362_v47  ;;  %23863 = vmatmul.mubr.msk.f32.gmra.mrb[4].mxu1 %vm535_vm1, %v6731_v49  ;;  %v13848_v47 = vld [vmem:[#allocation2 + $0x774] ss:$4 sm:$0xff]  ;;  %v7217_v49 = vld [vmem:[#allocation2 + $0x219] ss:$4 sm:$0xff] }
 0x3ab   : > { %24579 = vmatprep.mubr.msk.f32.mxu0 %vm535_vm1, %v13364_v48  ;;  %23865 = vmatprep.mubr.msk.f32.mxu1 %vm535_vm1, %v6733_v26  ;;  %v13850_v48 = vld [vmem:[#allocation2 + $0x874] ss:$4 sm:$0xff]  ;;  %v7219_v26 = vld [vmem:[#allocation2 + $0x319] ss:$4 sm:$0xff] }
 0x3ae   : > { %24580 = vmatmul.mubr.msk.f32.gmra.mrb[14].mxu0 %vm535_vm1, %v13366_v50  ;;  %23866 = vmatmul.mubr.msk.f32.gmra.mrb[6].mxu1 %vm535_vm1, %v6735_v52  ;;  %v29252_v50 = vld [vmem:[%s30269_s1 + $0xa2] sm:$0x3f] }
 0x3af   : > { %24584 = vmatprep.mubr.msk.f32.mxu0 %vm535_vm1, %v13581_v51  ;;  %23868 = vmatprep.mubr.msk.f32.mxu1 %vm535_vm1, %v6737_v53  ;;  %v13852_v51 = vld [vmem:[#allocation2 + $0x894] ss:$4 sm:$0xff]  ;;  %v7221_v53 = vld [vmem:[#allocation2 + $0x339] ss:$4 sm:$0xff] }
 0x3b0   : > { %v13854_v52 = vld [vmem:[#allocation2 + $0x994] ss:$4 sm:$0xff] }
 0x3b2   : > { %24585 = vmatmul.mubr.msk.f32.vlgmr.msra.gmra.mrb[0].mxu0 %vm535_vm1, %v13583_v54  ;;  %23869 = vmatmul.mubr.msk.f32.gmra.mrb[8].mxu1 %vm535_vm1, %v6739_v56  ;;  %v7223_v54 = vld [vmem:[#allocation2 + $0x439] ss:$4 sm:$0xff] }
 0x3b3   : > { %24609 = vmatpush3.msk.msra.mxu0 %vm1231_vm0, %v29120_v24  ;;  %24587 = vmatprep.mubr.msk.f32.mxu0 %vm535_vm1, %v13585_v55  ;;  %v6980_v24 = vld [vmem:[#allocation2 + $0x458] ss:$4 sm:$0xff]  ;;  %v14071_v56 = vld [vmem:[#allocation2 + $0x1b5] ss:$4 sm:$0xff] }
 0x3b4   : > { %24634 = vmatprep.subr.msk.mxu0 %vm1231_vm0, %v29170_v57  ;;  %23871 = vmatprep.mubr.msk.f32.mxu1 %vm535_vm1, %v6741_v58  ;;  %v13856_v55 = vld [vmem:[#allocation2 + $0x9b4] ss:$4 sm:$0xff]  ;;  %v7227_v58 = vld [vmem:[#allocation2 + $0x559] ss:$4 sm:$0xff] }
 0x3b6   : > { %24588 = vmatmul.mubr.msk.f32.gmra.mrb[2].mxu0 %vm535_vm1, %v13587_v30  ;;  %23872 = vmatmul.mubr.msk.f32.gmra.mrb[10].mxu1 %vm535_vm1, %v6743_v9  ;;  %v14073_v30 = vld [vmem:[#allocation2 + $0x1d5] ss:$4 sm:$0xff] }
 0x3b7   : > { %24590 = vmatprep.mubr.msk.f32.mxu0 %vm535_vm1, %v13589_v60  ;;  %23874 = vmatprep.mubr.msk.f32.mxu1 %vm535_vm1, %v6745_v61  ;;  %v14075_v60 = vld [vmem:[#allocation2 + $0x2d5] ss:$4 sm:$0xff] }
 0x3b8   : > { %v7229_v9 = vld [vmem:[#allocation2 + $0x579] ss:$4 sm:$0xff] }
 0x3b9   : > { %v29270_v61 = vld [vmem:[%s30269_s1 + $0x14a] sm:$0x3f] }
 0x3ba   : > { %24591 = vmatmul.mubr.msk.f32.gmra.mrb[4].mxu0 %vm535_vm1, %v13591_v62  ;;  %23875 = vmatmul.mubr.msk.f32.gmra.mrb[12].mxu1 %vm535_vm1, %v6747_v0  ;;  %v7231_v62 = vld [vmem:[#allocation2 + $0x679] ss:$4 sm:$0xff] }
 0x3bb   : > { %24593 = vmatprep.mubr.msk.f32.mxu0 %vm535_vm1, %v13593_v63  ;;  %23877 = vmatprep.mubr.msk.f32.mxu1 %vm535_vm1, %v6749_v2  ;;  %v14077_v63 = vld [vmem:[#allocation2 + $0x2f5] ss:$4 sm:$0xff] }
 0x3bc   : > { %v14079_v0 = vld [vmem:[#allocation2 + $0x3f5] ss:$4 sm:$0xff] }
 0x3bd   : > { %v7233_v2 = vld [vmem:[#allocation2 + $0x699] ss:$4 sm:$0xff] }
 0x3be   : > { %24594 = vmatmul.mubr.msk.f32.gmra.mrb[6].mxu0 %vm535_vm1, %v13595_v4  ;;  %23878 = vmatmul.mubr.msk.f32.gmra.mrb[14].mxu1 %vm535_vm1, %v6751_v6  ;;  %v7235_v4 = vld [vmem:[#allocation2 + $0x799] ss:$4 sm:$0xff] }
 0x3bf   : > { %24596 = vmatprep.mubr.msk.f32.mxu0 %vm535_vm1, %v13597_v5  ;;  %23882 = vmatprep.mubr.msk.f32.mxu1 %vm535_vm1, %v6966_v7  ;;  %v14081_v5 = vld [vmem:[#allocation2 + $0x415] ss:$4 sm:$0xff] }
 0x3c0   : > { %v14083_v6 = vld [vmem:[#allocation2 + $0x515] ss:$4 sm:$0xff] }
 0x3c1   : > { %v7237_v7 = vld [vmem:[#allocation2 + $0x7b9] ss:$4 sm:$0xff] }
 0x3c2   : > { %24597 = vmatmul.mubr.msk.f32.gmra.mrb[8].mxu0 %vm535_vm1, %v13599_v10  ;;  %23883 = vmatmul.mubr.msk.f32.vlgmr.msra.gmra.mrb[0].mxu1 %vm535_vm1, %v6968_v12  ;;  %v7239_v10 = vld [vmem:[#allocation2 + $0x8b9] ss:$4 sm:$0xff] }
 0x3c3   : > { %24599 = vmatprep.mubr.msk.f32.mxu0 %vm535_vm1, %v13601_v8  ;;  %23885 = vmatprep.mubr.msk.f32.mxu1 %vm535_vm1, %v6970_v13  ;;  %v14085_v8 = vld [vmem:[#allocation2 + $0x535] ss:$4 sm:$0xff] }
 0x3c4   : > { %23907 = vmatpush3.msk.msra.mxu1 %vm1231_vm0, %v29147_v44  ;;  %v13844_v44 = vld [vmem:[#allocation2 + $0x654] ss:$4 sm:$0xff]  ;;  %v14087_v12 = vld [vmem:[#allocation2 + $0x635] ss:$4 sm:$0xff] }
 0x3c5   : > { %23932 = vmatprep.subr.msk.mxu1 %vm1231_vm0, %v29197_v15  ;;  %v7241_v13 = vld [vmem:[#allocation2 + $0x8d9] ss:$4 sm:$0xff] }
 0x3c6   : > { %24600 = vmatmul.mubr.msk.f32.gmra.mrb[10].mxu0 %vm535_vm1, %v13603_v14  ;;  %23886 = vmatmul.mubr.msk.f32.gmra.mrb[2].mxu1 %vm535_vm1, %v6972_v17  ;;  %v7456_v14 = vld [vmem:[#allocation2 + $0xda] ss:$4 sm:$0xff] }
 0x3c7   : > { %24602 = vmatprep.mubr.msk.f32.mxu0 %vm535_vm1, %v13605_v16  ;;  %23888 = vmatprep.mubr.msk.f32.mxu1 %vm535_vm1, %v6974_v18  ;;  %v14091_v16 = vld [vmem:[#allocation2 + $0x755] ss:$4 sm:$0xff]  ;;  %v7458_v17 = vld [vmem:[#allocation2 + $0xfa] ss:$4 sm:$0xff] }
 0x3c8   : > { %v7460_v18 = vld [vmem:[#allocation2 + $0x1fa] ss:$4 sm:$0xff] }
 0x3ca   : > { %24603 = vmatmul.mubr.msk.f32.gmra.mrb[12].mxu0 %vm535_vm1, %v13607_v19  ;;  %23889 = vmatmul.mubr.msk.f32.gmra.mrb[4].mxu1 %vm535_vm1, %v6976_v20  ;;  %v14093_v19 = vld [vmem:[#allocation2 + $0x775] ss:$4 sm:$0xff]  ;;  %v7462_v20 = vld [vmem:[#allocation2 + $0x21a] ss:$4 sm:$0xff] }
 0x3cb   : > { %24605 = vmatprep.mubr.msk.f32.mxu0 %vm535_vm1, %v13609_v3  ;;  %23891 = vmatprep.mubr.msk.f32.mxu1 %vm535_vm1, %v6978_v21  ;;  %v14095_v3 = vld [vmem:[#allocation2 + $0x875] ss:$4 sm:$0xff]  ;;  %v7464_v21 = vld [vmem:[#allocation2 + $0x31a] ss:$4 sm:$0xff] }
 0x3ce   : > { %24606 = vmatmul.mubr.msk.f32.gmra.mrb[14].mxu0 %vm535_vm1, %v13611_v22  ;;  %23892 = vmatmul.mubr.msk.f32.gmra.mrb[6].mxu1 %vm535_vm1, %v6980_v24  ;;  %v14097_v22 = vld [vmem:[#allocation2 + $0x895] ss:$4 sm:$0xff]  ;;  %v7466_v24 = vld [vmem:[#allocation2 + $0x33a] ss:$4 sm:$0xff] }
 0x3cf   : > { %24610 = vmatprep.mubr.msk.f32.mxu0 %vm535_vm1, %v13826_v23  ;;  %23894 = vmatprep.mubr.msk.f32.mxu1 %vm535_vm1, %v6982_v25  ;;  %v14099_v23 = vld [vmem:[#allocation2 + $0x995] ss:$4 sm:$0xff]  ;;  %v7468_v25 = vld [vmem:[#allocation2 + $0x43a] ss:$4 sm:$0xff] }
 0x3d2   : > { %24611 = vmatmul.mubr.msk.f32.vlgmr.msra.gmra.mrb[0].mxu0 %vm535_vm1, %v13828_v59  ;;  %23895 = vmatmul.mubr.msk.f32.gmra.mrb[8].mxu1 %vm535_vm1, %v6984_v28  ;;  %v14101_v59 = vld [vmem:[#allocation2 + $0x9b5] ss:$4 sm:$0xff]  ;;  %v7470_v28 = vld [vmem:[#allocation2 + $0x45a] ss:$4 sm:$0xff] }
 0x3d3   : > { %24635 = vmatpush3.msk.msra.mxu0 %vm1231_vm0, %v29170_v57  ;;  %24613 = vmatprep.mubr.msk.f32.mxu0 %vm535_vm1, %v13830_v27  ;;  %v7225_v57 = vld [vmem:[#allocation2 + $0x459] ss:$4 sm:$0xff]  ;;  %v14316_v27 = vld [vmem:[#allocation2 + $0x1b6] ss:$4 sm:$0xff] }
 0x3d4   : > { %24660 = vmatprep.subr.msk.mxu0 %vm1231_vm0, %v29220_v29  ;;  %23897 = vmatprep.mubr.msk.f32.mxu1 %vm535_vm1, %v6986_v31  ;;  %v14318_v31 = vld [vmem:[#allocation2 + $0x1d6] ss:$4 sm:$0xff] }
 0x3d6   : > { %24614 = vmatmul.mubr.msk.f32.gmra.mrb[2].mxu0 %vm535_vm1, %v13832_v32  ;;  %23898 = vmatmul.mubr.msk.f32.gmra.mrb[10].mxu1 %vm535_vm1, %v6988_v34  ;;  %v14320_v32 = vld [vmem:[#allocation2 + $0x2d6] ss:$4 sm:$0xff] }
 0x3d7   : > { %24616 = vmatprep.mubr.msk.f32.mxu0 %vm535_vm1, %v13834_v33  ;;  %23900 = vmatprep.mubr.msk.f32.mxu1 %vm535_vm1, %v6990_v35  ;;  %v7474_v33 = vld [vmem:[#allocation2 + $0x57a] ss:$4 sm:$0xff] }
 0x3d8   : > { %v29313_v34 = vld [vmem:[%s30269_s1 + $0x150] sm:$0x3f] }
 0x3d9   : > { %v7476_v35 = vld [vmem:[#allocation2 + $0x67a] ss:$4 sm:$0xff] }
 0x3da   : > { %24617 = vmatmul.mubr.msk.f32.gmra.mrb[4].mxu0 %vm535_vm1, %v13836_v36  ;;  %23901 = vmatmul.mubr.msk.f32.gmra.mrb[12].mxu1 %vm535_vm1, %v6992_v38  ;;  %v14322_v36 = vld [vmem:[#allocation2 + $0x2f6] ss:$4 sm:$0xff] }
 0x3db   : > { %24619 = vmatprep.mubr.msk.f32.mxu0 %vm535_vm1, %v13838_v37  ;;  %23903 = vmatprep.mubr.msk.f32.mxu1 %vm535_vm1, %v6994_v39  ;;  %v14324_v37 = vld [vmem:[#allocation2 + $0x3f6] ss:$4 sm:$0xff] }
 0x3dc   : > { %v7478_v38 = vld [vmem:[#allocation2 + $0x69a] ss:$4 sm:$0xff] }
 0x3dd   : > { %v7480_v39 = vld [vmem:[#allocation2 + $0x79a] ss:$4 sm:$0xff] }
 0x3de   : > { %24620 = vmatmul.mubr.msk.f32.gmra.mrb[6].mxu0 %vm535_vm1, %v13840_v40  ;;  %23904 = vmatmul.mubr.msk.f32.gmra.mrb[14].mxu1 %vm535_vm1, %v6996_v42  ;;  %v14326_v40 = vld [vmem:[#allocation2 + $0x416] ss:$4 sm:$0xff] }
 0x3df   : > { %24622 = vmatprep.mubr.msk.f32.mxu0 %vm535_vm1, %v13842_v41  ;;  %23908 = vmatprep.mubr.msk.f32.mxu1 %vm535_vm1, %v7211_v43  ;;  %v14328_v41 = vld [vmem:[#allocation2 + $0x516] ss:$4 sm:$0xff] }
 0x3e0   : > { %v7482_v42 = vld [vmem:[#allocation2 + $0x7ba] ss:$4 sm:$0xff] }
 0x3e1   : > { %v7484_v43 = vld [vmem:[#allocation2 + $0x8ba] ss:$4 sm:$0xff] }
 0x3e2   : > { %24623 = vmatmul.mubr.msk.f32.gmra.mrb[8].mxu0 %vm535_vm1, %v13844_v44  ;;  %23909 = vmatmul.mubr.msk.f32.vlgmr.msra.gmra.mrb[0].mxu1 %vm535_vm1, %v7213_v11  ;;  %v14330_v44 = vld [vmem:[#allocation2 + $0x536] ss:$4 sm:$0xff] }
 0x3e3   : > { %24625 = vmatprep.mubr.msk.f32.mxu0 %vm535_vm1, %v13846_v45  ;;  %23911 = vmatprep.mubr.msk.f32.mxu1 %vm535_vm1, %v7215_v46  ;;  %v14332_v45 = vld [vmem:[#allocation2 + $0x636] ss:$4 sm:$0xff]  ;;  %v7709_v46 = vld [vmem:[#allocation2 + $0x31b] ss:$4 sm:$0xff] }
 0x3e4   : > { %23933 = vmatpush3.msk.msra.mxu1 %vm1231_vm0, %v29197_v15  ;;  %v14089_v15 = vld [vmem:[#allocation2 + $0x655] ss:$4 sm:$0xff]  ;;  %v7486_v11 = vld [vmem:[#allocation2 + $0x8da] ss:$4 sm:$0xff] }
 0x3e5   : > { %25614 = vmatprep.subr.msk.mxu1 %vm1231_vm0, %v29252_v50 }
 0x3e6   : > { %24626 = vmatmul.mubr.msk.f32.gmra.mrb[10].mxu0 %vm535_vm1, %v13848_v47  ;;  %23912 = vmatmul.mubr.msk.f32.gmra.mrb[2].mxu1 %vm535_vm1, %v7217_v49  ;;  %v14334_v47 = vld [vmem:[#allocation2 + $0x656] ss:$4 sm:$0xff]  ;;  %v7711_v49 = vld [vmem:[#allocation2 + $0x33b] ss:$4 sm:$0xff] }
 0x3e7   : > { %24628 = vmatprep.mubr.msk.f32.mxu0 %vm535_vm1, %v13850_v48  ;;  %23914 = vmatprep.mubr.msk.f32.mxu1 %vm535_vm1, %v7219_v26  ;;  %v14336_v48 = vld [vmem:[#allocation2 + $0x756] ss:$4 sm:$0xff]  ;;  %v7713_v26 = vld [vmem:[#allocation2 + $0x43b] ss:$4 sm:$0xff] }
 0x3ea   : > { %24629 = vmatmul.mubr.msk.f32.gmra.mrb[12].mxu0 %vm535_vm1, %v13852_v51  ;;  %23915 = vmatmul.mubr.msk.f32.gmra.mrb[4].mxu1 %vm535_vm1, %v7221_v53  ;;  %v14340_v51 = vld [vmem:[#allocation2 + $0x876] ss:$4 sm:$0xff]  ;;  %v7717_v53 = vld [vmem:[#allocation2 + $0x55b] ss:$4 sm:$0xff] }
 0x3eb   : > { %24631 = vmatprep.mubr.msk.f32.mxu0 %vm535_vm1, %v13854_v52  ;;  %23917 = vmatprep.mubr.msk.f32.mxu1 %vm535_vm1, %v7223_v54  ;;  %v7715_v52 = vld [vmem:[#allocation2 + $0x45b] ss:$4 sm:$0xff]  ;;  %v14342_v54 = vld [vmem:[#allocation2 + $0x896] ss:$4 sm:$0xff] }
 0x3ee   : > { %24632 = vmatmul.mubr.msk.f32.gmra.mrb[14].mxu0 %vm535_vm1, %v13856_v55  ;;  %23918 = vmatmul.mubr.msk.f32.gmra.mrb[6].mxu1 %vm535_vm1, %v7225_v57  ;;  %v14344_v55 = vld [vmem:[#allocation2 + $0x996] ss:$4 sm:$0xff]  ;;  %v7721_v57 = vld [vmem:[#allocation2 + $0x67b] ss:$4 sm:$0xff] }
 0x3ef   : > { %24636 = vmatprep.mubr.msk.f32.mxu0 %vm535_vm1, %v14071_v56  ;;  %23920 = vmatprep.mubr.msk.f32.mxu1 %vm535_vm1, %v7227_v58  ;;  %v7719_v56 = vld [vmem:[#allocation2 + $0x57b] ss:$4 sm:$0xff]  ;;  %v14346_v58 = vld [vmem:[#allocation2 + $0x9b6] ss:$4 sm:$0xff] }
 0x3f2   : > { %24637 = vmatmul.mubr.msk.f32.vlgmr.msra.gmra.mrb[0].mxu0 %vm535_vm1, %v14073_v30  ;;  %23921 = vmatmul.mubr.msk.f32.gmra.mrb[8].mxu1 %vm535_vm1, %v7229_v9  ;;  %v14561_v30 = vld [vmem:[#allocation2 + $0x1b7] ss:$4 sm:$0xff] }
 0x3f3   : > { %24661 = vmatpush3.msk.msra.mxu0 %vm1231_vm0, %v29220_v29  ;;  %24639 = vmatprep.mubr.msk.f32.mxu0 %vm535_vm1, %v14075_v60  ;;  %v7472_v29 = vld [vmem:[#allocation2 + $0x55a] ss:$4 sm:$0xff]  ;;  %v7723_v60 = vld [vmem:[#allocation2 + $0x69b] ss:$4 sm:$0xff] }
 0x3f4   : > { %24686 = vmatprep.subr.msk.mxu0 %vm1231_vm0, %v29270_v61  ;;  %23923 = vmatprep.mubr.msk.f32.mxu1 %vm535_vm1, %v7231_v62  ;;  %v7725_v9 = vld [vmem:[#allocation2 + $0x79b] ss:$4 sm:$0xff] }
 0x3f5   : > { %v14565_v62 = vld [vmem:[#allocation2 + $0x2d7] ss:$4 sm:$0xff] }
 0x3f6   : > { %24640 = vmatmul.mubr.msk.f32.gmra.mrb[2].mxu0 %vm535_vm1, %v14077_v63  ;;  %23924 = vmatmul.mubr.msk.f32.gmra.mrb[10].mxu1 %vm535_vm1, %v7233_v2  ;;  %v7727_v63 = vld [vmem:[#allocation2 + $0x7bb] ss:$4 sm:$0xff] }
 0x3f7   : > { %24642 = vmatprep.mubr.msk.f32.mxu0 %vm535_vm1, %v14079_v0  ;;  %23926 = vmatprep.mubr.msk.f32.mxu1 %vm535_vm1, %v7235_v4  ;;  %v15082_v0 = vld [vmem:[%s30269_s1 + $0x156] sm:$0x3f] }
 0x3f8   : > { %v7729_v2 = vld [vmem:[#allocation2 + $0x8bb] ss:$4 sm:$0xff] }
 0x3f9   : > { %v14567_v4 = vld [vmem:[#allocation2 + $0x2f7] ss:$4 sm:$0xff] }
 0x3fa   : > { %24643 = vmatmul.mubr.msk.f32.gmra.mrb[4].mxu0 %vm535_vm1, %v14081_v5  ;;  %23927 = vmatmul.mubr.msk.f32.gmra.mrb[12].mxu1 %vm535_vm1, %v7237_v7  ;;  %v14569_v5 = vld [vmem:[#allocation2 + $0x3f7] ss:$4 sm:$0xff] }
 0x3fb   : > { %24645 = vmatprep.mubr.msk.f32.mxu0 %vm535_vm1, %v14083_v6  ;;  %23929 = vmatprep.mubr.msk.f32.mxu1 %vm535_vm1, %v7239_v10  ;;  %v7731_v6 = vld [vmem:[#allocation2 + $0x8db] ss:$4 sm:$0xff] }
 0x3fc   : > { %v14571_v7 = vld [vmem:[#allocation2 + $0x417] ss:$4 sm:$0xff] }
 0x3fd   : > { %v14573_v10 = vld [vmem:[#allocation2 + $0x517] ss:$4 sm:$0xff] }
 0x3fe   : > { %24646 = vmatmul.mubr.msk.f32.gmra.mrb[6].mxu0 %vm535_vm1, %v14085_v8  ;;  %23930 = vmatmul.mubr.msk.f32.gmra.mrb[14].mxu1 %vm535_vm1, %v7241_v13  ;;  %v14575_v8 = vld [vmem:[#allocation2 + $0x537] ss:$4 sm:$0xff] }
 0x3ff   : > { %24648 = vmatprep.mubr.msk.f32.mxu0 %vm535_vm1, %v14087_v12  ;;  %23934 = vmatprep.mubr.msk.f32.mxu1 %vm535_vm1, %v7456_v14  ;;  %v14577_v12 = vld [vmem:[#allocation2 + $0x637] ss:$4 sm:$0xff] }
 0x400   : > { %v14579_v13 = vld [vmem:[#allocation2 + $0x657] ss:$4 sm:$0xff] }
 0x401   : > { %v14581_v14 = vld [vmem:[#allocation2 + $0x757] ss:$4 sm:$0xff] }
 0x402   : > { %24649 = vmatmul.mubr.msk.f32.gmra.mrb[8].mxu0 %vm535_vm1, %v14089_v15  ;;  %23935 = vmatmul.mubr.msk.f32.vlgmr.msra.gmra.mrb[0].mxu1 %vm535_vm1, %v7458_v17  ;;  %v14583_v15 = vld [vmem:[#allocation2 + $0x777] ss:$4 sm:$0xff] }
 0x403   : > { %24651 = vmatprep.mubr.msk.f32.mxu0 %vm535_vm1, %v14091_v16  ;;  %23937 = vmatprep.mubr.msk.f32.mxu1 %vm535_vm1, %v7460_v18  ;;  %v14585_v16 = vld [vmem:[#allocation2 + $0x877] ss:$4 sm:$0xff] }
 0x404   : > { %25615 = vmatpush3.msk.msra.mxu1 %vm1231_vm0, %v29252_v50  ;;  %v14338_v50 = vld [vmem:[#allocation2 + $0x776] ss:$4 sm:$0xff]  ;;  %v14587_v17 = vld [vmem:[#allocation2 + $0x897] ss:$4 sm:$0xff] }
 0x405   : > { %v14589_v18 = vld [vmem:[#allocation2 + $0x997] ss:$4 sm:$0xff] }
 0x406   : > { %24652 = vmatmul.mubr.msk.f32.gmra.mrb[10].mxu0 %vm535_vm1, %v14093_v19  ;;  %23938 = vmatmul.mubr.msk.f32.gmra.mrb[2].mxu1 %vm535_vm1, %v7462_v20  ;;  %v14591_v19 = vld [vmem:[#allocation2 + $0x9b7] ss:$4 sm:$0xff]  ;;  %v14808_v20 = vld [vmem:[#allocation2 + $0x218] ss:$4 sm:$0xff] }
 0x407   : > { %24654 = vmatprep.mubr.msk.f32.mxu0 %vm535_vm1, %v14095_v3  ;;  %23940 = vmatprep.mubr.msk.f32.mxu1 %vm535_vm1, %v7464_v21  ;;  %v14806_v3 = vld [vmem:[#allocation2 + $0x1f8] ss:$4 sm:$0xff] }
 0x408   : > { %v14810_v21 = vld [vmem:[#allocation2 + $0x318] ss:$4 sm:$0xff] }
 0x40a   : > { %24655 = vmatmul.mubr.msk.f32.gmra.mrb[12].mxu0 %vm535_vm1, %v14097_v22  ;;  %23941 = vmatmul.mubr.msk.f32.gmra.mrb[4].mxu1 %vm535_vm1, %v7466_v24  ;;  %v15327_v22 = vld [vmem:[%s30269_s1 + $0x15c] sm:$0x3f] }
 0x40b   : > { %24657 = vmatprep.mubr.msk.f32.mxu0 %vm535_vm1, %v14099_v23  ;;  %23943 = vmatprep.mubr.msk.f32.mxu1 %vm535_vm1, %v7468_v25  ;;  %v14812_v23 = vld [vmem:[#allocation2 + $0x338] ss:$4 sm:$0xff] }
 0x40c   : > { %v14814_v24 = vld [vmem:[#allocation2 + $0x438] ss:$4 sm:$0xff] }
 0x40d   : > { %v14816_v25 = vld [vmem:[#allocation2 + $0x458] ss:$4 sm:$0xff] }
 0x40e   : > { %24658 = vmatmul.mubr.msk.f32.gmra.mrb[14].mxu0 %vm535_vm1, %v14101_v59  ;;  %23944 = vmatmul.mubr.msk.f32.gmra.mrb[6].mxu1 %vm535_vm1, %v7470_v28  ;;  %v14818_v59 = vld [vmem:[#allocation2 + $0x558] ss:$4 sm:$0xff] }
 0x40f   : > { %24662 = vmatprep.mubr.msk.f32.mxu0 %vm535_vm1, %v14316_v27  ;;  %23946 = vmatprep.mubr.msk.f32.mxu1 %vm535_vm1, %v7472_v29  ;;  %v14820_v27 = vld [vmem:[#allocation2 + $0x578] ss:$4 sm:$0xff] }
 0x410   : > { %v14822_v28 = vld [vmem:[#allocation2 + $0x678] ss:$4 sm:$0xff] }
 0x411   : > { %v14824_v29 = vld [vmem:[#allocation2 + $0x698] ss:$4 sm:$0xff] }
 0x412   : > { %24663 = vmatmul.mubr.msk.f32.vlgmr.msra.gmra.mrb[0].mxu0 %vm535_vm1, %v14318_v31  ;;  %23947 = vmatmul.mubr.msk.f32.gmra.mrb[8].mxu1 %vm535_vm1, %v7474_v33  ;;  %v14826_v31 = vld [vmem:[#allocation2 + $0x798] ss:$4 sm:$0xff] }
 0x413   : > { %24687 = vmatpush3.msk.msra.mxu0 %vm1231_vm0, %v29270_v61  ;;  %24665 = vmatprep.mubr.msk.f32.mxu0 %vm535_vm1, %v14320_v32  ;;  %v14563_v61 = vld [vmem:[#allocation2 + $0x1d7] ss:$4 sm:$0xff]  ;;  %v14828_v32 = vld [vmem:[#allocation2 + $0x7b8] ss:$4 sm:$0xff] }
 0x414   : > { %24712 = vmatprep.subr.msk.mxu0 %vm1231_vm0, %v29313_v34  ;;  %23949 = vmatprep.mubr.msk.f32.mxu1 %vm535_vm1, %v7476_v35  ;;  %v14830_v33 = vld [vmem:[#allocation2 + $0x8b8] ss:$4 sm:$0xff] }
 0x415   : > { %v14834_v35 = vld [vmem:[#allocation2 + $0x9d8] ss:$4 sm:$0xff] }
 0x416   : > { %24666 = vmatmul.mubr.msk.f32.gmra.mrb[2].mxu0 %vm535_vm1, %v14322_v36  ;;  %23950 = vmatmul.mubr.msk.f32.gmra.mrb[10].mxu1 %vm535_vm1, %v7478_v38  ;;  %v14836_v36 = vld [vmem:[#allocation2 + $0x9f8] ss:$4 sm:$0xff]  ;;  %v15053_v38 = vld [vmem:[#allocation2 + $0x219] ss:$4 sm:$0xff] }
 0x417   : > { %24668 = vmatprep.mubr.msk.f32.mxu0 %vm535_vm1, %v14324_v37  ;;  %23952 = vmatprep.mubr.msk.f32.mxu1 %vm535_vm1, %v7480_v39  ;;  %v15051_v37 = vld [vmem:[#allocation2 + $0x1f9] ss:$4 sm:$0xff] }
 0x418   : > { %v15055_v39 = vld [vmem:[#allocation2 + $0x319] ss:$4 sm:$0xff] }
 0x41a   : > { %24669 = vmatmul.mubr.msk.f32.gmra.mrb[4].mxu0 %vm535_vm1, %v14326_v40  ;;  %23953 = vmatmul.mubr.msk.f32.gmra.mrb[12].mxu1 %vm535_vm1, %v7482_v42  ;;  %v15572_v40 = vld [vmem:[%s30269_s1 + $0x162] sm:$0x3f] }
 0x41b   : > { %24671 = vmatprep.mubr.msk.f32.mxu0 %vm535_vm1, %v14328_v41  ;;  %23955 = vmatprep.mubr.msk.f32.mxu1 %vm535_vm1, %v7484_v43  ;;  %v15057_v41 = vld [vmem:[#allocation2 + $0x339] ss:$4 sm:$0xff] }
 0x41c   : > { %v15059_v42 = vld [vmem:[#allocation2 + $0x439] ss:$4 sm:$0xff] }
 0x41d   : > { %v15061_v43 = vld [vmem:[#allocation2 + $0x459] ss:$4 sm:$0xff] }
 0x41e   : > { %24672 = vmatmul.mubr.msk.f32.gmra.mrb[6].mxu0 %vm535_vm1, %v14330_v44  ;;  %23956 = vmatmul.mubr.msk.f32.gmra.mrb[14].mxu1 %vm535_vm1, %v7486_v11  ;;  %v15063_v44 = vld [vmem:[#allocation2 + $0x559] ss:$4 sm:$0xff] }
 0x41f   : > { %24674 = vmatprep.mubr.msk.f32.mxu0 %vm535_vm1, %v14332_v45  ;;  %23966 = vmatprep.mubr.msk.f32.mxu1 %vm535_vm1, %v7709_v46  ;;  %v15065_v45 = vld [vmem:[#allocation2 + $0x579] ss:$4 sm:$0xff] }
 0x420   : > { %v15067_v11 = vld [vmem:[#allocation2 + $0x679] ss:$4 sm:$0xff] }
 0x421   : > { %v15069_v46 = vld [vmem:[#allocation2 + $0x699] ss:$4 sm:$0xff] }
 0x422   : > { %24675 = vmatmul.mubr.msk.f32.gmra.mrb[8].mxu0 %vm535_vm1, %v14334_v47  ;;  %23967 = vmatmul.mubr.msk.f32.vlgmr.msra.gmra.mrb[4].mxu1 %vm535_vm1, %v7711_v49  ;;  %v15071_v47 = vld [vmem:[#allocation2 + $0x799] ss:$4 sm:$0xff] }
 0x423   : > { %24677 = vmatprep.mubr.msk.f32.mxu0 %vm535_vm1, %v14336_v48  ;;  %23969 = vmatprep.mubr.msk.f32.mxu1 %vm535_vm1, %v7713_v26  ;;  %v15073_v48 = vld [vmem:[#allocation2 + $0x7b9] ss:$4 sm:$0xff] }
 0x424   : > { %v15075_v49 = vld [vmem:[#allocation2 + $0x8b9] ss:$4 sm:$0xff] }
 0x425   : > { %v15077_v26 = vld [vmem:[#allocation2 + $0x8d9] ss:$4 sm:$0xff] }
 0x426   : > { %24678 = vmatmul.mubr.msk.f32.gmra.mrb[10].mxu0 %vm535_vm1, %v14338_v50  ;;  %23970 = vmatmul.mubr.msk.f32.gmra.mrb[6].mxu1 %vm535_vm1, %v7715_v52  ;;  %v15079_v50 = vld [vmem:[#allocation2 + $0x9d9] ss:$4 sm:$0xff]  ;;  %v15296_v52 = vld [vmem:[#allocation2 + $0x1fa] ss:$4 sm:$0xff] }
 0x427   : > { %24680 = vmatprep.mubr.msk.f32.mxu0 %vm535_vm1, %v14340_v51  ;;  %23972 = vmatprep.mubr.msk.f32.mxu1 %vm535_vm1, %v7717_v53  ;;  %v15081_v51 = vld [vmem:[#allocation2 + $0x9f9] ss:$4 sm:$0xff]  ;;  %v15298_v53 = vld [vmem:[#allocation2 + $0x21a] ss:$4 sm:$0xff] }
 0x42a   : > { %24681 = vmatmul.mubr.msk.f32.gmra.mrb[12].mxu0 %vm535_vm1, %v14342_v54  ;;  %23973 = vmatmul.mubr.msk.f32.gmra.mrb[8].mxu1 %vm535_vm1, %v7719_v56  ;;  %v15300_v54 = vld [vmem:[#allocation2 + $0x31a] ss:$4 sm:$0xff] }
 0x42b   : > { %24683 = vmatprep.mubr.msk.f32.mxu0 %vm535_vm1, %v14344_v55  ;;  %23975 = vmatprep.mubr.msk.f32.mxu1 %vm535_vm1, %v7721_v57  ;;  %v15817_v55 = vld [vmem:[%s30269_s1 + $0x168] sm:$0x3f] }
 0x42c   : > { %v15302_v56 = vld [vmem:[#allocation2 + $0x33a] ss:$4 sm:$0xff] }
 0x42d   : > { %v15304_v57 = vld [vmem:[#allocation2 + $0x43a] ss:$4 sm:$0xff] }
 0x42e   : > { %24684 = vmatmul.mubr.msk.f32.gmra.mrb[14].mxu0 %vm535_vm1, %v14346_v58  ;;  %23976 = vmatmul.mubr.msk.f32.gmra.mrb[10].mxu1 %vm535_vm1, %v7723_v60  ;;  %v15306_v58 = vld [vmem:[#allocation2 + $0x45a] ss:$4 sm:$0xff] }
 0x42f   : > { %24688 = vmatprep.mubr.msk.f32.mxu0 %vm535_vm1, %v14561_v30  ;;  %23978 = vmatprep.mubr.msk.f32.mxu1 %vm535_vm1, %v7725_v9  ;;  %v15308_v30 = vld [vmem:[#allocation2 + $0x55a] ss:$4 sm:$0xff] }
 0x430   : > { %v15310_v60 = vld [vmem:[#allocation2 + $0x57a] ss:$4 sm:$0xff] }
 0x431   : > { %v15312_v9 = vld [vmem:[#allocation2 + $0x67a] ss:$4 sm:$0xff] }
 0x432   : > { %24689 = vmatmul.mubr.msk.f32.vlgmr.msra.gmra.mrb[0].mxu0 %vm535_vm1, %v14563_v61  ;;  %23979 = vmatmul.mubr.msk.f32.gmra.mrb[12].mxu1 %vm535_vm1, %v7727_v63  ;;  %v15314_v61 = vld [vmem:[#allocation2 + $0x69a] ss:$4 sm:$0xff] }
 0x433   : > { %24713 = vmatpush3.msk.msra.mxu0 %vm1231_vm0, %v29313_v34  ;;  %24691 = vmatprep.mubr.msk.f32.mxu0 %vm535_vm1, %v14565_v62  ;;  %v14832_v34 = vld [vmem:[#allocation2 + $0x8d8] ss:$4 sm:$0xff]  ;;  %v15316_v62 = vld [vmem:[#allocation2 + $0x79a] ss:$4 sm:$0xff] }
 0x434   : > { %24738 = vmatprep.subr.msk.mxu0 %vm1231_vm0, %v15082_v0  ;;  %23981 = vmatprep.mubr.msk.f32.mxu1 %vm535_vm1, %v7729_v2  ;;  %v15318_v63 = vld [vmem:[#allocation2 + $0x7ba] ss:$4 sm:$0xff] }
 0x435   : > { %v15322_v2 = vld [vmem:[#allocation2 + $0x8da] ss:$4 sm:$0xff] }
 0x436   : > { %24692 = vmatmul.mubr.msk.f32.gmra.mrb[2].mxu0 %vm535_vm1, %v14567_v4  ;;  %23982 = vmatmul.mubr.msk.f32.gmra.mrb[14].mxu1 %vm535_vm1, %v7731_v6  ;;  %v15324_v4 = vld [vmem:[#allocation2 + $0x9da] ss:$4 sm:$0xff]  ;;  %v15541_v6 = vld [vmem:[#allocation2 + $0x1fb] ss:$4 sm:$0xff] }
 0x437   : > { %24694 = vmatprep.mubr.msk.f32.mxu0 %vm535_vm1, %v14569_v5  ;;  %v15326_v5 = vld [vmem:[#allocation2 + $0x9fa] ss:$4 sm:$0xff] }
 0x43a   : > { %24695 = vmatmul.mubr.msk.f32.gmra.mrb[4].mxu0 %vm535_vm1, %v14571_v7  ;;  %v15543_v7 = vld [vmem:[#allocation2 + $0x21b] ss:$4 sm:$0xff] }
 0x43b   : > { %24697 = vmatprep.mubr.msk.f32.mxu0 %vm535_vm1, %v14573_v10  ;;  %v15545_v10 = vld [vmem:[#allocation2 + $0x31b] ss:$4 sm:$0xff] }
 0x43e   : > { %24698 = vmatmul.mubr.msk.f32.gmra.mrb[6].mxu0 %vm535_vm1, %v14575_v8  ;;  %v16062_v8 = vld [vmem:[%s30269_s1 + $0x16e] sm:$0x3f] }
 0x43f   : > { %24700 = vmatprep.mubr.msk.f32.mxu0 %vm535_vm1, %v14577_v12  ;;  %v15547_v12 = vld [vmem:[#allocation2 + $0x33b] ss:$4 sm:$0xff] }
 0x442   : > { %24701 = vmatmul.mubr.msk.f32.gmra.mrb[8].mxu0 %vm535_vm1, %v14579_v13  ;;  %v15549_v13 = vld [vmem:[#allocation2 + $0x43b] ss:$4 sm:$0xff] }
 0x443   : > { %24703 = vmatprep.mubr.msk.f32.mxu0 %vm535_vm1, %v14581_v14  ;;  %v15551_v14 = vld [vmem:[#allocation2 + $0x45b] ss:$4 sm:$0xff] }
 0x446   : > { %24704 = vmatmul.mubr.msk.f32.gmra.mrb[10].mxu0 %vm535_vm1, %v14583_v15  ;;  %v15553_v15 = vld [vmem:[#allocation2 + $0x55b] ss:$4 sm:$0xff] }
 0x447   : > { %24706 = vmatprep.mubr.msk.f32.mxu0 %vm535_vm1, %v14585_v16  ;;  %v15555_v16 = vld [vmem:[#allocation2 + $0x57b] ss:$4 sm:$0xff] }
 0x44a   : > { %24707 = vmatmul.mubr.msk.f32.gmra.mrb[12].mxu0 %vm535_vm1, %v14587_v17  ;;  %v15557_v17 = vld [vmem:[#allocation2 + $0x67b] ss:$4 sm:$0xff] }
 0x44b   : > { %24709 = vmatprep.mubr.msk.f32.mxu0 %vm535_vm1, %v14589_v18  ;;  %v15559_v18 = vld [vmem:[#allocation2 + $0x69b] ss:$4 sm:$0xff] }
 0x44e   : > { %24710 = vmatmul.mubr.msk.f32.gmra.mrb[14].mxu0 %vm535_vm1, %v14591_v19  ;;  %v15561_v19 = vld [vmem:[#allocation2 + $0x79b] ss:$4 sm:$0xff] }
 0x44f   : > { %24714 = vmatprep.mubr.msk.f32.mxu0 %vm535_vm1, %v14806_v3  ;;  %v15563_v3 = vld [vmem:[#allocation2 + $0x7bb] ss:$4 sm:$0xff] }
 0x452   : > { %24715 = vmatmul.mubr.msk.f32.vlgmr.msra.gmra.mrb[0].mxu0 %vm535_vm1, %v14808_v20  ;;  %v15565_v20 = vld [vmem:[#allocation2 + $0x8bb] ss:$4 sm:$0xff] }
 0x453   : > { %24739 = vmatpush3.msk.msra.mxu0 %vm1231_vm0, %v15082_v0  ;;  %24717 = vmatprep.mubr.msk.f32.mxu0 %vm535_vm1, %v14810_v21  ;;  %v15320_v0 = vld [vmem:[#allocation2 + $0x8ba] ss:$4 sm:$0xff]  ;;  %v15567_v21 = vld [vmem:[#allocation2 + $0x8db] ss:$4 sm:$0xff] }
 0x454   : > { %24764 = vmatprep.subr.msk.mxu0 %vm1231_vm0, %v15327_v22 }
 0x456   : > { %24718 = vmatmul.mubr.msk.f32.gmra.mrb[2].mxu0 %vm535_vm1, %v14812_v23  ;;  %v15571_v23 = vld [vmem:[#allocation2 + $0x9fb] ss:$4 sm:$0xff] }
 0x457   : > { %24720 = vmatprep.mubr.msk.f32.mxu0 %vm535_vm1, %v14814_v24  ;;  %v15786_v24 = vld [vmem:[#allocation2 + $0x1fc] ss:$4 sm:$0xff] }
 0x45a   : > { %24721 = vmatmul.mubr.msk.f32.gmra.mrb[4].mxu0 %vm535_vm1, %v14816_v25  ;;  %v15788_v25 = vld [vmem:[#allocation2 + $0x21c] ss:$4 sm:$0xff] }
 0x45b   : > { %24723 = vmatprep.mubr.msk.f32.mxu0 %vm535_vm1, %v14818_v59  ;;  %v15790_v59 = vld [vmem:[#allocation2 + $0x31c] ss:$4 sm:$0xff] }
 0x45e   : > { %24724 = vmatmul.mubr.msk.f32.gmra.mrb[6].mxu0 %vm535_vm1, %v14820_v27  ;;  %v16307_v27 = vld [vmem:[%s30269_s1 + $0x174] sm:$0x3f] }
 0x45f   : > { %24726 = vmatprep.mubr.msk.f32.mxu0 %vm535_vm1, %v14822_v28  ;;  %v15792_v28 = vld [vmem:[#allocation2 + $0x33c] ss:$4 sm:$0xff] }
 0x462   : > { %24727 = vmatmul.mubr.msk.f32.gmra.mrb[8].mxu0 %vm535_vm1, %v14824_v29  ;;  %v15794_v29 = vld [vmem:[#allocation2 + $0x43c] ss:$4 sm:$0xff] }
 0x463   : > { %24729 = vmatprep.mubr.msk.f32.mxu0 %vm535_vm1, %v14826_v31 }
 0x466   : > { %24730 = vmatmul.mubr.msk.f32.gmra.mrb[10].mxu0 %vm535_vm1, %v14828_v32  ;;  %v15796_v32 = vld [vmem:[#allocation2 + $0x45c] ss:$4 sm:$0xff] }
 0x467   : > { %24732 = vmatprep.mubr.msk.f32.mxu0 %vm535_vm1, %v14830_v33 }
 0x46a   : > { %24733 = vmatmul.mubr.msk.f32.gmra.mrb[12].mxu0 %vm535_vm1, %v14832_v34  ;;  %v15798_v34 = vld [vmem:[#allocation2 + $0x55c] ss:$4 sm:$0xff] }
 0x46b   : > { %24735 = vmatprep.mubr.msk.f32.mxu0 %vm535_vm1, %v14834_v35 }
 0x46e   : > { %24736 = vmatmul.mubr.msk.f32.gmra.mrb[14].mxu0 %vm535_vm1, %v14836_v36  ;;  %v15800_v36 = vld [vmem:[#allocation2 + $0x57c] ss:$4 sm:$0xff] }
 0x46f   : > { %24740 = vmatprep.mubr.msk.f32.mxu0 %vm535_vm1, %v15051_v37 }
 0x472   : > { %24741 = vmatmul.mubr.msk.f32.vlgmr.msra.gmra.mrb[0].mxu0 %vm535_vm1, %v15053_v38  ;;  %v15802_v38 = vld [vmem:[#allocation2 + $0x67c] ss:$4 sm:$0xff] }
 0x473   : > { %24765 = vmatpush3.msk.msra.mxu0 %vm1231_vm0, %v15327_v22  ;;  %24743 = vmatprep.mubr.msk.f32.mxu0 %vm535_vm1, %v15055_v39  ;;  %v15569_v22 = vld [vmem:[#allocation2 + $0x9db] ss:$4 sm:$0xff]  ;;  %v15804_v39 = vld [vmem:[#allocation2 + $0x69c] ss:$4 sm:$0xff] }
 0x474   : > { %24790 = vmatprep.subr.msk.mxu0 %vm1231_vm0, %v15572_v40 }
 0x476   : > { %24744 = vmatmul.mubr.msk.f32.gmra.mrb[2].mxu0 %vm535_vm1, %v15057_v41  ;;  %v15808_v41 = vld [vmem:[#allocation2 + $0x7bc] ss:$4 sm:$0xff] }
 0x477   : > { %24746 = vmatprep.mubr.msk.f32.mxu0 %vm535_vm1, %v15059_v42  ;;  %v15810_v42 = vld [vmem:[#allocation2 + $0x8bc] ss:$4 sm:$0xff] }
 0x47a   : > { %24747 = vmatmul.mubr.msk.f32.gmra.mrb[4].mxu0 %vm535_vm1, %v15061_v43  ;;  %v15812_v43 = vld [vmem:[#allocation2 + $0x8dc] ss:$4 sm:$0xff] }
 0x47b   : > { %24749 = vmatprep.mubr.msk.f32.mxu0 %vm535_vm1, %v15063_v44  ;;  %v15814_v44 = vld [vmem:[#allocation2 + $0x9dc] ss:$4 sm:$0xff] }
 0x47e   : > { %24750 = vmatmul.mubr.msk.f32.gmra.mrb[6].mxu0 %vm535_vm1, %v15065_v45  ;;  %v15816_v45 = vld [vmem:[#allocation2 + $0x9fc] ss:$4 sm:$0xff] }
 0x47f   : > { %24752 = vmatprep.mubr.msk.f32.mxu0 %vm535_vm1, %v15067_v11  ;;  %v16031_v11 = vld [vmem:[#allocation2 + $0x1fd] ss:$4 sm:$0xff] }
 0x482   : > { %24753 = vmatmul.mubr.msk.f32.gmra.mrb[8].mxu0 %vm535_vm1, %v15069_v46  ;;  %v16033_v46 = vld [vmem:[#allocation2 + $0x21d] ss:$4 sm:$0xff] }
 0x483   : > { %24755 = vmatprep.mubr.msk.f32.mxu0 %vm535_vm1, %v15071_v47  ;;  %v16035_v47 = vld [vmem:[#allocation2 + $0x31d] ss:$4 sm:$0xff] }
 0x486   : > { %24756 = vmatmul.mubr.msk.f32.gmra.mrb[10].mxu0 %vm535_vm1, %v15073_v48  ;;  %v16552_v48 = vld [vmem:[%s30269_s1 + $0x17a] sm:$0x3f] }
 0x487   : > { %24758 = vmatprep.mubr.msk.f32.mxu0 %vm535_vm1, %v15075_v49  ;;  %v16037_v49 = vld [vmem:[#allocation2 + $0x33d] ss:$4 sm:$0xff] }
 0x48a   : > { %24759 = vmatmul.mubr.msk.f32.gmra.mrb[12].mxu0 %vm535_vm1, %v15077_v26  ;;  %v16039_v26 = vld [vmem:[#allocation2 + $0x43d] ss:$4 sm:$0xff] }
 0x48b   : > { %24761 = vmatprep.mubr.msk.f32.mxu0 %vm535_vm1, %v15079_v50 }
 0x48e   : > { %24762 = vmatmul.mubr.msk.f32.gmra.mrb[14].mxu0 %vm535_vm1, %v15081_v51  ;;  %v16041_v51 = vld [vmem:[#allocation2 + $0x45d] ss:$4 sm:$0xff] }
 0x48f   : > { %24766 = vmatprep.mubr.msk.f32.mxu0 %vm535_vm1, %v15296_v52 }
 0x492   : > { %24767 = vmatmul.mubr.msk.f32.vlgmr.msra.gmra.mrb[0].mxu0 %vm535_vm1, %v15298_v53  ;;  %v16043_v53 = vld [vmem:[#allocation2 + $0x55d] ss:$4 sm:$0xff] }
 0x493   : > { %24791 = vmatpush3.msk.msra.mxu0 %vm1231_vm0, %v15572_v40  ;;  %24769 = vmatprep.mubr.msk.f32.mxu0 %vm535_vm1, %v15300_v54  ;;  %v15806_v40 = vld [vmem:[#allocation2 + $0x79c] ss:$4 sm:$0xff] }
 0x494   : > { %24816 = vmatprep.subr.msk.mxu0 %vm1231_vm0, %v15817_v55 }
 0x496   : > { %24770 = vmatmul.mubr.msk.f32.gmra.mrb[2].mxu0 %vm535_vm1, %v15302_v56 }
 0x497   : > { %24772 = vmatprep.mubr.msk.f32.mxu0 %vm535_vm1, %v15304_v57  ;;  %v16047_v57 = vld [vmem:[#allocation2 + $0x67d] ss:$4 sm:$0xff] }
 0x49a   : > { %24773 = vmatmul.mubr.msk.f32.gmra.mrb[4].mxu0 %vm535_vm1, %v15306_v58 }
 0x49b   : > { %24775 = vmatprep.mubr.msk.f32.mxu0 %vm535_vm1, %v15308_v30  ;;  %v16049_v30 = vld [vmem:[#allocation2 + $0x69d] ss:$4 sm:$0xff] }
 0x49e   : > { %24776 = vmatmul.mubr.msk.f32.gmra.mrb[6].mxu0 %vm535_vm1, %v15310_v60 }
 0x49f   : > { %24778 = vmatprep.mubr.msk.f32.mxu0 %vm535_vm1, %v15312_v9  ;;  %v16051_v9 = vld [vmem:[#allocation2 + $0x79d] ss:$4 sm:$0xff] }
 0x4a2   : > { %24779 = vmatmul.mubr.msk.f32.gmra.mrb[8].mxu0 %vm535_vm1, %v15314_v61 }
 0x4a3   : > { %24781 = vmatprep.mubr.msk.f32.mxu0 %vm535_vm1, %v15316_v62  ;;  %v16053_v62 = vld [vmem:[#allocation2 + $0x7bd] ss:$4 sm:$0xff] }
 0x4a6   : > { %24782 = vmatmul.mubr.msk.f32.gmra.mrb[10].mxu0 %vm535_vm1, %v15318_v63 }
 0x4a7   : > { %24784 = vmatprep.mubr.msk.f32.mxu0 %vm535_vm1, %v15320_v0  ;;  %v16055_v0 = vld [vmem:[#allocation2 + $0x8bd] ss:$4 sm:$0xff] }
 0x4aa   : > { %24785 = vmatmul.mubr.msk.f32.gmra.mrb[12].mxu0 %vm535_vm1, %v15322_v2 }
 0x4ab   : > { %24787 = vmatprep.mubr.msk.f32.mxu0 %vm535_vm1, %v15324_v4  ;;  %v16057_v4 = vld [vmem:[#allocation2 + $0x8dd] ss:$4 sm:$0xff] }
 0x4ae   : > { %24788 = vmatmul.mubr.msk.f32.gmra.mrb[14].mxu0 %vm535_vm1, %v15326_v5 }
 0x4af   : > { %24792 = vmatprep.mubr.msk.f32.mxu0 %vm535_vm1, %v15541_v6  ;;  %v16059_v6 = vld [vmem:[#allocation2 + $0x9dd] ss:$4 sm:$0xff] }
 0x4b2   : > { %24793 = vmatmul.mubr.msk.f32.vlgmr.msra.gmra.mrb[0].mxu0 %vm535_vm1, %v15543_v7 }
 0x4b3   : > { %24817 = vmatpush3.msk.msra.mxu0 %vm1231_vm0, %v15817_v55  ;;  %24795 = vmatprep.mubr.msk.f32.mxu0 %vm535_vm1, %v15545_v10  ;;  %v16045_v55 = vld [vmem:[#allocation2 + $0x57d] ss:$4 sm:$0xff] }
 0x4b4   : > { %24842 = vmatprep.subr.msk.mxu0 %vm1231_vm0, %v16062_v8  ;;  %v16061_v10 = vld [vmem:[#allocation2 + $0x9fd] ss:$4 sm:$0xff] }
 0x4b6   : > { %24796 = vmatmul.mubr.msk.f32.gmra.mrb[2].mxu0 %vm535_vm1, %v15547_v12  ;;  %v16276_v12 = vld [vmem:[#allocation2 + $0x1fe] ss:$4 sm:$0xff] }
 0x4b7   : > { %24798 = vmatprep.mubr.msk.f32.mxu0 %vm535_vm1, %v15549_v13  ;;  %v16278_v13 = vld [vmem:[#allocation2 + $0x21e] ss:$4 sm:$0xff] }
 0x4ba   : > { %24799 = vmatmul.mubr.msk.f32.gmra.mrb[4].mxu0 %vm535_vm1, %v15551_v14  ;;  %v16280_v14 = vld [vmem:[#allocation2 + $0x31e] ss:$4 sm:$0xff] }
 0x4bb   : > { %24801 = vmatprep.mubr.msk.f32.mxu0 %vm535_vm1, %v15553_v15  ;;  %v16282_v15 = vld [vmem:[#allocation2 + $0x33e] ss:$4 sm:$0xff] }
 0x4be   : > { %24802 = vmatmul.mubr.msk.f32.gmra.mrb[6].mxu0 %vm535_vm1, %v15555_v16  ;;  %v16284_v16 = vld [vmem:[#allocation2 + $0x43e] ss:$4 sm:$0xff] }
 0x4bf   : > { %24804 = vmatprep.mubr.msk.f32.mxu0 %vm535_vm1, %v15557_v17  ;;  %v16286_v17 = vld [vmem:[#allocation2 + $0x45e] ss:$4 sm:$0xff] }
 0x4c2   : > { %24805 = vmatmul.mubr.msk.f32.gmra.mrb[8].mxu0 %vm535_vm1, %v15559_v18  ;;  %v16288_v18 = vld [vmem:[#allocation2 + $0x55e] ss:$4 sm:$0xff] }
 0x4c3   : > { %24807 = vmatprep.mubr.msk.f32.mxu0 %vm535_vm1, %v15561_v19  ;;  %v16290_v19 = vld [vmem:[#allocation2 + $0x57e] ss:$4 sm:$0xff] }
 0x4c6   : > { %24808 = vmatmul.mubr.msk.f32.gmra.mrb[10].mxu0 %vm535_vm1, %v15563_v3  ;;  %v16292_v3 = vld [vmem:[#allocation2 + $0x67e] ss:$4 sm:$0xff] }
 0x4c7   : > { %24810 = vmatprep.mubr.msk.f32.mxu0 %vm535_vm1, %v15565_v20  ;;  %v16294_v20 = vld [vmem:[#allocation2 + $0x69e] ss:$4 sm:$0xff] }
 0x4ca   : > { %24811 = vmatmul.mubr.msk.f32.gmra.mrb[12].mxu0 %vm535_vm1, %v15567_v21  ;;  %v16296_v21 = vld [vmem:[#allocation2 + $0x79e] ss:$4 sm:$0xff] }
 0x4cb   : > { %24813 = vmatprep.mubr.msk.f32.mxu0 %vm535_vm1, %v15569_v22  ;;  %v16298_v22 = vld [vmem:[#allocation2 + $0x7be] ss:$4 sm:$0xff] }
 0x4ce   : > { %24814 = vmatmul.mubr.msk.f32.gmra.mrb[14].mxu0 %vm535_vm1, %v15571_v23  ;;  %v16300_v23 = vld [vmem:[#allocation2 + $0x8be] ss:$4 sm:$0xff] }
 0x4cf   : > { %24818 = vmatprep.mubr.msk.f32.mxu0 %vm535_vm1, %v15786_v24  ;;  %v16302_v24 = vld [vmem:[#allocation2 + $0x8de] ss:$4 sm:$0xff] }
 0x4d2   : > { %24819 = vmatmul.mubr.msk.f32.vlgmr.msra.gmra.mrb[0].mxu0 %vm535_vm1, %v15788_v25  ;;  %v16304_v25 = vld [vmem:[#allocation2 + $0x9de] ss:$4 sm:$0xff] }
 0x4d3   : > { %24843 = vmatpush3.msk.msra.mxu0 %vm1231_vm0, %v16062_v8  ;;  %24821 = vmatprep.mubr.msk.f32.mxu0 %vm535_vm1, %v15790_v59  ;;  %v16306_v59 = vld [vmem:[#allocation2 + $0x9fe] ss:$4 sm:$0xff] }
 0x4d4   : > { %24868 = vmatprep.subr.msk.mxu0 %vm1231_vm0, %v16307_v27 }
 0x4d5   : > { %v29468_v31 = vpop.f32.mrb[0].mxu1 }
 0x4d6   : > { %24822 = vmatmul.mubr.msk.f32.gmra.mrb[2].mxu0 %vm535_vm1, %v15792_v28  ;;  %v29471_v33 = vpop.f32.mrb[1].mxu1  ;;  %v16523_v28 = vld [vmem:[#allocation2 + $0x21f] ss:$4 sm:$0xff] }
 0x4d7   : > { %24824 = vmatprep.mubr.msk.f32.mxu0 %vm535_vm1, %v15794_v29  ;;  %v16525_v29 = vld [vmem:[#allocation2 + $0x31f] ss:$4 sm:$0xff] }
 0x4d9   : > { %v29474_v35 = vpop.f32.mrb[2].mxu1 }
 0x4da   : > { %24825 = vmatmul.mubr.msk.f32.gmra.mrb[4].mxu0 %vm535_vm1, %v15796_v32  ;;  %v29477_v37 = vpop.f32.mrb[3].mxu1  ;;  %v16527_v32 = vld [vmem:[#allocation2 + $0x33f] ss:$4 sm:$0xff] }
 0x4db   : > { %24827 = vmatprep.mubr.msk.f32.mxu0 %vm535_vm1, %v15798_v34  ;;  %v16529_v34 = vld [vmem:[#allocation2 + $0x43f] ss:$4 sm:$0xff] }
 0x4de   : > { %24828 = vmatmul.mubr.msk.f32.gmra.mrb[6].mxu0 %vm535_vm1, %v15800_v36  ;;  %v16531_v36 = vld [vmem:[#allocation2 + $0x45f] ss:$4 sm:$0xff] }
 0x4df   : > { %24830 = vmatprep.mubr.msk.f32.mxu0 %vm535_vm1, %v15802_v38  ;;  %v16533_v38 = vld [vmem:[#allocation2 + $0x55f] ss:$4 sm:$0xff] }
 0x4e2   : > { %24831 = vmatmul.mubr.msk.f32.gmra.mrb[8].mxu0 %vm535_vm1, %v15804_v39  ;;  %v16535_v39 = vld [vmem:[#allocation2 + $0x57f] ss:$4 sm:$0xff] }
 0x4e3   : > { %24833 = vmatprep.mubr.msk.f32.mxu0 %vm535_vm1, %v15806_v40  ;;  %v16537_v40 = vld [vmem:[#allocation2 + $0x67f] ss:$4 sm:$0xff] }
 0x4e6   : > { %24834 = vmatmul.mubr.msk.f32.gmra.mrb[10].mxu0 %vm535_vm1, %v15808_v41  ;;  %v16539_v41 = vld [vmem:[#allocation2 + $0x69f] ss:$4 sm:$0xff] }
 0x4e7   : > { %24836 = vmatprep.mubr.msk.f32.mxu0 %vm535_vm1, %v15810_v42  ;;  %v16541_v42 = vld [vmem:[#allocation2 + $0x79f] ss:$4 sm:$0xff] }
 0x4ea   : > { %24837 = vmatmul.mubr.msk.f32.gmra.mrb[12].mxu0 %vm535_vm1, %v15812_v43  ;;  %v16543_v43 = vld [vmem:[#allocation2 + $0x7bf] ss:$4 sm:$0xff] }
 0x4eb   : > { %24839 = vmatprep.mubr.msk.f32.mxu0 %vm535_vm1, %v15814_v44  ;;  %v16545_v44 = vld [vmem:[#allocation2 + $0x8bf] ss:$4 sm:$0xff] }
 0x4ee   : > { %24840 = vmatmul.mubr.msk.f32.gmra.mrb[14].mxu0 %vm535_vm1, %v15816_v45  ;;  %v16547_v45 = vld [vmem:[#allocation2 + $0x8df] ss:$4 sm:$0xff] }
 0x4ef   : > { %24844 = vmatprep.mubr.msk.f32.mxu0 %vm535_vm1, %v16031_v11  ;;  %v16549_v11 = vld [vmem:[#allocation2 + $0x9df] ss:$4 sm:$0xff] }
 0x4f2   : > { %24845 = vmatmul.mubr.msk.f32.vlgmr.msra.gmra.mrb[0].mxu0 %vm535_vm1, %v16033_v46  ;;  %v16551_v46 = vld [vmem:[#allocation2 + $0x9ff] ss:$4 sm:$0xff] }
 0x4f3   : > { %24869 = vmatpush3.msk.msra.mxu0 %vm1231_vm0, %v16307_v27  ;;  %24847 = vmatprep.mubr.msk.f32.mxu0 %vm535_vm1, %v16035_v47  ;;  %v16521_v27 = vld [vmem:[#allocation2 + $0x1ff] ss:$4 sm:$0xff] }
 0x4f4   : > { %24894 = vmatprep.subr.msk.mxu0 %vm1231_vm0, %v16552_v48  ;;  %v16872_v47 = vld [vmem:[%s30271_s3 + $0x20] sm:$0xff] }
 0x4f5   : > { %v29497_v50 = vpop.f32.mrb[4].mxu1 }
 0x4f6   : > { %24848 = vmatmul.mubr.msk.f32.gmra.mrb[2].mxu0 %vm535_vm1, %v16037_v49  ;;  %v29500_v52 = vpop.f32.mrb[5].mxu1 }
 0x4f7   : > { %24850 = vmatprep.mubr.msk.f32.mxu0 %vm535_vm1, %v16039_v26  ;;  %v16874_v26 = vld [vmem:[%s30271_s3 + $0x30] sm:$0xff] }
 0x4f9   : > { %v29503_v54 = vpop.f32.mrb[6].mxu1 }
 0x4fa   : > { %24851 = vmatmul.mubr.msk.f32.gmra.mrb[4].mxu0 %vm535_vm1, %v16041_v51  ;;  %v29506_v56 = vpop.f32.mrb[7].mxu1  ;;  %v16875_v51 = vld [vmem:[%s30271_s3 + $0x38] sm:$0xff] }
 0x4fb   : > { %24853 = vmatprep.mubr.msk.f32.mxu0 %vm535_vm1, %v16043_v53  ;;  %v25346_v53 = vpack.c.bf16 %v16875_v51, %v16874_v26 }
 0x4fd   : > { %v29509_v58 = vpop.f32.mrb[8].mxu1 }
 0x4fe   : > { %24854 = vmatmul.mubr.msk.f32.gmra.mrb[6].mxu0 %vm535_vm1, %v16045_v55  ;;  %v29512_v60 = vpop.f32.mrb[9].mxu1  ;;  %v16865_v55 = vld [vmem:[#allocation3 + $0x1] ss:$2 sm:$0xff] }
 0x4ff   : > { %24856 = vmatprep.mubr.msk.f32.mxu0 %vm535_vm1, %v16047_v57  ;;  %24928 = vmatprep.mubr.msk.f32.mxu1 %vm16804_vm3, %v16865_v55  ;;  %v16860_v57 = vld [vmem:[%s30271_s3] sm:$0xff] }
 0x501   : > { %v29515_v61 = vpop.f32.mrb[10].mxu1 }
 0x502   : > { %24857 = vmatmul.mubr.msk.f32.gmra.mrb[8].mxu0 %vm535_vm1, %v16049_v30  ;;  %v29518_v63 = vpop.f32.mrb[11].mxu1  ;;  %v16861_v30 = vld [vmem:[%s30271_s3 + $0x8] sm:$0xff] }
 0x503   : > { %24859 = vmatprep.mubr.msk.f32.mxu0 %vm535_vm1, %v16051_v9  ;;  %v25350_v9 = vpack.c.bf16 %v16861_v30, %v16860_v57 }
 0x505   : > { %v29521_v2 = vpop.f32.mrb[12].mxu1 }
 0x506   : > { %24860 = vmatmul.mubr.msk.f32.gmra.mrb[10].mxu0 %vm535_vm1, %v16053_v62  ;;  %v29524_v5 = vpop.f32.mrb[13].mxu1 }
 0x507   : > { %24862 = vmatprep.mubr.msk.f32.mxu0 %vm535_vm1, %v16055_v0  ;;  %v29648_v0 = vld [vmem:[%s30270_s2] ss:$0 sm:$0xff] }
 0x509   : > { %v29527_v7 = vpop.f32.mrb[14].mxu1 }
 0x50a   : > { %24863 = vmatmul.mubr.msk.f32.gmra.mrb[12].mxu0 %vm535_vm1, %v16057_v4  ;;  %v29530_v8 = vpop.f32.mrb[15].mxu1 }
 0x50b   : > { %24865 = vmatprep.mubr.msk.f32.mxu0 %vm535_vm1, %v16059_v6 }
 0x50e   : > { %24866 = vmatmul.mubr.msk.f32.gmra.mrb[14].mxu0 %vm535_vm1, %v16061_v10 }
 0x50f   : > { %24870 = vmatprep.mubr.msk.f32.mxu0 %vm535_vm1, %v16276_v12 }
 0x512   : > { %24871 = vmatmul.mubr.msk.f32.vlgmr.msra.gmra.mrb[0].mxu0 %vm535_vm1, %v16278_v13 }
 0x513   : > { %24895 = vmatpush3.msk.msra.mxu0 %vm1231_vm0, %v16552_v48  ;;  %24873 = vmatprep.mubr.msk.f32.mxu0 %vm535_vm1, %v16280_v14  ;;  %v16873_v48 = vld [vmem:[%s30271_s3 + $0x28] sm:$0xff] }
 0x514   : > { %v25342_v49 = vpack.c.bf16 %v16873_v48, %v16872_v47 }
 0x516   : > { %24874 = vmatmul.mubr.msk.f32.gmra.mrb[2].mxu0 %vm535_vm1, %v16282_v15  ;;  %25343 = vmatprep.subr.bf16.mxu1 %v25342_v49 }
 0x517   : > { %24876 = vmatprep.mubr.msk.f32.mxu0 %vm535_vm1, %v16284_v16  ;;  %25345 = vmatpush3.bf16.msra.mxu1 %v25342_v49 }
 0x518   : > { %25347 = vmatprep.subr.bf16.mxu1 %v25346_v53 }
 0x51a   : > { %24877 = vmatmul.mubr.msk.f32.gmra.mrb[4].mxu0 %vm535_vm1, %v16286_v17 }
 0x51b   : > { %24879 = vmatprep.mubr.msk.f32.mxu0 %vm535_vm1, %v16288_v18  ;;  %25349 = vmatpush3.bf16.msra.mxu1 %v25346_v53 }
 0x51c   : > { %25351 = vmatprep.subr.bf16.mxu1 %v25350_v9 }
 0x51e   : > { %24880 = vmatmul.mubr.msk.f32.gmra.mrb[6].mxu0 %vm535_vm1, %v16290_v19 }
 0x51f   : > { %24882 = vmatprep.mubr.msk.f32.mxu0 %vm535_vm1, %v16292_v3 }
 0x522   : > { %24883 = vmatmul.mubr.msk.f32.gmra.mrb[8].mxu0 %vm535_vm1, %v16294_v20 }
 0x523   : > { %24885 = vmatprep.mubr.msk.f32.mxu0 %vm535_vm1, %v16296_v21 }
 0x526   : > { %24886 = vmatmul.mubr.msk.f32.gmra.mrb[10].mxu0 %vm535_vm1, %v16298_v22 }
 0x527   : > { %24888 = vmatprep.mubr.msk.f32.mxu0 %vm535_vm1, %v16300_v23 }
 0x52a   : > { %24889 = vmatmul.mubr.msk.f32.gmra.mrb[12].mxu0 %vm535_vm1, %v16302_v24 }
 0x52b   : > { %24891 = vmatprep.mubr.msk.f32.mxu0 %vm535_vm1, %v16304_v25 }
 0x52e   : > { %24892 = vmatmul.mubr.msk.f32.gmra.mrb[14].mxu0 %vm535_vm1, %v16306_v59 }
 0x52f   : > { %24896 = vmatprep.mubr.msk.f32.mxu0 %vm535_vm1, %v16521_v27 }
 0x532   : > { %24897 = vmatmul.mubr.msk.f32.vlgmr.msra.gmra.mrb[0].mxu0 %vm535_vm1, %v16523_v28 }
 0x533   : > { %24899 = vmatprep.mubr.msk.f32.mxu0 %vm535_vm1, %v16525_v29 }
 0x536   : > { %24900 = vmatmul.mubr.msk.f32.gmra.mrb[2].mxu0 %vm535_vm1, %v16527_v32  ;;  %v16862_v32 = vld [vmem:[%s30271_s3 + $0x10] sm:$0xff] }
 0x537   : > { %24902 = vmatprep.mubr.msk.f32.mxu0 %vm535_vm1, %v16529_v34  ;;  %v16863_v34 = vld [vmem:[%s30271_s3 + $0x18] sm:$0xff] }
 0x53a   : > { %24903 = vmatmul.mubr.msk.f32.gmra.mrb[4].mxu0 %vm535_vm1, %v16531_v36 }
 0x53b   : > { %24905 = vmatprep.mubr.msk.f32.mxu0 %vm535_vm1, %v16533_v38 }
 0x53e   : > { %24906 = vmatmul.mubr.msk.f32.gmra.mrb[6].mxu0 %vm535_vm1, %v16535_v39 }
 0x53f   : > { %24908 = vmatprep.mubr.msk.f32.mxu0 %vm535_vm1, %v16537_v40 }
 0x542   : > { %24909 = vmatmul.mubr.msk.f32.gmra.mrb[8].mxu0 %vm535_vm1, %v16539_v41 }
 0x543   : > { %24911 = vmatprep.mubr.msk.f32.mxu0 %vm535_vm1, %v16541_v42  ;;  %v25354_v42 = vpack.c.bf16 %v16863_v34, %v16862_v32 }
 0x546   : > { %24912 = vmatmul.mubr.msk.f32.gmra.mrb[10].mxu0 %vm535_vm1, %v16543_v43 }
 0x547   : > { %24914 = vmatprep.mubr.msk.f32.mxu0 %vm535_vm1, %v16545_v44 }
 0x54a   : > { %24915 = vmatmul.mubr.msk.f32.gmra.mrb[12].mxu0 %vm535_vm1, %v16547_v45  ;;  %v17078_v45 = vld [vmem:[%s30271_s3 + $0x40] sm:$0xff] }
 0x54b   : > { %24917 = vmatprep.mubr.msk.f32.mxu0 %vm535_vm1, %v16549_v11  ;;  %v17079_v11 = vld [vmem:[%s30271_s3 + $0x48] sm:$0xff] }
 0x54c   : > { %v25358_v51 = vpack.c.bf16 %v17079_v11, %v17078_v45  ;;  %v17419_v45 = vld [vmem:[%s30271_s3 + $0xb8] sm:$0xff] }
 0x54e   : > { %24918 = vmatmul.mubr.msk.f32.gmra.mrb[14].mxu0 %vm535_vm1, %v16551_v46 }
 0x605   : > { %v24898_v62 = vpop.f32.mrb[0].mxu0 }
 0x606   : > { %v25616_v4 = vadd.f32 %v24898_v62, %v29468_v31  ;;  %v16670_v6 = vpop.f32.mrb[1].mxu0 }
 0x607   : > { %v25617_v10 = vadd.f32 %v16670_v6, %v29471_v33 }
 0x608   : > { %v16773_v12 = vadd.f32 %v25616_v4, %v29648_v0 }
 0x609   : > { %v16772_v13 = vadd.f32 %v25617_v10, %v29648_v0  ;;  %v24901_v14 = vpop.f32.mrb[2].mxu0 }
 0x60a   : > { %v16789_v15 = vmax.f32 %v16773_v12, 0.0  ;;  %v25618_v16 = vadd.f32 %v24901_v14, %v29474_v35  ;;  %v16680_v17 = vpop.f32.mrb[3].mxu0 }
 0x60b   : > { %v16788_v18 = vmax.f32 %v16772_v13, 0.0  ;;  %v25619_v19 = vadd.f32 %v16680_v17, %v29477_v37 }
 0x60c   : > { %16838 = vst.msk [vmem:[#allocation3 + $0x21] sm:$0xff] %vm16804_vm3, %v16789_v15  ;;  %v16775_v3 = vadd.f32 %v25618_v16, %v29648_v0 }
 0x60d   : > { %16837 = vst.msk [vmem:[#allocation3 + $0x19] sm:$0xff] %vm16804_vm3, %v16788_v18  ;;  %v16774_v31 = vadd.f32 %v25619_v19, %v29648_v0  ;;  %v24904_v33 = vpop.f32.mrb[4].mxu0 }
 0x60e   : > { %v16791_v20 = vmax.f32 %v16775_v3, 0.0  ;;  %v25620_v21 = vadd.f32 %v24904_v33, %v29497_v50  ;;  %v16690_v22 = vpop.f32.mrb[5].mxu0  ;;  %v16853_v3 = vld [vmem:[#allocation3] ss:$2 sm:$0xff] }
 0x60f   : > { %v16790_v23 = vmax.f32 %v16774_v31, 0.0  ;;  %v25621_v35 = vadd.f32 %v16690_v22, %v29500_v52 }
 0x610   : > { %16840 = vst.msk [vmem:[#allocation3 + $0x39] sm:$0xff] %vm16804_vm3, %v16791_v20  ;;  %v16777_v37 = vadd.f32 %v25620_v21, %v29648_v0  ;;  %v17191_v20 = vld [vmem:[%s30271_s3 + $0x60] sm:$0xff]  ;;  %v17192_v21 = vld [vmem:[%s30271_s3 + $0x68] sm:$0xff] }
 0x611   : > { %16839 = vst.msk [vmem:[#allocation3 + $0x31] sm:$0xff] %vm16804_vm3, %v16790_v23  ;;  %v16776_v24 = vadd.f32 %v25621_v35, %v29648_v0  ;;  %v24907_v25 = vpop.f32.mrb[6].mxu0  ;;  %v17071_v23 = vld [vmem:[#allocation3 + $0x2] ss:$2 sm:$0xff]  ;;  %v25366_v35 = vpack.c.bf16 %v17192_v21, %v17191_v20 }
 0x612   : > { %v16793_v59 = vmax.f32 %v16777_v37, 0.0  ;;  %v25622_v27 = vadd.f32 %v24907_v25, %v29503_v54  ;;  %v16700_v28 = vpop.f32.mrb[7].mxu0  ;;  %v17194_v25 = vld [vmem:[%s30271_s3 + $0x78] sm:$0xff] }
 0x613   : > { %v16792_v29 = vmax.f32 %v16776_v24, 0.0  ;;  %v25623_v50 = vadd.f32 %v16700_v28, %v29506_v56  ;;  %v17193_v24 = vld [vmem:[%s30271_s3 + $0x70] sm:$0xff]  ;;  %v17303_v28 = vld [vmem:[%s30271_s3 + $0x80] sm:$0xff] }
 0x614   : > { %16842 = vst.msk [vmem:[#allocation3 + $0x51] sm:$0xff] %vm16804_vm3, %v16793_v59  ;;  %v16779_v52 = vadd.f32 %v25622_v27, %v29648_v0  ;;  %v25370_v59 = vpack.c.bf16 %v17194_v25, %v17193_v24  ;;  %v17296_v11 = vld [vmem:[#allocation3 + $0x18] ss:$2 sm:$0xff] }
 0x615   : > { %16841 = vst.msk [vmem:[#allocation3 + $0x49] sm:$0xff] %vm16804_vm3, %v16792_v29  ;;  %v16778_v54 = vadd.f32 %v25623_v50, %v29648_v0  ;;  %v24910_v36 = vpop.f32.mrb[8].mxu0  ;;  %v17304_v29 = vld [vmem:[%s30271_s3 + $0x88] sm:$0xff]  ;;  %v17981_v25 = vld [vmem:[%s30271_s3 + $0x140] sm:$0xff] }
 0x616   : > { %v16795_v38 = vmax.f32 %v16779_v52, 0.0  ;;  %v25624_v56 = vadd.f32 %v24910_v36, %v29509_v58  ;;  %v16710_v39 = vpop.f32.mrb[9].mxu0  ;;  %v17184_v52 = vld [vmem:[#allocation3 + $0x3] ss:$2 sm:$0xff]  ;;  %v25374_v32 = vpack.c.bf16 %v17304_v29, %v17303_v28  ;;  %v17306_v36 = vld [vmem:[%s30271_s3 + $0x98] sm:$0xff] }
 0x617   : > { %v16794_v40 = vmax.f32 %v16778_v54, 0.0  ;;  %v25625_v41 = vadd.f32 %v16710_v39, %v29512_v60  ;;  %v17305_v54 = vld [vmem:[%s30271_s3 + $0x90] sm:$0xff]  ;;  %v17416_v39 = vld [vmem:[%s30271_s3 + $0xa0] sm:$0xff] }
 0x618   : > { %16844 = vst.msk [vmem:[#allocation3 + $0x69] sm:$0xff] %vm16804_vm3, %v16795_v38  ;;  %v16781_v43 = vadd.f32 %v25624_v56, %v29648_v0  ;;  %v16867_v44 = vld [vmem:[#allocation3 + $0x31] ss:$2 sm:$0xff]  ;;  %v16855_v33 = vld [vmem:[#allocation3 + $0x30] ss:$2 sm:$0xff]  ;;  %v25378_v38 = vpack.c.bf16 %v17306_v36, %v17305_v54  ;;  %v18094_v36 = vld [vmem:[%s30271_s3 + $0x160] sm:$0xff] }
 0x619   : > { %16843 = vst.msk [vmem:[#allocation3 + $0x61] sm:$0xff] %vm16804_vm3, %v16794_v40  ;;  %v16780_v58 = vadd.f32 %v25625_v41, %v29648_v0  ;;  %v24913_v46 = vpop.f32.mrb[10].mxu0  ;;  %24929 = vmatmul.mubr.msk.f32.vlgmr.msra.gmra.mrb[16].mxu1 %vm16804_vm3, %v16867_v44  ;;  %v17073_v27 = vld [vmem:[#allocation3 + $0x32] ss:$2 sm:$0xff]  ;;  %v17186_v56 = vld [vmem:[#allocation3 + $0x33] ss:$2 sm:$0xff] }
 0x61a   : > { %v16797_v60 = vmax.f32 %v16781_v43, 0.0  ;;  %v25626_v47 = vadd.f32 %v24913_v46, %v29515_v61  ;;  %v16720_v48 = vpop.f32.mrb[11].mxu0  ;;  %25353 = vmatpush3.bf16.msra.mxu1 %v25350_v9  ;;  %v17417_v40 = vld [vmem:[%s30271_s3 + $0xa8] sm:$0xff]  ;;  %v17418_v44 = vld [vmem:[%s30271_s3 + $0xb0] sm:$0xff] }
 0x61b   : > { %v16796_v49 = vmax.f32 %v16780_v58, 0.0  ;;  %v25627_v26 = vadd.f32 %v16720_v48, %v29518_v63  ;;  %25355 = vmatprep.subr.bf16.mxu1 %v25354_v42  ;;  %v25386_v58 = vpack.c.bf16 %v17419_v45, %v17418_v44 }
 0x61c   : > { %16846 = vst.msk [vmem:[#allocation3 + $0x81] sm:$0xff] %vm16804_vm3, %v16797_v60  ;;  %v16783_v53 = vadd.f32 %v25626_v47, %v29648_v0  ;;  %v17298_v46 = vld [vmem:[#allocation3 + $0x48] ss:$2 sm:$0xff]  ;;  %v17529_v60 = vld [vmem:[%s30271_s3 + $0xc0] sm:$0xff] }
 0x61d   : > { %16845 = vst.msk [vmem:[#allocation3 + $0x79] sm:$0xff] %vm16804_vm3, %v16796_v49  ;;  %v16782_v55 = vadd.f32 %v25627_v26, %v29648_v0  ;;  %v24916_v57 = vpop.f32.mrb[12].mxu0  ;;  %v17530_v47 = vld [vmem:[%s30271_s3 + $0xc8] sm:$0xff] }
 0x61e   : > { %v16799_v30 = vmax.f32 %v16783_v53, 0.0  ;;  %v25628_v62 = vadd.f32 %v24916_v57, %v29521_v2  ;;  %v16730_v61 = vpop.f32.mrb[13].mxu0  ;;  %25357 = vmatpush3.bf16.msra.mxu1 %v25354_v42  ;;  %v25382_v42 = vpack.c.bf16 %v17417_v40, %v17416_v39  ;;  %v25390_v49 = vpack.c.bf16 %v17530_v47, %v17529_v60  ;;  %v17532_v53 = vld [vmem:[%s30271_s3 + $0xd8] sm:$0xff] }
 0x61f   : > { %v16798_v9 = vmax.f32 %v16782_v55, 0.0  ;;  %v25629_v4 = vadd.f32 %v16730_v61, %v29524_v5  ;;  %25359 = vmatprep.subr.bf16.mxu1 %v25358_v51  ;;  %v17409_v55 = vld [vmem:[#allocation3 + $0x19] ss:$2 sm:$0xff]  ;;  %v17643_v61 = vld [vmem:[%s30271_s3 + $0xe8] sm:$0xff] }
 0x620   : > { %16848 = vst.msk [vmem:[#allocation3 + $0x99] sm:$0xff] %vm16804_vm3, %v16799_v30  ;;  %v16785_v63 = vadd.f32 %v25628_v62, %v29648_v0  ;;  %v16869_v6 = vld [vmem:[#allocation3 + $0x61] ss:$2 sm:$0xff]  ;;  %v16857_v22 = vld [vmem:[#allocation3 + $0x60] ss:$2 sm:$0xff] }
 0x621   : > { %16847 = vst.msk [vmem:[#allocation3 + $0x91] sm:$0xff] %vm16804_vm3, %v16798_v9  ;;  %v16784_v10 = vadd.f32 %v25629_v4, %v29648_v0  ;;  %v24919_v12 = vpop.f32.mrb[14].mxu0  ;;  %24931 = vmatprep.mubr.msk.f32.mxu1 %vm16804_vm3, %v16869_v6  ;;  %v17075_v50 = vld [vmem:[#allocation3 + $0x62] ss:$2 sm:$0xff]  ;;  %v17188_v41 = vld [vmem:[#allocation3 + $0x63] ss:$2 sm:$0xff] }
 0x622   : > { %v16801_v13 = vmax.f32 %v16785_v63, 0.0  ;;  %v25630_v2 = vadd.f32 %v24919_v12, %v29527_v7  ;;  %v16740_v14 = vpop.f32.mrb[15].mxu0  ;;  %v17080_v7 = vld [vmem:[%s30271_s3 + $0x50] sm:$0xff]  ;;  %v17642_v62 = vld [vmem:[%s30271_s3 + $0xe0] sm:$0xff] }
 0x623   : > { %v16800_v15 = vmax.f32 %v16784_v10, 0.0  ;;  %v25631_v5 = vadd.f32 %v16740_v14, %v29530_v8  ;;  %v17081_v8 = vld [vmem:[%s30271_s3 + $0x58] sm:$0xff]  ;;  %v17411_v30 = vld [vmem:[#allocation3 + $0x49] ss:$2 sm:$0xff]  ;;  %v25398_v4 = vpack.c.bf16 %v17643_v61, %v17642_v62  ;;  %v17755_v14 = vld [vmem:[%s30271_s3 + $0x100] sm:$0xff] }
 0x624   : > { %16850 = vst.msk [vmem:[#allocation3 + $0xb1] sm:$0xff] %vm16804_vm3, %v16801_v13  ;;  %v16787_v16 = vadd.f32 %v25630_v2, %v29648_v0  ;;  %v17300_v48 = vld [vmem:[#allocation3 + $0x78] ss:$2 sm:$0xff]  ;;  %v17413_v9 = vld [vmem:[#allocation3 + $0x79] ss:$2 sm:$0xff]  ;;  %v17644_v6 = vld [vmem:[%s30271_s3 + $0xf0] sm:$0xff] }
 0x625   : > { %16849 = vst.msk [vmem:[#allocation3 + $0xa9] sm:$0xff] %vm16804_vm3, %v16800_v15  ;;  %v16786_v17 = vadd.f32 %v25631_v5, %v29648_v0  ;;  %v25362_v0 = vpack.c.bf16 %v17081_v8, %v17080_v7  ;;  %v17645_v10 = vld [vmem:[%s30271_s3 + $0xf8] sm:$0xff]  ;;  %v17756_v15 = vld [vmem:[%s30271_s3 + $0x108] sm:$0xff]  ;;  %v17868_v8 = vld [vmem:[%s30271_s3 + $0x120] sm:$0xff] }
 0x626   : > { %v16803_v18 = vmax.f32 %v16787_v16, 0.0  ;;  %v17522_v12 = vld [vmem:[#allocation3 + $0x1a] ss:$2 sm:$0xff]  ;;  %v25402_v13 = vpack.c.bf16 %v17645_v10, %v17644_v6  ;;  %v17524_v2 = vld [vmem:[#allocation3 + $0x4a] ss:$2 sm:$0xff]  ;;  %v25406_v16 = vpack.c.bf16 %v17756_v15, %v17755_v14 }
 0x627   : > { %v16802_v19 = vmax.f32 %v16786_v17, 0.0  ;;  %v17526_v5 = vld [vmem:[#allocation3 + $0x7a] ss:$2 sm:$0xff]  ;;  %v17637_v7 = vld [vmem:[#allocation3 + $0x4b] ss:$2 sm:$0xff] }
 0x628   : > { %16852 = vst.msk [vmem:[#allocation3 + $0xc9] sm:$0xff] %vm16804_vm3, %v16803_v18  ;;  %v16871_v31 = vld [vmem:[#allocation3 + $0x91] ss:$2 sm:$0xff]  ;;  %v16859_v37 = vld [vmem:[#allocation3 + $0x90] ss:$2 sm:$0xff] }
 0x629   : > { %16851 = vst.msk [vmem:[#allocation3 + $0xc1] sm:$0xff] %vm16804_vm3, %v16802_v19  ;;  %24932 = vmatmul.mubr.msk.f32.gmra.mrb[18].mxu1 %vm16804_vm3, %v16871_v31  ;;  %v17077_v34 = vld [vmem:[#allocation3 + $0x92] ss:$2 sm:$0xff]  ;;  %v17190_v43 = vld [vmem:[#allocation3 + $0x93] ss:$2 sm:$0xff] }
 0x62a   : > { %24942 = vmatprep.mubr.msk.f32.mxu1 %vm16804_vm3, %v16853_v3  ;;  %v17757_v18 = vld [vmem:[%s30271_s3 + $0x110] sm:$0xff]  ;;  %v17758_v19 = vld [vmem:[%s30271_s3 + $0x118] sm:$0xff]  ;;  %v17750_v24 = vld [vmem:[#allocation3 + $0x60] ss:$2 sm:$0xff] }
 0x62b   : > { %v17635_v3 = vld [vmem:[#allocation3 + $0x1b] ss:$2 sm:$0xff]  ;;  %v25410_v31 = vpack.c.bf16 %v17758_v19, %v17757_v18  ;;  %v17976_v45 = vld [vmem:[#allocation3 + $0x62] ss:$2 sm:$0xff] }
 0x62c   : > { %v17302_v26 = vld [vmem:[#allocation3 + $0xa8] ss:$2 sm:$0xff]  ;;  %v17415_v63 = vld [vmem:[#allocation3 + $0xa9] ss:$2 sm:$0xff]  ;;  %v18202_v10 = vld [vmem:[#allocation3 + $0x78] ss:$2 sm:$0xff] }
 0x62d   : > { %24943 = vmatmul.mubr.msk.f32.vlgmr.msra.gmra.mrb[16].mxu1 %vm16804_vm3, %v16855_v33  ;;  %v17528_v17 = vld [vmem:[#allocation3 + $0xaa] ss:$2 sm:$0xff]  ;;  %v17639_v33 = vld [vmem:[#allocation3 + $0x7b] ss:$2 sm:$0xff]  ;;  %v17641_v21 = vld [vmem:[#allocation3 + $0xab] ss:$2 sm:$0xff] }
 0x62e   : > { %25361 = vmatpush3.bf16.msra.mxu1 %v25358_v51  ;;  %24945 = vmatprep.mubr.msk.f32.mxu1 %vm16804_vm3, %v16857_v22  ;;  %v17531_v51 = vld [vmem:[%s30271_s3 + $0xd0] sm:$0xff]  ;;  %v17863_v54 = vld [vmem:[#allocation3 + $0x61] ss:$2 sm:$0xff]  ;;  %v18206_v14 = vld [vmem:[#allocation3 + $0xd8] ss:$2 sm:$0xff] }
 0x62f   : > { %25363 = vmatprep.subr.bf16.mxu1 %v25362_v0  ;;  %v25394_v57 = vpack.c.bf16 %v17532_v53, %v17531_v51  ;;  %v17870_v22 = vld [vmem:[%s30271_s3 + $0x130] sm:$0xff]  ;;  %v18315_v19 = vld [vmem:[#allocation3 + $0x79] ss:$2 sm:$0xff] }
 0x630   : > { %v17754_v29 = vld [vmem:[#allocation3 + $0xc0] ss:$2 sm:$0xff]  ;;  %v17867_v40 = vld [vmem:[#allocation3 + $0xc1] ss:$2 sm:$0xff] }
 0x631   : > { %24946 = vmatmul.mubr.msk.f32.gmra.mrb[18].mxu1 %vm16804_vm3, %v16859_v37  ;;  %v17980_v47 = vld [vmem:[#allocation3 + $0xc2] ss:$2 sm:$0xff]  ;;  %v18089_v53 = vld [vmem:[#allocation3 + $0x63] ss:$2 sm:$0xff] }
 0x632   : > { %25365 = vmatpush3.bf16.msra.mxu1 %v25362_v0  ;;  %24956 = vmatprep.mubr.msk.f32.mxu1 %vm16804_vm3, %v17071_v23  ;;  %v17869_v0 = vld [vmem:[%s30271_s3 + $0x128] sm:$0xff]  ;;  %v17871_v23 = vld [vmem:[%s30271_s3 + $0x138] sm:$0xff] }
 0x633   : > { %25367 = vmatprep.subr.bf16.mxu1 %v25366_v35  ;;  %v25414_v20 = vpack.c.bf16 %v17869_v0, %v17868_v8  ;;  %v25418_v37 = vpack.c.bf16 %v17871_v23, %v17870_v22  ;;  %v18093_v61 = vld [vmem:[#allocation3 + $0xc3] ss:$2 sm:$0xff]  ;;  %v18428_v23 = vld [vmem:[#allocation3 + $0x7a] ss:$2 sm:$0xff] }
 0x634   : > { %v18319_v8 = vld [vmem:[#allocation3 + $0xd9] ss:$2 sm:$0xff] }
 0x635   : > { %24957 = vmatmul.mubr.msk.f32.vlgmr.msra.gmra.mrb[16].mxu1 %vm16804_vm3, %v17073_v27  ;;  %v17752_v27 = vld [vmem:[#allocation3 + $0x90] ss:$2 sm:$0xff] }
 0x636   : > { %25369 = vmatpush3.bf16.msra.mxu1 %v25366_v35  ;;  %24959 = vmatprep.mubr.msk.f32.mxu1 %vm16804_vm3, %v17075_v50  ;;  %v17748_v35 = vld [vmem:[#allocation3 + $0x30] ss:$2 sm:$0xff] }
 0x637   : > { %25371 = vmatprep.subr.bf16.mxu1 %v25370_v59  ;;  %v17983_v50 = vld [vmem:[%s30271_s3 + $0x150] sm:$0xff] }
 0x639   : > { %24960 = vmatmul.mubr.msk.f32.gmra.mrb[18].mxu1 %vm16804_vm3, %v17077_v34 }
 0x63a   : > { %25373 = vmatpush3.bf16.msra.mxu1 %v25370_v59  ;;  %24970 = vmatprep.mubr.msk.f32.mxu1 %vm16804_vm3, %v17184_v52  ;;  %v17982_v59 = vld [vmem:[%s30271_s3 + $0x148] sm:$0xff]  ;;  %v17984_v52 = vld [vmem:[%s30271_s3 + $0x158] sm:$0xff] }
 0x63b   : > { %25375 = vmatprep.subr.bf16.mxu1 %v25374_v32  ;;  %v25422_v28 = vpack.c.bf16 %v17982_v59, %v17981_v25  ;;  %v25426_v34 = vpack.c.bf16 %v17984_v52, %v17983_v50  ;;  %v18432_v25 = vld [vmem:[#allocation3 + $0xda] ss:$2 sm:$0xff]  ;;  %v18545_v50 = vld [vmem:[#allocation3 + $0xdb] ss:$2 sm:$0xff]  ;;  %v18703_v52 = vld [vmem:[%s30273_s5 + $0x50] sm:$0xff] }
 0x63d   : > { %24971 = vmatmul.mubr.msk.f32.vlgmr.msra.gmra.mrb[16].mxu1 %vm16804_vm3, %v17186_v56  ;;  %v17865_v56 = vld [vmem:[#allocation3 + $0x91] ss:$2 sm:$0xff] }
 0x63e   : > { %25377 = vmatpush3.bf16.msra.mxu1 %v25374_v32  ;;  %24973 = vmatprep.mubr.msk.f32.mxu1 %vm16804_vm3, %v17188_v41  ;;  %v17861_v32 = vld [vmem:[#allocation3 + $0x31] ss:$2 sm:$0xff] }
 0x63f   : > { %25379 = vmatprep.subr.bf16.mxu1 %v25378_v38  ;;  %v18096_v41 = vld [vmem:[%s30271_s3 + $0x170] sm:$0xff] }
 0x641   : > { %24974 = vmatmul.mubr.msk.f32.gmra.mrb[18].mxu1 %vm16804_vm3, %v17190_v43  ;;  %v17974_v43 = vld [vmem:[#allocation3 + $0x32] ss:$2 sm:$0xff] }
 0x642   : > { %25381 = vmatpush3.bf16.msra.mxu1 %v25378_v38  ;;  %24984 = vmatprep.mubr.msk.f32.mxu1 %vm16804_vm3, %v17296_v11  ;;  %v18095_v38 = vld [vmem:[%s30271_s3 + $0x168] sm:$0xff]  ;;  %v18207_v11 = vld [vmem:[%s30271_s3 + $0x180] sm:$0xff] }
 0x643   : > { %25383 = vmatprep.subr.bf16.mxu1 %v25382_v42  ;;  %v25430_v39 = vpack.c.bf16 %v18095_v38, %v18094_v36  ;;  %v18706_v36 = vld [vmem:[%s30273_s5 + $0x68] sm:$0xff] }
 0x645   : > { %24985 = vmatmul.mubr.msk.f32.vlgmr.msra.gmra.mrb[16].mxu1 %vm16804_vm3, %v17298_v46  ;;  %v17978_v46 = vld [vmem:[#allocation3 + $0x92] ss:$2 sm:$0xff] }
 0x646   : > { %25385 = vmatpush3.bf16.msra.mxu1 %v25382_v42  ;;  %24987 = vmatprep.mubr.msk.f32.mxu1 %vm16804_vm3, %v17300_v48  ;;  %v18097_v42 = vld [vmem:[%s30271_s3 + $0x178] sm:$0xff]  ;;  %v18209_v48 = vld [vmem:[%s30271_s3 + $0x190] sm:$0xff] }
 0x647   : > { %25387 = vmatprep.subr.bf16.mxu1 %v25386_v58  ;;  %v25434_v44 = vpack.c.bf16 %v18097_v42, %v18096_v41  ;;  %v18690_v41 = vld [vmem:[%s30273_s5 + $0x8] sm:$0xff]  ;;  %v18697_v42 = vld [vmem:[#allocation4 + $0x1] sm:$0xff] }
 0x649   : > { %24988 = vmatmul.mubr.msk.f32.gmra.mrb[18].mxu1 %vm16804_vm3, %v17302_v26  ;;  %v18087_v26 = vld [vmem:[#allocation3 + $0x33] ss:$2 sm:$0xff] }
 0x64a   : > { %25389 = vmatpush3.bf16.msra.mxu1 %v25386_v58  ;;  %24998 = vmatprep.mubr.msk.f32.mxu1 %vm16804_vm3, %v17409_v55  ;;  %v18208_v58 = vld [vmem:[%s30271_s3 + $0x188] sm:$0xff]  ;;  %v18320_v55 = vld [vmem:[%s30271_s3 + $0x1a0] sm:$0xff] }
 0x64b   : > { %25391 = vmatprep.subr.bf16.mxu1 %v25390_v49  ;;  %v25438_v60 = vpack.c.bf16 %v18208_v58, %v18207_v11 }
 0x64d   : > { %24999 = vmatmul.mubr.msk.f32.vlgmr.msra.gmra.mrb[16].mxu1 %vm16804_vm3, %v17411_v30  ;;  %v18091_v30 = vld [vmem:[#allocation3 + $0x93] ss:$2 sm:$0xff] }
 0x64e   : > { %25393 = vmatpush3.bf16.msra.mxu1 %v25390_v49  ;;  %25001 = vmatprep.mubr.msk.f32.mxu1 %vm16804_vm3, %v17413_v9  ;;  %v18210_v49 = vld [vmem:[%s30271_s3 + $0x198] sm:$0xff]  ;;  %v18322_v9 = vld [vmem:[%s30271_s3 + $0x1b0] sm:$0xff] }
 0x64f   : > { %25395 = vmatprep.subr.bf16.mxu1 %v25394_v57  ;;  %v25442_v51 = vpack.c.bf16 %v18210_v49, %v18209_v48 }
 0x651   : > { %25002 = vmatmul.mubr.msk.f32.gmra.mrb[18].mxu1 %vm16804_vm3, %v17415_v63  ;;  %v18200_v63 = vld [vmem:[#allocation3 + $0x48] ss:$2 sm:$0xff] }
 0x652   : > { %25397 = vmatpush3.bf16.msra.mxu1 %v25394_v57  ;;  %25012 = vmatprep.mubr.msk.f32.mxu1 %vm16804_vm3, %v17522_v12  ;;  %v18321_v57 = vld [vmem:[%s30271_s3 + $0x1a8] sm:$0xff]  ;;  %v18433_v12 = vld [vmem:[%s30271_s3 + $0x1c0] sm:$0xff] }
 0x653   : > { %25399 = vmatprep.subr.bf16.mxu1 %v25398_v4  ;;  %v25446_v62 = vpack.c.bf16 %v18321_v57, %v18320_v55  ;;  %v18691_v57 = vld [vmem:[%s30273_s5 + $0x10] sm:$0xff] }
 0x655   : > { %25013 = vmatmul.mubr.msk.f32.vlgmr.msra.gmra.mrb[16].mxu1 %vm16804_vm3, %v17524_v2  ;;  %v18204_v2 = vld [vmem:[#allocation3 + $0xa8] ss:$2 sm:$0xff] }
 0x656   : > { %25401 = vmatpush3.bf16.msra.mxu1 %v25398_v4  ;;  %25015 = vmatprep.mubr.msk.f32.mxu1 %vm16804_vm3, %v17526_v5  ;;  %v18323_v4 = vld [vmem:[%s30271_s3 + $0x1b8] sm:$0xff]  ;;  %v18435_v5 = vld [vmem:[%s30271_s3 + $0x1d0] sm:$0xff] }
 0x657   : > { %25403 = vmatprep.subr.bf16.mxu1 %v25402_v13  ;;  %v25450_v6 = vpack.c.bf16 %v18323_v4, %v18322_v9  ;;  %v18693_v9 = vld [vmem:[%s30273_s5 + $0x20] sm:$0xff]  ;;  %v18694_v4 = vld [vmem:[%s30273_s5 + $0x28] sm:$0xff] }
 0x659   : > { %25016 = vmatmul.mubr.msk.f32.gmra.mrb[18].mxu1 %vm16804_vm3, %v17528_v17  ;;  %v18313_v17 = vld [vmem:[#allocation3 + $0x49] ss:$2 sm:$0xff] }
 0x65a   : > { %25405 = vmatpush3.bf16.msra.mxu1 %v25402_v13  ;;  %25026 = vmatprep.mubr.msk.f32.mxu1 %vm16804_vm3, %v17635_v3  ;;  %v18434_v13 = vld [vmem:[%s30271_s3 + $0x1c8] sm:$0xff]  ;;  %v18546_v3 = vld [vmem:[%s30271_s3 + $0x1e0] sm:$0xff] }
 0x65b   : > { %25407 = vmatprep.subr.bf16.mxu1 %v25406_v16  ;;  %v25454_v15 = vpack.c.bf16 %v18434_v13, %v18433_v12  ;;  %v18695_v13 = vld [vmem:[%s30273_s5 + $0x30] sm:$0xff] }
 0x65d   : > { %25027 = vmatmul.mubr.msk.f32.vlgmr.msra.gmra.mrb[16].mxu1 %vm16804_vm3, %v17637_v7  ;;  %v18317_v7 = vld [vmem:[#allocation3 + $0xa9] ss:$2 sm:$0xff] }
 0x65e   : > { %25409 = vmatpush3.bf16.msra.mxu1 %v25406_v16  ;;  %25029 = vmatprep.mubr.msk.f32.mxu1 %vm16804_vm3, %v17639_v33  ;;  %v18436_v16 = vld [vmem:[%s30271_s3 + $0x1d8] sm:$0xff]  ;;  %v18548_v33 = vld [vmem:[%s30271_s3 + $0x1f0] sm:$0xff] }
 0x65f   : > { %25411 = vmatprep.subr.bf16.mxu1 %v25410_v31  ;;  %v25458_v18 = vpack.c.bf16 %v18436_v16, %v18435_v5  ;;  %v18908_v5 = vld [vmem:[%s30273_s5 + $0x88] sm:$0xff] }
 0x661   : > { %25030 = vmatmul.mubr.msk.f32.gmra.mrb[18].mxu1 %vm16804_vm3, %v17641_v21  ;;  %v18426_v21 = vld [vmem:[#allocation3 + $0x4a] ss:$2 sm:$0xff] }
 0x662   : > { %25413 = vmatpush3.bf16.msra.mxu1 %v25410_v31  ;;  %25040 = vmatprep.mubr.msk.f32.mxu1 %vm16804_vm3, %v17748_v35  ;;  %v18547_v31 = vld [vmem:[%s30271_s3 + $0x1e8] sm:$0xff]  ;;  %v18701_v35 = vld [vmem:[%s30273_s5 + $0x40] sm:$0xff] }
 0x663   : > { %25415 = vmatprep.subr.bf16.mxu1 %v25414_v20  ;;  %v25462_v0 = vpack.c.bf16 %v18547_v31, %v18546_v3  ;;  %v18911_v31 = vld [vmem:[%s30273_s5 + $0xa0] sm:$0xff] }
 0x665   : > { %25041 = vmatmul.mubr.msk.f32.vlgmr.msra.gmra.mrb[16].mxu1 %vm16804_vm3, %v17750_v24  ;;  %v18430_v24 = vld [vmem:[#allocation3 + $0xaa] ss:$2 sm:$0xff] }
 0x666   : > { %25417 = vmatpush3.bf16.msra.mxu1 %v25414_v20  ;;  %25043 = vmatprep.mubr.msk.f32.mxu1 %vm16804_vm3, %v17752_v27  ;;  %v18549_v20 = vld [vmem:[%s30271_s3 + $0x1f8] sm:$0xff] }
 0x667   : > { %25419 = vmatprep.subr.bf16.mxu1 %v25418_v37  ;;  %v25466_v22 = vpack.c.bf16 %v18549_v20, %v18548_v33  ;;  %v18539_v27 = vld [vmem:[#allocation3 + $0x4b] ss:$2 sm:$0xff] }
 0x668   : > { %v18903_v33 = vld [vmem:[#allocation4 + $0x2] sm:$0xff] }
 0x669   : > { %25044 = vmatmul.mubr.msk.f32.gmra.mrb[18].mxu1 %vm16804_vm3, %v17754_v29  ;;  %v18543_v29 = vld [vmem:[#allocation3 + $0xab] ss:$2 sm:$0xff] }
 0x66a   : > { %25421 = vmatpush3.bf16.msra.mxu1 %v25418_v37  ;;  %25054 = vmatprep.mubr.msk.f32.mxu1 %vm16804_vm3, %v17861_v32  ;;  %v18702_v37 = vld [vmem:[%s30273_s5 + $0x48] sm:$0xff]  ;;  %v18704_v32 = vld [vmem:[%s30273_s5 + $0x58] sm:$0xff] }
 0x66b   : > { %25423 = vmatprep.subr.bf16.mxu1 %v25422_v28  ;;  %v25470_v59 = vpack.c.bf16 %v18702_v37, %v18701_v35  ;;  %v19020_v35 = vld [vmem:[%s30273_s5 + $0xc0] sm:$0xff]  ;;  %v19021_v37 = vld [vmem:[%s30273_s5 + $0xc8] sm:$0xff] }
 0x66d   : > { %25055 = vmatmul.mubr.msk.f32.vlgmr.msra.gmra.mrb[16].mxu1 %vm16804_vm3, %v17863_v54  ;;  %v18705_v54 = vld [vmem:[%s30273_s5 + $0x60] sm:$0xff] }
 0x66e   : > { %25425 = vmatpush3.bf16.msra.mxu1 %v25422_v28  ;;  %25057 = vmatprep.mubr.msk.f32.mxu1 %vm16804_vm3, %v17865_v56  ;;  %v18541_v28 = vld [vmem:[#allocation3 + $0x7b] ss:$2 sm:$0xff]  ;;  %v25478_v38 = vpack.c.bf16 %v18706_v36, %v18705_v54  ;;  %v18707_v56 = vld [vmem:[%s30273_s5 + $0x70] sm:$0xff] }
 0x66f   : > { %25427 = vmatprep.subr.bf16.mxu1 %v25426_v34  ;;  %v19026_v54 = vld [vmem:[%s30273_s5 + $0xf0] sm:$0xff]  ;;  %v19027_v36 = vld [vmem:[%s30273_s5 + $0xf8] sm:$0xff] }
 0x671   : > { %25058 = vmatmul.mubr.msk.f32.gmra.mrb[18].mxu1 %vm16804_vm3, %v17867_v40  ;;  %v18689_v40 = vld [vmem:[%s30273_s5] sm:$0xff] }
 0x672   : > { %25429 = vmatpush3.bf16.msra.mxu1 %v25426_v34  ;;  %25068 = vmatprep.mubr.msk.f32.mxu1 %vm16804_vm3, %v17974_v43  ;;  %v25474_v34 = vpack.c.bf16 %v18704_v32, %v18703_v52  ;;  %v25486_v43 = vpack.c.bf16 %v18690_v41, %v18689_v40  ;;  %v19135_v40 = vld [vmem:[%s30273_s5 + $0x110] sm:$0xff]  ;;  %v19136_v41 = vld [vmem:[%s30273_s5 + $0x118] sm:$0xff] }
 0x673   : > { %25431 = vmatprep.subr.bf16.mxu1 %v25430_v39 }
 0x675   : > { %25069 = vmatmul.mubr.msk.f32.vlgmr.msra.gmra.mrb[16].mxu1 %vm16804_vm3, %v17976_v45 }
 0x676   : > { %25433 = vmatpush3.bf16.msra.mxu1 %v25430_v39  ;;  %25071 = vmatprep.mubr.msk.f32.mxu1 %vm16804_vm3, %v17978_v46  ;;  %v25482_v39 = vpack.c.bf16 %v18708_v1, %v18707_v56  ;;  %v19133_v56 = vld [vmem:[%s30273_s5 + $0x100] sm:$0xff]  ;;  %v19134_v1 = vld [vmem:[%s30273_s5 + $0x108] sm:$0xff] }
 0x677   : > { %25435 = vmatprep.subr.bf16.mxu1 %v25434_v44 }
 0x679   : > { %25072 = vmatmul.mubr.msk.f32.gmra.mrb[18].mxu1 %vm16804_vm3, %v17980_v47 }
 0x67a   : > { %25437 = vmatpush3.bf16.msra.mxu1 %v25434_v44  ;;  %25082 = vmatprep.mubr.msk.f32.mxu1 %vm16804_vm3, %v18087_v26  ;;  %v21882_v44 = vld [vmem:[%s30272_s4] ss:$0 sm:$0xff] }
 0x67b   : > { %25439 = vmatprep.subr.bf16.mxu1 %v25438_v60 }
 0x67d   : > { %25083 = vmatmul.mubr.msk.f32.vlgmr.msra.gmra.mrb[16].mxu1 %vm16804_vm3, %v18089_v53 }
 0x67e   : > { %25441 = vmatpush3.bf16.msra.mxu1 %v25438_v60  ;;  %25085 = vmatprep.mubr.msk.f32.mxu1 %vm16804_vm3, %v18091_v30  ;;  %v18692_v30 = vld [vmem:[%s30273_s5 + $0x18] sm:$0xff] }
 0x67f   : > { %25443 = vmatprep.subr.bf16.mxu1 %v25442_v51 }
 0x681   : > { %25086 = vmatmul.mubr.msk.f32.gmra.mrb[18].mxu1 %vm16804_vm3, %v18093_v61 }
 0x682   : > { %25445 = vmatpush3.bf16.msra.mxu1 %v25442_v51  ;;  %25096 = vmatprep.mubr.msk.f32.mxu1 %vm16804_vm3, %v18200_v63 }
 0x683   : > { %25447 = vmatprep.subr.bf16.mxu1 %v25446_v62 }
 0x685   : > { %25097 = vmatmul.mubr.msk.f32.vlgmr.msra.gmra.mrb[16].mxu1 %vm16804_vm3, %v18202_v10  ;;  %v18685_v10 = vld [vmem:[#allocation4] sm:$0xff] }
 0x686   : > { %25449 = vmatpush3.bf16.msra.mxu1 %v25446_v62  ;;  %25099 = vmatprep.mubr.msk.f32.mxu1 %vm16804_vm3, %v18204_v2  ;;  %v25490_v62 = vpack.c.bf16 %v18692_v30, %v18691_v57  ;;  %v18696_v2 = vld [vmem:[%s30273_s5 + $0x38] sm:$0xff]  ;;  %v19251_v57 = vld [vmem:[%s30273_s5 + $0x168] sm:$0xff] }
 0x687   : > { %25451 = vmatprep.subr.bf16.mxu1 %v25450_v6 }
 0x689   : > { %25100 = vmatmul.mubr.msk.f32.gmra.mrb[18].mxu1 %vm16804_vm3, %v18206_v14  ;;  %v25498_v14 = vpack.c.bf16 %v18696_v2, %v18695_v13  ;;  %v19362_v2 = vld [vmem:[%s30273_s5 + $0x190] sm:$0xff] }
 0x68a   : > { %25453 = vmatpush3.bf16.msra.mxu1 %v25450_v6  ;;  %25110 = vmatprep.mubr.msk.f32.mxu1 %vm16804_vm3, %v18313_v17  ;;  %v25494_v6 = vpack.c.bf16 %v18694_v4, %v18693_v9  ;;  %v18909_v17 = vld [vmem:[%s30273_s5 + $0x90] sm:$0xff]  ;;  %v19253_v9 = vld [vmem:[%s30273_s5 + $0x178] sm:$0xff] }
 0x68b   : > { %25455 = vmatprep.subr.bf16.mxu1 %v25454_v15 }
 0x68d   : > { %25111 = vmatmul.mubr.msk.f32.vlgmr.msra.gmra.mrb[16].mxu1 %vm16804_vm3, %v18315_v19 }
 0x68e   : > { %25457 = vmatpush3.bf16.msra.mxu1 %v25454_v15  ;;  %25113 = vmatprep.mubr.msk.f32.mxu1 %vm16804_vm3, %v18317_v7  ;;  %v18907_v15 = vld [vmem:[%s30273_s5 + $0x80] sm:$0xff]  ;;  %v18912_v7 = vld [vmem:[%s30273_s5 + $0xa8] sm:$0xff] }
 0x68f   : > { %25459 = vmatprep.subr.bf16.mxu1 %v25458_v18  ;;  %v25502_v16 = vpack.c.bf16 %v18908_v5, %v18907_v15  ;;  %v19364_v5 = vld [vmem:[%s30273_s5 + $0x1a0] sm:$0xff] }
 0x691   : > { %25114 = vmatmul.mubr.msk.f32.gmra.mrb[18].mxu1 %vm16804_vm3, %v18319_v8 }
 0x692   : > { %25461 = vmatpush3.bf16.msra.mxu1 %v25458_v18  ;;  %25124 = vmatprep.mubr.msk.f32.mxu1 %vm16804_vm3, %v18426_v21  ;;  %v18910_v18 = vld [vmem:[%s30273_s5 + $0x98] sm:$0xff]  ;;  %v18913_v21 = vld [vmem:[%s30273_s5 + $0xb0] sm:$0xff] }
 0x693   : > { %25463 = vmatprep.subr.bf16.mxu1 %v25462_v0  ;;  %v25506_v19 = vpack.c.bf16 %v18910_v18, %v18909_v17 }
 0x695   : > { %25125 = vmatmul.mubr.msk.f32.vlgmr.msra.gmra.mrb[16].mxu1 %vm16804_vm3, %v18428_v23 }
 0x696   : > { %25465 = vmatpush3.bf16.msra.mxu1 %v25462_v0  ;;  %25127 = vmatprep.mubr.msk.f32.mxu1 %vm16804_vm3, %v18430_v24  ;;  %v25510_v0 = vpack.c.bf16 %v18912_v7, %v18911_v31  ;;  %v25518_v24 = vpack.c.bf16 %v19021_v37, %v19020_v35  ;;  %v19473_v7 = vld [vmem:[%s30273_s5 + $0x1c0] sm:$0xff]  ;;  %v19478_v35 = vld [vmem:[%s30273_s5 + $0x1e8] sm:$0xff] }
 0x697   : > { %25467 = vmatprep.subr.bf16.mxu1 %v25466_v22  ;;  %v19359_v37 = vld [vmem:[#allocation4 + $0x50] sm:$0xff] }
 0x699   : > { %25128 = vmatmul.mubr.msk.f32.gmra.mrb[18].mxu1 %vm16804_vm3, %v18432_v25  ;;  %v19022_v25 = vld [vmem:[%s30273_s5 + $0xd0] sm:$0xff] }
 0x69a   : > { %25469 = vmatpush3.bf16.msra.mxu1 %v25466_v22  ;;  %25138 = vmatprep.mubr.msk.f32.mxu1 %vm16804_vm3, %v18539_v27  ;;  %v18914_v22 = vld [vmem:[%s30273_s5 + $0xb8] sm:$0xff] }
 0x69b   : > { %25471 = vmatprep.subr.bf16.mxu1 %v25470_v59  ;;  %v25514_v23 = vpack.c.bf16 %v18914_v22, %v18913_v21  ;;  %v19475_v21 = vld [vmem:[%s30273_s5 + $0x1d0] sm:$0xff] }
 0x69d   : > { %25139 = vmatmul.mubr.msk.f32.vlgmr.msra.gmra.mrb[16].mxu1 %vm16804_vm3, %v18541_v28 }
 0x69e   : > { %25141 = vmatprep.mubr.msk.f32.mxu1 %vm16804_vm3, %v18543_v29  ;;  %25473 = vmatpush3.bf16.msra.mxu1 %v25470_v59  ;;  %v19023_v59 = vld [vmem:[%s30273_s5 + $0xd8] sm:$0xff]  ;;  %v19024_v29 = vld [vmem:[%s30273_s5 + $0xe0] sm:$0xff] }
 0x69f   : > { %25475 = vmatprep.subr.bf16.mxu1 %v25474_v34  ;;  %v25522_v27 = vpack.c.bf16 %v19023_v59, %v19022_v25  ;;  %v19479_v25 = vld [vmem:[%s30273_s5 + $0x1f0] sm:$0xff]  ;;  %v19480_v59 = vld [vmem:[%s30273_s5 + $0x1f8] sm:$0xff] }
 0x6a1   : > { %25142 = vmatmul.mubr.msk.f32.gmra.mrb[18].mxu1 %vm16804_vm3, %v18545_v50  ;;  %v19025_v50 = vld [vmem:[%s30273_s5 + $0xe8] sm:$0xff] }
 0x6a2   : > { %25477 = vmatpush3.bf16.msra.mxu1 %v25474_v34  ;;  %25160 = vmatprep.mubr.msk.f32.mxu1 %vm18666_vm5, %v18697_v42  ;;  %v25526_v32 = vpack.c.bf16 %v19025_v50, %v19024_v29  ;;  %v25538_v42 = vpack.c.bf16 %v19136_v41, %v19135_v40  ;;  %v19588_v50 = vld [vmem:[%s30273_s5 + $0x210] sm:$0xff]  ;;  %v19585_v40 = vld [vmem:[#allocation4 + $0x52] sm:$0xff]  ;;  %v21919_v41 = vld [vmem:[%s30274_s6] ss:$0 sm:$0xff] }
 0x6a3   : > { %25479 = vmatprep.subr.bf16.mxu1 %v25478_v38 }
 0x6a6   : > { %25481 = vmatpush3.bf16.msra.mxu1 %v25478_v38  ;;  %v25530_v38 = vpack.c.bf16 %v19027_v36, %v19026_v54  ;;  %v19590_v54 = vld [vmem:[%s30273_s5 + $0x220] sm:$0xff]  ;;  %v19591_v36 = vld [vmem:[%s30273_s5 + $0x228] sm:$0xff] }
 0x6a7   : > { %25483 = vmatprep.subr.bf16.mxu1 %v25482_v39 }
 0x6aa   : > { %25485 = vmatpush3.bf16.msra.mxu1 %v25482_v39  ;;  %v25534_v39 = vpack.c.bf16 %v19134_v1, %v19133_v56  ;;  %v25606_v56 = vpack.c.bf16 %v19591_v36, %v19590_v54  ;;  %v19592_v1 = vld [vmem:[%s30273_s5 + $0x230] sm:$0xff] }
 0x6ab   : > { %25487 = vmatprep.subr.bf16.mxu1 %v25486_v43 }
 0x770   : > { %v25140_v45 = vpop.f32.mrb[16].mxu1 }
 0x771   : > { %v18659_v11 = vadd.f32 %v25140_v45, %v21882_v44  ;;  %v18628_v58 = vpop.f32.mrb[17].mxu1 }
 0x772   : > { %v18658_v46 = vadd.f32 %v21882_v44, %v18628_v58  ;;  %v19139_v58 = vld [vmem:[%s30273_s5 + $0x130] sm:$0xff] }
 0x773   : > { %v18663_v60 = vmax.f32 %v18659_v11, 0.0 }
 0x774   : > { %v18662_v47 = vmax.f32 %v18658_v46, 0.0  ;;  %v25143_v48 = vpop.f32.mrb[18].mxu1  ;;  %v19140_v46 = vld [vmem:[%s30273_s5 + $0x138] sm:$0xff] }
 0x775   : > { %18682 = vst.msk [vmem:[#allocation4 + $0x21] sm:$0xff] %vm18666_vm5, %v18663_v60  ;;  %v18661_v49 = vadd.f32 %v25143_v48, %v21882_v44  ;;  %v18638_v26 = vpop.f32.mrb[19].mxu1  ;;  %v25546_v60 = vpack.c.bf16 %v19140_v46, %v19139_v58  ;;  %v19247_v48 = vld [vmem:[%s30273_s5 + $0x148] sm:$0xff] }
 0x776   : > { %18681 = vst.msk [vmem:[#allocation4 + $0x11] sm:$0xff] %vm18666_vm5, %v18662_v47  ;;  %v18660_v51 = vadd.f32 %v21882_v44, %v18638_v26  ;;  %v19138_v44 = vld [vmem:[%s30273_s5 + $0x128] sm:$0xff]  ;;  %v19246_v47 = vld [vmem:[%s30273_s5 + $0x140] sm:$0xff]  ;;  %v19248_v26 = vld [vmem:[%s30273_s5 + $0x150] sm:$0xff] }
 0x777   : > { %v18665_v53 = vmax.f32 %v18661_v49, 0.0  ;;  %v25550_v49 = vpack.c.bf16 %v19247_v48, %v19246_v47 }
 0x778   : > { %v18664_v55 = vmax.f32 %v18660_v51, 0.0  ;;  %v19249_v51 = vld [vmem:[%s30273_s5 + $0x158] sm:$0xff] }
 0x779   : > { %18684 = vst.msk [vmem:[#allocation4 + $0x41] sm:$0xff] %vm18666_vm5, %v18665_v53  ;;  %v25554_v53 = vpack.c.bf16 %v19249_v51, %v19248_v26 }
 0x77a   : > { %18683 = vst.msk [vmem:[#allocation4 + $0x31] sm:$0xff] %vm18666_vm5, %v18664_v55  ;;  %v19250_v55 = vld [vmem:[%s30273_s5 + $0x160] sm:$0xff] }
 0x77b   : > { %v25558_v30 = vpack.c.bf16 %v19251_v57, %v19250_v55 }
 0x77c   : > { %v30007_v63 = vld [vmem:[#allocation4 + $0x21] sm:$0xff] }
 0x77d   : > { %v29997_v61 = vld [vmem:[#allocation4 + $0x11] sm:$0xff]  ;;  %v30041_v8 = vld [vmem:[#allocation4 + $0x20] sm:$0xff] }
 0x77e   : > { %25161 = vmatmul.mubr.msk.f32.vlgmr.msra.gmra.mrb[20].mxu1 %vm18666_vm5, %v29997_v61  ;;  %v18686_v3 = vld [vmem:[#allocation4 + $0x10] sm:$0xff]  ;;  %v30078_v52 = vld [vmem:[#allocation4 + $0x22] sm:$0xff] }
 0x77f   : > { %25489 = vmatpush3.bf16.msra.mxu1 %v25486_v43  ;;  %25163 = vmatprep.mubr.msk.f32.mxu1 %vm18666_vm5, %v30007_v63  ;;  %v30068_v28 = vld [vmem:[#allocation4 + $0x12] sm:$0xff] }
 0x780   : > { %25491 = vmatprep.subr.bf16.mxu1 %v25490_v62  ;;  %v19137_v43 = vld [vmem:[%s30273_s5 + $0x120] sm:$0xff]  ;;  %v30115_v11 = vld [vmem:[#allocation4 + $0x40] sm:$0xff] }
 0x781   : > { %v30011_v12 = vld [vmem:[#allocation4 + $0x31] sm:$0xff]  ;;  %v25542_v45 = vpack.c.bf16 %v19138_v44, %v19137_v43  ;;  %v19245_v18 = vld [vmem:[#allocation4 + $0x42] sm:$0xff] }
 0x782   : > { %25164 = vmatmul.mubr.msk.f32.gmra.mrb[22].mxu1 %vm18666_vm5, %v30011_v12  ;;  %v30045_v20 = vld [vmem:[#allocation4 + $0x30] sm:$0xff] }
 0x783   : > { %25493 = vmatpush3.bf16.msra.mxu1 %v25490_v62  ;;  %25182 = vmatprep.mubr.msk.f32.mxu1 %vm18666_vm5, %v18685_v10  ;;  %v30082_v34 = vld [vmem:[#allocation4 + $0x32] sm:$0xff]  ;;  %v30149_v62 = vld [vmem:[#allocation4 + $0x41] sm:$0xff] }
 0x784   : > { %25495 = vmatprep.subr.bf16.mxu1 %v25494_v6  ;;  %v19361_v10 = vld [vmem:[%s30273_s5 + $0x188] sm:$0xff] }
 0x787   : > { %25497 = vmatpush3.bf16.msra.mxu1 %v25494_v6  ;;  %v19360_v6 = vld [vmem:[%s30273_s5 + $0x180] sm:$0xff] }
 0x788   : > { %25499 = vmatprep.subr.bf16.mxu1 %v25498_v14  ;;  %v25566_v13 = vpack.c.bf16 %v19361_v10, %v19360_v6 }
 0x78b   : > { %25501 = vmatpush3.bf16.msra.mxu1 %v25498_v14  ;;  %v19363_v14 = vld [vmem:[%s30273_s5 + $0x198] sm:$0xff] }
 0x78c   : > { %25503 = vmatprep.subr.bf16.mxu1 %v25502_v16  ;;  %v25570_v15 = vpack.c.bf16 %v19363_v14, %v19362_v2 }
 0x78e   : > { %25183 = vmatmul.mubr.msk.f32.vlgmr.msra.gmra.mrb[20].mxu1 %vm18666_vm5, %v18686_v3 }
 0x78f   : > { %25185 = vmatprep.mubr.msk.f32.mxu1 %vm18666_vm5, %v30041_v8  ;;  %25505 = vmatpush3.bf16.msra.mxu1 %v25502_v16  ;;  %v19365_v16 = vld [vmem:[%s30273_s5 + $0x1a8] sm:$0xff] }
 0x790   : > { %25507 = vmatprep.subr.bf16.mxu1 %v25506_v19  ;;  %v25574_v17 = vpack.c.bf16 %v19365_v16, %v19364_v5 }
 0x792   : > { %25186 = vmatmul.mubr.msk.f32.gmra.mrb[22].mxu1 %vm18666_vm5, %v30045_v20 }
 0x793   : > { %25509 = vmatpush3.bf16.msra.mxu1 %v25506_v19  ;;  %25204 = vmatprep.mubr.msk.f32.mxu1 %vm18666_vm5, %v18903_v33  ;;  %v19366_v19 = vld [vmem:[%s30273_s5 + $0x1b0] sm:$0xff] }
 0x794   : > { %25511 = vmatprep.subr.bf16.mxu1 %v25510_v0 }
 0x797   : > { %25513 = vmatpush3.bf16.msra.mxu1 %v25510_v0  ;;  %v19474_v0 = vld [vmem:[%s30273_s5 + $0x1c8] sm:$0xff] }
 0x798   : > { %25515 = vmatprep.subr.bf16.mxu1 %v25514_v23  ;;  %v25582_v33 = vpack.c.bf16 %v19474_v0, %v19473_v7 }
 0x79b   : > { %25517 = vmatpush3.bf16.msra.mxu1 %v25514_v23  ;;  %v19477_v23 = vld [vmem:[%s30273_s5 + $0x1e0] sm:$0xff] }
 0x79c   : > { %25519 = vmatprep.subr.bf16.mxu1 %v25518_v24 }
 0x79e   : > { %25205 = vmatmul.mubr.msk.f32.vlgmr.msra.gmra.mrb[20].mxu1 %vm18666_vm5, %v30068_v28 }
 0x79f   : > { %25207 = vmatprep.mubr.msk.f32.mxu1 %vm18666_vm5, %v30078_v52  ;;  %25521 = vmatpush3.bf16.msra.mxu1 %v25518_v24  ;;  %v25590_v24 = vpack.c.bf16 %v19478_v35, %v19477_v23 }
 0x7a0   : > { %25523 = vmatprep.subr.bf16.mxu1 %v25522_v27 }
 0x7a2   : > { %25208 = vmatmul.mubr.msk.f32.gmra.mrb[22].mxu1 %vm18666_vm5, %v30082_v34 }
 0x7a3   : > { %25525 = vmatpush3.bf16.msra.mxu1 %v25522_v27  ;;  %25226 = vmatprep.mubr.msk.f32.mxu1 %vm18666_vm5, %v18686_v3  ;;  %v19367_v3 = vld [vmem:[%s30273_s5 + $0x1b8] sm:$0xff]  ;;  %v19586_v27 = vld [vmem:[%s30273_s5 + $0x200] sm:$0xff] }
 0x7a4   : > { %25527 = vmatprep.subr.bf16.mxu1 %v25526_v32  ;;  %v25578_v31 = vpack.c.bf16 %v19367_v3, %v19366_v19 }
 0x7a7   : > { %25529 = vmatpush3.bf16.msra.mxu1 %v25526_v32 }
 0x7a8   : > { %25531 = vmatprep.subr.bf16.mxu1 %v25530_v38 }
 0x7ab   : > { %25533 = vmatpush3.bf16.msra.mxu1 %v25530_v38  ;;  %v19472_v38 = vld [vmem:[#allocation4 + $0x51] sm:$0xff] }
 0x7ac   : > { %25535 = vmatprep.subr.bf16.mxu1 %v25534_v39 }
 0x7ae   : > { %25227 = vmatmul.mubr.msk.f32.vlgmr.msra.gmra.mrb[20].mxu1 %vm18666_vm5, %v30041_v8 }
 0x7af   : > { %25229 = vmatprep.mubr.msk.f32.mxu1 %vm18666_vm5, %v30045_v20  ;;  %25537 = vmatpush3.bf16.msra.mxu1 %v25534_v39  ;;  %v19593_v39 = vld [vmem:[%s30273_s5 + $0x238] sm:$0xff] }
 0x7b0   : > { %25539 = vmatprep.subr.bf16.mxu1 %v25538_v42 }
 0x7b2   : > { %25230 = vmatmul.mubr.msk.f32.gmra.mrb[22].mxu1 %vm18666_vm5, %v30115_v11 }
 0x7b3   : > { %25541 = vmatpush3.bf16.msra.mxu1 %v25538_v42  ;;  %25248 = vmatprep.mubr.msk.f32.mxu1 %vm18666_vm5, %v29997_v61  ;;  %v19252_v61 = vld [vmem:[%s30273_s5 + $0x170] sm:$0xff] }
 0x7b4   : > { %25543 = vmatprep.subr.bf16.mxu1 %v25542_v45  ;;  %v25562_v4 = vpack.c.bf16 %v19253_v9, %v19252_v61 }
 0x7b7   : > { %25545 = vmatpush3.bf16.msra.mxu1 %v25542_v45 }
 0x7b8   : > { %25547 = vmatprep.subr.bf16.mxu1 %v25546_v60 }
 0x7bb   : > { %25549 = vmatpush3.bf16.msra.mxu1 %v25546_v60 }
 0x7bc   : > { %25551 = vmatprep.subr.bf16.mxu1 %v25550_v49 }
 0x7be   : > { %25249 = vmatmul.mubr.msk.f32.vlgmr.msra.gmra.mrb[20].mxu1 %vm18666_vm5, %v30007_v63 }
 0x7bf   : > { %25251 = vmatprep.mubr.msk.f32.mxu1 %vm18666_vm5, %v30011_v12  ;;  %25553 = vmatpush3.bf16.msra.mxu1 %v25550_v49 }
 0x7c0   : > { %25555 = vmatprep.subr.bf16.mxu1 %v25554_v53 }
 0x7c2   : > { %25252 = vmatmul.mubr.msk.f32.gmra.mrb[22].mxu1 %vm18666_vm5, %v30149_v62 }
 0x7c3   : > { %25557 = vmatpush3.bf16.msra.mxu1 %v25554_v53  ;;  %25270 = vmatprep.mubr.msk.f32.mxu1 %vm18666_vm5, %v30068_v28  ;;  %v19587_v28 = vld [vmem:[%s30273_s5 + $0x208] sm:$0xff] }
 0x7c4   : > { %25559 = vmatprep.subr.bf16.mxu1 %v25558_v30  ;;  %v25598_v29 = vpack.c.bf16 %v19587_v28, %v19586_v27 }
 0x7c7   : > { %25561 = vmatpush3.bf16.msra.mxu1 %v25558_v30 }
 0x7c8   : > { %25563 = vmatprep.subr.bf16.mxu1 %v25562_v4 }
 0x7cb   : > { %25565 = vmatpush3.bf16.msra.mxu1 %v25562_v4 }
 0x7cc   : > { %25567 = vmatprep.subr.bf16.mxu1 %v25566_v13 }
 0x7ce   : > { %25271 = vmatmul.mubr.msk.f32.vlgmr.msra.gmra.mrb[20].mxu1 %vm18666_vm5, %v30078_v52 }
 0x7cf   : > { %25273 = vmatprep.mubr.msk.f32.mxu1 %vm18666_vm5, %v30082_v34  ;;  %25569 = vmatpush3.bf16.msra.mxu1 %v25566_v13 }
 0x7d0   : > { %25571 = vmatprep.subr.bf16.mxu1 %v25570_v15 }
 0x7d2   : > { %25274 = vmatmul.mubr.msk.f32.gmra.mrb[22].mxu1 %vm18666_vm5, %v19245_v18 }
 0x7d3   : > { %25573 = vmatpush3.bf16.msra.mxu1 %v25570_v15  ;;  %25292 = vmatprep.mubr.msk.f32.mxu1 %vm18666_vm5, %v30041_v8  ;;  %v19476_v8 = vld [vmem:[%s30273_s5 + $0x1d8] sm:$0xff] }
 0x7d4   : > { %25575 = vmatprep.subr.bf16.mxu1 %v25574_v17  ;;  %v25586_v22 = vpack.c.bf16 %v19476_v8, %v19475_v21 }
 0x7d7   : > { %25577 = vmatpush3.bf16.msra.mxu1 %v25574_v17 }
 0x7d8   : > { %25579 = vmatprep.subr.bf16.mxu1 %v25578_v31 }
 0x7db   : > { %25581 = vmatpush3.bf16.msra.mxu1 %v25578_v31 }
 0x7dc   : > { %25583 = vmatprep.subr.bf16.mxu1 %v25582_v33 }
 0x7de   : > { %25293 = vmatmul.mubr.msk.f32.vlgmr.msra.gmra.mrb[20].mxu1 %vm18666_vm5, %v30045_v20  ;;  %v25594_v20 = vpack.c.bf16 %v19480_v59, %v19479_v25 }
 0x7df   : > { %25295 = vmatprep.mubr.msk.f32.mxu1 %vm18666_vm5, %v30115_v11  ;;  %25585 = vmatpush3.bf16.msra.mxu1 %v25582_v33 }
 0x7e0   : > { %25587 = vmatprep.subr.bf16.mxu1 %v25586_v22 }
 0x7e2   : > { %25296 = vmatmul.mubr.msk.f32.gmra.mrb[22].mxu1 %vm18666_vm5, %v19359_v37 }
 0x7e3   : > { %25589 = vmatpush3.bf16.msra.mxu1 %v25586_v22  ;;  %25314 = vmatprep.mubr.msk.f32.mxu1 %vm18666_vm5, %v30007_v63  ;;  %v19589_v63 = vld [vmem:[%s30273_s5 + $0x218] sm:$0xff] }
 0x7e4   : > { %25591 = vmatprep.subr.bf16.mxu1 %v25590_v24  ;;  %v25602_v32 = vpack.c.bf16 %v19589_v63, %v19588_v50 }
 0x7e7   : > { %25593 = vmatpush3.bf16.msra.mxu1 %v25590_v24 }
 0x7e8   : > { %25595 = vmatprep.subr.bf16.mxu1 %v25594_v20 }
 0x7eb   : > { %25597 = vmatpush3.bf16.msra.mxu1 %v25594_v20 }
 0x7ec   : > { %25599 = vmatprep.subr.bf16.mxu1 %v25598_v29 }
 0x7ee   : > { %25315 = vmatmul.mubr.msk.f32.vlgmr.msra.gmra.mrb[20].mxu1 %vm18666_vm5, %v30011_v12  ;;  %v25610_v12 = vpack.c.bf16 %v19593_v39, %v19592_v1 }
 0x7ef   : > { %25317 = vmatprep.mubr.msk.f32.mxu1 %vm18666_vm5, %v30149_v62  ;;  %25601 = vmatpush3.bf16.msra.mxu1 %v25598_v29 }
 0x7f0   : > { %25603 = vmatprep.subr.bf16.mxu1 %v25602_v32 }
 0x7f2   : > { %25318 = vmatmul.mubr.msk.f32.gmra.mrb[22].mxu1 %vm18666_vm5, %v19472_v38 }
 0x7f3   : > { %25605 = vmatpush3.bf16.msra.mxu1 %v25602_v32  ;;  %25336 = vmatprep.mubr.msk.f32.mxu1 %vm18666_vm5, %v30078_v52 }
 0x7f4   : > { %25607 = vmatprep.subr.bf16.mxu1 %v25606_v56 }
 0x7f7   : > { %25609 = vmatpush3.bf16.msra.mxu1 %v25606_v56 }
 0x7f8   : > { %25611 = vmatprep.subr.bf16.mxu1 %v25610_v12 }
 0x7fb   : > { %25613 = vmatpush3.bf16.msra.mxu1 %v25610_v12 }
 0x7fe   : > { %25337 = vmatmul.mubr.msk.f32.vlgmr.msra.gmra.mrb[20].mxu1 %vm18666_vm5, %v30082_v34 }
 0x7ff   : > { %25339 = vmatprep.mubr.msk.f32.mxu1 %vm18666_vm5, %v19245_v18 }
 0x802   : > { %25340 = vmatmul.mubr.msk.f32.gmra.mrb[22].mxu1 %vm18666_vm5, %v19585_v40 }
 0x8d1   : > { %v25338_v42 = vpop.f32.mrb[20].mxu1 }
 0x8d2   : > { %v19703_v52 = vadd.f32 %v25338_v42, %v21919_v41  ;;  %v19672_v43 = vpop.f32.mrb[21].mxu1 }
 0x8d3   : > { %v19702_v44 = vadd.f32 %v21919_v41, %v19672_v43 }
 0x8d4   : > { %v19707_v45 = vmax.f32 %v19703_v52, 0.0 }
 0x8d5   : > { %v19706_v34 = vmax.f32 %v19702_v44, 0.0  ;;  %v25341_v11 = vpop.f32.mrb[22].mxu1 }
 0x8d6   : > { %v21929_v58 = vpack.c.bf16 %v19707_v45, %v19707_v45  ;;  %v19705_v46 = vadd.f32 %v25341_v11, %v21919_v41  ;;  %v19682_v60 = vpop.f32.mrb[23].mxu1 }
 0x8d7   : > { %v21928_v47 = vpack.c.bf16 %v19706_v34, %v19706_v34  ;;  %v19704_v48 = vadd.f32 %v21919_v41, %v19682_v60 }
 0x8d8   : > { %19728 = vst.msk [vmem:[%s278_s22 + $0x4] sm:$0xf] %vm19726_vm7, %v21929_v58  ;;  %v19709_v49 = vmax.f32 %v19705_v46, 0.0 }
 0x8d9   : > { %19727 = vst.msk [vmem:[%s278_s22] sm:$0xf] %vm19726_vm7, %v21928_v47  ;;  %v19708_v26 = vmax.f32 %v19704_v48, 0.0 }
 0x8da   : > { %v21931_v51 = vpack.c.bf16 %v19709_v49, %v19709_v49 }
 0x8db   : > { %v21930_v53 = vpack.c.bf16 %v19708_v26, %v19708_v26 }
 0x8dc   : > { %19730 = vst.msk [vmem:[%s278_s22 + $0xc] sm:$0xf] %vm19726_vm7, %v21931_v51 }
 0x8dd   : > { %19729 = vst.msk [vmem:[%s278_s22 + $0x8] sm:$0xf] %vm19726_vm7, %v21930_v53 }
 0x8de PF: > { %s17_s24 = sadd.s32 1, %s26732_s24  }
 0x8df   : > { %p14_p4 = scmp.ge.s32.totalorder %s17_s24, 4  }
 0x8e1   :  { %16 = sbr.rel (!%p14_p4) target bundleno = 1 (0x1), region = 1166 }

</bundles_post_ra>
